<compile_context>
chip_gen: v5e
topology: v5e:2x2
jax: 0.10.0
libtpu: 0.0.40
codegen_flags: <defaults>
</compile_context>

<pallas_src>
import functools

import jax
import jax.numpy as jnp
from jax.experimental import pallas as pl
from jax.experimental.pallas import tpu as pltpu


# ---------------------------------------------------------------------------
# Fused Pallas kernel: one grid step == one sample's full forward pass.
# ---------------------------------------------------------------------------

def _mnv3_fused_kernel(
    # inputs -----------------------------------------------------------------
    xph_ref,                                   # (1, H+1, W+1, 4*Cin) f32 polyphase padded image
    stem_w_ref, stem_b_ref,                    # (4, 4*Cin, 16) bf16, (1, 16) f32
    ds_dw_w_ref, ds_dw_b_ref,                  # (9, 16) f32, (1, 16) f32
    ds_pw_w_ref, ds_pw_b_ref,                  # (16, 16) bf16, (1, 16) f32
    ir1_pw_w_ref, ir1_pw_b_ref,                # (16, 64) bf16, (1, 64) f32
    ir1_dw_w_ref, ir1_dw_b_ref,                # (9, 64) f32, (1, 64) f32
    se_r_w_ref, se_r_b_ref,                    # (64, 16) bf16, (1, 16) f32
    se_e_w_ref, se_e_b_ref,                    # (16, 64) bf16, (1, 64) f32
    ir1_pwl_w_ref, ir1_pwl_b_ref,              # (64, 24) bf16, (1, 24) f32
    ir2_pw_w_ref, ir2_pw_b_ref,                # (24, 72) bf16, (1, 72) f32
    ir2_dw_w_ref, ir2_dw_b_ref,                # (9, 72) f32, (1, 72) f32
    ir2_pwl_w_ref, ir2_pwl_b_ref,              # (72, 24) bf16, (1, 24) f32
    head_w_ref, head_b_ref,                    # (24, 128) bf16, (1, 128) f32
    cls_w_ref, cls_b_ref,                      # (128, NC) bf16, (1, NC) f32
    # output -----------------------------------------------------------------
    out_ref,                                   # (1, 1, NC) f32
    # scratch ----------------------------------------------------------------
    pad16_ref, pad64_ref, pad72_ref,           # (H+2, W+16, C) f32 padded tiles
    *, H, W):
  """Whole (simplified) MobileNetV3 forward for one sample."""
  f32 = jnp.float32
  bf16 = jnp.bfloat16
  M = H * W
  inv_hw = 1.0 / float(M)

  def pw(x2d, w_ref, b_ref, relu):
    """1x1 conv + folded-BN bias: bf16 MXU matmul, f32 accumulate/epilogue."""
    y = jnp.dot(x2d.astype(bf16), w_ref[...],
                preferred_element_type=f32) + b_ref[...]
    return jnp.maximum(y, 0.0) if relu else y

  def dwconv(x2d, pad_ref, w_ref, b_ref):
    """Depthwise 3x3 (stride 1, pad 1) + folded-BN bias + ReLU, f32 on the VPU.

    The tile is staged into a zero-padded VMEM scratch so all nine taps are
    plain static VMEM reads (zero padding handles the borders; no masks, no
    HBM traffic).  Data lives at rows [1, H+1) and columns [8, 8+W).
    """
    C = x2d.shape[-1]
    pad_ref[...] = jnp.zeros(pad_ref.shape, f32)
    pad_ref[1:H + 1, 8:8 + W, :] = x2d.reshape(H, W, C)
    w = w_ref[...]                                     # (9, C), BN scale folded
    acc = jnp.zeros((H, W, C), f32)
    for kh in range(3):
      for kw in range(3):
        tap = pad_ref[kh:kh + H, 7 + kw:7 + kw + W, :]
        wk = w[3 * kh + kw:3 * kh + kw + 1, :].reshape(1, 1, C)
        acc = acc + tap * wk
    y = acc.reshape(M, C) + b_ref[...]
    return jnp.maximum(y, 0.0)

  def sigmoid(z):
    # exp + approx reciprocal -> both on the (otherwise idle) EUP slot.
    return pl.reciprocal(1.0 + jnp.exp(-z), approx=True)

  # ---- conv_stem (3x3, stride 2) + bn1 + act1(ReLU) -------------------------
  # The stride-2 conv was polyphase-decomposed in the wrapper; here it is a
  # 2x2 stride-1 conv over the 4 even/odd phases -> 4 small bf16 matmuls.
  cph = xph_ref.shape[-1]
  cstem = stem_b_ref.shape[-1]
  acc = jnp.zeros((M, cstem), f32)
  for a in range(2):
    for b in range(2):
      tap = xph_ref[:, a:a + H, b:b + W, :].reshape(M, cph)
      acc = acc + jnp.dot(tap.astype(bf16), stem_w_ref[2 * a + b],
                          preferred_element_type=f32)
  x = jnp.maximum(acc + stem_b_ref[...], 0.0)                        # (M, 16)

  # ---- block 0: depthwise separable, residual (16 -> 16) --------------------
  shortcut = x
  y = dwconv(x, pad16_ref, ds_dw_w_ref, ds_dw_b_ref)
  x = pw(y, ds_pw_w_ref, ds_pw_b_ref, relu=False) + shortcut         # fused add

  # ---- block 1: inverted residual + SE (16 -> 64 -> 24, no residual) --------
  y = pw(x, ir1_pw_w_ref, ir1_pw_b_ref, relu=True)                   # (M, 64)
  y = dwconv(y, pad64_ref, ir1_dw_w_ref, ir1_dw_b_ref)
  pooled = jnp.sum(y, axis=0, keepdims=True) * inv_hw                # (1, 64)
  r = pw(pooled, se_r_w_ref, se_r_b_ref, relu=True)                  # (1, 16)
  gate = sigmoid(pw(r, se_e_w_ref, se_e_b_ref, relu=False))          # (1, 64)
  y = y * gate                                                       # in-VMEM broadcast
  x = pw(y, ir1_pwl_w_ref, ir1_pwl_b_ref, relu=False)                # (M, 24)

  # ---- block 2: inverted residual (24 -> 72 -> 24), residual ----------------
  shortcut = x
  y = pw(x, ir2_pw_w_ref, ir2_pw_b_ref, relu=True)                   # (M, 72)
  y = dwconv(y, pad72_ref, ir2_dw_w_ref, ir2_dw_b_ref)
  x = pw(y, ir2_pwl_w_ref, ir2_pwl_b_ref, relu=False) + shortcut     # fused add

  # ---- efficient head: global pool -> conv_head(1x1+bias) -> ReLU -> classifier
  pooled = jnp.sum(x, axis=0, keepdims=True) * inv_hw                # (1, 24)
  feat = pw(pooled, head_w_ref, head_b_ref, relu=True)               # (1, 128)
  logits = pw(feat, cls_w_ref, cls_b_ref, relu=False)                # (1, NC)
  out_ref[...] = logits.reshape(1, 1, -1)


# ---------------------------------------------------------------------------
# Parameters (deterministic, synthetic; BatchNorm in eval mode)
# ---------------------------------------------------------------------------

def init_params(key):
  it = iter(jax.random.split(key, 64))

  def nrm(shape, s=0.2):
    return (s * jax.random.normal(next(it), shape)).astype(jnp.float32)

  def bn(c, eps=1e-5):
    gamma = 1.0 + 0.1 * jax.random.normal(next(it), (c,))
    beta = 0.1 * jax.random.normal(next(it), (c,))
    mean = 0.05 * jax.random.normal(next(it), (c,))
    var = 1.0 + 0.1 * jax.random.uniform(next(it), (c,))
    scale = gamma / jnp.sqrt(var + eps)
    bias = beta - mean * scale
    return scale.astype(jnp.float32), bias.astype(jnp.float32)

  p = {}
  # conv_stem: 3 -> 16, 3x3 stride 2, pad 1 ; bn1
  p["stem_w"] = nrm((3, 3, 3, 16))
  p["stem_bn"] = bn(16)
  # block 0: depthwise-separable, 16 -> 16, stride 1 (residual)
  p["ds_dw_w"] = nrm((3, 3, 16))
  p["ds_dw_bn"] = bn(16)
  p["ds_pw_w"] = nrm((16, 16))
  p["ds_pw_bn"] = bn(16)
  # block 1: inverted residual with SE, 16 -> (expand 64) -> 24
  p["ir1_pw_w"] = nrm((16, 64))
  p["ir1_pw_bn"] = bn(64)
  p["ir1_dw_w"] = nrm((3, 3, 64))
  p["ir1_dw_bn"] = bn(64)
  p["ir1_se_r_w"] = nrm((64, 16))
  p["ir1_se_r_b"] = nrm((16,), 0.1)
  p["ir1_se_e_w"] = nrm((16, 64))
  p["ir1_se_e_b"] = nrm((64,), 0.1)
  p["ir1_pwl_w"] = nrm((64, 24))
  p["ir1_pwl_bn"] = bn(24)
  # block 2: inverted residual, 24 -> (expand 72) -> 24 (residual)
  p["ir2_pw_w"] = nrm((24, 72))
  p["ir2_pw_bn"] = bn(72)
  p["ir2_dw_w"] = nrm((3, 3, 72))
  p["ir2_dw_bn"] = bn(72)
  p["ir2_pwl_w"] = nrm((72, 24))
  p["ir2_pwl_bn"] = bn(24)
  # efficient head: conv_head 24 -> 128 (1x1, bias, no BN), classifier 128 -> 10
  p["head_w"] = nrm((24, 128))
  p["head_b"] = nrm((128,), 0.1)
  p["cls_w"] = nrm((128, 10))
  p["cls_b"] = nrm((10,), 0.1)
  return p


def prepare_params(p):
  """Fold BN scales into conv weights, cast MXU weights to bf16, rearrange
  the stride-2 stem conv into its 4 polyphase tap matrices.  Done once."""
  f32, bf16 = jnp.float32, jnp.bfloat16
  out = {}

  def fold_pw(w, bn_):
    s, b = bn_
    return (w.astype(f32) * s[None, :]).astype(bf16), b.reshape(1, -1).astype(f32)

  def fold_dw(w, bn_):
    s, b = bn_
    c = w.shape[-1]
    return ((w.astype(f32) * s[None, None, :]).reshape(9, c).astype(f32),
            b.reshape(1, -1).astype(f32))

  # stem: (3,3,Cin,Cout) with BN scale folded -> 4 polyphase tap matrices.
  s, b = p["stem_bn"]
  w = p["stem_w"].astype(f32) * s[None, None, None, :]
  cin, cout = w.shape[2], w.shape[3]
  w4 = jnp.zeros((2, 2, 4, cin, cout), f32)
  for a in range(2):
    for bb in range(2):
      for pa in range(2):
        for pb in range(2):
          kh, kw = 2 * a + pa, 2 * bb + pb
          if kh <= 2 and kw <= 2:
            w4 = w4.at[a, bb, 2 * pa + pb].set(w[kh, kw])
  out["stem_w"] = w4.reshape(4, 4 * cin, cout).astype(bf16)
  out["stem_b"] = b.reshape(1, -1).astype(f32)

  out["ds_dw_w"], out["ds_dw_b"] = fold_dw(p["ds_dw_w"], p["ds_dw_bn"])
  out["ds_pw_w"], out["ds_pw_b"] = fold_pw(p["ds_pw_w"], p["ds_pw_bn"])

  out["ir1_pw_w"], out["ir1_pw_b"] = fold_pw(p["ir1_pw_w"], p["ir1_pw_bn"])
  out["ir1_dw_w"], out["ir1_dw_b"] = fold_dw(p["ir1_dw_w"], p["ir1_dw_bn"])
  out["se_r_w"] = p["ir1_se_r_w"].astype(bf16)
  out["se_r_b"] = p["ir1_se_r_b"].reshape(1, -1).astype(f32)
  out["se_e_w"] = p["ir1_se_e_w"].astype(bf16)
  out["se_e_b"] = p["ir1_se_e_b"].reshape(1, -1).astype(f32)
  out["ir1_pwl_w"], out["ir1_pwl_b"] = fold_pw(p["ir1_pwl_w"], p["ir1_pwl_bn"])

  out["ir2_pw_w"], out["ir2_pw_b"] = fold_pw(p["ir2_pw_w"], p["ir2_pw_bn"])
  out["ir2_dw_w"], out["ir2_dw_b"] = fold_dw(p["ir2_dw_w"], p["ir2_dw_bn"])
  out["ir2_pwl_w"], out["ir2_pwl_b"] = fold_pw(p["ir2_pwl_w"], p["ir2_pwl_bn"])

  out["head_w"] = p["head_w"].astype(bf16)
  out["head_b"] = p["head_b"].reshape(1, -1).astype(f32)
  out["cls_w"] = p["cls_w"].astype(bf16)
  out["cls_b"] = p["cls_b"].reshape(1, -1).astype(f32)
  return out


# ---------------------------------------------------------------------------
# Forward pass wrapper (only layout glue lives here)
# ---------------------------------------------------------------------------

_WEIGHT_ORDER = [
    "stem_w", "stem_b",
    "ds_dw_w", "ds_dw_b", "ds_pw_w", "ds_pw_b",
    "ir1_pw_w", "ir1_pw_b", "ir1_dw_w", "ir1_dw_b",
    "se_r_w", "se_r_b", "se_e_w", "se_e_b",
    "ir1_pwl_w", "ir1_pwl_b",
    "ir2_pw_w", "ir2_pw_b", "ir2_dw_w", "ir2_dw_b",
    "ir2_pwl_w", "ir2_pwl_b",
    "head_w", "head_b", "cls_w", "cls_b",
]


def mobilenetv3_forward(prep, x_nchw):
  # NCHW (PyTorch) -> NHWC
  x = jnp.transpose(x_nchw, (0, 2, 3, 1)).astype(jnp.float32)
  N, Hi, Wi, _ = x.shape
  H, W = Hi // 2, Wi // 2        # spatial size after the stride-2 stem

  # Polyphase (space-to-depth) decomposition of the stride-2 stem conv input:
  # pad by 1, split even/odd phases, concat on channels.  1x data copy only.
  xp = jnp.pad(x, ((0, 0), (1, 1), (1, 1), (0, 0)))
  phases = [xp[:, a::2, b::2, :] for a in (0, 1) for b in (0, 1)]
  xph = jnp.concatenate(phases, axis=-1)               # (N, H+1, W+1, 4*Cin)
  Hp, Wp, Cph = xph.shape[1], xph.shape[2], xph.shape[3]

  weights = [prep[k] for k in _WEIGHT_ORDER]
  nc = prep["cls_b"].shape[-1]

  def const_spec(shape):
    nd = len(shape)
    return pl.BlockSpec(shape, lambda n, _nd=nd: (0,) * _nd)

  in_specs = [pl.BlockSpec((1, Hp, Wp, Cph), lambda n: (n, 0, 0, 0))]
  in_specs += [const_spec(w.shape) for w in weights]

  grid_spec = pltpu.PrefetchScalarGridSpec(
      num_scalar_prefetch=0,
      grid=(N,),
      in_specs=in_specs,
      out_specs=pl.BlockSpec((1, 1, nc), lambda n: (n, 0, 0)),
      scratch_shapes=[
          pltpu.VMEM((H + 2, W + 16, 16), jnp.float32),
          pltpu.VMEM((H + 2, W + 16, 64), jnp.float32),
          pltpu.VMEM((H + 2, W + 16, 72), jnp.float32),
      ],
  )

  out = pl.pallas_call(
      functools.partial(_mnv3_fused_kernel, H=H, W=W),
      out_shape=jax.ShapeDtypeStruct((N, 1, nc), jnp.float32),
      grid_spec=grid_spec,
      compiler_params=pltpu.CompilerParams(
          dimension_semantics=("parallel",)),
  )(xph, *weights)

  # flatten(1) of the PyTorch module: (N, 1, NC) -> (N, NC)
  return out.reshape(N, nc)


# ---------------------------------------------------------------------------

if __name__ == "__main__":
  key = jax.random.PRNGKey(0)
  pkey, xkey = jax.random.split(key)
  params = init_params(pkey)
  prep = prepare_params(params)

  x = jax.random.normal(xkey, (2, 3, 32, 32), jnp.float32)  # NCHW like PyTorch

  fwd = jax.jit(mobilenetv3_forward)
  logits = fwd(prep, x)
  jax.block_until_ready(logits)

  assert logits.shape == (2, 10), logits.shape
  assert bool(jnp.all(jnp.isfinite(logits)))
  print("KERNEL_OK")
</pallas_src>

<mosaic_0001>
module attributes {stable_mosaic.version = 11 : i64} {
  func.func @_mnv3_fused_kernel(%arg0: i32, %arg1: memref<1x17x17x12xf32, #tpu.memory_space<vmem>>, %arg2: memref<4x12x16xbf16, #tpu.memory_space<vmem>>, %arg3: memref<1x16xf32, #tpu.memory_space<vmem>>, %arg4: memref<9x16xf32, #tpu.memory_space<vmem>>, %arg5: memref<1x16xf32, #tpu.memory_space<vmem>>, %arg6: memref<16x16xbf16, #tpu.memory_space<vmem>>, %arg7: memref<1x16xf32, #tpu.memory_space<vmem>>, %arg8: memref<16x64xbf16, #tpu.memory_space<vmem>>, %arg9: memref<1x64xf32, #tpu.memory_space<vmem>>, %arg10: memref<9x64xf32, #tpu.memory_space<vmem>>, %arg11: memref<1x64xf32, #tpu.memory_space<vmem>>, %arg12: memref<64x16xbf16, #tpu.memory_space<vmem>>, %arg13: memref<1x16xf32, #tpu.memory_space<vmem>>, %arg14: memref<16x64xbf16, #tpu.memory_space<vmem>>, %arg15: memref<1x64xf32, #tpu.memory_space<vmem>>, %arg16: memref<64x24xbf16, #tpu.memory_space<vmem>>, %arg17: memref<1x24xf32, #tpu.memory_space<vmem>>, %arg18: memref<24x72xbf16, #tpu.memory_space<vmem>>, %arg19: memref<1x72xf32, #tpu.memory_space<vmem>>, %arg20: memref<9x72xf32, #tpu.memory_space<vmem>>, %arg21: memref<1x72xf32, #tpu.memory_space<vmem>>, %arg22: memref<72x24xbf16, #tpu.memory_space<vmem>>, %arg23: memref<1x24xf32, #tpu.memory_space<vmem>>, %arg24: memref<24x128xbf16, #tpu.memory_space<vmem>>, %arg25: memref<1x128xf32, #tpu.memory_space<vmem>>, %arg26: memref<128x10xbf16, #tpu.memory_space<vmem>>, %arg27: memref<1x10xf32, #tpu.memory_space<vmem>>, %arg28: memref<1x1x10xf32, #tpu.memory_space<vmem>>, %arg29: memref<18x32x16xf32, #tpu.memory_space<vmem>>, %arg30: memref<18x32x64xf32, #tpu.memory_space<vmem>>, %arg31: memref<18x32x72xf32, #tpu.memory_space<vmem>>) attributes {dimension_semantics = [#tpu.dimension_semantics<parallel>], iteration_bounds = array<i64: 2>, scalar_prefetch = 0 : i64, scratch_operands = 3 : i64, tpu.core_type = #tpu.core_type<tc>, window_params = [{transform_indices = @transform_0, window_bounds = array<i64: 1, 17, 17, 12>}, {pipeline_mode = #tpu.pipeline_mode<synchronous>, transform_indices = @transform_1, window_bounds = array<i64: 4, 12, 16>}, {pipeline_mode = #tpu.pipeline_mode<synchronous>, transform_indices = @transform_2, window_bounds = array<i64: 1, 16>}, {pipeline_mode = #tpu.pipeline_mode<synchronous>, transform_indices = @transform_3, window_bounds = array<i64: 9, 16>}, {pipeline_mode = #tpu.pipeline_mode<synchronous>, transform_indices = @transform_4, window_bounds = array<i64: 1, 16>}, {pipeline_mode = #tpu.pipeline_mode<synchronous>, transform_indices = @transform_5, window_bounds = array<i64: 16, 16>}, {pipeline_mode = #tpu.pipeline_mode<synchronous>, transform_indices = @transform_6, window_bounds = array<i64: 1, 16>}, {pipeline_mode = #tpu.pipeline_mode<synchronous>, transform_indices = @transform_7, window_bounds = array<i64: 16, 64>}, {pipeline_mode = #tpu.pipeline_mode<synchronous>, transform_indices = @transform_8, window_bounds = array<i64: 1, 64>}, {pipeline_mode = #tpu.pipeline_mode<synchronous>, transform_indices = @transform_9, window_bounds = array<i64: 9, 64>}, {pipeline_mode = #tpu.pipeline_mode<synchronous>, transform_indices = @transform_10, window_bounds = array<i64: 1, 64>}, {pipeline_mode = #tpu.pipeline_mode<synchronous>, transform_indices = @transform_11, window_bounds = array<i64: 64, 16>}, {pipeline_mode = #tpu.pipeline_mode<synchronous>, transform_indices = @transform_12, window_bounds = array<i64: 1, 16>}, {pipeline_mode = #tpu.pipeline_mode<synchronous>, transform_indices = @transform_13, window_bounds = array<i64: 16, 64>}, {pipeline_mode = #tpu.pipeline_mode<synchronous>, transform_indices = @transform_14, window_bounds = array<i64: 1, 64>}, {pipeline_mode = #tpu.pipeline_mode<synchronous>, transform_indices = @transform_15, window_bounds = array<i64: 64, 24>}, {pipeline_mode = #tpu.pipeline_mode<synchronous>, transform_indices = @transform_16, window_bounds = array<i64: 1, 24>}, {pipeline_mode = #tpu.pipeline_mode<synchronous>, transform_indices = @transform_17, window_bounds = array<i64: 24, 72>}, {pipeline_mode = #tpu.pipeline_mode<synchronous>, transform_indices = @transform_18, window_bounds = array<i64: 1, 72>}, {pipeline_mode = #tpu.pipeline_mode<synchronous>, transform_indices = @transform_19, window_bounds = array<i64: 9, 72>}, {pipeline_mode = #tpu.pipeline_mode<synchronous>, transform_indices = @transform_20, window_bounds = array<i64: 1, 72>}, {pipeline_mode = #tpu.pipeline_mode<synchronous>, transform_indices = @transform_21, window_bounds = array<i64: 72, 24>}, {pipeline_mode = #tpu.pipeline_mode<synchronous>, transform_indices = @transform_22, window_bounds = array<i64: 1, 24>}, {pipeline_mode = #tpu.pipeline_mode<synchronous>, transform_indices = @transform_23, window_bounds = array<i64: 24, 128>}, {pipeline_mode = #tpu.pipeline_mode<synchronous>, transform_indices = @transform_24, window_bounds = array<i64: 1, 128>}, {pipeline_mode = #tpu.pipeline_mode<synchronous>, transform_indices = @transform_25, window_bounds = array<i64: 128, 10>}, {pipeline_mode = #tpu.pipeline_mode<synchronous>, transform_indices = @transform_26, window_bounds = array<i64: 1, 10>}, {transform_indices = @transform_27, window_bounds = array<i64: 1, 1, 10>}]} {
    %cst = arith.constant 0.000000e+00 : f32
    %0 = vector.broadcast %cst : f32 to vector<256x16xf32>
    %c0 = arith.constant 0 : index
    %c0_0 = arith.constant 0 : index
    %c0_1 = arith.constant 0 : index
    %c0_2 = arith.constant 0 : index
    %1 = vector.load %arg1[%c0, %c0_0, %c0_1, %c0_2] : memref<1x17x17x12xf32, #tpu.memory_space<vmem>>, vector<1x16x16x12xf32>
    %2 = vector.shape_cast %1 : vector<1x16x16x12xf32> to vector<256x12xf32>
    %3 = arith.truncf %2 : vector<256x12xf32> to vector<256x12xbf16>
    %c0_3 = arith.constant 0 : index
    %c0_4 = arith.constant 0 : index
    %c0_5 = arith.constant 0 : index
    %4 = vector.load %arg2[%c0_3, %c0_4, %c0_5] : memref<4x12x16xbf16, #tpu.memory_space<vmem>>, vector<1x12x16xbf16>
    %5 = vector.shape_cast %4 : vector<1x12x16xbf16> to vector<12x16xbf16>
    %cst_6 = arith.constant dense<0.000000e+00> : vector<256x16xf32>
    %6 = tpu.matmul %3, %5, %cst_6 {dimension_numbers = #tpu.dot_dimension_numbers<[1], [0], [0], [1], [0, 0, 1, 1], [], []>} : vector<256x12xbf16>, vector<12x16xbf16>, vector<256x16xf32> -> vector<256x16xf32>
    %7 = arith.addf %0, %6 : vector<256x16xf32>
    %c0_7 = arith.constant 0 : index
    %c0_8 = arith.constant 0 : index
    %c1 = arith.constant 1 : index
    %c0_9 = arith.constant 0 : index
    %8 = vector.load %arg1[%c0_7, %c0_8, %c1, %c0_9] : memref<1x17x17x12xf32, #tpu.memory_space<vmem>>, vector<1x16x16x12xf32>
    %9 = vector.shape_cast %8 : vector<1x16x16x12xf32> to vector<256x12xf32>
    %10 = arith.truncf %9 : vector<256x12xf32> to vector<256x12xbf16>
    %c1_10 = arith.constant 1 : index
    %c0_11 = arith.constant 0 : index
    %c0_12 = arith.constant 0 : index
    %11 = vector.load %arg2[%c1_10, %c0_11, %c0_12] : memref<4x12x16xbf16, #tpu.memory_space<vmem>>, vector<1x12x16xbf16>
    %12 = vector.shape_cast %11 : vector<1x12x16xbf16> to vector<12x16xbf16>
    %cst_13 = arith.constant dense<0.000000e+00> : vector<256x16xf32>
    %13 = tpu.matmul %10, %12, %cst_13 {dimension_numbers = #tpu.dot_dimension_numbers<[1], [0], [0], [1], [0, 0, 1, 1], [], []>} : vector<256x12xbf16>, vector<12x16xbf16>, vector<256x16xf32> -> vector<256x16xf32>
    %14 = arith.addf %7, %13 : vector<256x16xf32>
    %c0_14 = arith.constant 0 : index
    %c1_15 = arith.constant 1 : index
    %c0_16 = arith.constant 0 : index
    %c0_17 = arith.constant 0 : index
    %15 = vector.load %arg1[%c0_14, %c1_15, %c0_16, %c0_17] : memref<1x17x17x12xf32, #tpu.memory_space<vmem>>, vector<1x16x16x12xf32>
    %16 = vector.shape_cast %15 : vector<1x16x16x12xf32> to vector<256x12xf32>
    %17 = arith.truncf %16 : vector<256x12xf32> to vector<256x12xbf16>
    %c2 = arith.constant 2 : index
    %c0_18 = arith.constant 0 : index
    %c0_19 = arith.constant 0 : index
    %18 = vector.load %arg2[%c2, %c0_18, %c0_19] : memref<4x12x16xbf16, #tpu.memory_space<vmem>>, vector<1x12x16xbf16>
    %19 = vector.shape_cast %18 : vector<1x12x16xbf16> to vector<12x16xbf16>
    %cst_20 = arith.constant dense<0.000000e+00> : vector<256x16xf32>
    %20 = tpu.matmul %17, %19, %cst_20 {dimension_numbers = #tpu.dot_dimension_numbers<[1], [0], [0], [1], [0, 0, 1, 1], [], []>} : vector<256x12xbf16>, vector<12x16xbf16>, vector<256x16xf32> -> vector<256x16xf32>
    %21 = arith.addf %14, %20 : vector<256x16xf32>
    %c0_21 = arith.constant 0 : index
    %c1_22 = arith.constant 1 : index
    %c1_23 = arith.constant 1 : index
    %c0_24 = arith.constant 0 : index
    %22 = vector.load %arg1[%c0_21, %c1_22, %c1_23, %c0_24] : memref<1x17x17x12xf32, #tpu.memory_space<vmem>>, vector<1x16x16x12xf32>
    %23 = vector.shape_cast %22 : vector<1x16x16x12xf32> to vector<256x12xf32>
    %24 = arith.truncf %23 : vector<256x12xf32> to vector<256x12xbf16>
    %c3 = arith.constant 3 : index
    %c0_25 = arith.constant 0 : index
    %c0_26 = arith.constant 0 : index
    %25 = vector.load %arg2[%c3, %c0_25, %c0_26] : memref<4x12x16xbf16, #tpu.memory_space<vmem>>, vector<1x12x16xbf16>
    %26 = vector.shape_cast %25 : vector<1x12x16xbf16> to vector<12x16xbf16>
    %cst_27 = arith.constant dense<0.000000e+00> : vector<256x16xf32>
    %27 = tpu.matmul %24, %26, %cst_27 {dimension_numbers = #tpu.dot_dimension_numbers<[1], [0], [0], [1], [0, 0, 1, 1], [], []>} : vector<256x12xbf16>, vector<12x16xbf16>, vector<256x16xf32> -> vector<256x16xf32>
    %28 = arith.addf %21, %27 : vector<256x16xf32>
    %c0_28 = arith.constant 0 : index
    %c0_29 = arith.constant 0 : index
    %29 = vector.load %arg3[%c0_28, %c0_29] : memref<1x16xf32, #tpu.memory_space<vmem>>, vector<1x16xf32>
    %30 = vector.broadcast %29 : vector<1x16xf32> to vector<256x16xf32>
    %31 = arith.addf %28, %30 : vector<256x16xf32>
    %cst_30 = arith.constant 0.000000e+00 : f32
    %32 = vector.broadcast %cst_30 : f32 to vector<256x16xf32>
    %33 = arith.maximumf %31, %32 : vector<256x16xf32>
    %cst_31 = arith.constant 0.000000e+00 : f32
    %34 = vector.broadcast %cst_31 : f32 to vector<18x32x16xf32>
    %c0_32 = arith.constant 0 : index
    %c0_33 = arith.constant 0 : index
    %c0_34 = arith.constant 0 : index
    %35 = vector.load %arg29[%c0_32, %c0_33, %c0_34] : memref<18x32x16xf32, #tpu.memory_space<vmem>>, vector<18x32x16xf32>
    tpu.vector_store %arg29[%c0_32, %c0_33, %c0_34], %34 {strides = array<i32>} : memref<18x32x16xf32, #tpu.memory_space<vmem>>, vector<18x32x16xf32>,
    %36 = vector.shape_cast %33 : vector<256x16xf32> to vector<16x16x16xf32>
    %c1_35 = arith.constant 1 : index
    %c8 = arith.constant 8 : index
    %c0_36 = arith.constant 0 : index
    %37 = vector.load %arg29[%c1_35, %c8, %c0_36] : memref<18x32x16xf32, #tpu.memory_space<vmem>>, vector<16x16x16xf32>
    tpu.vector_store %arg29[%c1_35, %c8, %c0_36], %36 {strides = array<i32>} : memref<18x32x16xf32, #tpu.memory_space<vmem>>, vector<16x16x16xf32>,
    %c0_37 = arith.constant 0 : index
    %c0_38 = arith.constant 0 : index
    %38 = vector.load %arg4[%c0_37, %c0_38] : memref<9x16xf32, #tpu.memory_space<vmem>>, vector<9x16xf32>
    %cst_39 = arith.constant 0.000000e+00 : f32
    %39 = vector.broadcast %cst_39 : f32 to vector<16x16x16xf32>
    %c0_40 = arith.constant 0 : index
    %c7 = arith.constant 7 : index
    %c0_41 = arith.constant 0 : index
    %40 = vector.load %arg29[%c0_40, %c7, %c0_41] : memref<18x32x16xf32, #tpu.memory_space<vmem>>, vector<16x16x16xf32>
    %41 = vector.extract_strided_slice %38 {offsets = [0, 0], sizes = [1, 16], strides = [1, 1]} : vector<9x16xf32> to vector<1x16xf32>
    %42 = vector.shape_cast %41 : vector<1x16xf32> to vector<1x1x16xf32>
    %43 = vector.broadcast %42 : vector<1x1x16xf32> to vector<16x16x16xf32>
    %44 = arith.mulf %40, %43 : vector<16x16x16xf32>
    %45 = arith.addf %39, %44 : vector<16x16x16xf32>
    %c0_42 = arith.constant 0 : index
    %c8_43 = arith.constant 8 : index
    %c0_44 = arith.constant 0 : index
    %46 = vector.load %arg29[%c0_42, %c8_43, %c0_44] : memref<18x32x16xf32, #tpu.memory_space<vmem>>, vector<16x16x16xf32>
    %47 = vector.extract_strided_slice %38 {offsets = [1, 0], sizes = [1, 16], strides = [1, 1]} : vector<9x16xf32> to vector<1x16xf32>
    %48 = vector.shape_cast %47 : vector<1x16xf32> to vector<1x1x16xf32>
    %49 = vector.broadcast %48 : vector<1x1x16xf32> to vector<16x16x16xf32>
    %50 = arith.mulf %46, %49 : vector<16x16x16xf32>
    %51 = arith.addf %45, %50 : vector<16x16x16xf32>
    %c0_45 = arith.constant 0 : index
    %c9 = arith.constant 9 : index
    %c0_46 = arith.constant 0 : index
    %52 = vector.load %arg29[%c0_45, %c9, %c0_46] : memref<18x32x16xf32, #tpu.memory_space<vmem>>, vector<16x16x16xf32>
    %53 = vector.extract_strided_slice %38 {offsets = [2, 0], sizes = [1, 16], strides = [1, 1]} : vector<9x16xf32> to vector<1x16xf32>
    %54 = vector.shape_cast %53 : vector<1x16xf32> to vector<1x1x16xf32>
    %55 = vector.broadcast %54 : vector<1x1x16xf32> to vector<16x16x16xf32>
    %56 = arith.mulf %52, %55 : vector<16x16x16xf32>
    %57 = arith.addf %51, %56 : vector<16x16x16xf32>
    %c1_47 = arith.constant 1 : index
    %c7_48 = arith.constant 7 : index
    %c0_49 = arith.constant 0 : index
    %58 = vector.load %arg29[%c1_47, %c7_48, %c0_49] : memref<18x32x16xf32, #tpu.memory_space<vmem>>, vector<16x16x16xf32>
    %59 = vector.extract_strided_slice %38 {offsets = [3, 0], sizes = [1, 16], strides = [1, 1]} : vector<9x16xf32> to vector<1x16xf32>
    %60 = vector.shape_cast %59 : vector<1x16xf32> to vector<1x1x16xf32>
    %61 = vector.broadcast %60 : vector<1x1x16xf32> to vector<16x16x16xf32>
    %62 = arith.mulf %58, %61 : vector<16x16x16xf32>
    %63 = arith.addf %57, %62 : vector<16x16x16xf32>
    %c1_50 = arith.constant 1 : index
    %c8_51 = arith.constant 8 : index
    %c0_52 = arith.constant 0 : index
    %64 = vector.load %arg29[%c1_50, %c8_51, %c0_52] : memref<18x32x16xf32, #tpu.memory_space<vmem>>, vector<16x16x16xf32>
    %65 = vector.extract_strided_slice %38 {offsets = [4, 0], sizes = [1, 16], strides = [1, 1]} : vector<9x16xf32> to vector<1x16xf32>
    %66 = vector.shape_cast %65 : vector<1x16xf32> to vector<1x1x16xf32>
    %67 = vector.broadcast %66 : vector<1x1x16xf32> to vector<16x16x16xf32>
    %68 = arith.mulf %64, %67 : vector<16x16x16xf32>
    %69 = arith.addf %63, %68 : vector<16x16x16xf32>
    %c1_53 = arith.constant 1 : index
    %c9_54 = arith.constant 9 : index
    %c0_55 = arith.constant 0 : index
    %70 = vector.load %arg29[%c1_53, %c9_54, %c0_55] : memref<18x32x16xf32, #tpu.memory_space<vmem>>, vector<16x16x16xf32>
    %71 = vector.extract_strided_slice %38 {offsets = [5, 0], sizes = [1, 16], strides = [1, 1]} : vector<9x16xf32> to vector<1x16xf32>
    %72 = vector.shape_cast %71 : vector<1x16xf32> to vector<1x1x16xf32>
    %73 = vector.broadcast %72 : vector<1x1x16xf32> to vector<16x16x16xf32>
    %74 = arith.mulf %70, %73 : vector<16x16x16xf32>
    %75 = arith.addf %69, %74 : vector<16x16x16xf32>
    %c2_56 = arith.constant 2 : index
    %c7_57 = arith.constant 7 : index
    %c0_58 = arith.constant 0 : index
    %76 = vector.load %arg29[%c2_56, %c7_57, %c0_58] : memref<18x32x16xf32, #tpu.memory_space<vmem>>, vector<16x16x16xf32>
    %77 = vector.extract_strided_slice %38 {offsets = [6, 0], sizes = [1, 16], strides = [1, 1]} : vector<9x16xf32> to vector<1x16xf32>
    %78 = vector.shape_cast %77 : vector<1x16xf32> to vector<1x1x16xf32>
    %79 = vector.broadcast %78 : vector<1x1x16xf32> to vector<16x16x16xf32>
    %80 = arith.mulf %76, %79 : vector<16x16x16xf32>
    %81 = arith.addf %75, %80 : vector<16x16x16xf32>
    %c2_59 = arith.constant 2 : index
    %c8_60 = arith.constant 8 : index
    %c0_61 = arith.constant 0 : index
    %82 = vector.load %arg29[%c2_59, %c8_60, %c0_61] : memref<18x32x16xf32, #tpu.memory_space<vmem>>, vector<16x16x16xf32>
    %83 = vector.extract_strided_slice %38 {offsets = [7, 0], sizes = [1, 16], strides = [1, 1]} : vector<9x16xf32> to vector<1x16xf32>
    %84 = vector.shape_cast %83 : vector<1x16xf32> to vector<1x1x16xf32>
    %85 = vector.broadcast %84 : vector<1x1x16xf32> to vector<16x16x16xf32>
    %86 = arith.mulf %82, %85 : vector<16x16x16xf32>
    %87 = arith.addf %81, %86 : vector<16x16x16xf32>
    %c2_62 = arith.constant 2 : index
    %c9_63 = arith.constant 9 : index
    %c0_64 = arith.constant 0 : index
    %88 = vector.load %arg29[%c2_62, %c9_63, %c0_64] : memref<18x32x16xf32, #tpu.memory_space<vmem>>, vector<16x16x16xf32>
    %89 = vector.extract_strided_slice %38 {offsets = [8, 0], sizes = [1, 16], strides = [1, 1]} : vector<9x16xf32> to vector<1x16xf32>
    %90 = vector.shape_cast %89 : vector<1x16xf32> to vector<1x1x16xf32>
    %91 = vector.broadcast %90 : vector<1x1x16xf32> to vector<16x16x16xf32>
    %92 = arith.mulf %88, %91 : vector<16x16x16xf32>
    %93 = arith.addf %87, %92 : vector<16x16x16xf32>
    %94 = vector.shape_cast %93 : vector<16x16x16xf32> to vector<256x16xf32>
    %c0_65 = arith.constant 0 : index
    %c0_66 = arith.constant 0 : index
    %95 = vector.load %arg5[%c0_65, %c0_66] : memref<1x16xf32, #tpu.memory_space<vmem>>, vector<1x16xf32>
    %96 = vector.broadcast %95 : vector<1x16xf32> to vector<256x16xf32>
    %97 = arith.addf %94, %96 : vector<256x16xf32>
    %cst_67 = arith.constant 0.000000e+00 : f32
    %98 = vector.broadcast %cst_67 : f32 to vector<256x16xf32>
    %99 = arith.maximumf %97, %98 : vector<256x16xf32>
    %100 = arith.truncf %99 : vector<256x16xf32> to vector<256x16xbf16>
    %c0_68 = arith.constant 0 : index
    %c0_69 = arith.constant 0 : index
    %101 = vector.load %arg6[%c0_68, %c0_69] : memref<16x16xbf16, #tpu.memory_space<vmem>>, vector<16x16xbf16>
    %cst_70 = arith.constant dense<0.000000e+00> : vector<256x16xf32>
    %102 = tpu.matmul %100, %101, %cst_70 {dimension_numbers = #tpu.dot_dimension_numbers<[1], [0], [0], [1], [0, 0, 1, 1], [], []>} : vector<256x16xbf16>, vector<16x16xbf16>, vector<256x16xf32> -> vector<256x16xf32>
    %c0_71 = arith.constant 0 : index
    %c0_72 = arith.constant 0 : index
    %103 = vector.load %arg7[%c0_71, %c0_72] : memref<1x16xf32, #tpu.memory_space<vmem>>, vector<1x16xf32>
    %104 = vector.broadcast %103 : vector<1x16xf32> to vector<256x16xf32>
    %105 = arith.addf %102, %104 : vector<256x16xf32>
    %106 = arith.addf %105, %33 : vector<256x16xf32>
    %107 = arith.truncf %106 : vector<256x16xf32> to vector<256x16xbf16>
    %c0_73 = arith.constant 0 : index
    %c0_74 = arith.constant 0 : index
    %108 = vector.load %arg8[%c0_73, %c0_74] : memref<16x64xbf16, #tpu.memory_space<vmem>>, vector<16x64xbf16>
    %cst_75 = arith.constant dense<0.000000e+00> : vector<256x64xf32>
    %109 = tpu.matmul %107, %108, %cst_75 {dimension_numbers = #tpu.dot_dimension_numbers<[1], [0], [0], [1], [0, 0, 1, 1], [], []>} : vector<256x16xbf16>, vector<16x64xbf16>, vector<256x64xf32> -> vector<256x64xf32>
    %c0_76 = arith.constant 0 : index
    %c0_77 = arith.constant 0 : index
    %110 = vector.load %arg9[%c0_76, %c0_77] : memref<1x64xf32, #tpu.memory_space<vmem>>, vector<1x64xf32>
    %111 = vector.broadcast %110 : vector<1x64xf32> to vector<256x64xf32>
    %112 = arith.addf %109, %111 : vector<256x64xf32>
    %cst_78 = arith.constant 0.000000e+00 : f32
    %113 = vector.broadcast %cst_78 : f32 to vector<256x64xf32>
    %114 = arith.maximumf %112, %113 : vector<256x64xf32>
    %cst_79 = arith.constant 0.000000e+00 : f32
    %115 = vector.broadcast %cst_79 : f32 to vector<18x32x64xf32>
    %c0_80 = arith.constant 0 : index
    %c0_81 = arith.constant 0 : index
    %c0_82 = arith.constant 0 : index
    %116 = vector.load %arg30[%c0_80, %c0_81, %c0_82] : memref<18x32x64xf32, #tpu.memory_space<vmem>>, vector<18x32x64xf32>
    tpu.vector_store %arg30[%c0_80, %c0_81, %c0_82], %115 {strides = array<i32>} : memref<18x32x64xf32, #tpu.memory_space<vmem>>, vector<18x32x64xf32>,
    %117 = vector.shape_cast %114 : vector<256x64xf32> to vector<16x16x64xf32>
    %c1_83 = arith.constant 1 : index
    %c8_84 = arith.constant 8 : index
    %c0_85 = arith.constant 0 : index
    %118 = vector.load %arg30[%c1_83, %c8_84, %c0_85] : memref<18x32x64xf32, #tpu.memory_space<vmem>>, vector<16x16x64xf32>
    tpu.vector_store %arg30[%c1_83, %c8_84, %c0_85], %117 {strides = array<i32>} : memref<18x32x64xf32, #tpu.memory_space<vmem>>, vector<16x16x64xf32>,
    %c0_86 = arith.constant 0 : index
    %c0_87 = arith.constant 0 : index
    %119 = vector.load %arg10[%c0_86, %c0_87] : memref<9x64xf32, #tpu.memory_space<vmem>>, vector<9x64xf32>
    %cst_88 = arith.constant 0.000000e+00 : f32
    %120 = vector.broadcast %cst_88 : f32 to vector<16x16x64xf32>
    %c0_89 = arith.constant 0 : index
    %c7_90 = arith.constant 7 : index
    %c0_91 = arith.constant 0 : index
    %121 = vector.load %arg30[%c0_89, %c7_90, %c0_91] : memref<18x32x64xf32, #tpu.memory_space<vmem>>, vector<16x16x64xf32>
    %122 = vector.extract_strided_slice %119 {offsets = [0, 0], sizes = [1, 64], strides = [1, 1]} : vector<9x64xf32> to vector<1x64xf32>
    %123 = vector.shape_cast %122 : vector<1x64xf32> to vector<1x1x64xf32>
    %124 = vector.broadcast %123 : vector<1x1x64xf32> to vector<16x16x64xf32>
    %125 = arith.mulf %121, %124 : vector<16x16x64xf32>
    %126 = arith.addf %120, %125 : vector<16x16x64xf32>
    %c0_92 = arith.constant 0 : index
    %c8_93 = arith.constant 8 : index
    %c0_94 = arith.constant 0 : index
    %127 = vector.load %arg30[%c0_92, %c8_93, %c0_94] : memref<18x32x64xf32, #tpu.memory_space<vmem>>, vector<16x16x64xf32>
    %128 = vector.extract_strided_slice %119 {offsets = [1, 0], sizes = [1, 64], strides = [1, 1]} : vector<9x64xf32> to vector<1x64xf32>
    %129 = vector.shape_cast %128 : vector<1x64xf32> to vector<1x1x64xf32>
    %130 = vector.broadcast %129 : vector<1x1x64xf32> to vector<16x16x64xf32>
    %131 = arith.mulf %127, %130 : vector<16x16x64xf32>
    %132 = arith.addf %126, %131 : vector<16x16x64xf32>
    %c0_95 = arith.constant 0 : index
    %c9_96 = arith.constant 9 : index
    %c0_97 = arith.constant 0 : index
    %133 = vector.load %arg30[%c0_95, %c9_96, %c0_97] : memref<18x32x64xf32, #tpu.memory_space<vmem>>, vector<16x16x64xf32>
    %134 = vector.extract_strided_slice %119 {offsets = [2, 0], sizes = [1, 64], strides = [1, 1]} : vector<9x64xf32> to vector<1x64xf32>
    %135 = vector.shape_cast %134 : vector<1x64xf32> to vector<1x1x64xf32>
    %136 = vector.broadcast %135 : vector<1x1x64xf32> to vector<16x16x64xf32>
    %137 = arith.mulf %133, %136 : vector<16x16x64xf32>
    %138 = arith.addf %132, %137 : vector<16x16x64xf32>
    %c1_98 = arith.constant 1 : index
    %c7_99 = arith.constant 7 : index
    %c0_100 = arith.constant 0 : index
    %139 = vector.load %arg30[%c1_98, %c7_99, %c0_100] : memref<18x32x64xf32, #tpu.memory_space<vmem>>, vector<16x16x64xf32>
    %140 = vector.extract_strided_slice %119 {offsets = [3, 0], sizes = [1, 64], strides = [1, 1]} : vector<9x64xf32> to vector<1x64xf32>
    %141 = vector.shape_cast %140 : vector<1x64xf32> to vector<1x1x64xf32>
    %142 = vector.broadcast %141 : vector<1x1x64xf32> to vector<16x16x64xf32>
    %143 = arith.mulf %139, %142 : vector<16x16x64xf32>
    %144 = arith.addf %138, %143 : vector<16x16x64xf32>
    %c1_101 = arith.constant 1 : index
    %c8_102 = arith.constant 8 : index
    %c0_103 = arith.constant 0 : index
    %145 = vector.load %arg30[%c1_101, %c8_102, %c0_103] : memref<18x32x64xf32, #tpu.memory_space<vmem>>, vector<16x16x64xf32>
    %146 = vector.extract_strided_slice %119 {offsets = [4, 0], sizes = [1, 64], strides = [1, 1]} : vector<9x64xf32> to vector<1x64xf32>
    %147 = vector.shape_cast %146 : vector<1x64xf32> to vector<1x1x64xf32>
    %148 = vector.broadcast %147 : vector<1x1x64xf32> to vector<16x16x64xf32>
    %149 = arith.mulf %145, %148 : vector<16x16x64xf32>
    %150 = arith.addf %144, %149 : vector<16x16x64xf32>
    %c1_104 = arith.constant 1 : index
    %c9_105 = arith.constant 9 : index
    %c0_106 = arith.constant 0 : index
    %151 = vector.load %arg30[%c1_104, %c9_105, %c0_106] : memref<18x32x64xf32, #tpu.memory_space<vmem>>, vector<16x16x64xf32>
    %152 = vector.extract_strided_slice %119 {offsets = [5, 0], sizes = [1, 64], strides = [1, 1]} : vector<9x64xf32> to vector<1x64xf32>
    %153 = vector.shape_cast %152 : vector<1x64xf32> to vector<1x1x64xf32>
    %154 = vector.broadcast %153 : vector<1x1x64xf32> to vector<16x16x64xf32>
    %155 = arith.mulf %151, %154 : vector<16x16x64xf32>
    %156 = arith.addf %150, %155 : vector<16x16x64xf32>
    %c2_107 = arith.constant 2 : index
    %c7_108 = arith.constant 7 : index
    %c0_109 = arith.constant 0 : index
    %157 = vector.load %arg30[%c2_107, %c7_108, %c0_109] : memref<18x32x64xf32, #tpu.memory_space<vmem>>, vector<16x16x64xf32>
    %158 = vector.extract_strided_slice %119 {offsets = [6, 0], sizes = [1, 64], strides = [1, 1]} : vector<9x64xf32> to vector<1x64xf32>
    %159 = vector.shape_cast %158 : vector<1x64xf32> to vector<1x1x64xf32>
    %160 = vector.broadcast %159 : vector<1x1x64xf32> to vector<16x16x64xf32>
    %161 = arith.mulf %157, %160 : vector<16x16x64xf32>
    %162 = arith.addf %156, %161 : vector<16x16x64xf32>
    %c2_110 = arith.constant 2 : index
    %c8_111 = arith.constant 8 : index
    %c0_112 = arith.constant 0 : index
    %163 = vector.load %arg30[%c2_110, %c8_111, %c0_112] : memref<18x32x64xf32, #tpu.memory_space<vmem>>, vector<16x16x64xf32>
    %164 = vector.extract_strided_slice %119 {offsets = [7, 0], sizes = [1, 64], strides = [1, 1]} : vector<9x64xf32> to vector<1x64xf32>
    %165 = vector.shape_cast %164 : vector<1x64xf32> to vector<1x1x64xf32>
    %166 = vector.broadcast %165 : vector<1x1x64xf32> to vector<16x16x64xf32>
    %167 = arith.mulf %163, %166 : vector<16x16x64xf32>
    %168 = arith.addf %162, %167 : vector<16x16x64xf32>
    %c2_113 = arith.constant 2 : index
    %c9_114 = arith.constant 9 : index
    %c0_115 = arith.constant 0 : index
    %169 = vector.load %arg30[%c2_113, %c9_114, %c0_115] : memref<18x32x64xf32, #tpu.memory_space<vmem>>, vector<16x16x64xf32>
    %170 = vector.extract_strided_slice %119 {offsets = [8, 0], sizes = [1, 64], strides = [1, 1]} : vector<9x64xf32> to vector<1x64xf32>
    %171 = vector.shape_cast %170 : vector<1x64xf32> to vector<1x1x64xf32>
    %172 = vector.broadcast %171 : vector<1x1x64xf32> to vector<16x16x64xf32>
    %173 = arith.mulf %169, %172 : vector<16x16x64xf32>
    %174 = arith.addf %168, %173 : vector<16x16x64xf32>
    %175 = vector.shape_cast %174 : vector<16x16x64xf32> to vector<256x64xf32>
    %c0_116 = arith.constant 0 : index
    %c0_117 = arith.constant 0 : index
    %176 = vector.load %arg11[%c0_116, %c0_117] : memref<1x64xf32, #tpu.memory_space<vmem>>, vector<1x64xf32>
    %177 = vector.broadcast %176 : vector<1x64xf32> to vector<256x64xf32>
    %178 = arith.addf %175, %177 : vector<256x64xf32>
    %cst_118 = arith.constant 0.000000e+00 : f32
    %179 = vector.broadcast %cst_118 : f32 to vector<256x64xf32>
    %180 = arith.maximumf %178, %179 : vector<256x64xf32>
    %cst_119 = arith.constant dense<0.000000e+00> : vector<64xf32>
    %181 = vector.multi_reduction <add>, %180, %cst_119 [0] : vector<256x64xf32> to vector<64xf32>
    %182 = vector.shape_cast %181 : vector<64xf32> to vector<1x64xf32>
    %cst_120 = arith.constant 3.906250e-03 : f32
    %183 = vector.broadcast %cst_120 : f32 to vector<1x64xf32>
    %184 = arith.mulf %182, %183 : vector<1x64xf32>
    %185 = arith.truncf %184 : vector<1x64xf32> to vector<1x64xbf16>
    %c0_121 = arith.constant 0 : index
    %c0_122 = arith.constant 0 : index
    %186 = vector.load %arg12[%c0_121, %c0_122] : memref<64x16xbf16, #tpu.memory_space<vmem>>, vector<64x16xbf16>
    %cst_123 = arith.constant dense<0.000000e+00> : vector<1x16xf32>
    %187 = tpu.matmul %185, %186, %cst_123 {dimension_numbers = #tpu.dot_dimension_numbers<[1], [0], [0], [1], [0, 0, 1, 1], [], []>} : vector<1x64xbf16>, vector<64x16xbf16>, vector<1x16xf32> -> vector<1x16xf32>
    %c0_124 = arith.constant 0 : index
    %c0_125 = arith.constant 0 : index
    %188 = vector.load %arg13[%c0_124, %c0_125] : memref<1x16xf32, #tpu.memory_space<vmem>>, vector<1x16xf32>
    %189 = arith.addf %187, %188 : vector<1x16xf32>
    %cst_126 = arith.constant 0.000000e+00 : f32
    %190 = vector.broadcast %cst_126 : f32 to vector<1x16xf32>
    %191 = arith.maximumf %189, %190 : vector<1x16xf32>
    %192 = arith.truncf %191 : vector<1x16xf32> to vector<1x16xbf16>
    %c0_127 = arith.constant 0 : index
    %c0_128 = arith.constant 0 : index
    %193 = vector.load %arg14[%c0_127, %c0_128] : memref<16x64xbf16, #tpu.memory_space<vmem>>, vector<16x64xbf16>
    %cst_129 = arith.constant dense<0.000000e+00> : vector<1x64xf32>
    %194 = tpu.matmul %192, %193, %cst_129 {dimension_numbers = #tpu.dot_dimension_numbers<[1], [0], [0], [1], [0, 0, 1, 1], [], []>} : vector<1x16xbf16>, vector<16x64xbf16>, vector<1x64xf32> -> vector<1x64xf32>
    %c0_130 = arith.constant 0 : index
    %c0_131 = arith.constant 0 : index
    %195 = vector.load %arg15[%c0_130, %c0_131] : memref<1x64xf32, #tpu.memory_space<vmem>>, vector<1x64xf32>
    %196 = arith.addf %194, %195 : vector<1x64xf32>
    %cst_132 = arith.constant 0.000000e+00 : f32
    %197 = vector.broadcast %cst_132 : f32 to vector<1x64xf32>
    %198 = arith.subf %197, %196 : vector<1x64xf32>
    %199 = math.exp %198 : vector<1x64xf32>
    %cst_133 = arith.constant 1.000000e+00 : f32
    %200 = vector.broadcast %cst_133 : f32 to vector<1x64xf32>
    %201 = arith.addf %200, %199 : vector<1x64xf32>
    %202 = tpu.reciprocal %201 {approx = true} : vector<1x64xf32> -> vector<1x64xf32>
    %203 = vector.broadcast %202 : vector<1x64xf32> to vector<256x64xf32>
    %204 = arith.mulf %180, %203 : vector<256x64xf32>
    %205 = arith.truncf %204 : vector<256x64xf32> to vector<256x64xbf16>
    %c0_134 = arith.constant 0 : index
    %c0_135 = arith.constant 0 : index
    %206 = vector.load %arg16[%c0_134, %c0_135] : memref<64x24xbf16, #tpu.memory_space<vmem>>, vector<64x24xbf16>
    %cst_136 = arith.constant dense<0.000000e+00> : vector<256x24xf32>
    %207 = tpu.matmul %205, %206, %cst_136 {dimension_numbers = #tpu.dot_dimension_numbers<[1], [0], [0], [1], [0, 0, 1, 1], [], []>} : vector<256x64xbf16>, vector<64x24xbf16>, vector<256x24xf32> -> vector<256x24xf32>
    %c0_137 = arith.constant 0 : index
    %c0_138 = arith.constant 0 : index
    %208 = vector.load %arg17[%c0_137, %c0_138] : memref<1x24xf32, #tpu.memory_space<vmem>>, vector<1x24xf32>
    %209 = vector.broadcast %208 : vector<1x24xf32> to vector<256x24xf32>
    %210 = arith.addf %207, %209 : vector<256x24xf32>
    %211 = arith.truncf %210 : vector<256x24xf32> to vector<256x24xbf16>
    %c0_139 = arith.constant 0 : index
    %c0_140 = arith.constant 0 : index
    %212 = vector.load %arg18[%c0_139, %c0_140] : memref<24x72xbf16, #tpu.memory_space<vmem>>, vector<24x72xbf16>
    %cst_141 = arith.constant dense<0.000000e+00> : vector<256x72xf32>
    %213 = tpu.matmul %211, %212, %cst_141 {dimension_numbers = #tpu.dot_dimension_numbers<[1], [0], [0], [1], [0, 0, 1, 1], [], []>} : vector<256x24xbf16>, vector<24x72xbf16>, vector<256x72xf32> -> vector<256x72xf32>
    %c0_142 = arith.constant 0 : index
    %c0_143 = arith.constant 0 : index
    %214 = vector.load %arg19[%c0_142, %c0_143] : memref<1x72xf32, #tpu.memory_space<vmem>>, vector<1x72xf32>
    %215 = vector.broadcast %214 : vector<1x72xf32> to vector<256x72xf32>
    %216 = arith.addf %213, %215 : vector<256x72xf32>
    %cst_144 = arith.constant 0.000000e+00 : f32
    %217 = vector.broadcast %cst_144 : f32 to vector<256x72xf32>
    %218 = arith.maximumf %216, %217 : vector<256x72xf32>
    %cst_145 = arith.constant 0.000000e+00 : f32
    %219 = vector.broadcast %cst_145 : f32 to vector<18x32x72xf32>
    %c0_146 = arith.constant 0 : index
    %c0_147 = arith.constant 0 : index
    %c0_148 = arith.constant 0 : index
    %220 = vector.load %arg31[%c0_146, %c0_147, %c0_148] : memref<18x32x72xf32, #tpu.memory_space<vmem>>, vector<18x32x72xf32>
    tpu.vector_store %arg31[%c0_146, %c0_147, %c0_148], %219 {strides = array<i32>} : memref<18x32x72xf32, #tpu.memory_space<vmem>>, vector<18x32x72xf32>,
    %221 = vector.shape_cast %218 : vector<256x72xf32> to vector<16x16x72xf32>
    %c1_149 = arith.constant 1 : index
    %c8_150 = arith.constant 8 : index
    %c0_151 = arith.constant 0 : index
    %222 = vector.load %arg31[%c1_149, %c8_150, %c0_151] : memref<18x32x72xf32, #tpu.memory_space<vmem>>, vector<16x16x72xf32>
    tpu.vector_store %arg31[%c1_149, %c8_150, %c0_151], %221 {strides = array<i32>} : memref<18x32x72xf32, #tpu.memory_space<vmem>>, vector<16x16x72xf32>,
    %c0_152 = arith.constant 0 : index
    %c0_153 = arith.constant 0 : index
    %223 = vector.load %arg20[%c0_152, %c0_153] : memref<9x72xf32, #tpu.memory_space<vmem>>, vector<9x72xf32>
    %cst_154 = arith.constant 0.000000e+00 : f32
    %224 = vector.broadcast %cst_154 : f32 to vector<16x16x72xf32>
    %c0_155 = arith.constant 0 : index
    %c7_156 = arith.constant 7 : index
    %c0_157 = arith.constant 0 : index
    %225 = vector.load %arg31[%c0_155, %c7_156, %c0_157] : memref<18x32x72xf32, #tpu.memory_space<vmem>>, vector<16x16x72xf32>
    %226 = vector.extract_strided_slice %223 {offsets = [0, 0], sizes = [1, 72], strides = [1, 1]} : vector<9x72xf32> to vector<1x72xf32>
    %227 = vector.shape_cast %226 : vector<1x72xf32> to vector<1x1x72xf32>
    %228 = vector.broadcast %227 : vector<1x1x72xf32> to vector<16x16x72xf32>
    %229 = arith.mulf %225, %228 : vector<16x16x72xf32>
    %230 = arith.addf %224, %229 : vector<16x16x72xf32>
    %c0_158 = arith.constant 0 : index
    %c8_159 = arith.constant 8 : index
    %c0_160 = arith.constant 0 : index
    %231 = vector.load %arg31[%c0_158, %c8_159, %c0_160] : memref<18x32x72xf32, #tpu.memory_space<vmem>>, vector<16x16x72xf32>
    %232 = vector.extract_strided_slice %223 {offsets = [1, 0], sizes = [1, 72], strides = [1, 1]} : vector<9x72xf32> to vector<1x72xf32>
    %233 = vector.shape_cast %232 : vector<1x72xf32> to vector<1x1x72xf32>
    %234 = vector.broadcast %233 : vector<1x1x72xf32> to vector<16x16x72xf32>
    %235 = arith.mulf %231, %234 : vector<16x16x72xf32>
    %236 = arith.addf %230, %235 : vector<16x16x72xf32>
    %c0_161 = arith.constant 0 : index
    %c9_162 = arith.constant 9 : index
    %c0_163 = arith.constant 0 : index
    %237 = vector.load %arg31[%c0_161, %c9_162, %c0_163] : memref<18x32x72xf32, #tpu.memory_space<vmem>>, vector<16x16x72xf32>
    %238 = vector.extract_strided_slice %223 {offsets = [2, 0], sizes = [1, 72], strides = [1, 1]} : vector<9x72xf32> to vector<1x72xf32>
    %239 = vector.shape_cast %238 : vector<1x72xf32> to vector<1x1x72xf32>
    %240 = vector.broadcast %239 : vector<1x1x72xf32> to vector<16x16x72xf32>
    %241 = arith.mulf %237, %240 : vector<16x16x72xf32>
    %242 = arith.addf %236, %241 : vector<16x16x72xf32>
    %c1_164 = arith.constant 1 : index
    %c7_165 = arith.constant 7 : index
    %c0_166 = arith.constant 0 : index
    %243 = vector.load %arg31[%c1_164, %c7_165, %c0_166] : memref<18x32x72xf32, #tpu.memory_space<vmem>>, vector<16x16x72xf32>
    %244 = vector.extract_strided_slice %223 {offsets = [3, 0], sizes = [1, 72], strides = [1, 1]} : vector<9x72xf32> to vector<1x72xf32>
    %245 = vector.shape_cast %244 : vector<1x72xf32> to vector<1x1x72xf32>
    %246 = vector.broadcast %245 : vector<1x1x72xf32> to vector<16x16x72xf32>
    %247 = arith.mulf %243, %246 : vector<16x16x72xf32>
    %248 = arith.addf %242, %247 : vector<16x16x72xf32>
    %c1_167 = arith.constant 1 : index
    %c8_168 = arith.constant 8 : index
    %c0_169 = arith.constant 0 : index
    %249 = vector.load %arg31[%c1_167, %c8_168, %c0_169] : memref<18x32x72xf32, #tpu.memory_space<vmem>>, vector<16x16x72xf32>
    %250 = vector.extract_strided_slice %223 {offsets = [4, 0], sizes = [1, 72], strides = [1, 1]} : vector<9x72xf32> to vector<1x72xf32>
    %251 = vector.shape_cast %250 : vector<1x72xf32> to vector<1x1x72xf32>
    %252 = vector.broadcast %251 : vector<1x1x72xf32> to vector<16x16x72xf32>
    %253 = arith.mulf %249, %252 : vector<16x16x72xf32>
    %254 = arith.addf %248, %253 : vector<16x16x72xf32>
    %c1_170 = arith.constant 1 : index
    %c9_171 = arith.constant 9 : index
    %c0_172 = arith.constant 0 : index
    %255 = vector.load %arg31[%c1_170, %c9_171, %c0_172] : memref<18x32x72xf32, #tpu.memory_space<vmem>>, vector<16x16x72xf32>
    %256 = vector.extract_strided_slice %223 {offsets = [5, 0], sizes = [1, 72], strides = [1, 1]} : vector<9x72xf32> to vector<1x72xf32>
    %257 = vector.shape_cast %256 : vector<1x72xf32> to vector<1x1x72xf32>
    %258 = vector.broadcast %257 : vector<1x1x72xf32> to vector<16x16x72xf32>
    %259 = arith.mulf %255, %258 : vector<16x16x72xf32>
    %260 = arith.addf %254, %259 : vector<16x16x72xf32>
    %c2_173 = arith.constant 2 : index
    %c7_174 = arith.constant 7 : index
    %c0_175 = arith.constant 0 : index
    %261 = vector.load %arg31[%c2_173, %c7_174, %c0_175] : memref<18x32x72xf32, #tpu.memory_space<vmem>>, vector<16x16x72xf32>
    %262 = vector.extract_strided_slice %223 {offsets = [6, 0], sizes = [1, 72], strides = [1, 1]} : vector<9x72xf32> to vector<1x72xf32>
    %263 = vector.shape_cast %262 : vector<1x72xf32> to vector<1x1x72xf32>
    %264 = vector.broadcast %263 : vector<1x1x72xf32> to vector<16x16x72xf32>
    %265 = arith.mulf %261, %264 : vector<16x16x72xf32>
    %266 = arith.addf %260, %265 : vector<16x16x72xf32>
    %c2_176 = arith.constant 2 : index
    %c8_177 = arith.constant 8 : index
    %c0_178 = arith.constant 0 : index
    %267 = vector.load %arg31[%c2_176, %c8_177, %c0_178] : memref<18x32x72xf32, #tpu.memory_space<vmem>>, vector<16x16x72xf32>
    %268 = vector.extract_strided_slice %223 {offsets = [7, 0], sizes = [1, 72], strides = [1, 1]} : vector<9x72xf32> to vector<1x72xf32>
    %269 = vector.shape_cast %268 : vector<1x72xf32> to vector<1x1x72xf32>
    %270 = vector.broadcast %269 : vector<1x1x72xf32> to vector<16x16x72xf32>
    %271 = arith.mulf %267, %270 : vector<16x16x72xf32>
    %272 = arith.addf %266, %271 : vector<16x16x72xf32>
    %c2_179 = arith.constant 2 : index
    %c9_180 = arith.constant 9 : index
    %c0_181 = arith.constant 0 : index
    %273 = vector.load %arg31[%c2_179, %c9_180, %c0_181] : memref<18x32x72xf32, #tpu.memory_space<vmem>>, vector<16x16x72xf32>
    %274 = vector.extract_strided_slice %223 {offsets = [8, 0], sizes = [1, 72], strides = [1, 1]} : vector<9x72xf32> to vector<1x72xf32>
    %275 = vector.shape_cast %274 : vector<1x72xf32> to vector<1x1x72xf32>
    %276 = vector.broadcast %275 : vector<1x1x72xf32> to vector<16x16x72xf32>
    %277 = arith.mulf %273, %276 : vector<16x16x72xf32>
    %278 = arith.addf %272, %277 : vector<16x16x72xf32>
    %279 = vector.shape_cast %278 : vector<16x16x72xf32> to vector<256x72xf32>
    %c0_182 = arith.constant 0 : index
    %c0_183 = arith.constant 0 : index
    %280 = vector.load %arg21[%c0_182, %c0_183] : memref<1x72xf32, #tpu.memory_space<vmem>>, vector<1x72xf32>
    %281 = vector.broadcast %280 : vector<1x72xf32> to vector<256x72xf32>
    %282 = arith.addf %279, %281 : vector<256x72xf32>
    %cst_184 = arith.constant 0.000000e+00 : f32
    %283 = vector.broadcast %cst_184 : f32 to vector<256x72xf32>
    %284 = arith.maximumf %282, %283 : vector<256x72xf32>
    %285 = arith.truncf %284 : vector<256x72xf32> to vector<256x72xbf16>
    %c0_185 = arith.constant 0 : index
    %c0_186 = arith.constant 0 : index
    %286 = vector.load %arg22[%c0_185, %c0_186] : memref<72x24xbf16, #tpu.memory_space<vmem>>, vector<72x24xbf16>
    %cst_187 = arith.constant dense<0.000000e+00> : vector<256x24xf32>
    %287 = tpu.matmul %285, %286, %cst_187 {dimension_numbers = #tpu.dot_dimension_numbers<[1], [0], [0], [1], [0, 0, 1, 1], [], []>} : vector<256x72xbf16>, vector<72x24xbf16>, vector<256x24xf32> -> vector<256x24xf32>
    %c0_188 = arith.constant 0 : index
    %c0_189 = arith.constant 0 : index
    %288 = vector.load %arg23[%c0_188, %c0_189] : memref<1x24xf32, #tpu.memory_space<vmem>>, vector<1x24xf32>
    %289 = vector.broadcast %288 : vector<1x24xf32> to vector<256x24xf32>
    %290 = arith.addf %287, %289 : vector<256x24xf32>
    %291 = arith.addf %290, %210 : vector<256x24xf32>
    %cst_190 = arith.constant dense<0.000000e+00> : vector<24xf32>
    %292 = vector.multi_reduction <add>, %291, %cst_190 [0] : vector<256x24xf32> to vector<24xf32>
    %293 = vector.shape_cast %292 : vector<24xf32> to vector<1x24xf32>
    %cst_191 = arith.constant 3.906250e-03 : f32
    %294 = vector.broadcast %cst_191 : f32 to vector<1x24xf32>
    %295 = arith.mulf %293, %294 : vector<1x24xf32>
    %296 = arith.truncf %295 : vector<1x24xf32> to vector<1x24xbf16>
    %c0_192 = arith.constant 0 : index
    %c0_193 = arith.constant 0 : index
    %297 = vector.load %arg24[%c0_192, %c0_193] : memref<24x128xbf16, #tpu.memory_space<vmem>>, vector<24x128xbf16>
    %cst_194 = arith.constant dense<0.000000e+00> : vector<1x128xf32>
    %298 = tpu.matmul %296, %297, %cst_194 {dimension_numbers = #tpu.dot_dimension_numbers<[1], [0], [0], [1], [0, 0, 1, 1], [], []>} : vector<1x24xbf16>, vector<24x128xbf16>, vector<1x128xf32> -> vector<1x128xf32>
    %c0_195 = arith.constant 0 : index
    %c0_196 = arith.constant 0 : index
    %299 = vector.load %arg25[%c0_195, %c0_196] : memref<1x128xf32, #tpu.memory_space<vmem>>, vector<1x128xf32>
    %300 = arith.addf %298, %299 : vector<1x128xf32>
    %cst_197 = arith.constant 0.000000e+00 : f32
    %301 = vector.broadcast %cst_197 : f32 to vector<1x128xf32>
    %302 = arith.maximumf %300, %301 : vector<1x128xf32>
    %303 = arith.truncf %302 : vector<1x128xf32> to vector<1x128xbf16>
    %c0_198 = arith.constant 0 : index
    %c0_199 = arith.constant 0 : index
    %304 = vector.load %arg26[%c0_198, %c0_199] : memref<128x10xbf16, #tpu.memory_space<vmem>>, vector<128x10xbf16>
    %cst_200 = arith.constant dense<0.000000e+00> : vector<1x10xf32>
    %305 = tpu.matmul %303, %304, %cst_200 {dimension_numbers = #tpu.dot_dimension_numbers<[1], [0], [0], [1], [0, 0, 1, 1], [], []>} : vector<1x128xbf16>, vector<128x10xbf16>, vector<1x10xf32> -> vector<1x10xf32>
    %c0_201 = arith.constant 0 : index
    %c0_202 = arith.constant 0 : index
    %306 = vector.load %arg27[%c0_201, %c0_202] : memref<1x10xf32, #tpu.memory_space<vmem>>, vector<1x10xf32>
    %307 = arith.addf %305, %306 : vector<1x10xf32>
    %308 = vector.shape_cast %307 : vector<1x10xf32> to vector<1x1x10xf32>
    %c0_203 = arith.constant 0 : index
    %c0_204 = arith.constant 0 : index
    %c0_205 = arith.constant 0 : index
    %309 = vector.load %arg28[%c0_203, %c0_204, %c0_205] : memref<1x1x10xf32, #tpu.memory_space<vmem>>, vector<1x1x10xf32>
    tpu.vector_store %arg28[%c0_203, %c0_204, %c0_205], %308 {strides = array<i32>} : memref<1x1x10xf32, #tpu.memory_space<vmem>>, vector<1x1x10xf32>,
    return
  }
  func.func @transform_0(%arg0: i32) -> (i32, i32, i32, i32) {
    %c0_i32 = arith.constant 0 : i32
    %c0_i32_0 = arith.constant 0 : i32
    %c0_i32_1 = arith.constant 0 : i32
    %c0_i32_2 = arith.constant 0 : i32
    return %arg0, %c0_i32, %c0_i32_0, %c0_i32_1 : i32, i32, i32, i32
  }
  func.func @transform_1(%arg0: i32) -> (i32, i32, i32) {
    %c0_i32 = arith.constant 0 : i32
    %c0_i32_0 = arith.constant 0 : i32
    %c0_i32_1 = arith.constant 0 : i32
    %c0_i32_2 = arith.constant 0 : i32
    return %c0_i32, %c0_i32_0, %c0_i32_1 : i32, i32, i32
  }
  func.func @transform_2(%arg0: i32) -> (i32, i32) {
    %c0_i32 = arith.constant 0 : i32
    %c0_i32_0 = arith.constant 0 : i32
    %c0_i32_1 = arith.constant 0 : i32
    return %c0_i32, %c0_i32_0 : i32, i32
  }
  func.func @transform_3(%arg0: i32) -> (i32, i32) {
    %c0_i32 = arith.constant 0 : i32
    %c0_i32_0 = arith.constant 0 : i32
    %c0_i32_1 = arith.constant 0 : i32
    return %c0_i32, %c0_i32_0 : i32, i32
  }
  func.func @transform_4(%arg0: i32) -> (i32, i32) {
    %c0_i32 = arith.constant 0 : i32
    %c0_i32_0 = arith.constant 0 : i32
    %c0_i32_1 = arith.constant 0 : i32
    return %c0_i32, %c0_i32_0 : i32, i32
  }
  func.func @transform_5(%arg0: i32) -> (i32, i32) {
    %c0_i32 = arith.constant 0 : i32
    %c0_i32_0 = arith.constant 0 : i32
    %c0_i32_1 = arith.constant 0 : i32
    return %c0_i32, %c0_i32_0 : i32, i32
  }
  func.func @transform_6(%arg0: i32) -> (i32, i32) {
    %c0_i32 = arith.constant 0 : i32
    %c0_i32_0 = arith.constant 0 : i32
    %c0_i32_1 = arith.constant 0 : i32
    return %c0_i32, %c0_i32_0 : i32, i32
  }
  func.func @transform_7(%arg0: i32) -> (i32, i32) {
    %c0_i32 = arith.constant 0 : i32
    %c0_i32_0 = arith.constant 0 : i32
    %c0_i32_1 = arith.constant 0 : i32
    return %c0_i32, %c0_i32_0 : i32, i32
  }
  func.func @transform_8(%arg0: i32) -> (i32, i32) {
    %c0_i32 = arith.constant 0 : i32
    %c0_i32_0 = arith.constant 0 : i32
    %c0_i32_1 = arith.constant 0 : i32
    return %c0_i32, %c0_i32_0 : i32, i32
  }
  func.func @transform_9(%arg0: i32) -> (i32, i32) {
    %c0_i32 = arith.constant 0 : i32
    %c0_i32_0 = arith.constant 0 : i32
    %c0_i32_1 = arith.constant 0 : i32
    return %c0_i32, %c0_i32_0 : i32, i32
  }
  func.func @transform_10(%arg0: i32) -> (i32, i32) {
    %c0_i32 = arith.constant 0 : i32
    %c0_i32_0 = arith.constant 0 : i32
    %c0_i32_1 = arith.constant 0 : i32
    return %c0_i32, %c0_i32_0 : i32, i32
  }
  func.func @transform_11(%arg0: i32) -> (i32, i32) {
    %c0_i32 = arith.constant 0 : i32
    %c0_i32_0 = arith.constant 0 : i32
    %c0_i32_1 = arith.constant 0 : i32
    return %c0_i32, %c0_i32_0 : i32, i32
  }
  func.func @transform_12(%arg0: i32) -> (i32, i32) {
    %c0_i32 = arith.constant 0 : i32
    %c0_i32_0 = arith.constant 0 : i32
    %c0_i32_1 = arith.constant 0 : i32
    return %c0_i32, %c0_i32_0 : i32, i32
  }
  func.func @transform_13(%arg0: i32) -> (i32, i32) {
    %c0_i32 = arith.constant 0 : i32
    %c0_i32_0 = arith.constant 0 : i32
    %c0_i32_1 = arith.constant 0 : i32
    return %c0_i32, %c0_i32_0 : i32, i32
  }
  func.func @transform_14(%arg0: i32) -> (i32, i32) {
    %c0_i32 = arith.constant 0 : i32
    %c0_i32_0 = arith.constant 0 : i32
    %c0_i32_1 = arith.constant 0 : i32
    return %c0_i32, %c0_i32_0 : i32, i32
  }
  func.func @transform_15(%arg0: i32) -> (i32, i32) {
    %c0_i32 = arith.constant 0 : i32
    %c0_i32_0 = arith.constant 0 : i32
    %c0_i32_1 = arith.constant 0 : i32
    return %c0_i32, %c0_i32_0 : i32, i32
  }
  func.func @transform_16(%arg0: i32) -> (i32, i32) {
    %c0_i32 = arith.constant 0 : i32
    %c0_i32_0 = arith.constant 0 : i32
    %c0_i32_1 = arith.constant 0 : i32
    return %c0_i32, %c0_i32_0 : i32, i32
  }
  func.func @transform_17(%arg0: i32) -> (i32, i32) {
    %c0_i32 = arith.constant 0 : i32
    %c0_i32_0 = arith.constant 0 : i32
    %c0_i32_1 = arith.constant 0 : i32
    return %c0_i32, %c0_i32_0 : i32, i32
  }
  func.func @transform_18(%arg0: i32) -> (i32, i32) {
    %c0_i32 = arith.constant 0 : i32
    %c0_i32_0 = arith.constant 0 : i32
    %c0_i32_1 = arith.constant 0 : i32
    return %c0_i32, %c0_i32_0 : i32, i32
  }
  func.func @transform_19(%arg0: i32) -> (i32, i32) {
    %c0_i32 = arith.constant 0 : i32
    %c0_i32_0 = arith.constant 0 : i32
    %c0_i32_1 = arith.constant 0 : i32
    return %c0_i32, %c0_i32_0 : i32, i32
  }
  func.func @transform_20(%arg0: i32) -> (i32, i32) {
    %c0_i32 = arith.constant 0 : i32
    %c0_i32_0 = arith.constant 0 : i32
    %c0_i32_1 = arith.constant 0 : i32
    return %c0_i32, %c0_i32_0 : i32, i32
  }
  func.func @transform_21(%arg0: i32) -> (i32, i32) {
    %c0_i32 = arith.constant 0 : i32
    %c0_i32_0 = arith.constant 0 : i32
    %c0_i32_1 = arith.constant 0 : i32
    return %c0_i32, %c0_i32_0 : i32, i32
  }
  func.func @transform_22(%arg0: i32) -> (i32, i32) {
    %c0_i32 = arith.constant 0 : i32
    %c0_i32_0 = arith.constant 0 : i32
    %c0_i32_1 = arith.constant 0 : i32
    return %c0_i32, %c0_i32_0 : i32, i32
  }
  func.func @transform_23(%arg0: i32) -> (i32, i32) {
    %c0_i32 = arith.constant 0 : i32
    %c0_i32_0 = arith.constant 0 : i32
    %c0_i32_1 = arith.constant 0 : i32
    return %c0_i32, %c0_i32_0 : i32, i32
  }
  func.func @transform_24(%arg0: i32) -> (i32, i32) {
    %c0_i32 = arith.constant 0 : i32
    %c0_i32_0 = arith.constant 0 : i32
    %c0_i32_1 = arith.constant 0 : i32
    return %c0_i32, %c0_i32_0 : i32, i32
  }
  func.func @transform_25(%arg0: i32) -> (i32, i32) {
    %c0_i32 = arith.constant 0 : i32
    %c0_i32_0 = arith.constant 0 : i32
    %c0_i32_1 = arith.constant 0 : i32
    return %c0_i32, %c0_i32_0 : i32, i32
  }
  func.func @transform_26(%arg0: i32) -> (i32, i32) {
    %c0_i32 = arith.constant 0 : i32
    %c0_i32_0 = arith.constant 0 : i32
    %c0_i32_1 = arith.constant 0 : i32
    return %c0_i32, %c0_i32_0 : i32, i32
  }
  func.func @transform_27(%arg0: i32) -> (i32, i32, i32) {
    %c0_i32 = arith.constant 0 : i32
    %c0_i32_0 = arith.constant 0 : i32
    %c0_i32_1 = arith.constant 0 : i32
    return %arg0, %c0_i32, %c0_i32_0 : i32, i32, i32
  }
}

</mosaic_0001>

<bundles_post_ra>
// kernel: mobilenetv3_forward.1
= control target key start
LH: loop header
LB: loop body
LE: loop exit
PB: predicated region body
PF: predicated region fallthrough
CT: control target
= control target key end

     0   :  { %s10686_s0 = inlined_call_operand.vmem [shape: f32[2,17,17,12], index: 0, kind: input, shape index: {}]   ;;  %s10687_s1 = inlined_call_operand.vmem [shape: bf16[4,12,16], index: 1, kind: input, shape index: {}]   ;;  %s10688_s2 = inlined_call_operand.vmem [shape: f32[1,16], index: 2, kind: input, shape index: {}]   ;;  %s10689_s3 = inlined_call_operand.vmem [shape: f32[9,16], index: 3, kind: input, shape index: {}]   ;;  %s10690_s4 = inlined_call_operand.vmem [shape: f32[1,16], index: 4, kind: input, shape index: {}]   ;;  %s10691_s5 = inlined_call_operand.vmem [shape: bf16[16,16], index: 5, kind: input, shape index: {}]   ;;  %s10692_s6 = inlined_call_operand.vmem [shape: f32[1,16], index: 6, kind: input, shape index: {}]   ;;  %s10693_s7 = inlined_call_operand.vmem [shape: bf16[16,64], index: 7, kind: input, shape index: {}]   ;;  %s10694_s8 = inlined_call_operand.vmem [shape: f32[1,64], index: 8, kind: input, shape index: {}]   ;;  %s10695_s9 = inlined_call_operand.vmem [shape: f32[9,64], index: 9, kind: input, shape index: {}]   ;;  %s10696_s10 = inlined_call_operand.vmem [shape: f32[1,64], index: 10, kind: input, shape index: {}]   ;;  %s10697_s11 = inlined_call_operand.vmem [shape: bf16[64,16], index: 11, kind: input, shape index: {}]   ;;  %s10698_s12 = inlined_call_operand.vmem [shape: f32[1,16], index: 12, kind: input, shape index: {}]   ;;  %s10699_s13 = inlined_call_operand.vmem [shape: bf16[16,64], index: 13, kind: input, shape index: {}]   ;;  %s10700_s14 = inlined_call_operand.vmem [shape: f32[1,64], index: 14, kind: input, shape index: {}]   ;;  %s10701_s15 = inlined_call_operand.vmem [shape: bf16[64,24], index: 15, kind: input, shape index: {}]   ;;  %s10702_s16 = inlined_call_operand.vmem [shape: f32[1,24], index: 16, kind: input, shape index: {}]   ;;  %s10703_s17 = inlined_call_operand.vmem [shape: bf16[24,72], index: 17, kind: input, shape index: {}]   ;;  %s10704_s18 = inlined_call_operand.vmem [shape: f32[1,72], index: 18, kind: input, shape index: {}]   ;;  %s10705_s19 = inlined_call_operand.vmem [shape: f32[9,72], index: 19, kind: input, shape index: {}]   ;;  %s10706_s20 = inlined_call_operand.vmem [shape: f32[1,72], index: 20, kind: input, shape index: {}]   ;;  %s10707_s21 = inlined_call_operand.vmem [shape: bf16[72,24], index: 21, kind: input, shape index: {}]   ;;  %s10708_s22 = inlined_call_operand.vmem [shape: f32[1,24], index: 22, kind: input, shape index: {}]   ;;  %s10709_s23 = inlined_call_operand.vmem [shape: bf16[24,128], index: 23, kind: input, shape index: {}]   ;;  %s10710_s24 = inlined_call_operand.vmem [shape: f32[1,128], index: 24, kind: input, shape index: {}]   ;;  %s10711_s25 = inlined_call_operand.vmem [shape: bf16[128,10], index: 25, kind: input, shape index: {}]   ;;  %s10712_s26 = inlined_call_operand.vmem [shape: f32[1,10], index: 26, kind: input, shape index: {}]   ;;  %s10713_s27 = inlined_call_operand.hbm [shape: f32[2,1,10], index: 27, kind: output, shape index: {}]  }
   0x1   :  { %10821 = sst [smem:[#allocation30_spill]] %s10686_s0 }
   0x2   :  { %10822 = sst [smem:[#allocation31_spill]] %s10687_s1 }
   0x3   :  { %10823 = sst [smem:[#allocation32_spill]] %s10688_s2 }
   0x4   :  { %10824 = sst [smem:[#allocation33_spill]] %s10689_s3 }
   0x5   :  { %10825 = sst [smem:[#allocation34_spill]] %s10690_s4 }
   0x6   :  { %10826 = sst [smem:[#allocation35_spill]] %s10691_s5 }
   0x7   :  { %10827 = sst [smem:[#allocation36_spill]] %s10692_s6 }
   0x8   :  { %10828 = sst [smem:[#allocation37_spill]] %s10693_s7 }
   0x9   :  { %10829 = sst [smem:[#allocation38_spill]] %s10694_s8 }
   0xa   :  { %10830 = sst [smem:[#allocation39_spill]] %s10695_s9 }
   0xb   :  { %10831 = sst [smem:[#allocation40_spill]] %s10696_s10 }
   0xc   :  { %10832 = sst [smem:[#allocation41_spill]] %s10697_s11 }
   0xd   :  { %10833 = sst [smem:[#allocation42_spill]] %s10698_s12 }
   0xe   :  { %10834 = sst [smem:[#allocation43_spill]] %s10699_s13 }
   0xf   :  { %10835 = sst [smem:[#allocation44_spill]] %s10700_s14 }
  0x10   :  { %32 = vsyncpa [#allocation6], 0 }
  0x11   :  { %34 = vsyncpa [#allocation6 + $0x1], 0  ;;  %s6984_s7 = smov 0   ;;  %s6986_s4 = smov 0  }
  0x12   :  { %s6988_s8 = smov 0   ;;  %s6990_s30 = smov 0  }
  0x13 LB: > { %10836 = sst [smem:[#allocation8_spill]] %s6829_s7  ;;  %s7005_s9 = sadd.s32 4294967295, %s6841_s30   ;;  %s6841_s30 = sphi %s6990_s30, %s11003_s30   ;;  %s6837_s8 = sphi %s6988_s8, %s11005_s8   ;;  %s6833_s4 = sphi %s6986_s4, %s11007_s4   ;;  %s6829_s7 = sphi %s6984_s7, %s11006_s7  }
  0x14   : > { %10837 = sst [smem:[#allocation9_spill]] %s6837_s8  ;;  %s6340_s5 = sadd.s32 4294967294, %s6841_s30  }
  0x15   : > { %s7009_s28 = sadd.s32 1, %s6841_s30   ;;  %s619_s0 = sadd.s32 1, %s6837_s8 }
  0x16   : > { %10838 = sst [smem:[#allocation10_spill]] %s7009_s28  ;;  %s616_s10 = ssub.s32 %s6841_s30, %s7009_s28 }
  0x17   : > { %p629_p0 = scmp.ne.s32.totalorder %s6837_s8, %s6833_s4  ;;  %p617_p1 = scmp.eq.s32.totalorder %s616_s10, 0 }
  0x18   : > { %p630_p2 = scmp.eq.s32.totalorder %s7005_s9, 1  ;;  %p635_p3 = scmp.ne.s32.totalorder %s6833_s4, %s6829_s7 }
  0x19   : > { %p636_p4 = scmp.eq.s32.totalorder %s6340_s5, 1  ;;  %p6343_p7 = scmp.ge.s32.totalorder %s6841_s30, 1 }
  0x1a   : > { %s7020_s29 = scalar_select %p617_p1, %s6837_s8, %s619_s0  }
  0x1b   : > { %p7022_p5 = por %p630_p2, %p629_p0  ;;  %p7026_p6 = por %p636_p4, %p635_p3 }
  0x1c   : > { %10839 = sst [smem:[#allocation11_spill]] %s7020_s29  ;;  %p740_p8 = scmp.lt.s32.totalorder %s6841_s30, 3 }
  0x1d   : > { %s10841_s6 = scalar_select %p7026_p6, 1, 0 }
  0x1e   : > { %p741_p9 = pnand %p6343_p7, %p740_p8 }
  0x1f   : > { %10842 = sst [smem:[#allocation12_spill]] %s10841_s6 }
  0x20   : > { %744 = sbr.rel (%p741_p9) target bundleno = 2195 (0x893), region = 128 }
  0x25   : > { %s10843_s3 = sld [smem:[#allocation31_spill]]  ;;  %vm972_vm0 = vcmask 1045504   ;;  %p811_p10 = scmp.lt.s32.totalorder %s7005_s9, 1  ;;  %vm923_vm1 = vcmask 97280   ;;  %vm1735_vm2 = vcmask 130048   ;;  %vm3179_vm3 = vcmask 523264  }
  0x26   : > { %s10844_s2 = sld [smem:[#allocation30_spill]]  ;;  %vm4684_vm4 = vcmask 1043456   ;;  %vm4635_vm5 = vcmask 195584   ;;  %vm4809_vm6 = vcmask 588800   ;;  %vm6270_vm7 = vcmask 73728  }
  0x27   : > { %s812_s6 = scalar_select %p811_p10, %s7005_s9, 1 }
  0x28   : > { %s10845_s29 = sld [smem:[#allocation37_spill]] }
  0x29   : > { %s6712_s28 = smul.u32 408, %s812_s6  ;;  %s10864_s11 = sld [smem:[#allocation34_spill]] }
  0x2a   : > { %s10870_s6 = sld [smem:[#allocation36_spill]] }
  0x2b   : > { %v6349_v0 = vld [vmem:[%s10843_s3 + $0x8] sm:$0xf]  ;;  %v6681_v1 = vld [vmem:[%s10843_s3 + $0x8] sm:$0x30]  ;;  %v6477_v3 = vld [vmem:[%s10843_s3 + $0x18] sm:$0xf] }
  0x2c   : > { %v6350_v2 = vor.u32 %v6681_v1, %v6349_v0  ;;  %v6683_v4 = vld [vmem:[%s10843_s3 + $0x18] sm:$0x30]  ;;  %v6369_v6 = vld [vmem:[%s10843_s3] sm:$0xf]  ;;  %v6680_v7 = vld [vmem:[%s10843_s3] sm:$0x30]  ;;  %s7064_s5 = scalar_lea.vmem %s10844_s2, %s6712_s28 }
  0x2d   : > { %v6478_v5 = vor.u32 %v6683_v4, %v6477_v3  ;;  %v6370_v9 = vor.u32 %v6680_v7, %v6369_v6  ;;  %v6423_v10 = vld [vmem:[%s10843_s3 + $0x10] sm:$0xf]  ;;  %v6682_v11 = vld [vmem:[%s10843_s3 + $0x10] sm:$0x30]  ;;  %v877_v16 = vld [vmem:[%s7064_s5 + $0x79] sm:$0xff]  ;;  %s10847_s28 = sld [smem:[#allocation35_spill]] }
  0x2e   : > { %v974_v8 = vsel %vm972_vm0, %v6350_v2, 0  ;;  %v6424_v13 = vor.u32 %v6682_v11, %v6423_v10  ;;  %v878_v17 = vld [vmem:[%s7064_s5 + $0x81] sm:$0xff]  ;;  %v892_v20 = vld [vmem:[%s7064_s5 + $0x129] sm:$0xff]  ;;  %v885_v21 = vld [vmem:[%s7064_s5 + $0xd9] sm:$0xff]  ;;  %s10855_s2 = sld [smem:[#allocation32_spill]] }
  0x2f   : > { %6709 = vmatpush.bf16.msra.mxu1 %v974_v8  ;;  %6711 = vmatpush.bf16.msra.mxu3 %v974_v8  ;;  %v1544_v12 = vsel %vm972_vm0, %v6478_v5, 0  ;;  %v1119_v14 = vsel %vm972_vm0, %v6370_v9, 0  ;;  %v891_v18 = vld [vmem:[%s7064_s5 + $0x121] sm:$0xff]  ;;  %v7070_v19 = vpack.c.bf16 %v878_v17, %v877_v16  ;;  %v879_v25 = vld [vmem:[%s7064_s5 + $0x91] sm:$0xff]  ;;  %v880_v26 = vld [vmem:[%s7064_s5 + $0x99] sm:$0xff]  ;;  %s10907_s8 = sld [smem:[#allocation38_spill]] }
  0x30   : > { %6710 = vmatpush.bf16.msra.mxu2 %v974_v8  ;;  %v1316_v15 = vsel %vm972_vm0, %v6424_v13, 0  ;;  %983 = vmatpush.bf16.msra.mxu0 %v974_v8  ;;  %v886_v22 = vld [vmem:[%s7064_s5 + $0xe1] sm:$0xff]  ;;  %v7075_v23 = vpack.c.bf16 %v892_v20, %v891_v18  ;;  %v893_v27 = vld [vmem:[%s7064_s5 + $0x139] sm:$0xff]  ;;  %v887_v29 = vld [vmem:[%s7064_s5 + $0xf1] sm:$0xff]  ;;  %v7091_v31 = vpack.c.bf16 %v880_v26, %v879_v25  ;;  %s10923_s10 = sld [smem:[#allocation39_spill]] }
  0x31   : > { %v7077_v24 = vpack.c.bf16 %v886_v22, %v885_v21  ;;  %v894_v28 = vld [vmem:[%s7064_s5 + $0x141] sm:$0xff]  ;;  %v888_v30 = vld [vmem:[%s7064_s5 + $0xf9] sm:$0xff]  ;;  %v868_v35 = vld [vmem:[%s7064_s5 + $0x9] sm:$0xff]  ;;  %s10935_s13 = sld [smem:[#allocation43_spill]] }
  0x32   : > { %6356 = vmatmul.msk.bf16.vlgmr.msra.gmra.mxu1 %vm923_vm1, %v7070_v19  ;;  %6363 = vmatmul.msk.bf16.vlgmr.msra.gmra.mxu3 %vm923_vm1, %v7075_v23  ;;  %v7093_v32 = vpack.c.bf16 %v894_v28, %v893_v27  ;;  %v7095_v33 = vpack.c.bf16 %v888_v30, %v887_v29  ;;  %v867_v34 = vld [vmem:[%s7064_s5 + $0x1] sm:$0xff]  ;;  %v881_v37 = vld [vmem:[%s7064_s5 + $0xa9] sm:$0xff]  ;;  %v882_v38 = vld [vmem:[%s7064_s5 + $0xb1] sm:$0xff]  ;;  %s10946_s12 = sld [smem:[#allocation42_spill]] }
  0x33   : > { %1553 = vmatpush.bf16.msrb.mxu3 %v1544_v12  ;;  %1128 = vmatpush.bf16.msrb.mxu1 %v1119_v14  ;;  %v899_v36 = vpack.c.bf16 %v868_v35, %v867_v34  ;;  %v895_v39 = vld [vmem:[%s7064_s5 + $0x151] sm:$0xff]  ;;  %v896_v40 = vld [vmem:[%s7064_s5 + $0x159] sm:$0xff]  ;;  %v889_v41 = vld [vmem:[%s7064_s5 + $0x109] sm:$0xff]  ;;  %v7112_v43 = vpack.c.bf16 %v882_v38, %v881_v37  ;;  %s10947_s14 = sld [smem:[#allocation44_spill]] }
  0x34   : > { %1325 = vmatpush.bf16.msrb.mxu2 %v1316_v15  ;;  %v890_v42 = vld [vmem:[%s7064_s5 + $0x111] sm:$0xff]  ;;  %v913_v44 = vpack.c.bf16 %v896_v40, %v895_v39  ;;  %v6441_v46 = vld [vmem:[%s7064_s5 + $0x19] sm:$0xff]  ;;  %v6442_v47 = vld [vmem:[%s7064_s5 + $0x21] sm:$0xff] }
  0x35   : > { %6360 = vmatmul.msk.bf16.vlgmr.msra.gmra.mxu2 %vm923_vm1, %v7077_v24  ;;  %6351 = vmatmul.msk.bf16.vlgmr.msra.gmra.mxu0 %vm923_vm1, %v899_v36  ;;  %v7114_v45 = vpack.c.bf16 %v890_v42, %v889_v41  ;;  %v1471_v48 = vpack.c.bf16 %v6442_v47, %v6441_v46  ;;  %v883_v49 = vld [vmem:[%s7064_s5 + $0xc1] sm:$0xff]  ;;  %v884_v50 = vld [vmem:[%s7064_s5 + $0xc9] sm:$0xff]  ;;  %v898_v52 = vld [vmem:[%s7064_s5 + $0x171] sm:$0xff] }
  0x36   : > { %v897_v51 = vld [vmem:[%s7064_s5 + $0x169] sm:$0xff]  ;;  %v6387_v53 = vld [vmem:[%s7064_s5 + $0x18] sm:$0xff]  ;;  %v6388_v54 = vld [vmem:[%s7064_s5 + $0x20] sm:$0xff]  ;;  %v7130_v55 = vpack.c.bf16 %v884_v50, %v883_v49 }
  0x37   : > { %v914_v56 = vpack.c.bf16 %v898_v52, %v897_v51  ;;  %v1243_v57 = vpack.c.bf16 %v6388_v54, %v6387_v53  ;;  %v6443_v58 = vld [vmem:[%s7064_s5 + $0x31] sm:$0xff]  ;;  %v6444_v59 = vld [vmem:[%s7064_s5 + $0x39] sm:$0xff]  ;;  %v818_v62 = vld [vmem:[%s7064_s5 + $0x8] sm:$0xff]  ;;  %v10728_v51 = vmov 0.0  }
  0x38   : > { %v1472_v60 = vpack.c.bf16 %v6444_v59, %v6443_v58  ;;  %v817_v61 = vld [vmem:[%s7064_s5] sm:$0xff]  ;;  %v6389_v63 = vld [vmem:[%s7064_s5 + $0x30] sm:$0xff]  ;;  %v6390_v0 = vld [vmem:[%s7064_s5 + $0x38] sm:$0xff]  ;;  %1741 = vst.msk [vmem:[#allocation2 + $0x28] sm:$0xff] %vm1735_vm2, %v10728_v51 }
  0x39   : > { %v849_v1 = vpack.c.bf16 %v818_v62, %v817_v61  ;;  %v1244_v2 = vpack.c.bf16 %v6390_v0, %v6389_v63  ;;  %v6445_v3 = vld [vmem:[%s7064_s5 + $0x49] sm:$0xff]  ;;  %v6446_v4 = vld [vmem:[%s7064_s5 + $0x51] sm:$0xff]  ;;  %v6447_v9 = vld [vmem:[%s7064_s5 + $0x61] sm:$0xff]  ;;  %1736 = vst.msk [vmem:[#allocation2] sm:$0xff] %vm1735_vm2, %v10728_v51 }
  0x3a   : > { %v1473_v5 = vpack.c.bf16 %v6446_v4, %v6445_v3  ;;  %v6391_v6 = vld [vmem:[%s7064_s5 + $0x48] sm:$0xff]  ;;  %v6392_v7 = vld [vmem:[%s7064_s5 + $0x50] sm:$0xff]  ;;  %v6393_v12 = vld [vmem:[%s7064_s5 + $0x60] sm:$0xff]  ;;  %1737 = vst.msk [vmem:[#allocation2 + $0x8] sm:$0xff] %vm1735_vm2, %v10728_v51 }
  0x3b   : > { %v1245_v8 = vpack.c.bf16 %v6392_v7, %v6391_v6  ;;  %v6448_v10 = vld [vmem:[%s7064_s5 + $0x69] sm:$0xff]  ;;  %v6685_v15 = vld [vmem:[%s10845_s29] sm:$0xff]  ;;  %v6395_v16 = vld [vmem:[%s7064_s5 + $0x78] sm:$0xff]  ;;  %1738 = vst.msk [vmem:[#allocation2 + $0x10] sm:$0xff] %vm1735_vm2, %v10728_v51  ;;  %s10857_s29 = sld [smem:[#allocation33_spill]] }
  0x3c   : > { %v1474_v11 = vpack.c.bf16 %v6448_v10, %v6447_v9  ;;  %v6394_v13 = vld [vmem:[%s7064_s5 + $0x68] sm:$0xff]  ;;  %3065 = vmatpush.bf16.msra.mxu1 %v6685_v15  ;;  %v6396_v17 = vld [vmem:[%s7064_s5 + $0x80] sm:$0xff]  ;;  %v6397_v20 = vld [vmem:[%s7064_s5 + $0x90] sm:$0xff]  ;;  %1739 = vst.msk [vmem:[#allocation2 + $0x18] sm:$0xff] %vm1735_vm2, %v10728_v51 }
  0x3d   : > { %v1246_v14 = vpack.c.bf16 %v6394_v13, %v6393_v12  ;;  %v1247_v18 = vpack.c.bf16 %v6396_v17, %v6395_v16  ;;  %v6398_v21 = vld [vmem:[%s7064_s5 + $0x98] sm:$0xff]  ;;  %v6684_v29 = vld [vmem:[%s10847_s28] sm:$0xff]  ;;  %v6399_v30 = vld [vmem:[%s7064_s5 + $0xa8] sm:$0xff]  ;;  %1740 = vst.msk [vmem:[#allocation2 + $0x20] sm:$0xff] %vm1735_vm2, %v10728_v51  ;;  %s10908_s28 = smov %s10907_s8 }
  0x3e   : > { %v1248_v25 = vpack.c.bf16 %v6398_v21, %v6397_v20  ;;  %2868 = vmatpush.bf16.msrb.mxu0 %v6684_v29  ;;  %v6400_v34 = vld [vmem:[%s7064_s5 + $0xb0] sm:$0xff]  ;;  %v6401_v41 = vld [vmem:[%s7064_s5 + $0xc0] sm:$0xff]  ;;  %v6402_v42 = vld [vmem:[%s7064_s5 + $0xc8] sm:$0xff]  ;;  %1742 = vst.msk [vmem:[#allocation2 + $0x30] sm:$0xff] %vm1735_vm2, %v10728_v51 }
  0x3f   : > { %v1249_v37 = vpack.c.bf16 %v6400_v34, %v6399_v30  ;;  %v6404_v52 = vld [vmem:[%s7064_s5 + $0xe0] sm:$0xff]  ;;  %1743 = vst.msk [vmem:[#allocation2 + $0x38] sm:$0xff] %vm1735_vm2, %v10728_v51  ;;  %v6405_v62 = vld [vmem:[%s7064_s5 + $0xf0] sm:$0xff]  ;;  %v6406_v63 = vld [vmem:[%s7064_s5 + $0xf8] sm:$0xff] }
  0x40   : > { %1744 = vst.msk [vmem:[#allocation2 + $0x40] sm:$0xff] %vm1735_vm2, %v10728_v51  ;;  %v7296_v3 = vpack.c.bf16 %v6406_v63, %v6405_v62  ;;  %v7316_v6 = vld [vmem:[%s10855_s2] ss:$0 sm:$0xff]  ;;  %v6407_v17 = vld [vmem:[%s7064_s5 + $0x108] sm:$0xff] }
  0x41   : > { %1745 = vst.msk [vmem:[#allocation2 + $0x48] sm:$0xff] %vm1735_vm2, %v10728_v51 }
  0x42   : > { %6357 = vmatmul.msk.bf16.gmra.mxu1 %vm923_vm1, %v7091_v31  ;;  %6364 = vmatmul.msk.bf16.gmra.mxu3 %vm923_vm1, %v7093_v32  ;;  %1746 = vst.msk [vmem:[#allocation2 + $0x50] sm:$0xff] %vm1735_vm2, %v10728_v51 }
  0x43   : > { %1747 = vst.msk [vmem:[#allocation2 + $0x58] sm:$0xff] %vm1735_vm2, %v10728_v51 }
  0x44   : > { %1748 = vst.msk [vmem:[#allocation2 + $0x60] sm:$0xff] %vm1735_vm2, %v10728_v51 }
  0x45   : > { %6361 = vmatmul.msk.bf16.gmra.mxu2 %vm923_vm1, %v7095_v33  ;;  %6352 = vmatmul.msk.bf16.gmra.mxu0 %vm923_vm1, %v1471_v48  ;;  %1749 = vst.msk [vmem:[#allocation2 + $0x68] sm:$0xff] %vm1735_vm2, %v10728_v51 }
  0x46   : > { %1750 = vst.msk [vmem:[#allocation2 + $0x70] sm:$0xff] %vm1735_vm2, %v10728_v51 }
  0x47   : > { %1751 = vst.msk [vmem:[#allocation2 + $0x78] sm:$0xff] %vm1735_vm2, %v10728_v51 }
  0x48   : > { %1752 = vst.msk [vmem:[#allocation2 + $0x80] sm:$0xff] %vm1735_vm2, %v10728_v51 }
  0x49   : > { %1753 = vst.msk [vmem:[#allocation2 + $0x88] sm:$0xff] %vm1735_vm2, %v10728_v51 }
  0x4a   : > { %1754 = vst.msk [vmem:[#allocation2 + $0x90] sm:$0xff] %vm1735_vm2, %v10728_v51 }
  0x4b   : > { %1755 = vst.msk [vmem:[#allocation2 + $0x98] sm:$0xff] %vm1735_vm2, %v10728_v51 }
  0x4c   : > { %1756 = vst.msk [vmem:[#allocation2 + $0xa0] sm:$0xff] %vm1735_vm2, %v10728_v51 }
  0x4d   : > { %1757 = vst.msk [vmem:[#allocation2 + $0xa8] sm:$0xff] %vm1735_vm2, %v10728_v51 }
  0x4e   : > { %1758 = vst.msk [vmem:[#allocation2 + $0xb0] sm:$0xff] %vm1735_vm2, %v10728_v51 }
  0x4f   : > { %1759 = vst.msk [vmem:[#allocation2 + $0xb8] sm:$0xff] %vm1735_vm2, %v10728_v51 }
  0x50   : > { %1760 = vst.msk [vmem:[#allocation2 + $0xc0] sm:$0xff] %vm1735_vm2, %v10728_v51 }
  0x51   : > { %1761 = vst.msk [vmem:[#allocation2 + $0xc8] sm:$0xff] %vm1735_vm2, %v10728_v51 }
  0x52   : > { %6358 = vmatmul.msk.bf16.gmra.mxu1 %vm923_vm1, %v7112_v43  ;;  %6365 = vmatmul.msk.bf16.gmra.mxu3 %vm923_vm1, %v913_v44  ;;  %1762 = vst.msk [vmem:[#allocation2 + $0xd0] sm:$0xff] %vm1735_vm2, %v10728_v51 }
  0x53   : > { %1763 = vst.msk [vmem:[#allocation2 + $0xd8] sm:$0xff] %vm1735_vm2, %v10728_v51 }
  0x54   : > { %1764 = vst.msk [vmem:[#allocation2 + $0xe0] sm:$0xff] %vm1735_vm2, %v10728_v51 }
  0x55   : > { %6362 = vmatmul.msk.bf16.gmra.mxu2 %vm923_vm1, %v7114_v45  ;;  %6353 = vmatmul.msk.bf16.gmra.mxu0 %vm923_vm1, %v1472_v60  ;;  %1765 = vst.msk [vmem:[#allocation2 + $0xe8] sm:$0xff] %vm1735_vm2, %v10728_v51 }
  0x56   : > { %1766 = vst.msk [vmem:[#allocation2 + $0xf0] sm:$0xff] %vm1735_vm2, %v10728_v51 }
  0x57   : > { %1767 = vst.msk [vmem:[#allocation2 + $0xf8] sm:$0xff] %vm1735_vm2, %v10728_v51 }
  0x58   : > { %1768 = vst.msk [vmem:[#allocation2 + $0x100] sm:$0xff] %vm1735_vm2, %v10728_v51 }
  0x59   : > { %1769 = vst.msk [vmem:[#allocation2 + $0x108] sm:$0xff] %vm1735_vm2, %v10728_v51 }
  0x5a   : > { %1770 = vst.msk [vmem:[#allocation2 + $0x110] sm:$0xff] %vm1735_vm2, %v10728_v51 }
  0x5b   : > { %1771 = vst.msk [vmem:[#allocation2 + $0x118] sm:$0xff] %vm1735_vm2, %v10728_v51 }
  0x5c   : > { %1772 = vst.msk [vmem:[#allocation2 + $0x120] sm:$0xff] %vm1735_vm2, %v10728_v51 }
  0x5d   : > { %1773 = vst.msk [vmem:[#allocation2 + $0x128] sm:$0xff] %vm1735_vm2, %v10728_v51 }
  0x5e   : > { %1774 = vst.msk [vmem:[#allocation2 + $0x130] sm:$0xff] %vm1735_vm2, %v10728_v51 }
  0x5f   : > { %1775 = vst.msk [vmem:[#allocation2 + $0x138] sm:$0xff] %vm1735_vm2, %v10728_v51 }
  0x60   : > { %1776 = vst.msk [vmem:[#allocation2 + $0x140] sm:$0xff] %vm1735_vm2, %v10728_v51 }
  0x61   : > { %1777 = vst.msk [vmem:[#allocation2 + $0x148] sm:$0xff] %vm1735_vm2, %v10728_v51 }
  0x62   : > { %6359 = vmatmul.msk.bf16.gmra.mxu1 %vm923_vm1, %v7130_v55  ;;  %6366 = vmatmul.msk.bf16.gmra.mxu3 %vm923_vm1, %v914_v56  ;;  %1778 = vst.msk [vmem:[#allocation2 + $0x150] sm:$0xff] %vm1735_vm2, %v10728_v51 }
  0x63   : > { %1779 = vst.msk [vmem:[#allocation2 + $0x158] sm:$0xff] %vm1735_vm2, %v10728_v51 }
  0x64   : > { %1780 = vst.msk [vmem:[#allocation2 + $0x160] sm:$0xff] %vm1735_vm2, %v10728_v51 }
  0x65   : > { %6425 = vmatmul.msk.bf16.vlgmr.msrb.gmra.mxu2 %vm923_vm1, %v1243_v57  ;;  %6354 = vmatmul.msk.bf16.gmra.mxu0 %vm923_vm1, %v1473_v5  ;;  %1781 = vst.msk [vmem:[#allocation2 + $0x168] sm:$0xff] %vm1735_vm2, %v10728_v51 }
  0x66   : > { %1782 = vst.msk [vmem:[#allocation2 + $0x170] sm:$0xff] %vm1735_vm2, %v10728_v51 }
  0x67   : > { %1783 = vst.msk [vmem:[#allocation2 + $0x178] sm:$0xff] %vm1735_vm2, %v10728_v51 }
  0x68   : > { %1784 = vst.msk [vmem:[#allocation2 + $0x180] sm:$0xff] %vm1735_vm2, %v10728_v51 }
  0x69   : > { %1785 = vst.msk [vmem:[#allocation2 + $0x188] sm:$0xff] %vm1735_vm2, %v10728_v51 }
  0x6a   : > { %1786 = vst.msk [vmem:[#allocation2 + $0x190] sm:$0xff] %vm1735_vm2, %v10728_v51 }
  0x6b   : > { %1787 = vst.msk [vmem:[#allocation2 + $0x198] sm:$0xff] %vm1735_vm2, %v10728_v51 }
  0x6c   : > { %1788 = vst.msk [vmem:[#allocation2 + $0x1a0] sm:$0xff] %vm1735_vm2, %v10728_v51 }
  0x6d   : > { %1789 = vst.msk [vmem:[#allocation2 + $0x1a8] sm:$0xff] %vm1735_vm2, %v10728_v51 }
  0x6e   : > { %1790 = vst.msk [vmem:[#allocation2 + $0x1b0] sm:$0xff] %vm1735_vm2, %v10728_v51 }
  0x6f   : > { %1791 = vst.msk [vmem:[#allocation2 + $0x1b8] sm:$0xff] %vm1735_vm2, %v10728_v51 }
  0x70   : > { %1792 = vst.msk [vmem:[#allocation2 + $0x1c0] sm:$0xff] %vm1735_vm2, %v10728_v51 }
  0x71   : > { %1793 = vst.msk [vmem:[#allocation2 + $0x1c8] sm:$0xff] %vm1735_vm2, %v10728_v51 }
  0x72   : > { %6371 = vmatmul.msk.bf16.vlgmr.msrb.gmra.mxu1 %vm923_vm1, %v849_v1  ;;  %6479 = vmatmul.msk.bf16.vlgmr.msrb.gmra.mxu3 %vm923_vm1, %v1471_v48  ;;  %v1250_v48 = vpack.c.bf16 %v6402_v42, %v6401_v41  ;;  %v6409_v42 = vld [vmem:[%s7064_s5 + $0x120] sm:$0xff]  ;;  %1794 = vst.msk [vmem:[#allocation2 + $0x1d0] sm:$0xff] %vm1735_vm2, %v10728_v51 }
  0x73   : > { %1795 = vst.msk [vmem:[#allocation2 + $0x1d8] sm:$0xff] %vm1735_vm2, %v10728_v51 }
  0x74   : > { %1796 = vst.msk [vmem:[#allocation2 + $0x1e0] sm:$0xff] %vm1735_vm2, %v10728_v51 }
  0x75   : > { %6426 = vmatmul.msk.bf16.gmra.mxu2 %vm923_vm1, %v1244_v2  ;;  %6355 = vmatmul.msk.bf16.gmra.mxu0 %vm923_vm1, %v1474_v11  ;;  %1797 = vst.msk [vmem:[#allocation2 + $0x1e8] sm:$0xff] %vm1735_vm2, %v10728_v51 }
  0x76   : > { %1798 = vst.msk [vmem:[#allocation2 + $0x1f0] sm:$0xff] %vm1735_vm2, %v10728_v51 }
  0x77   : > { %1799 = vst.msk [vmem:[#allocation2 + $0x1f8] sm:$0xff] %vm1735_vm2, %v10728_v51 }
  0x78   : > { %1800 = vst.msk [vmem:[#allocation2 + $0x200] sm:$0xff] %vm1735_vm2, %v10728_v51 }
  0x79   : > { %1801 = vst.msk [vmem:[#allocation2 + $0x208] sm:$0xff] %vm1735_vm2, %v10728_v51 }
  0x7a   : > { %1802 = vst.msk [vmem:[#allocation2 + $0x210] sm:$0xff] %vm1735_vm2, %v10728_v51 }
  0x7b   : > { %1803 = vst.msk [vmem:[#allocation2 + $0x218] sm:$0xff] %vm1735_vm2, %v10728_v51 }
  0x7c   : > { %1804 = vst.msk [vmem:[#allocation2 + $0x220] sm:$0xff] %vm1735_vm2, %v10728_v51 }
  0x7d   : > { %1805 = vst.msk [vmem:[#allocation2 + $0x228] sm:$0xff] %vm1735_vm2, %v10728_v51 }
  0x7e   : > { %1806 = vst.msk [vmem:[#allocation2 + $0x230] sm:$0xff] %vm1735_vm2, %v10728_v51 }
  0x7f   : > { %1807 = vst.msk [vmem:[#allocation2 + $0x238] sm:$0xff] %vm1735_vm2, %v10728_v51 }
  0x82   : > { %6372 = vmatmul.msk.bf16.gmra.mxu1 %vm923_vm1, %v1243_v57  ;;  %6480 = vmatmul.msk.bf16.gmra.mxu3 %vm923_vm1, %v1472_v60 }
  0x85   : > { %6427 = vmatmul.msk.bf16.gmra.mxu2 %vm923_vm1, %v1245_v8 }
  0x92   : > { %6373 = vmatmul.msk.bf16.gmra.mxu1 %vm923_vm1, %v1244_v2  ;;  %6481 = vmatmul.msk.bf16.gmra.mxu3 %vm923_vm1, %v1473_v5 }
  0x95   : > { %6428 = vmatmul.msk.bf16.gmra.mxu2 %vm923_vm1, %v1246_v14 }
  0xa2   : > { %6374 = vmatmul.msk.bf16.gmra.mxu1 %vm923_vm1, %v1245_v8  ;;  %6482 = vmatmul.msk.bf16.gmra.mxu3 %vm923_vm1, %v1474_v11 }
  0xa5   : > { %6429 = vmatmul.msk.bf16.gmra.mxu2 %vm923_vm1, %v1247_v18 }
  0xaf   : > { %v7172_v22 = vpop.f32.mrf.mxu1 }
  0xb2   : > { %6375 = vmatmul.msk.bf16.gmra.mxu1 %vm923_vm1, %v1246_v14  ;;  %6483 = vmatmul.msk.bf16.gmra.mxu3 %vm923_vm1, %v7070_v19  ;;  %v985_v58 = vpop.f32.mrf.mxu0 }
  0xb5   : > { %6430 = vmatmul.msk.bf16.gmra.mxu2 %vm923_vm1, %v1248_v25  ;;  %v7178_v26 = vpop.f32.mrf.mxu3 }
  0xb6   : > { %10846 = vst [vmem:[#allocation13_spill] sm:$0xff] %v7178_v26 }
  0xb7   : > { %v7182_v28 = vpop.f32.mrf.mxu1 }
  0xb8   : > { %v7180_v27 = vpop.f32.mrf.mxu2 }
  0xba   : > { %v7278_v61 = vpop.f32.mrf.mxu0 }
  0xbd   : > { %v7189_v35 = vpop.f32.mrf.mxu3 }
  0xbe   : > { %10848 = vst [vmem:[#allocation14_spill] sm:$0xff] %v7189_v35 }
  0xbf   : > { %v7193_v36 = vpop.f32.mrf.mxu1 }
  0xc0   : > { %v7191_v19 = vpop.f32.mrf.mxu2 }
  0xc2   : > { %6376 = vmatmul.msk.bf16.gmra.mxu1 %vm923_vm1, %v1247_v18  ;;  %6484 = vmatmul.msk.bf16.gmra.mxu3 %vm923_vm1, %v7091_v31  ;;  %v990_v7 = vpop.f32.mrf.mxu0  ;;  %v6408_v18 = vld [vmem:[%s7064_s5 + $0x110] sm:$0xff] }
  0xc3   : > { %v7361_v20 = vpack.c.bf16 %v6408_v18, %v6407_v17 }
  0xc5   : > { %6431 = vmatmul.msk.bf16.gmra.mxu2 %vm923_vm1, %v1249_v37  ;;  %v7199_v38 = vpop.f32.mrf.mxu3 }
  0xc6   : > { %10849 = vst [vmem:[#allocation15_spill] sm:$0xff] %v7199_v38 }
  0xc7   : > { %v7203_v40 = vpop.f32.mrf.mxu1 }
  0xc8   : > { %v7201_v39 = vpop.f32.mrf.mxu2 }
  0xca   : > { %v992_v15 = vpop.f32.mrf.mxu0 }
  0xcd   : > { %v7207_v44 = vpop.f32.mrf.mxu3 }
  0xce   : > { %10850 = vst [vmem:[#allocation16_spill] sm:$0xff] %v7207_v44 }
  0xcf   : > { %v7211_v47 = vpop.f32.mrf.mxu1 }
  0xd0   : > { %v7209_v46 = vpop.f32.mrf.mxu2 }
  0xd2   : > { %6377 = vmatmul.msk.bf16.gmra.mxu1 %vm923_vm1, %v1248_v25  ;;  %6485 = vmatmul.msk.bf16.gmra.mxu3 %vm923_vm1, %v7112_v43  ;;  %v6403_v43 = vld [vmem:[%s7064_s5 + $0xd8] sm:$0xff]  ;;  %v995_v25 = vpop.f32.mrf.mxu0 }
  0xd3   : > { %v7243_v57 = vpack.c.bf16 %v6404_v52, %v6403_v43 }
  0xd5   : > { %6432 = vmatmul.msk.bf16.gmra.mxu2 %vm923_vm1, %v1250_v48  ;;  %v7217_v31 = vpop.f32.mrf.mxu3 }
  0xd6   : > { %10851 = vst [vmem:[#allocation17_spill] sm:$0xff] %v7217_v31 }
  0xd7   : > { %v7221_v50 = vpop.f32.mrf.mxu1 }
  0xd8   : > { %v7219_v49 = vpop.f32.mrf.mxu2 }
  0xda   : > { %v997_v41 = vpop.f32.mrf.mxu0 }
  0xdd   : > { %v7235_v53 = vpop.f32.mrf.mxu3 }
  0xde   : > { %10852 = vst [vmem:[#allocation18_spill] sm:$0xff] %v7235_v53 }
  0xdf   : > { %v7241_v56 = vpop.f32.mrf.mxu1 }
  0xe0   : > { %v7237_v54 = vpop.f32.mrf.mxu2 }
  0xe2   : > { %6378 = vmatmul.msk.bf16.gmra.mxu1 %vm923_vm1, %v1249_v37  ;;  %6486 = vmatmul.msk.bf16.gmra.mxu3 %vm923_vm1, %v7130_v55  ;;  %v1000_v17 = vpop.f32.mrf.mxu0 }
  0xe5   : > { %6433 = vmatmul.msk.bf16.gmra.mxu2 %vm923_vm1, %v7243_v57  ;;  %v7264_v59 = vpop.f32.mrf.mxu3 }
  0xe6   : > { %10853 = vst [vmem:[#allocation19_spill] sm:$0xff] %v7264_v59 }
  0xe7   : > { %v7268_v55 = vpop.f32.mrf.mxu1 }
  0xe8   : > { %v1327_v60 = vpop.f32.mrf.mxu2 }
  0xed   : > { %v7288_v0 = vpop.f32.mrf.mxu3 }
  0xee   : > { %10854 = vst [vmem:[#allocation20_spill] sm:$0xff] %v7288_v0 }
  0xef   : > { %v1130_v2 = vpop.f32.mrf.mxu1 }
  0xf0   : > { %v7290_v1 = vpop.f32.mrf.mxu2  ;;  %v1131_v4 = vadd.f32 %v1130_v2, %v985_v58  ;;  %v7397_v58 = vld [vmem:[%s10857_s29] sm:$0xff] }
  0xf1   : > { %v7413_v2 = vperm.slane %v7397_v58, 0  ;;  %v7519_v51 = vperm.slane %v7397_v58, 7 }
  0xf2   : > { %6379 = vmatmul.msk.bf16.gmra.mxu1 %vm923_vm1, %v1250_v48  ;;  %6487 = vmatmul.msk.bf16.gmra.mxu3 %vm923_vm1, %v7077_v24  ;;  %v1407_v5 = vadd.f32 %v1327_v60, %v1131_v4  ;;  %v6410_v48 = vld [vmem:[%s7064_s5 + $0x128] sm:$0xff]  ;;  %v7416_v4 = vperm.slane %v7397_v58, 1 }
  0xf3   : > { %v7403_v62 = vpack.c.bf16 %v6410_v48, %v6409_v42  ;;  %v1844_v42 = vld [vmem:[#allocation2 + $0xf] sm:$0xff] }
  0xf4   : > { %v1941_v48 = vld [vmem:[#allocation2 + $0x10] sm:$0xff] }
  0xf5   : > { %6434 = vmatmul.msk.bf16.gmra.mxu2 %vm923_vm1, %v7296_v3  ;;  %v1555_v24 = vpop.f32.mrf.mxu3 }
  0xf6   : > { %v1635_v8 = vadd.f32 %v1555_v24, %v1407_v5  ;;  %v1843_v5 = vld [vmem:[#allocation2 + $0x7] sm:$0xff] }
  0xf7   : > { %v1132_v9 = vpop.f32.mrf.mxu1 }
  0xf8   : > { %v1332_v10 = vpop.f32.mrf.mxu2  ;;  %v7327_v11 = vadd.f32 %v7316_v6, %v1635_v8  ;;  %v1133_v43 = vadd.f32 %v1132_v9, %v7278_v61 }
  0xfa   : > { %10856 = vst [vmem:[#allocation21_spill] sm:$0xff] %v7327_v11  ;;  %v10735_v12 = vmax.f32 %v7327_v11, 0.0  ;;  %v1408_v63 = vadd.f32 %v7290_v1, %v1133_v43 }
  0xfc   : > { %1809 = vst.msk [vmem:[#allocation2 + $0x28] sm:$0xff] %vm1735_vm2, %v10735_v12 }
  0xfd   : > { %v1557_v13 = vpop.f32.mrf.mxu3 }
  0xff   : > { %v1135_v14 = vpop.f32.mrf.mxu1 }
 0x100   : > { %v1334_v16 = vpop.f32.mrf.mxu2  ;;  %v1136_v34 = vadd.f32 %v1135_v14, %v990_v7  ;;  %v1940_v7 = vld [vmem:[#allocation2 + $0x8] sm:$0xff]  ;;  %v1876_v14 = vmul.f32 %v7413_v2, %v1843_v5 }
 0x102   : > { %6380 = vmatmul.msk.bf16.gmra.mxu1 %vm923_vm1, %v7243_v57  ;;  %6488 = vmatmul.msk.bf16.gmra.mxu3 %vm923_vm1, %v7095_v33  ;;  %v1409_v61 = vadd.f32 %v1332_v10, %v1136_v34 }
 0x105   : > { %v1560_v21 = vpop.f32.mrf.mxu3  ;;  %6435 = vmatmul.msk.bf16.gmra.mxu2 %vm923_vm1, %v7361_v20 }
 0x106   : > { %v1637_v1 = vadd.f32 %v1560_v21, %v1409_v61 }
 0x107   : > { %v1137_v33 = vpop.f32.mrf.mxu1 }
 0x108   : > { %v1337_v29 = vpop.f32.mrf.mxu2  ;;  %v1138_v60 = vadd.f32 %v1137_v33, %v992_v15  ;;  %v1973_v15 = vmul.f32 %v7416_v4, %v1940_v7  ;;  %v7433_v33 = vperm.slane %v7397_v58, 2  ;;  %v6411_v7 = vld [vmem:[%s7064_s5 + $0x138] sm:$0xff] }
 0x10a   : > { %v1410_v24 = vadd.f32 %v1334_v16, %v1138_v60  ;;  %v2005_v34 = vadd.f32 %v1973_v15, %v1876_v14 }
 0x10d   : > { %v1562_v30 = vpop.f32.mrf.mxu3 }
 0x10e   : > { %v1638_v10 = vadd.f32 %v1562_v30, %v1410_v24 }
 0x10f   : > { %v1140_v37 = vpop.f32.mrf.mxu1 }
 0x110   : > { %v1141_v52 = vadd.f32 %v1140_v37, %v995_v25  ;;  %v1339_v57 = vpop.f32.mrf.mxu2  ;;  %v2037_v25 = vld [vmem:[#allocation2 + $0x9] sm:$0xff]  ;;  %v7448_v30 = vadd.f32 %v7316_v6, %v1638_v10 }
 0x111   : > { %v2070_v43 = vmul.f32 %v7433_v33, %v2037_v25 }
 0x112   : > { %6381 = vmatmul.msk.bf16.gmra.mxu1 %vm923_vm1, %v7296_v3  ;;  %6489 = vmatmul.msk.bf16.gmra.mxu3 %vm923_vm1, %v7114_v45  ;;  %v1411_v3 = vadd.f32 %v1337_v29, %v1141_v52  ;;  %v1636_v45 = vadd.f32 %v1557_v13, %v1408_v63  ;;  %v7443_v29 = vadd.f32 %v7316_v6, %v1637_v1  ;;  %v7457_v52 = vperm.slane %v7397_v58, 3  ;;  %v2134_v63 = vld [vmem:[#allocation2 + $0x27] sm:$0xff] }
 0x113   : > { %10860 = vst [vmem:[#allocation24_spill] sm:$0xff] %v7448_v30  ;;  %v10732_v24 = vmax.f32 %v7448_v30, 0.0  ;;  %v1877_v1 = vmul.f32 %v7413_v2, %v1844_v42 }
 0x114   : > { %v7438_v21 = vadd.f32 %v7316_v6, %v1636_v45  ;;  %10859 = vst [vmem:[#allocation23_spill] sm:$0xff] %v7443_v29  ;;  %v6412_v45 = vld [vmem:[%s7064_s5 + $0x140] sm:$0xff]  ;;  %v2167_v25 = vmul.f32 %v7457_v52, %v2134_v63 }
 0x115   : > { %v1565_v8 = vpop.f32.mrf.mxu3  ;;  %6436 = vmatmul.msk.bf16.gmra.mxu2 %vm923_vm1, %v7403_v62  ;;  %1812 = vst.msk [vmem:[#allocation2 + $0x50] sm:$0xff] %vm1735_vm2, %v10732_v24 }
 0x116   : > { %v1639_v13 = vadd.f32 %v1565_v8, %v1411_v3  ;;  %10858 = vst [vmem:[#allocation22_spill] sm:$0xff] %v7438_v21  ;;  %v10734_v60 = vmax.f32 %v7438_v21, 0.0  ;;  %v10733_v3 = vmax.f32 %v7443_v29, 0.0 }
 0x117   : > { %v1142_v9 = vpop.f32.mrf.mxu1 }
 0x118   : > { %v1143_v16 = vadd.f32 %v1142_v9, %v997_v41  ;;  %v1342_v18 = vpop.f32.mrf.mxu2  ;;  %v7453_v37 = vadd.f32 %v7316_v6, %v1639_v13  ;;  %v1974_v9 = vmul.f32 %v7416_v4, %v1941_v48  ;;  %v2038_v13 = vld [vmem:[#allocation2 + $0x11] sm:$0xff]  ;;  %1810 = vst.msk [vmem:[#allocation2 + $0x30] sm:$0xff] %vm1735_vm2, %v10734_v60  ;;  %v1002_v48 = vpop.f32.mrf.mxu0 }
 0x119   : > { %1811 = vst.msk [vmem:[#allocation2 + $0x48] sm:$0xff] %vm1735_vm2, %v10733_v3 }
 0x11a   : > { %10861 = vst [vmem:[#allocation25_spill] sm:$0xff] %v7453_v37  ;;  %v1412_v41 = vadd.f32 %v1339_v57, %v1143_v16  ;;  %v10731_v10 = vmax.f32 %v7453_v37, 0.0  ;;  %v2102_v16 = vadd.f32 %v2070_v43, %v2005_v34  ;;  %v7493_v43 = vperm.slane %v7397_v58, 4 }
 0x11c   : > { %1813 = vst.msk [vmem:[#allocation2 + $0x68] sm:$0xff] %vm1735_vm2, %v10731_v10 }
 0x11d   : > { %v1567_v61 = vpop.f32.mrf.mxu3 }
 0x11e   : > { %v1640_v57 = vadd.f32 %v1567_v61, %v1412_v41  ;;  %v2231_v41 = vld [vmem:[#allocation2 + $0x28] sm:$0xff]  ;;  %v2071_v61 = vmul.f32 %v7433_v33, %v2038_v13  ;;  %v6414_v13 = vld [vmem:[%s7064_s5 + $0x158] sm:$0xff] }
 0x11f   : > { %v1145_v5 = vpop.f32.mrf.mxu1  ;;  %v2328_v24 = vld [vmem:[#allocation2 + $0x29] sm:$0xff] }
 0x120   : > { %v1146_v8 = vadd.f32 %v1145_v5, %v1000_v17  ;;  %v7476_v14 = vadd.f32 %v7316_v6, %v1640_v57  ;;  %v1344_v15 = vpop.f32.mrf.mxu2  ;;  %v7484_v17 = vpack.c.bf16 %v6412_v45, %v6411_v7  ;;  %v2199_v57 = vadd.f32 %v2167_v25, %v2102_v16  ;;  %v7534_v12 = vld [vmem:[#allocation2 + $0x48] sm:$0xff]  ;;  %v1005_v30 = vpop.f32.mrf.mxu0 }
 0x121   : > { %v7510_v7 = vperm.slane %v7397_v58, 5 }
 0x122   : > { %10862 = vst [vmem:[#allocation26_spill] sm:$0xff] %v7476_v14  ;;  %6382 = vmatmul.msk.bf16.gmra.mxu1 %vm923_vm1, %v7361_v20  ;;  %v10730_v42 = vmax.f32 %v7476_v14, 0.0  ;;  %6490 = vmatmul.msk.bf16.gmra.mxu3 %vm923_vm1, %v7075_v23  ;;  %v1413_v34 = vadd.f32 %v1342_v18, %v1146_v8  ;;  %v2006_v20 = vadd.f32 %v1974_v9, %v1877_v1  ;;  %v7514_v9 = vperm.slane %v7397_v58, 6  ;;  %v2329_v58 = vld [vmem:[#allocation2 + $0x31] sm:$0xff]  ;;  %v7546_v14 = vld [vmem:[#allocation2 + $0x49] sm:$0xff] }
 0x123   : > { %v1878_v23 = vmul.f32 %v2134_v63, %v7413_v2  ;;  %v1975_v18 = vmul.f32 %v2231_v41, %v7416_v4  ;;  %v2264_v1 = vmul.f32 %v7493_v43, %v2231_v41  ;;  %v6413_v63 = vld [vmem:[%s7064_s5 + $0x150] sm:$0xff] }
 0x124   : > { %1814 = vst.msk [vmem:[#allocation2 + $0x70] sm:$0xff] %vm1735_vm2, %v10730_v42  ;;  %v2103_v25 = vadd.f32 %v2071_v61, %v2006_v20  ;;  %v7524_v42 = vld [vmem:[%s10857_s29 + $0x8] ss:$0 sm:$0xff]  ;;  %v2232_v41 = vld [vmem:[#allocation2 + $0x30] sm:$0xff]  ;;  %v2361_v61 = vmul.f32 %v7510_v7, %v2328_v24  ;;  %v7536_v0 = vpack.c.bf16 %v6414_v13, %v6413_v63  ;;  %v2556_v13 = vmul.f32 %v7519_v51, %v7534_v12 }
 0x125   : > { %v1570_v5 = vpop.f32.mrf.mxu3  ;;  %6437 = vmatmul.msk.bf16.gmra.mxu2 %vm923_vm1, %v7484_v17  ;;  %v2296_v10 = vadd.f32 %v2264_v1, %v2199_v57  ;;  %v2007_v60 = vadd.f32 %v1975_v18, %v1878_v23  ;;  %v2265_v20 = vmul.f32 %v7493_v43, %v2232_v41  ;;  %v2362_v57 = vmul.f32 %v7510_v7, %v2329_v58  ;;  %v7540_v1 = vld [vmem:[#allocation2 + $0x4f] sm:$0xff] }
 0x126   : > { %v1641_v45 = vadd.f32 %v1570_v5, %v1413_v34  ;;  %v2135_v5 = vld [vmem:[#allocation2 + $0x2f] sm:$0xff]  ;;  %v2460_v63 = vmul.f32 %v7514_v9, %v7540_v1  ;;  %v2653_v31 = vmul.f32 %v7524_v42, %v7546_v14 }
 0x127   : > { %v1147_v8 = vpop.f32.mrf.mxu1  ;;  %v7544_v18 = vld [vmem:[#allocation2 + $0x50] sm:$0xff]  ;;  %v2393_v53 = vadd.f32 %v2361_v61, %v2296_v10  ;;  %v1976_v10 = vmul.f32 %v2232_v41, %v7416_v4 }
 0x128   : > { %v1148_v16 = vadd.f32 %v1147_v8, %v1002_v48  ;;  %v7527_v34 = vadd.f32 %v7316_v6, %v1641_v45  ;;  %v1347_v3 = vpop.f32.mrf.mxu2  ;;  %v2168_v48 = vmul.f32 %v7457_v52, %v2135_v5  ;;  %v7532_v8 = vld [vmem:[#allocation2 + $0x47] sm:$0xff]  ;;  %v2557_v29 = vmul.f32 %v7519_v51, %v7544_v18 }
 0x129   : > { %v2459_v23 = vmul.f32 %v7514_v9, %v7532_v8  ;;  %v2169_v38 = vmul.f32 %v7532_v8, %v7457_v52 }
 0x12a   : > { %10863 = vst [vmem:[#allocation27_spill] sm:$0xff] %v7527_v34  ;;  %v10741_v45 = vmax.f32 %v7527_v34, 0.0  ;;  %v1414_v37 = vadd.f32 %v1344_v15, %v1148_v16  ;;  %v2200_v59 = vadd.f32 %v2168_v48, %v2103_v25  ;;  %v1879_v15 = vmul.f32 %v2135_v5, %v7413_v2  ;;  %v7561_v48 = vld [vmem:[#allocation2 + $0x51] sm:$0xff] }
 0x12b   : > { %v2491_v25 = vadd.f32 %v2459_v23, %v2393_v53  ;;  %v2072_v34 = vmul.f32 %v2328_v24, %v7433_v33  ;;  %v2170_v5 = vmul.f32 %v7540_v1, %v7457_v52  ;;  %v7572_v53 = vld [vmem:[%s10864_s11] ss:$0 sm:$0xff] }
 0x12c   : > { %1815 = vst.msk [vmem:[#allocation2 + $0x88] sm:$0xff] %vm1735_vm2, %v10741_v45  ;;  %v2297_v16 = vadd.f32 %v2265_v20, %v2200_v59  ;;  %v2073_v45 = vmul.f32 %v2329_v58, %v7433_v33  ;;  %v2008_v11 = vadd.f32 %v1976_v10, %v1879_v15  ;;  %v2266_v15 = vmul.f32 %v7534_v12, %v7493_v43 }
 0x12d   : > { %v1572_v61 = vpop.f32.mrf.mxu3  ;;  %v2588_v41 = vadd.f32 %v2556_v13, %v2491_v25  ;;  %v2104_v24 = vadd.f32 %v2072_v34, %v2007_v60  ;;  %v7587_v60 = vld [vmem:[#allocation2 + $0x6f] sm:$0xff] }
 0x12e   : > { %v1642_v44 = vadd.f32 %v1572_v61, %v1414_v37  ;;  %v2394_v35 = vadd.f32 %v2362_v57, %v2297_v16  ;;  %v2654_v37 = vmul.f32 %v7524_v42, %v7561_v48  ;;  %v2105_v23 = vadd.f32 %v2073_v45, %v2008_v11  ;;  %v7581_v57 = vld [vmem:[#allocation2 + $0x67] sm:$0xff]  ;;  %v7599_v16 = vld [vmem:[#allocation2 + $0x70] sm:$0xff] }
 0x12f   : > { %v1150_v21 = vpop.f32.mrf.mxu1  ;;  %v2685_v10 = vadd.f32 %v2653_v31, %v2588_v41  ;;  %v1007_v41 = vpop.f32.mrf.mxu0 }
 0x130   : > { %v1151_v59 = vadd.f32 %v1150_v21, %v1005_v30  ;;  %v7577_v20 = vadd.f32 %v7316_v6, %v1642_v44  ;;  %v1349_v58 = vpop.f32.mrf.mxu2  ;;  %v2492_v13 = vadd.f32 %v2460_v63, %v2394_v35  ;;  %v2201_v21 = vadd.f32 %v2169_v38, %v2104_v24  ;;  %v7597_v63 = vld [vmem:[#allocation2 + $0x68] sm:$0xff] }
 0x131   : > { %v2267_v30 = vmul.f32 %v7544_v18, %v7493_v43  ;;  %v2202_v34 = vadd.f32 %v2170_v5, %v2105_v23  ;;  %v2363_v35 = vmul.f32 %v7546_v14, %v7510_v7  ;;  %v2721_v45 = vadd.f32 %v7572_v53, %v2685_v10  ;;  %v7614_v10 = vld [vmem:[#allocation2 + $0x69] sm:$0xff] }
 0x132   : > { %10865 = vst [vmem:[#allocation28_spill] sm:$0xff] %v7577_v20  ;;  %6383 = vmatmul.msk.bf16.gmra.mxu1 %vm923_vm1, %v7403_v62  ;;  %v10744_v44 = vmax.f32 %v7577_v20, 0.0  ;;  %6491 = vmatmul.msk.bf16.gmra.mxu3 %vm923_vm1, %v7093_v32  ;;  %v1415_v11 = vadd.f32 %v1347_v3, %v1151_v59  ;;  %v2589_v31 = vadd.f32 %v2557_v29, %v2492_v13  ;;  %v6416_v20 = vld [vmem:[%s7064_s5 + $0x170] sm:$0xff] }
 0x133   : > { %v2298_v62 = vadd.f32 %v2266_v15, %v2201_v21  ;;  %v2461_v38 = vmul.f32 %v7514_v9, %v7581_v57  ;;  %v2299_v32 = vadd.f32 %v2267_v30, %v2202_v34  ;;  %v2364_v3 = vmul.f32 %v7561_v48, %v7510_v7  ;;  %v7616_v21 = vld [vmem:[#allocation2 + $0x71] sm:$0xff] }
 0x134   : > { %1816 = vst.msk [vmem:[#allocation2 + $0x90] sm:$0xff] %vm1735_vm2, %v10744_v44  ;;  %v2462_v29 = vmul.f32 %v7514_v9, %v7587_v60  ;;  %v2686_v25 = vadd.f32 %v2654_v37, %v2589_v31  ;;  %v2558_v15 = vmul.f32 %v7519_v51, %v7597_v63  ;;  %v2559_v13 = vmul.f32 %v7519_v51, %v7599_v16 }
 0x135   : > { %v1575_v61 = vpop.f32.mrf.mxu3  ;;  %6438 = vmatmul.msk.bf16.gmra.mxu2 %vm923_vm1, %v7536_v0  ;;  %v2395_v5 = vadd.f32 %v2363_v35, %v2298_v62  ;;  %v2396_v23 = vadd.f32 %v2364_v3, %v2299_v32  ;;  %v2753_v30 = vmax.f32 %v2721_v45, 0.0  ;;  %v1880_v32 = vmul.f32 %v7532_v8, %v7413_v2 }
 0x136   : > { %v1643_v59 = vadd.f32 %v1575_v61, %v1415_v11  ;;  %v2722_v37 = vadd.f32 %v7572_v53, %v2686_v25  ;;  %v1881_v3 = vmul.f32 %v7540_v1, %v7413_v2  ;;  %v2655_v45 = vmul.f32 %v7524_v42, %v7614_v10 }
 0x137   : > { %v1152_v24 = vpop.f32.mrf.mxu1  ;;  %v2493_v31 = vadd.f32 %v2461_v38, %v2395_v5  ;;  %v2494_v11 = vadd.f32 %v2462_v29, %v2396_v23  ;;  %v2656_v38 = vmul.f32 %v7524_v42, %v7616_v21  ;;  %v1977_v29 = vmul.f32 %v7534_v12, %v7416_v4  ;;  %v6467_v23 = vld [vmem:[%s7064_s5 + $0x151] sm:$0xff]  ;;  %v6415_v12 = vld [vmem:[%s7064_s5 + $0x168] sm:$0xff] }
 0x138   : > { %v1153_v34 = vadd.f32 %v1152_v24, %v1007_v41  ;;  %v7620_v35 = vadd.f32 %v7316_v6, %v1643_v59  ;;  %v1352_v62 = vpop.f32.mrf.mxu2  ;;  %v2754_v61 = vmax.f32 %v2722_v37, 0.0  ;;  %v1978_v8 = vmul.f32 %v7544_v18, %v7416_v4  ;;  %v6468_v37 = vld [vmem:[%s7064_s5 + $0x159] sm:$0xff] }
 0x139   : > { %v2591_v5 = vadd.f32 %v2559_v13, %v2494_v11  ;;  %v2074_v1 = vmul.f32 %v7546_v14, %v7433_v33  ;;  %v2590_v59 = vadd.f32 %v2558_v15, %v2493_v31  ;;  %v2009_v44 = vadd.f32 %v1977_v29, %v1880_v32 }
 0x13a   : > { %10866 = vst [vmem:[#allocation29_spill] sm:$0xff] %v7620_v35  ;;  %v10746_v25 = vmax.f32 %v7620_v35, 0.0  ;;  %v2785_v41 = vpack.c.bf16 %v2754_v61, %v2753_v30  ;;  %v1416_v24 = vadd.f32 %v1349_v58, %v1153_v34  ;;  %v2010_v26 = vadd.f32 %v1978_v8, %v1881_v3 }
 0x13b   : > { %v2075_v13 = vmul.f32 %v7561_v48, %v7433_v33  ;;  %v2171_v18 = vmul.f32 %v7581_v57, %v7457_v52  ;;  %v2172_v14 = vmul.f32 %v7587_v60, %v7457_v52  ;;  %v2687_v58 = vadd.f32 %v2655_v45, %v2590_v59  ;;  %v7653_v48 = vld [vmem:[#allocation2 + $0x8f] sm:$0xff] }
 0x13c   : > { %1817 = vst.msk [vmem:[#allocation2 + $0xa8] sm:$0xff] %vm1735_vm2, %v10746_v25  ;;  %6499 = vmatmul.msk.bf16.vlgmr.msrb.gmra.mxu0 %vm1735_vm2, %v2785_v41  ;;  %v2688_v15 = vadd.f32 %v2656_v38, %v2591_v5  ;;  %v2106_v34 = vadd.f32 %v2074_v1, %v2009_v44  ;;  %v1484_v32 = vpack.c.bf16 %v6468_v37, %v6467_v23  ;;  %v7661_v44 = vld [vmem:[#allocation2 + $0x87] sm:$0xff]  ;;  %v7679_v37 = vld [vmem:[#allocation2 + $0x90] sm:$0xff] }
 0x13d   : > { %v1577_v30 = vpop.f32.mrf.mxu3  ;;  %v2107_v61 = vadd.f32 %v2075_v13, %v2010_v26  ;;  %v7651_v3 = vpack.c.bf16 %v6416_v20, %v6415_v12  ;;  %v2269_v45 = vmul.f32 %v7599_v16, %v7493_v43  ;;  %v2723_v38 = vadd.f32 %v7572_v53, %v2687_v58 }
 0x13e   : > { %v1644_v31 = vadd.f32 %v1577_v30, %v1416_v24  ;;  %v2203_v29 = vadd.f32 %v2171_v18, %v2106_v34  ;;  %v2724_v26 = vadd.f32 %v7572_v53, %v2688_v15  ;;  %v2268_v20 = vmul.f32 %v7597_v63, %v7493_v43 }
 0x13f   : > { %v1155_v11 = vpop.f32.mrf.mxu1  ;;  %v2204_v41 = vadd.f32 %v2172_v14, %v2107_v61  ;;  %v2366_v59 = vmul.f32 %v7616_v21, %v7510_v7  ;;  %v2464_v24 = vmul.f32 %v7514_v9, %v7653_v48  ;;  %v1883_v18 = vmul.f32 %v7587_v60, %v7413_v2  ;;  %v7692_v61 = vld [vmem:[#allocation2 + $0x88] sm:$0xff] }
 0x140   : > { %v7656_v8 = vadd.f32 %v7316_v6, %v1644_v31  ;;  %v1156_v25 = vadd.f32 %v1155_v11, %v7172_v22  ;;  %v1354_v35 = vpop.f32.mrf.mxu2  ;;  %v2365_v22 = vmul.f32 %v7614_v10, %v7510_v7  ;;  %v2300_v23 = vadd.f32 %v2268_v20, %v2203_v29  ;;  %v7694_v60 = vld [vmem:[#allocation2 + $0x89] sm:$0xff] }
 0x141   : > { %v2301_v1 = vadd.f32 %v2269_v45, %v2204_v41  ;;  %v2756_v14 = vmax.f32 %v2724_v26, 0.0  ;;  %v1980_v30 = vmul.f32 %v7599_v16, %v7416_v4  ;;  %v2755_v34 = vmax.f32 %v2723_v38, 0.0  ;;  %v7704_v26 = vld [vmem:[#allocation2 + $0x91] sm:$0xff] }
 0x142   : > { %6384 = vmatmul.msk.bf16.gmra.mxu1 %vm923_vm1, %v7484_v17  ;;  %v10763_v5 = vmax.f32 %v7656_v8, 0.0  ;;  %6492 = vmatmul.msk.bf16.gmra.mxu3 %vm923_vm1, %v1484_v32  ;;  %v2463_v17 = vmul.f32 %v7514_v9, %v7661_v44  ;;  %v1417_v12 = vadd.f32 %v1352_v62, %v1156_v25  ;;  %v2397_v15 = vadd.f32 %v2365_v22, %v2300_v23 }
 0x143   : > { %v2398_v13 = vadd.f32 %v2366_v59, %v2301_v1  ;;  %v2561_v62 = vmul.f32 %v7519_v51, %v7679_v37  ;;  %v1882_v29 = vmul.f32 %v7581_v57, %v7413_v2  ;;  %v2012_v41 = vadd.f32 %v1980_v30, %v1883_v18 }
 0x144   : > { %1818 = vst.msk [vmem:[#allocation2 + $0xb0] sm:$0xff] %vm1735_vm2, %v10763_v5  ;;  %v2495_v25 = vadd.f32 %v2463_v17, %v2397_v15  ;;  %v2077_v16 = vmul.f32 %v7616_v21, %v7433_v33  ;;  %v1979_v22 = vmul.f32 %v7597_v63, %v7416_v4  ;;  %v2174_v57 = vmul.f32 %v7653_v48, %v7457_v52 }
 0x145   : > { %v1580_v58 = vpop.f32.mrf.mxu3  ;;  %6439 = vmatmul.msk.bf16.gmra.mxu2 %vm923_vm1, %v7651_v3  ;;  %v2496_v32 = vadd.f32 %v2464_v24, %v2398_v13  ;;  %v2786_v1 = vpack.c.bf16 %v2756_v14, %v2755_v34  ;;  %v2560_v23 = vmul.f32 %v7519_v51, %v7692_v61  ;;  %v2076_v17 = vmul.f32 %v7614_v10, %v7433_v33  ;;  %v6470_v13 = vld [vmem:[%s7064_s5 + $0x171] sm:$0xff] }
 0x146   : > { %v1645_v31 = vadd.f32 %v1580_v58, %v1417_v12  ;;  %v2109_v24 = vadd.f32 %v2077_v16, %v2012_v41  ;;  %v2658_v63 = vmul.f32 %v7524_v42, %v7704_v26  ;;  %v6469_v12 = vld [vmem:[%s7064_s5 + $0x169] sm:$0xff]  ;;  %v2011_v15 = vadd.f32 %v1979_v22, %v1882_v29 }
 0x147   : > { %v1157_v11 = vpop.f32.mrf.mxu1  ;;  %v2593_v59 = vadd.f32 %v2561_v62, %v2496_v32  ;;  %v2592_v14 = vadd.f32 %v2560_v23, %v2495_v25  ;;  %v2173_v30 = vmul.f32 %v7661_v44, %v7457_v52  ;;  %v2271_v32 = vmul.f32 %v7679_v37, %v7493_v43 }
 0x148   : > { %v7701_v45 = vadd.f32 %v7316_v6, %v1645_v31  ;;  %v1158_v38 = vadd.f32 %v1157_v11, %v7182_v28  ;;  %v1357_v20 = vpop.f32.mrf.mxu2  ;;  %v2657_v28 = vmul.f32 %v7524_v42, %v7694_v60  ;;  %v2206_v18 = vadd.f32 %v2174_v57, %v2109_v24  ;;  %v6417_v31 = vld [vmem:[%s7064_s5 + $0x180] sm:$0xff]  ;;  %v6418_v11 = vld [vmem:[%s7064_s5 + $0x188] sm:$0xff] }
 0x149   : > { %v2690_v34 = vadd.f32 %v2658_v63, %v2593_v59  ;;  %v1485_v57 = vpack.c.bf16 %v6470_v13, %v6469_v12  ;;  %v2108_v24 = vadd.f32 %v2076_v17, %v2011_v15  ;;  %v7742_v17 = vld [vmem:[#allocation2 + $0xa7] sm:$0xff]  ;;  %v1885_v12 = vmul.f32 %v7653_v48, %v7413_v2 }
 0x14a   : > { %v10762_v21 = vmax.f32 %v7701_v45, 0.0  ;;  %v1418_v58 = vadd.f32 %v1354_v35, %v1158_v38  ;;  %v2689_v62 = vadd.f32 %v2657_v28, %v2592_v14  ;;  %v2303_v35 = vadd.f32 %v2271_v32, %v2206_v18 }
 0x14b   : > { %v7731_v25 = vld [vmem:[#allocation2 + $0xaf] sm:$0xff]  ;;  %v2205_v59 = vadd.f32 %v2173_v30, %v2108_v24  ;;  %v2726_v23 = vadd.f32 %v7572_v53, %v2690_v34  ;;  %v2368_v28 = vmul.f32 %v7704_v26, %v7510_v7  ;;  %v2270_v18 = vmul.f32 %v7692_v61, %v7493_v43 }
 0x14c   : > { %1819 = vst.msk [vmem:[#allocation2 + $0xc8] sm:$0xff] %vm1735_vm2, %v10762_v21  ;;  %6500 = vmatmul.msk.bf16.gmra.mxu0 %vm1735_vm2, %v2786_v1  ;;  %v1258_v1 = vpack.c.bf16 %v6418_v11, %v6417_v31  ;;  %v2466_v63 = vmul.f32 %v7514_v9, %v7731_v25  ;;  %v2367_v14 = vmul.f32 %v7694_v60, %v7510_v7  ;;  %v2530_v30 = vld [vmem:[#allocation2 + $0xb0] sm:$0xff] }
 0x14d   : > { %v1582_v10 = vpop.f32.mrf.mxu3  ;;  %v2465_v15 = vmul.f32 %v7514_v9, %v7742_v17  ;;  %v2758_v34 = vmax.f32 %v2726_v23, 0.0  ;;  %v2176_v24 = vmul.f32 %v7731_v25, %v7457_v52  ;;  %v7776_v23 = vld [vmem:[#allocation2 + $0xb1] sm:$0xff] }
 0x14e   : > { %v1646_v41 = vadd.f32 %v1582_v10, %v1418_v58  ;;  %v2400_v58 = vadd.f32 %v2368_v28, %v2303_v35 }
 0x14f   : > { %v1160_v16 = vpop.f32.mrf.mxu1 }
 0x150   : > { %v7734_v29 = vadd.f32 %v7316_v6, %v1646_v41  ;;  %v1161_v38 = vadd.f32 %v1160_v16, %v7193_v36  ;;  %v1359_v22 = vpop.f32.mrf.mxu2  ;;  %v2725_v36 = vadd.f32 %v7572_v53, %v2689_v62  ;;  %v2498_v31 = vadd.f32 %v2466_v63, %v2400_v58 }
 0x151   : > { %v1981_v63 = vmul.f32 %v7692_v61, %v7416_v4  ;;  %v6472_v61 = vld [vmem:[%s7064_s5 + $0x189] sm:$0xff] }
 0x152   : > { %6385 = vmatmul.msk.bf16.gmra.mxu1 %vm923_vm1, %v7536_v0  ;;  %v10761_v13 = vmax.f32 %v7734_v29, 0.0  ;;  %6493 = vmatmul.msk.bf16.gmra.mxu3 %vm923_vm1, %v1485_v57  ;;  %v1982_v0 = vmul.f32 %v7679_v37, %v7416_v4  ;;  %v1419_v48 = vadd.f32 %v1357_v20, %v1161_v38  ;;  %v2302_v37 = vadd.f32 %v2270_v18, %v2205_v59  ;;  %v7774_v59 = vld [vmem:[#allocation2 + $0xa9] sm:$0xff] }
 0x153   : > { %v2757_v32 = vmax.f32 %v2725_v36, 0.0  ;;  %v2563_v57 = vmul.f32 %v7519_v51, %v2530_v30  ;;  %v2079_v20 = vmul.f32 %v7704_v26, %v7433_v33  ;;  %v1884_v26 = vmul.f32 %v7661_v44, %v7413_v2 }
 0x154   : > { %1820 = vst.msk [vmem:[#allocation2 + $0xd0] sm:$0xff] %vm1735_vm2, %v10761_v13  ;;  %v2014_v11 = vadd.f32 %v1982_v0, %v1885_v12  ;;  %v2399_v16 = vadd.f32 %v2367_v14, %v2302_v37  ;;  %v2078_v14 = vmul.f32 %v7694_v60, %v7433_v33  ;;  %v2660_v44 = vmul.f32 %v7524_v42, %v7776_v23 }
 0x155   : > { %v1585_v10 = vpop.f32.mrf.mxu3  ;;  %6440 = vmatmul.msk.bf16.gmra.mxu2 %vm923_vm1, %v1258_v1  ;;  %v7772_v1 = vld [vmem:[#allocation2 + $0xa8] sm:$0xff]  ;;  %v2787_v12 = vpack.c.bf16 %v2758_v34, %v2757_v32  ;;  %v2595_v0 = vadd.f32 %v2563_v57, %v2498_v31  ;;  %v2013_v37 = vadd.f32 %v1981_v63, %v1884_v26  ;;  %v2175_v60 = vmul.f32 %v7742_v17, %v7457_v52 }
 0x156   : > { %v1647_v62 = vadd.f32 %v1585_v10, %v1419_v48  ;;  %v2497_v36 = vadd.f32 %v2465_v15, %v2399_v16  ;;  %v2111_v18 = vadd.f32 %v2079_v20, %v2014_v11  ;;  %v2562_v58 = vmul.f32 %v7519_v51, %v7772_v1  ;;  %v6471_v10 = vld [vmem:[%s7064_s5 + $0x181] sm:$0xff] }
 0x157   : > { %v1162_v41 = vpop.f32.mrf.mxu1  ;;  %v2659_v48 = vmul.f32 %v7524_v42, %v7774_v59  ;;  %v2692_v11 = vadd.f32 %v2660_v44, %v2595_v0  ;;  %v1486_v57 = vpack.c.bf16 %v6472_v61, %v6471_v10  ;;  %v2110_v20 = vadd.f32 %v2078_v14, %v2013_v37  ;;  %v7811_v0 = vld [vmem:[#allocation2 + $0xc7] sm:$0xff] }
 0x158   : > { %v7769_v35 = vadd.f32 %v7316_v6, %v1647_v62  ;;  %v1163_v38 = vadd.f32 %v1162_v41, %v7203_v40  ;;  %v1362_v28 = vpop.f32.mrf.mxu2  ;;  %v2208_v34 = vadd.f32 %v2176_v24, %v2111_v18  ;;  %v2594_v31 = vadd.f32 %v2562_v58, %v2497_v36 }
 0x159   : > { %v2273_v62 = vmul.f32 %v2530_v30, %v7493_v43  ;;  %v2207_v63 = vadd.f32 %v2175_v60, %v2110_v20  ;;  %v2728_v36 = vadd.f32 %v7572_v53, %v2692_v11  ;;  %v1887_v58 = vmul.f32 %v7731_v25, %v7413_v2 }
 0x15a   : > { %v10748_v40 = vmax.f32 %v7769_v35, 0.0  ;;  %v1420_v15 = vadd.f32 %v1359_v22, %v1163_v38  ;;  %v2691_v18 = vadd.f32 %v2659_v48, %v2594_v31  ;;  %v2272_v44 = vmul.f32 %v7772_v1, %v7493_v43 }
 0x15b   : > { %v7800_v24 = vld [vmem:[#allocation2 + $0xcf] sm:$0xff]  ;;  %v2760_v37 = vmax.f32 %v2728_v36, 0.0 }
 0x15c   : > { %1821 = vst.msk [vmem:[#allocation2 + $0xe8] sm:$0xff] %vm1735_vm2, %v10748_v40  ;;  %6501 = vmatmul.msk.bf16.gmra.mxu0 %vm1735_vm2, %v2787_v12  ;;  %v2305_v40 = vadd.f32 %v2273_v62, %v2208_v34  ;;  %v2370_v12 = vmul.f32 %v7776_v23, %v7510_v7  ;;  %v2468_v14 = vmul.f32 %v7514_v9, %v7800_v24  ;;  %v7835_v20 = vld [vmem:[#allocation2 + $0xc9] sm:$0xff] }
 0x15d   : > { %v1587_v32 = vpop.f32.mrf.mxu3  ;;  %v2727_v10 = vadd.f32 %v7572_v53, %v2691_v18  ;;  %v2304_v34 = vadd.f32 %v2272_v44, %v2207_v63  ;;  %v2081_v18 = vmul.f32 %v7776_v23, %v7433_v33 }
 0x15e   : > { %v1648_v41 = vadd.f32 %v1587_v32, %v1420_v15  ;;  %v2402_v61 = vadd.f32 %v2370_v12, %v2305_v40  ;;  %v2532_v15 = vld [vmem:[#allocation2 + $0xd0] sm:$0xff]  ;;  %v1886_v40 = vmul.f32 %v7742_v17, %v7413_v2 }
 0x15f   : > { %v1165_v16 = vpop.f32.mrf.mxu1  ;;  %v2629_v17 = vld [vmem:[#allocation2 + $0xd1] sm:$0xff] }
 0x160   : > { %v7803_v22 = vadd.f32 %v7316_v6, %v1648_v41  ;;  %v1166_v38 = vadd.f32 %v1165_v16, %v7211_v47  ;;  %v1364_v26 = vpop.f32.mrf.mxu2  ;;  %v1984_v47 = vmul.f32 %v2530_v30, %v7416_v4  ;;  %v2467_v30 = vmul.f32 %v7514_v9, %v7811_v0 }
 0x161   : > { %v2500_v31 = vadd.f32 %v2468_v14, %v2402_v61  ;;  %v2759_v16 = vmax.f32 %v2727_v10, 0.0  ;;  %v2661_v61 = vmul.f32 %v7524_v42, %v7835_v20 }
 0x162   : > { %6386 = vmatmul.msk.bf16.gmra.mxu1 %vm923_vm1, %v7651_v3  ;;  %v10760_v48 = vmax.f32 %v7803_v22, 0.0  ;;  %6494 = vmatmul.msk.bf16.gmra.mxu3 %vm923_vm1, %v1486_v57  ;;  %v2369_v3 = vmul.f32 %v7774_v59, %v7510_v7  ;;  %v1421_v25 = vadd.f32 %v1362_v28, %v1166_v38  ;;  %v2016_v11 = vadd.f32 %v1984_v47, %v1887_v58  ;;  %v7832_v57 = vld [vmem:[#allocation2 + $0xc8] sm:$0xff] }
 0x163   : > { %v2565_v28 = vmul.f32 %v7519_v51, %v2532_v15  ;;  %v2178_v38 = vmul.f32 %v7800_v24, %v7457_v52  ;;  %v1983_v58 = vmul.f32 %v7772_v1, %v7416_v4  ;;  %v2788_v47 = vpack.c.bf16 %v2760_v37, %v2759_v16 }
 0x164   : > { %1822 = vst.msk [vmem:[#allocation2 + $0xf0] sm:$0xff] %vm1735_vm2, %v10760_v48  ;;  %v2401_v41 = vadd.f32 %v2369_v3, %v2304_v34  ;;  %v2113_v3 = vadd.f32 %v2081_v18, %v2016_v11  ;;  %v2564_v23 = vmul.f32 %v7519_v51, %v7832_v57  ;;  %v10873_v48 = vld [vmem:[#allocation21_spill] sm:$0xff] }
 0x165   : > { %v1590_v60 = vpop.f32.mrf.mxu3  ;;  %v2597_v44 = vadd.f32 %v2565_v28, %v2500_v31  ;;  %v2015_v37 = vadd.f32 %v1983_v58, %v1886_v40 }
 0x166   : > { %v1649_v32 = vadd.f32 %v1590_v60, %v1421_v25  ;;  %v2499_v36 = vadd.f32 %v2467_v30, %v2401_v41  ;;  %v2662_v25 = vmul.f32 %v7524_v42, %v2629_v17  ;;  %v2210_v34 = vadd.f32 %v2178_v38, %v2113_v3 }
 0x167   : > { %v1167_v62 = vpop.f32.mrf.mxu1  ;;  %v2177_v60 = vmul.f32 %v7811_v0, %v7457_v52  ;;  %v1986_v3 = vmul.f32 %v2532_v15, %v7416_v4 }
 0x168   : > { %v7842_v63 = vadd.f32 %v7316_v6, %v1649_v32  ;;  %v1168_v12 = vadd.f32 %v1167_v62, %v7221_v50  ;;  %v1367_v14 = vpop.f32.mrf.mxu2  ;;  %v2080_v50 = vmul.f32 %v7774_v59, %v7433_v33  ;;  %v2596_v1 = vadd.f32 %v2564_v23, %v2499_v36 }
 0x169   : > { %v2694_v31 = vadd.f32 %v2662_v25, %v2597_v44  ;;  %v2275_v32 = vmul.f32 %v2532_v15, %v7493_v43  ;;  %v2372_v36 = vmul.f32 %v2629_v17, %v7510_v7  ;;  %v1889_v44 = vmul.f32 %v7800_v24, %v7413_v2 }
 0x16a   : > { %v10759_v10 = vmax.f32 %v7842_v63, 0.0  ;;  %v1422_v30 = vadd.f32 %v1364_v26, %v1168_v12  ;;  %v2693_v59 = vadd.f32 %v2661_v61, %v2596_v1  ;;  %v2112_v16 = vadd.f32 %v2080_v50, %v2015_v37  ;;  %v7879_v61 = vld [vmem:[#allocation2 + $0xe7] sm:$0xff] }
 0x16b   : > { %v7862_v28 = vld [vmem:[#allocation2 + $0xef] sm:$0xff]  ;;  %v2307_v18 = vadd.f32 %v2275_v32, %v2210_v34  ;;  %v2730_v58 = vadd.f32 %v7572_v53, %v2694_v31  ;;  %v2371_v50 = vmul.f32 %v7835_v20, %v7510_v7  ;;  %v2469_v37 = vmul.f32 %v7514_v9, %v7879_v61 }
 0x16c   : > { %1823 = vst.msk [vmem:[#allocation2 + $0x108] sm:$0xff] %vm1735_vm2, %v10759_v10  ;;  %6502 = vmatmul.msk.bf16.gmra.mxu0 %vm1735_vm2, %v2788_v47  ;;  %v2209_v12 = vadd.f32 %v2177_v60, %v2112_v16  ;;  %v2470_v47 = vmul.f32 %v7514_v9, %v7862_v28  ;;  %v2729_v23 = vadd.f32 %v7572_v53, %v2693_v59  ;;  %v2534_v15 = vld [vmem:[#allocation2 + $0xf0] sm:$0xff] }
 0x16d   : > { %v1592_v11 = vpop.f32.mrf.mxu3  ;;  %v2404_v25 = vadd.f32 %v2372_v36, %v2307_v18  ;;  %v2762_v1 = vmax.f32 %v2730_v58, 0.0  ;;  %v2018_v31 = vadd.f32 %v1986_v3, %v1889_v44  ;;  %v2083_v16 = vmul.f32 %v2629_v17, %v7433_v33  ;;  %v7895_v18 = vld [vmem:[%s10855_s2] ss:$0 sm:$0xff]  ;;  %v7901_v36 = vld [vmem:[#allocation2 + $0xe8] sm:$0xff] }
 0x16e   : > { %v1650_v62 = vadd.f32 %v1592_v11, %v1422_v30  ;;  %v2761_v11 = vmax.f32 %v2729_v23, 0.0  ;;  %v7903_v58 = vld [vmem:[#allocation2 + $0xe9] sm:$0xff]  ;;  %v1888_v17 = vmul.f32 %v7811_v0, %v7413_v2  ;;  %v1985_v3 = vmul.f32 %v7832_v57, %v7416_v4 }
 0x16f   : > { %v1170_v41 = vpop.f32.mrf.mxu1  ;;  %v2502_v60 = vadd.f32 %v2470_v47, %v2404_v25  ;;  %v2631_v47 = vld [vmem:[#allocation2 + $0xf1] sm:$0xff]  ;;  %v2115_v25 = vadd.f32 %v2083_v16, %v2018_v31 }
 0x170   : > { %v7865_v38 = vadd.f32 %v7316_v6, %v1650_v62  ;;  %v1171_v26 = vadd.f32 %v1170_v41, %v7241_v56  ;;  %v1369_v40 = vpop.f32.mrf.mxu2  ;;  %v2274_v56 = vmul.f32 %v7832_v57, %v7493_v43  ;;  %v2567_v41 = vmul.f32 %v7519_v51, %v2534_v15 }
 0x171   : > { %v2789_v23 = vpack.c.bf16 %v2762_v1, %v2761_v11  ;;  %v2664_v0 = vmul.f32 %v7524_v42, %v2631_v47  ;;  %v2017_v1 = vadd.f32 %v1985_v3, %v1888_v17  ;;  %v2277_v11 = vmul.f32 %v2534_v15, %v7493_v43 }
 0x172   : > { %v10750_v6 = vmax.f32 %v7865_v38, 0.0  ;;  %v1423_v24 = vadd.f32 %v1367_v14, %v1171_v26  ;;  %v2306_v34 = vadd.f32 %v2274_v56, %v2209_v12  ;;  %v2180_v14 = vmul.f32 %v7862_v28, %v7457_v52 }
 0x174   : > { %1824 = vst.msk [vmem:[#allocation2 + $0x110] sm:$0xff] %vm1735_vm2, %v10750_v6  ;;  %v2403_v62 = vadd.f32 %v2371_v50, %v2306_v34  ;;  %v2599_v50 = vadd.f32 %v2567_v41, %v2502_v60  ;;  %v2566_v34 = vmul.f32 %v7519_v51, %v7901_v36 }
 0x175   : > { %v1595_v30 = vpop.f32.mrf.mxu3 }
 0x176   : > { %v1651_v32 = vadd.f32 %v1595_v30, %v1423_v24  ;;  %v2501_v56 = vadd.f32 %v2469_v37, %v2403_v62  ;;  %v2663_v30 = vmul.f32 %v7524_v42, %v7903_v58  ;;  %v2179_v37 = vmul.f32 %v7879_v61, %v7457_v52 }
 0x177   : > { %v1172_v59 = vpop.f32.mrf.mxu1  ;;  %v2696_v60 = vadd.f32 %v2664_v0, %v2599_v50  ;;  %v2276_v0 = vmul.f32 %v7901_v36, %v7493_v43 }
 0x178   : > { %v7898_v26 = vadd.f32 %v7895_v18, %v1651_v32  ;;  %v1173_v12 = vadd.f32 %v1172_v59, %v7268_v55  ;;  %v1372_v44 = vpop.f32.mrf.mxu2  ;;  %v2082_v55 = vmul.f32 %v7835_v20, %v7433_v33  ;;  %v2212_v32 = vadd.f32 %v2180_v14, %v2115_v25 }
 0x179   : > { %v2598_v20 = vadd.f32 %v2566_v34, %v2501_v56  ;;  %v2732_v56 = vadd.f32 %v7572_v53, %v2696_v60  ;;  %v1988_v34 = vmul.f32 %v2534_v15, %v7416_v4 }
 0x17a   : > { %v10749_v24 = vmax.f32 %v7898_v26, 0.0  ;;  %v1424_v57 = vadd.f32 %v1369_v40, %v1173_v12  ;;  %v2114_v41 = vadd.f32 %v2082_v55, %v2017_v1  ;;  %v2309_v25 = vadd.f32 %v2277_v11, %v2212_v32  ;;  %v7942_v32 = vld [vmem:[#allocation2 + $0x107] sm:$0xff] }
 0x17b   : > { %v7924_v16 = vld [vmem:[#allocation2 + $0x10f] sm:$0xff]  ;;  %v2695_v14 = vadd.f32 %v2663_v30, %v2598_v20  ;;  %v1891_v55 = vmul.f32 %v7862_v28, %v7413_v2  ;;  %v2764_v20 = vmax.f32 %v2732_v56, 0.0 }
 0x17c   : > { %1825 = vst.msk [vmem:[#allocation2 + $0x128] sm:$0xff] %vm1735_vm2, %v10749_v24  ;;  %6503 = vmatmul.msk.bf16.gmra.mxu0 %vm1735_vm2, %v2789_v23  ;;  %v2211_v3 = vadd.f32 %v2179_v37, %v2114_v41  ;;  %v2374_v23 = vmul.f32 %v2631_v47, %v7510_v7  ;;  %v2472_v50 = vmul.f32 %v7514_v9, %v7924_v16  ;;  %v2536_v15 = vld [vmem:[#allocation2 + $0x110] sm:$0xff] }
 0x17d   : > { %v1597_v31 = vpop.f32.mrf.mxu3  ;;  %v7960_v56 = vld [vmem:[#allocation2 + $0x109] sm:$0xff] }
 0x17e   : > { %v1652_v59 = vadd.f32 %v1597_v31, %v1424_v57  ;;  %v2731_v57 = vadd.f32 %v7572_v53, %v2695_v14  ;;  %v2406_v1 = vadd.f32 %v2374_v23, %v2309_v25  ;;  %v2308_v37 = vadd.f32 %v2276_v0, %v2211_v3  ;;  %v7958_v23 = vld [vmem:[#allocation2 + $0x108] sm:$0xff] }
 0x17f   : > { %v1175_v62 = vpop.f32.mrf.mxu1  ;;  %v2471_v31 = vmul.f32 %v7514_v9, %v7942_v32  ;;  %v2569_v14 = vmul.f32 %v7519_v51, %v2536_v15  ;;  %v2085_v25 = vmul.f32 %v2631_v47, %v7433_v33  ;;  %v1987_v47 = vmul.f32 %v7901_v36, %v7416_v4 }
 0x180   : > { %v7927_v40 = vadd.f32 %v7895_v18, %v1652_v59  ;;  %v1176_v12 = vadd.f32 %v1175_v62, %v7180_v27  ;;  %v1374_v17 = vpop.f32.mrf.mxu2  ;;  %v2373_v27 = vmul.f32 %v7903_v58, %v7510_v7  ;;  %v2504_v11 = vadd.f32 %v2472_v50, %v2406_v1  ;;  %v2633_v50 = vld [vmem:[#allocation2 + $0x111] sm:$0xff] }
 0x181   : > { %v2020_v59 = vadd.f32 %v1988_v34, %v1891_v55  ;;  %v2763_v6 = vmax.f32 %v2731_v57, 0.0  ;;  %v1890_v34 = vmul.f32 %v7879_v61, %v7413_v2  ;;  %v2666_v61 = vmul.f32 %v7524_v42, %v2633_v50 }
 0x182   : > { %v10756_v30 = vmax.f32 %v7927_v40, 0.0  ;;  %v1425_v28 = vadd.f32 %v1372_v44, %v1176_v12  ;;  %v2405_v24 = vadd.f32 %v2373_v27, %v2308_v37  ;;  %v2182_v44 = vmul.f32 %v7924_v16, %v7457_v52 }
 0x183   : > { %v2790_v0 = vpack.c.bf16 %v2764_v20, %v2763_v6  ;;  %v2601_v57 = vadd.f32 %v2569_v14, %v2504_v11  ;;  %v2117_v1 = vadd.f32 %v2085_v25, %v2020_v59  ;;  %v2568_v37 = vmul.f32 %v7519_v51, %v7958_v23 }
 0x184   : > { %1826 = vst.msk [vmem:[#allocation2 + $0x130] sm:$0xff] %vm1735_vm2, %v10756_v30  ;;  %v2503_v27 = vadd.f32 %v2471_v31, %v2405_v24  ;;  %v2019_v36 = vadd.f32 %v1987_v47, %v1890_v34  ;;  %v2181_v24 = vmul.f32 %v7942_v32, %v7457_v52  ;;  %v2279_v11 = vmul.f32 %v2536_v15, %v7493_v43 }
 0x185   : > { %v1600_v60 = vpop.f32.mrf.mxu3  ;;  %v2698_v20 = vadd.f32 %v2666_v61, %v2601_v57  ;;  %v7999_v61 = vld [vmem:[#allocation2 + $0x127] sm:$0xff] }
 0x186   : > { %v1653_v62 = vadd.f32 %v1600_v60, %v1425_v28  ;;  %v2665_v60 = vmul.f32 %v7524_v42, %v7960_v56 }
 0x187   : > { %v1177_v41 = vpop.f32.mrf.mxu1 }
 0x188   : > { %v7955_v12 = vadd.f32 %v7895_v18, %v1653_v62  ;;  %v1178_v3 = vadd.f32 %v1177_v41, %v7191_v19  ;;  %v1377_v55 = vpop.f32.mrf.mxu2  ;;  %v2084_v19 = vmul.f32 %v7903_v58, %v7433_v33  ;;  %v2214_v62 = vadd.f32 %v2182_v44, %v2117_v1 }
 0x189   : > { %v2600_v58 = vadd.f32 %v2568_v37, %v2503_v27  ;;  %v2734_v27 = vadd.f32 %v7572_v53, %v2698_v20  ;;  %v1893_v1 = vmul.f32 %v7924_v16, %v7413_v2  ;;  %v2473_v20 = vmul.f32 %v7514_v9, %v7999_v61 }
 0x18a   : > { %v10751_v28 = vmax.f32 %v7955_v12, 0.0  ;;  %v1426_v6 = vadd.f32 %v1374_v17, %v1178_v3  ;;  %v2116_v42 = vadd.f32 %v2084_v19, %v2019_v36  ;;  %v2311_v44 = vadd.f32 %v2279_v11, %v2214_v62 }
 0x18b   : > { %v7981_v14 = vld [vmem:[#allocation2 + $0x12f] sm:$0xff]  ;;  %v2697_v25 = vadd.f32 %v2665_v60, %v2600_v58  ;;  %v1990_v19 = vmul.f32 %v2536_v15, %v7416_v4  ;;  %v2278_v60 = vmul.f32 %v7958_v23, %v7493_v43 }
 0x18c   : > { %1827 = vst.msk [vmem:[#allocation2 + $0x148] sm:$0xff] %vm1735_vm2, %v10751_v28  ;;  %6504 = vmatmul.msk.bf16.gmra.mxu0 %vm1735_vm2, %v2790_v0  ;;  %v2213_v47 = vadd.f32 %v2181_v24, %v2116_v42  ;;  %v2376_v0 = vmul.f32 %v2633_v50, %v7510_v7  ;;  %v2474_v57 = vmul.f32 %v7514_v9, %v7981_v14  ;;  %v2538_v15 = vld [vmem:[#allocation2 + $0x130] sm:$0xff]  ;;  %v2766_v24 = vmax.f32 %v2734_v27, 0.0 }
 0x18d   : > { %v1602_v31 = vpop.f32.mrf.mxu3  ;;  %v2733_v62 = vadd.f32 %v7572_v53, %v2697_v25  ;;  %v2022_v11 = vadd.f32 %v1990_v19, %v1893_v1  ;;  %v2571_v25 = vmul.f32 %v7519_v51, %v2538_v15  ;;  %v8017_v27 = vld [vmem:[#allocation2 + $0x129] sm:$0xff]  ;;  %v1892_v19 = vmul.f32 %v7942_v32, %v7413_v2 }
 0x18e   : > { %v1654_v59 = vadd.f32 %v1602_v31, %v1426_v6  ;;  %v2408_v6 = vadd.f32 %v2376_v0, %v2311_v44  ;;  %v2310_v36 = vadd.f32 %v2278_v60, %v2213_v47  ;;  %v2087_v44 = vmul.f32 %v2633_v50, %v7433_v33  ;;  %v8015_v0 = vld [vmem:[#allocation2 + $0x128] sm:$0xff] }
 0x18f   : > { %v1180_v41 = vpop.f32.mrf.mxu1  ;;  %v2765_v28 = vmax.f32 %v2733_v62, 0.0  ;;  %v1989_v50 = vmul.f32 %v7958_v23, %v7416_v4 }
 0x190   : > { %v7984_v17 = vadd.f32 %v7895_v18, %v1654_v59  ;;  %v1181_v3 = vadd.f32 %v1180_v41, %v7201_v39  ;;  %v1379_v34 = vpop.f32.mrf.mxu2  ;;  %v2375_v39 = vmul.f32 %v7960_v56, %v7510_v7  ;;  %v2506_v31 = vadd.f32 %v2474_v57, %v2408_v6  ;;  %v2635_v57 = vld [vmem:[#allocation2 + $0x131] sm:$0xff] }
 0x191   : > { %v2791_v60 = vpack.c.bf16 %v2766_v24, %v2765_v28  ;;  %v2119_v6 = vadd.f32 %v2087_v44, %v2022_v11 }
 0x192   : > { %v10752_v37 = vmax.f32 %v7984_v17, 0.0  ;;  %v1427_v16 = vadd.f32 %v1377_v55, %v1181_v3  ;;  %v2407_v42 = vadd.f32 %v2375_v39, %v2310_v36  ;;  %v2184_v55 = vmul.f32 %v7981_v14, %v7457_v52 }
 0x193   : > { %v2603_v62 = vadd.f32 %v2571_v25, %v2506_v31  ;;  %v2570_v36 = vmul.f32 %v7519_v51, %v8015_v0 }
 0x194   : > { %1828 = vst.msk [vmem:[#allocation2 + $0x150] sm:$0xff] %vm1735_vm2, %v10752_v37  ;;  %v2505_v39 = vadd.f32 %v2473_v20, %v2407_v42  ;;  %v2216_v28 = vadd.f32 %v2184_v55, %v2119_v6 }
 0x195   : > { %v1605_v58 = vpop.f32.mrf.mxu3 }
 0x196   : > { %v1655_v59 = vadd.f32 %v1605_v58, %v1427_v16  ;;  %v8031_v58 = vld [vmem:[%s10857_s29 + $0x8] ss:$0 sm:$0xff]  ;;  %v2602_v20 = vadd.f32 %v2570_v36, %v2505_v39  ;;  %v2378_v36 = vmul.f32 %v2635_v57, %v7510_v7 }
 0x197   : > { %v1182_v41 = vpop.f32.mrf.mxu1  ;;  %v2667_v32 = vmul.f32 %v8031_v58, %v8017_v27  ;;  %v2668_v23 = vmul.f32 %v8031_v58, %v2635_v57 }
 0x198   : > { %v8012_v3 = vadd.f32 %v7895_v18, %v1655_v59  ;;  %v1183_v47 = vadd.f32 %v1182_v41, %v7209_v46  ;;  %v1382_v1 = vpop.f32.mrf.mxu2  ;;  %v2086_v46 = vmul.f32 %v7960_v56, %v7433_v33  ;;  %v2021_v56 = vadd.f32 %v1989_v50, %v1892_v19 }
 0x199   : > { %v2700_v31 = vadd.f32 %v2668_v23, %v2603_v62  ;;  %v2183_v59 = vmul.f32 %v7999_v61, %v7457_v52  ;;  %v2281_v41 = vmul.f32 %v2538_v15, %v7493_v43  ;;  %v2699_v55 = vadd.f32 %v2667_v32, %v2602_v20  ;;  %v8057_v23 = vld [vmem:[#allocation2 + $0x147] sm:$0xff] }
 0x19a   : > { %v10755_v16 = vmax.f32 %v8012_v3, 0.0  ;;  %v1428_v24 = vadd.f32 %v1379_v34, %v1183_v47  ;;  %v2118_v6 = vadd.f32 %v2086_v46, %v2021_v56  ;;  %v1895_v50 = vmul.f32 %v7981_v14, %v7413_v2 }
 0x19b   : > { %v8043_v44 = vld [vmem:[#allocation2 + $0x14f] sm:$0xff]  ;;  %v2313_v37 = vadd.f32 %v2281_v41, %v2216_v28  ;;  %v2736_v39 = vadd.f32 %v7572_v53, %v2700_v31  ;;  %v2280_v28 = vmul.f32 %v8015_v0, %v7493_v43  ;;  %v2377_v14 = vmul.f32 %v8017_v27, %v7510_v7 }
 0x19c   : > { %1829 = vst.msk [vmem:[#allocation2 + $0x168] sm:$0xff] %vm1735_vm2, %v10755_v16  ;;  %6505 = vmatmul.msk.bf16.gmra.mxu0 %vm1735_vm2, %v2791_v60  ;;  %v1992_v60 = vmul.f32 %v2538_v15, %v7416_v4  ;;  %v2215_v62 = vadd.f32 %v2183_v59, %v2118_v6  ;;  %v2476_v46 = vmul.f32 %v7514_v9, %v8043_v44  ;;  %v2540_v56 = vld [vmem:[#allocation2 + $0x150] sm:$0xff] }
 0x19d   : > { %v1607_v11 = vpop.f32.mrf.mxu3  ;;  %v2410_v15 = vadd.f32 %v2378_v36, %v2313_v37  ;;  %v2768_v31 = vmax.f32 %v2736_v39, 0.0  ;;  %v2186_v37 = vmul.f32 %v8043_v44, %v7457_v52  ;;  %v8077_v39 = vld [vmem:[#allocation2 + $0x149] sm:$0xff] }
 0x19e   : > { %v1656_v42 = vadd.f32 %v1607_v11, %v1428_v24  ;;  %v2024_v20 = vadd.f32 %v1992_v60, %v1895_v50  ;;  %v2312_v59 = vadd.f32 %v2280_v28, %v2215_v62  ;;  %v2539_v60 = vld [vmem:[#allocation2 + $0x148] sm:$0xff]  ;;  %v2637_v62 = vld [vmem:[#allocation2 + $0x151] sm:$0xff] }
 0x19f   : > { %v1185_v25 = vpop.f32.mrf.mxu1  ;;  %v2508_v41 = vadd.f32 %v2476_v46, %v2410_v15  ;;  %v1993_v16 = vmul.f32 %v2539_v60, %v7416_v4 }
 0x1a0   : > { %v8046_v34 = vadd.f32 %v7895_v18, %v1656_v42  ;;  %v1186_v47 = vadd.f32 %v1185_v25, %v7219_v49  ;;  %v1384_v19 = vpop.f32.mrf.mxu2  ;;  %v2735_v49 = vadd.f32 %v7572_v53, %v2699_v55  ;;  %v2475_v53 = vmul.f32 %v7514_v9, %v8057_v23 }
 0x1a1   : > { %v2089_v55 = vmul.f32 %v2635_v57, %v7433_v33  ;;  %v2409_v36 = vadd.f32 %v2377_v14, %v2312_v59  ;;  %v1894_v57 = vmul.f32 %v7999_v61, %v7413_v2  ;;  %v1991_v14 = vmul.f32 %v8015_v0, %v7416_v4 }
 0x1a2   : > { %v10753_v32 = vmax.f32 %v8046_v34, 0.0  ;;  %v1429_v24 = vadd.f32 %v1382_v1, %v1186_v47  ;;  %v2767_v6 = vmax.f32 %v2735_v49, 0.0  ;;  %v2573_v1 = vmul.f32 %v7519_v51, %v2540_v56 }
 0x1a3   : > { %v2121_v28 = vadd.f32 %v2089_v55, %v2024_v20  ;;  %v2088_v61 = vmul.f32 %v8017_v27, %v7433_v33  ;;  %v2283_v0 = vmul.f32 %v2540_v56, %v7493_v43  ;;  %v2023_v55 = vadd.f32 %v1991_v14, %v1894_v57 }
 0x1a4   : > { %1830 = vst.msk [vmem:[#allocation2 + $0x170] sm:$0xff] %vm1735_vm2, %v10753_v32  ;;  %v2792_v15 = vpack.c.bf16 %v2768_v31, %v2767_v6  ;;  %v2605_v49 = vadd.f32 %v2573_v1, %v2508_v41 }
 0x1a5   : > { %v1610_v11 = vpop.f32.mrf.mxu3  ;;  %v2218_v59 = vadd.f32 %v2186_v37, %v2121_v28  ;;  %v2185_v37 = vmul.f32 %v8057_v23, %v7457_v52  ;;  %v2120_v32 = vadd.f32 %v2088_v61, %v2023_v55 }
 0x1a6   : > { %v1657_v42 = vadd.f32 %v1610_v11, %v1429_v24  ;;  %v2507_v24 = vadd.f32 %v2475_v53, %v2409_v36 }
 0x1a7   : > { %v1187_v25 = vpop.f32.mrf.mxu1  ;;  %v2315_v1 = vadd.f32 %v2283_v0, %v2218_v59  ;;  %v2217_v59 = vadd.f32 %v2185_v37, %v2120_v32 }
 0x1a8   : > { %v8074_v47 = vadd.f32 %v7895_v18, %v1657_v42  ;;  %v1188_v50 = vadd.f32 %v1187_v25, %v7237_v54  ;;  %v1387_v46 = vpop.f32.mrf.mxu2  ;;  %v2572_v54 = vmul.f32 %v7519_v51, %v2539_v60  ;;  %v2669_v42 = vmul.f32 %v8031_v58, %v8077_v39 }
 0x1a9   : > { %v2670_v25 = vmul.f32 %v8031_v58, %v2637_v62 }
 0x1aa   : > { %v10754_v11 = vmax.f32 %v8074_v47, 0.0  ;;  %v1430_v20 = vadd.f32 %v1384_v19, %v1188_v50  ;;  %v2604_v31 = vadd.f32 %v2572_v54, %v2507_v24  ;;  %v10867_v50 = vld [vmem:[#allocation13_spill] sm:$0xff]  ;;  %v2380_v24 = vmul.f32 %v2637_v62, %v7510_v7 }
 0x1ab   : > { %v2702_v53 = vadd.f32 %v2670_v25, %v2605_v49  ;;  %v8097_v6 = vld [vmem:[#allocation2 + $0x16f] sm:$0xff]  ;;  %v8109_v49 = vld [vmem:[%s10864_s11] ss:$0 sm:$0xff]  ;;  %v1897_v54 = vmul.f32 %v8043_v44, %v7413_v2 }
 0x1ac   : > { %1831 = vst.msk [vmem:[#allocation2 + $0x188] sm:$0xff] %vm1735_vm2, %v10754_v11  ;;  %6506 = vmatmul.msk.bf16.gmra.mxu0 %vm1735_vm2, %v2792_v15  ;;  %v2701_v28 = vadd.f32 %v2669_v42, %v2604_v31  ;;  %v2478_v57 = vmul.f32 %v7514_v9, %v8097_v6  ;;  %v1994_v42 = vmul.f32 %v2540_v56, %v7416_v4  ;;  %v2542_v55 = vld [vmem:[#allocation2 + $0x170] sm:$0xff] }
 0x1ad   : > { %v1612_v41 = vpop.f32.mrf.mxu3  ;;  %v2738_v14 = vadd.f32 %v8109_v49, %v2702_v53  ;;  %v2412_v61 = vadd.f32 %v2380_v24, %v2315_v1  ;;  %v2282_v31 = vmul.f32 %v2539_v60, %v7493_v43  ;;  %v1896_v24 = vmul.f32 %v8057_v23, %v7413_v2 }
 0x1ae   : > { %v1658_v36 = vadd.f32 %v1612_v41, %v1430_v20  ;;  %v8116_v20 = vld [vmem:[#allocation2 + $0x167] sm:$0xff]  ;;  %v2737_v0 = vadd.f32 %v8109_v49, %v2701_v28  ;;  %v2379_v41 = vmul.f32 %v8077_v39, %v7510_v7 }
 0x1af   : > { %v1190_v27 = vpop.f32.mrf.mxu1  ;;  %v2510_v32 = vadd.f32 %v2478_v57, %v2412_v61  ;;  %v2770_v56 = vmax.f32 %v2738_v14, 0.0  ;;  %v2314_v37 = vadd.f32 %v2282_v31, %v2217_v59  ;;  %v2188_v57 = vmul.f32 %v8097_v6, %v7457_v52  ;;  %v10869_v59 = vld [vmem:[#allocation14_spill] sm:$0xff] }
 0x1b0   : > { %v8100_v19 = vadd.f32 %v7895_v18, %v1658_v36  ;;  %v1191_v11 = vadd.f32 %v1190_v27, %v10867_v50  ;;  %v1389_v15 = vpop.f32.mrf.mxu2  ;;  %v2477_v36 = vmul.f32 %v7514_v9, %v8116_v20  ;;  %v2026_v27 = vadd.f32 %v1994_v42, %v1897_v54  ;;  %v2541_v42 = vld [vmem:[#allocation2 + $0x168] sm:$0xff] }
 0x1b1   : > { %v2575_v50 = vmul.f32 %v7519_v51, %v2542_v55  ;;  %v2769_v30 = vmax.f32 %v2737_v0, 0.0  ;;  %v8140_v31 = vld [vmem:[#allocation2 + $0x169] sm:$0xff] }
 0x1b2   : > { %v10757_v25 = vmax.f32 %v8100_v19, 0.0  ;;  %v1431_v44 = vadd.f32 %v1387_v46, %v1191_v11  ;;  %v8131_v46 = vld [vmem:[#allocation2 + $0x171] sm:$0xff]  ;;  %v2091_v11 = vmul.f32 %v2637_v62, %v7433_v33 }
 0x1b3   : > { %v2607_v61 = vadd.f32 %v2575_v50, %v2510_v32  ;;  %v2793_v23 = vpack.c.bf16 %v2770_v56, %v2769_v30  ;;  %v2671_v32 = vmul.f32 %v8031_v58, %v8140_v31  ;;  %v2187_v30 = vmul.f32 %v8116_v20, %v7457_v52 }
 0x1b4   : > { %1832 = vst.msk [vmem:[#allocation2 + $0x190] sm:$0xff] %vm1735_vm2, %v10757_v25  ;;  %v2411_v25 = vadd.f32 %v2379_v41, %v2314_v37  ;;  %v2090_v41 = vmul.f32 %v8077_v39, %v7433_v33  ;;  %v2672_v37 = vmul.f32 %v8031_v58, %v8131_v46 }
 0x1b5   : > { %v1615_v53 = vpop.f32.mrf.mxu3 }
 0x1b6   : > { %v1659_v1 = vadd.f32 %v1615_v53, %v1431_v44  ;;  %v2509_v60 = vadd.f32 %v2477_v36, %v2411_v25  ;;  %v2123_v44 = vadd.f32 %v2091_v11, %v2026_v27  ;;  %v2704_v39 = vadd.f32 %v2672_v37, %v2607_v61  ;;  %v8158_v36 = vld [vmem:[%s10870_s6] ss:$0 sm:$0xff] }
 0x1b7   : > { %v1192_v28 = vpop.f32.mrf.mxu1 }
 0x1b8   : > { %v8137_v14 = vadd.f32 %v7895_v18, %v1659_v1  ;;  %v1193_v54 = vadd.f32 %v1192_v28, %v10869_v59  ;;  %v1392_v0 = vpop.f32.mrf.mxu2  ;;  %v2025_v1 = vadd.f32 %v1993_v16, %v1896_v24  ;;  %v2574_v28 = vmul.f32 %v7519_v51, %v2541_v42 }
 0x1b9   : > { %v2870_v62 = vpop.f32.mrf.mxu0  ;;  %v2220_v25 = vadd.f32 %v2188_v57, %v2123_v44  ;;  %v2285_v24 = vmul.f32 %v2542_v55, %v7493_v43 }
 0x1ba   : > { %10868 = vst [vmem:[#allocation13_spill] sm:$0xff] %v8137_v14  ;;  %v10758_v53 = vmax.f32 %v8137_v14, 0.0  ;;  %v1432_v56 = vadd.f32 %v1389_v15, %v1193_v54  ;;  %v2606_v16 = vadd.f32 %v2574_v28, %v2509_v60  ;;  %v2122_v50 = vadd.f32 %v2090_v41, %v2025_v1 }
 0x1bb   : > { %v8162_v59 = vld [vmem:[#allocation2 + $0x18f] sm:$0xff]  ;;  %v2317_v61 = vadd.f32 %v2285_v24, %v2220_v25  ;;  %v1899_v15 = vmul.f32 %v8097_v6, %v7413_v2  ;;  %v2740_v54 = vadd.f32 %v8109_v49, %v2704_v39  ;;  %v1996_v41 = vmul.f32 %v2542_v55, %v7416_v4  ;;  %v8179_v39 = vld [vmem:[#allocation2 + $0x187] sm:$0xff] }
 0x1bc   : > { %1833 = vst.msk [vmem:[#allocation2 + $0x1a8] sm:$0xff] %vm1735_vm2, %v10758_v53  ;;  %6507 = vmatmul.msk.bf16.gmra.mxu0 %vm1735_vm2, %v2793_v23  ;;  %v2703_v44 = vadd.f32 %v2671_v32, %v2606_v16  ;;  %v2219_v53 = vadd.f32 %v2187_v30, %v2122_v50  ;;  %v10872_v23 = vld [vmem:[#allocation15_spill] sm:$0xff]  ;;  %v2871_v1 = vadd.f32 %v8158_v36, %v2870_v62 }
 0x1bd   : > { %v1617_v27 = vpop.f32.mrf.mxu3  ;;  %v2382_v28 = vmul.f32 %v8131_v46, %v7510_v7  ;;  %v2480_v32 = vmul.f32 %v7514_v9, %v8162_v59  ;;  %v2284_v25 = vmul.f32 %v2541_v42, %v7493_v43  ;;  %v2772_v24 = vmax.f32 %v2740_v54, 0.0 }
 0x1be   : > { %v1660_v11 = vadd.f32 %v1617_v27, %v1432_v56  ;;  %v1898_v56 = vmul.f32 %v8116_v20, %v7413_v2  ;;  %v2739_v62 = vadd.f32 %v8109_v49, %v2703_v44  ;;  %v2381_v27 = vmul.f32 %v8140_v31, %v7510_v7 }
 0x1bf   : > { %v1195_v57 = vpop.f32.mrf.mxu1  ;;  %v2414_v50 = vadd.f32 %v2382_v28, %v2317_v61  ;;  %v2028_v10 = vadd.f32 %v1996_v41, %v1899_v15  ;;  %v10874_v20 = vmax.f32 %v10873_v48, 0.0  ;;  %v2479_v14 = vmul.f32 %v7514_v9, %v8179_v39 }
 0x1c0   : > { %v8168_v37 = vadd.f32 %v7895_v18, %v1660_v11  ;;  %v1196_v60 = vadd.f32 %v1195_v57, %v10872_v23  ;;  %v1394_v16 = vpop.f32.mrf.mxu2  ;;  %v2316_v57 = vadd.f32 %v2284_v25, %v2219_v53  ;;  %v2544_v23 = vld [vmem:[#allocation2 + $0x190] sm:$0xff]  ;;  %v2190_v53 = vmul.f32 %v8162_v59, %v7457_v52 }
 0x1c1   : > { %v2872_v30 = vpop.f32.mrf.mxu0  ;;  %v2950_v13 = vadd.f32 %v2871_v1, %v10874_v20  ;;  %v2512_v61 = vadd.f32 %v2480_v32, %v2414_v50  ;;  %v2771_v15 = vmax.f32 %v2739_v62, 0.0  ;;  %v10878_v1 = vld [vmem:[#allocation16_spill] sm:$0xff]  ;;  %v8208_v25 = vld [vmem:[#allocation2 + $0x189] sm:$0xff] }
 0x1c2   : > { %10871 = vst [vmem:[#allocation14_spill] sm:$0xff] %v8168_v37  ;;  %v10767_v6 = vmax.f32 %v8168_v37, 0.0  ;;  %v2873_v55 = vadd.f32 %v8158_v36, %v2872_v30  ;;  %v1433_v11 = vadd.f32 %v1392_v0, %v1196_v60  ;;  %v10875_v30 = vld [vmem:[#allocation22_spill] sm:$0xff]  ;;  %v1995_v37 = vmul.f32 %v2541_v42, %v7416_v4 }
 0x1c3   : > { %v10876_v21 = vmax.f32 %v10875_v30, 0.0  ;;  %v2093_v0 = vmul.f32 %v8131_v46, %v7433_v33  ;;  %v2413_v60 = vadd.f32 %v2381_v27, %v2316_v57  ;;  %v8210_v42 = vld [vmem:[#allocation2 + $0x191] sm:$0xff]  ;;  %v2092_v27 = vmul.f32 %v8140_v31, %v7433_v33 }
 0x1c4   : > { %1834 = vst.msk [vmem:[#allocation2 + $0x1b0] sm:$0xff] %vm1735_vm2, %v10767_v6  ;;  %v2027_v57 = vadd.f32 %v1995_v37, %v1898_v56  ;;  %v2287_v37 = vmul.f32 %v2544_v23, %v7493_v43 }
 0x1c5   : > { %v2951_v44 = vadd.f32 %v2873_v55, %v10876_v21  ;;  %v1620_v5 = vpop.f32.mrf.mxu3  ;;  %v2577_v21 = vmul.f32 %v7519_v51, %v2544_v23  ;;  %v2125_v46 = vadd.f32 %v2093_v0, %v2028_v10  ;;  %v2794_v55 = vpack.c.bf16 %v2772_v24, %v2771_v15 }
 0x1c6   : > { %v1661_v54 = vadd.f32 %v1620_v5, %v1433_v11  ;;  %v8206_v5 = vld [vmem:[#allocation2 + $0x188] sm:$0xff]  ;;  %v2674_v10 = vmul.f32 %v8031_v58, %v8210_v42 }
 0x1c7   : > { %v1197_v28 = vpop.f32.mrf.mxu1  ;;  %v2982_v48 = vpack.c.bf16 %v2951_v44, %v2950_v13  ;;  %v2511_v13 = vadd.f32 %v2479_v14, %v2413_v60  ;;  %v2609_v62 = vadd.f32 %v2577_v21, %v2512_v61  ;;  %v2222_v20 = vadd.f32 %v2190_v53, %v2125_v46  ;;  %v10880_v46 = vld [vmem:[#allocation17_spill] sm:$0xff] }
 0x1c8   : > { %v8203_v41 = vadd.f32 %v7895_v18, %v1661_v54  ;;  %v1198_v32 = vadd.f32 %v1197_v28, %v10878_v1  ;;  %v2576_v30 = vmul.f32 %v7519_v51, %v8206_v5  ;;  %v2673_v44 = vmul.f32 %v8031_v58, %v8208_v25  ;;  %v1397_v61 = vpop.f32.mrf.mxu2 }
 0x1c9   : > { %6519 = vmatmul.msk.bf16.vlgmr.msra.gmra.mxu1 %vm1735_vm2, %v2982_v48  ;;  %v2875_v50 = vpop.f32.mrf.mxu0  ;;  %v2189_v14 = vmul.f32 %v8179_v39, %v7457_v52  ;;  %v2706_v24 = vadd.f32 %v2674_v10, %v2609_v62  ;;  %v2124_v28 = vadd.f32 %v2092_v27, %v2027_v57  ;;  %v2319_v15 = vadd.f32 %v2287_v37, %v2222_v20 }
 0x1ca   : > { %10877 = vst [vmem:[#allocation15_spill] sm:$0xff] %v8203_v41  ;;  %v10766_v11 = vmax.f32 %v8203_v41, 0.0  ;;  %v1434_v31 = vadd.f32 %v1394_v16, %v1198_v32  ;;  %v2608_v56 = vadd.f32 %v2576_v30, %v2511_v13  ;;  %v2384_v1 = vmul.f32 %v8210_v42, %v7510_v7 }
 0x1cb   : > { %v8229_v0 = vld [vmem:[#allocation2 + $0x1af] sm:$0xff]  ;;  %v2221_v21 = vadd.f32 %v2189_v14, %v2124_v28  ;;  %v1901_v16 = vmul.f32 %v8162_v59, %v7413_v2  ;;  %v1998_v62 = vmul.f32 %v2544_v23, %v7416_v4  ;;  %v2876_v27 = vadd.f32 %v8158_v36, %v2875_v50  ;;  %v8249_v14 = vld [vmem:[#allocation2 + $0x1a7] sm:$0xff] }
 0x1cc   : > { %1835 = vst.msk [vmem:[#allocation2 + $0x1c8] sm:$0xff] %vm1735_vm2, %v10766_v11  ;;  %6508 = vmatmul.msk.bf16.gmra.mxu0 %vm1735_vm2, %v2794_v55  ;;  %v2705_v60 = vadd.f32 %v2673_v44, %v2608_v56  ;;  %v2482_v13 = vmul.f32 %v7514_v9, %v8229_v0  ;;  %v2742_v57 = vadd.f32 %v8109_v49, %v2706_v24  ;;  %v2546_v37 = vld [vmem:[#allocation2 + $0x1b0] sm:$0xff] }
 0x1cd   : > { %v1622_v54 = vpop.f32.mrf.mxu3  ;;  %v2286_v59 = vmul.f32 %v8206_v5, %v7493_v43  ;;  %v2383_v44 = vmul.f32 %v8208_v25, %v7510_v7  ;;  %v2416_v10 = vadd.f32 %v2384_v1, %v2319_v15  ;;  %v1900_v50 = vmul.f32 %v8179_v39, %v7413_v2  ;;  %v10883_v1 = vld [vmem:[#allocation24_spill] sm:$0xff] }
 0x1ce   : > { %v1662_v53 = vadd.f32 %v1622_v54, %v1434_v31  ;;  %v2741_v23 = vadd.f32 %v8109_v49, %v2705_v60  ;;  %v2030_v28 = vadd.f32 %v1998_v62, %v1901_v16  ;;  %v2774_v11 = vmax.f32 %v2742_v57, 0.0 }
 0x1cf   : > { %v1200_v48 = vpop.f32.mrf.mxu1  ;;  %v2318_v24 = vadd.f32 %v2286_v59, %v2221_v21  ;;  %v2514_v54 = vadd.f32 %v2482_v13, %v2416_v10  ;;  %v2481_v6 = vmul.f32 %v7514_v9, %v8249_v14  ;;  %v8267_v13 = vld [vmem:[#allocation2 + $0x1b1] sm:$0xff]  ;;  %v2095_v62 = vmul.f32 %v8210_v42, %v7433_v33  ;;  %v8277_v10 = vld [vmem:[#allocation2 + $0x1a8] sm:$0xff] }
 0x1d0   : > { %v8236_v32 = vadd.f32 %v7895_v18, %v1662_v53  ;;  %v1201_v55 = vadd.f32 %v1200_v48, %v10880_v46  ;;  %v10881_v53 = vld [vmem:[#allocation23_spill] sm:$0xff]  ;;  %v10884_v46 = vmax.f32 %v10883_v1, 0.0  ;;  %v2773_v16 = vmax.f32 %v2741_v23, 0.0  ;;  %v10885_v59 = vld [vmem:[#allocation18_spill] sm:$0xff] }
 0x1d1   : > { %v2877_v20 = vpop.f32.mrf.mxu0  ;;  %v10882_v48 = vmax.f32 %v10881_v53, 0.0  ;;  %v2094_v42 = vmul.f32 %v8208_v25, %v7433_v33 }
 0x1d2   : > { %10879 = vst [vmem:[#allocation21_spill] sm:$0xff] %v8236_v32  ;;  %v10770_v30 = vmax.f32 %v8236_v32, 0.0  ;;  %v2878_v31 = vadd.f32 %v8158_v36, %v2877_v20  ;;  %v1435_v56 = vadd.f32 %v1397_v61, %v1201_v55  ;;  %v2415_v32 = vadd.f32 %v2383_v44, %v2318_v24  ;;  %v1399_v55 = vpop.f32.mrf.mxu2 }
 0x1d3   : > { %v2952_v15 = vadd.f32 %v2876_v27, %v10882_v48  ;;  %v1997_v61 = vmul.f32 %v8206_v5, %v7416_v4  ;;  %v2192_v27 = vmul.f32 %v8229_v0, %v7457_v52  ;;  %v8279_v5 = vld [vmem:[#allocation2 + $0x1a9] sm:$0xff]  ;;  %v2795_v23 = vpack.c.bf16 %v2774_v11, %v2773_v16 }
 0x1d4   : > { %1836 = vst.msk [vmem:[#allocation2 + $0x1d0] sm:$0xff] %vm1735_vm2, %v10770_v30  ;;  %v2953_v20 = vadd.f32 %v2878_v31, %v10884_v46  ;;  %v2579_v30 = vmul.f32 %v7519_v51, %v2546_v37  ;;  %v2127_v24 = vadd.f32 %v2095_v62, %v2030_v28  ;;  %v2289_v46 = vmul.f32 %v2546_v37, %v7493_v43 }
 0x1d5   : > { %v1625_v60 = vpop.f32.mrf.mxu3  ;;  %v1903_v62 = vmul.f32 %v8229_v0, %v7413_v2 }
 0x1d6   : > { %v1663_v39 = vadd.f32 %v1625_v60, %v1435_v56  ;;  %v2983_v21 = vpack.c.bf16 %v2953_v20, %v2952_v15  ;;  %v2611_v31 = vadd.f32 %v2579_v30, %v2514_v54  ;;  %v2513_v56 = vadd.f32 %v2481_v6, %v2415_v32 }
 0x1d7   : > { %v1202_v41 = vpop.f32.mrf.mxu1  ;;  %v2676_v15 = vmul.f32 %v8031_v58, %v8267_v13  ;;  %v2578_v30 = vmul.f32 %v7519_v51, %v8277_v10  ;;  %v2675_v54 = vmul.f32 %v8031_v58, %v8279_v5  ;;  %v2191_v6 = vmul.f32 %v8249_v14, %v7457_v52 }
 0x1d8   : > { %v8274_v57 = vadd.f32 %v7895_v18, %v1663_v39  ;;  %v1203_v44 = vadd.f32 %v1202_v41, %v10885_v59  ;;  %v2029_v41 = vadd.f32 %v1997_v61, %v1900_v50  ;;  %v2224_v11 = vadd.f32 %v2192_v27, %v2127_v24  ;;  %v10886_v59 = vld [vmem:[#allocation19_spill] sm:$0xff] }
 0x1d9   : > { %6520 = vmatmul.msk.bf16.gmra.mxu1 %vm1735_vm2, %v2983_v21  ;;  %v2880_v53 = vpop.f32.mrf.mxu0  ;;  %v2708_v25 = vadd.f32 %v2676_v15, %v2611_v31  ;;  %v2610_v28 = vadd.f32 %v2578_v30, %v2513_v56  ;;  %v2000_v31 = vmul.f32 %v2546_v37, %v7416_v4  ;;  %v8316_v30 = vld [vmem:[#allocation2 + $0x1c7] sm:$0xff] }
 0x1da   : > { %v10771_v48 = vmax.f32 %v8274_v57, 0.0  ;;  %v1436_v32 = vadd.f32 %v1399_v55, %v1203_v44  ;;  %v2126_v1 = vadd.f32 %v2094_v42, %v2029_v41  ;;  %v2321_v16 = vadd.f32 %v2289_v46, %v2224_v11  ;;  %v1402_v56 = vpop.f32.mrf.mxu2 }
 0x1db   : > { %v8298_v39 = vld [vmem:[#allocation2 + $0x1cf] sm:$0xff]  ;;  %v2707_v61 = vadd.f32 %v2675_v54, %v2610_v28  ;;  %v2744_v27 = vadd.f32 %v8109_v49, %v2708_v25  ;;  %v2386_v42 = vmul.f32 %v8267_v13, %v7510_v7  ;;  %v2288_v41 = vmul.f32 %v8277_v10, %v7493_v43 }
 0x1dc   : > { %1837 = vst.msk [vmem:[#allocation2 + $0x1e8] sm:$0xff] %vm1735_vm2, %v10771_v48  ;;  %6509 = vmatmul.msk.bf16.gmra.mxu0 %vm1735_vm2, %v2795_v23  ;;  %v2223_v21 = vadd.f32 %v2191_v6, %v2126_v1  ;;  %v2881_v23 = vadd.f32 %v8158_v36, %v2880_v53  ;;  %v2484_v24 = vmul.f32 %v7514_v9, %v8298_v39  ;;  %v2548_v28 = vld [vmem:[#allocation2 + $0x1d0] sm:$0xff]  ;;  %v10887_v1 = vld [vmem:[#allocation25_spill] sm:$0xff] }
 0x1dd   : > { %v1627_v50 = vpop.f32.mrf.mxu3  ;;  %v2743_v37 = vadd.f32 %v8109_v49, %v2707_v61  ;;  %v2385_v53 = vmul.f32 %v8279_v5, %v7510_v7  ;;  %v2418_v6 = vadd.f32 %v2386_v42, %v2321_v16  ;;  %v2776_v11 = vmax.f32 %v2744_v27, 0.0 }
 0x1de   : > { %v1664_v20 = vadd.f32 %v1627_v50, %v1436_v32  ;;  %v2320_v32 = vadd.f32 %v2288_v41, %v2223_v21  ;;  %v2032_v50 = vadd.f32 %v2000_v31, %v1903_v62  ;;  %v10888_v46 = vmax.f32 %v10887_v1, 0.0 }
 0x1df   : > { %v1205_v60 = vpop.f32.mrf.mxu1  ;;  %v2483_v48 = vmul.f32 %v7514_v9, %v8316_v30  ;;  %v2516_v16 = vadd.f32 %v2484_v24, %v2418_v6  ;;  %v2097_v21 = vmul.f32 %v8267_v13, %v7433_v33  ;;  %v2194_v62 = vmul.f32 %v8298_v39, %v7457_v52  ;;  %v10892_v24 = vld [vmem:[#allocation20_spill] sm:$0xff]  ;;  %v8342_v6 = vld [vmem:[#allocation2 + $0x1c8] sm:$0xff] }
 0x1e0   : > { %v8304_v55 = vadd.f32 %v7895_v18, %v1664_v20  ;;  %v1206_v44 = vadd.f32 %v1205_v60, %v10886_v59  ;;  %v2954_v20 = vadd.f32 %v2881_v23, %v10888_v46  ;;  %v10889_v60 = vld [vmem:[#allocation26_spill] sm:$0xff]  ;;  %v2775_v31 = vmax.f32 %v2743_v37, 0.0 }
 0x1e1   : > { %v2882_v15 = vpop.f32.mrf.mxu0  ;;  %v10890_v59 = vmax.f32 %v10889_v60, 0.0  ;;  %v2417_v23 = vadd.f32 %v2385_v53, %v2320_v32  ;;  %v1999_v13 = vmul.f32 %v8277_v10, %v7416_v4  ;;  %v2129_v1 = vadd.f32 %v2097_v21, %v2032_v50 }
 0x1e2   : > { %v10772_v0 = vmax.f32 %v8304_v55, 0.0  ;;  %v2883_v54 = vadd.f32 %v8158_v36, %v2882_v15  ;;  %v1437_v25 = vadd.f32 %v1402_v56, %v1206_v44  ;;  %v2581_v56 = vmul.f32 %v7519_v51, %v2548_v28 }
 0x1e3   : > { %v2796_v37 = vpack.c.bf16 %v2776_v11, %v2775_v31  ;;  %v2515_v53 = vadd.f32 %v2483_v48, %v2417_v23  ;;  %v2096_v60 = vmul.f32 %v8279_v5, %v7433_v33  ;;  %v2291_v5 = vmul.f32 %v2548_v28, %v7493_v43 }
 0x1e4   : > { %1838 = vst.msk [vmem:[#allocation2 + $0x1f0] sm:$0xff] %vm1735_vm2, %v10772_v0  ;;  %v2955_v15 = vadd.f32 %v2883_v54, %v10890_v59  ;;  %v1902_v0 = vmul.f32 %v8249_v14, %v7413_v2  ;;  %v2645_v14 = vld [vmem:[#allocation2 + $0x1d1] sm:$0xff]  ;;  %v2613_v32 = vadd.f32 %v2581_v56, %v2516_v16  ;;  %v2226_v59 = vadd.f32 %v2194_v62, %v2129_v1 }
 0x1e5   : > { %v1630_v61 = vpop.f32.mrf.mxu3  ;;  %v2678_v50 = vmul.f32 %v8031_v58, %v2645_v14  ;;  %v2193_v16 = vmul.f32 %v8316_v30, %v7457_v52 }
 0x1e6   : > { %v1665_v27 = vadd.f32 %v1630_v61, %v1437_v25  ;;  %v2984_v44 = vpack.c.bf16 %v2955_v15, %v2954_v20  ;;  %v8344_v25 = vld [vmem:[#allocation2 + $0x1c9] sm:$0xff]  ;;  %v1404_v15 = vpop.f32.mrf.mxu2  ;;  %v2580_v61 = vmul.f32 %v7519_v51, %v8342_v6  ;;  %v2031_v11 = vadd.f32 %v1999_v13, %v1902_v0 }
 0x1e7   : > { %v1207_v42 = vpop.f32.mrf.mxu1  ;;  %v2677_v10 = vmul.f32 %v8031_v58, %v8344_v25  ;;  %v2323_v23 = vadd.f32 %v2291_v5, %v2226_v59 }
 0x1e8   : > { %v8339_v41 = vadd.f32 %v7895_v18, %v1665_v27  ;;  %v1208_v54 = vadd.f32 %v1207_v42, %v10892_v24  ;;  %v2612_v27 = vadd.f32 %v2580_v61, %v2515_v53  ;;  %v2710_v42 = vadd.f32 %v2678_v50, %v2613_v32  ;;  %v8374_v53 = vld [vmem:[#allocation2 + $0x1e7] sm:$0xff] }
 0x1e9   : > { %6521 = vmatmul.msk.bf16.gmra.mxu1 %vm1735_vm2, %v2984_v44  ;;  %v2885_v46 = vpop.f32.mrf.mxu0  ;;  %v2128_v31 = vadd.f32 %v2096_v60, %v2031_v11  ;;  %v1905_v32 = vmul.f32 %v8298_v39, %v7413_v2  ;;  %v2002_v60 = vmul.f32 %v2548_v28, %v7416_v4  ;;  %v2387_v61 = vmul.f32 %v8344_v25, %v7510_v7 }
 0x1ea   : > { %10891 = vst [vmem:[#allocation22_spill] sm:$0xff] %v8339_v41  ;;  %v10773_v20 = vmax.f32 %v8339_v41, 0.0  ;;  %v1438_v48 = vadd.f32 %v1404_v15, %v1208_v54  ;;  %v2709_v56 = vadd.f32 %v2677_v10, %v2612_v27  ;;  %v2388_v54 = vmul.f32 %v2645_v14, %v7510_v7  ;;  %v2549_v41 = vld [vmem:[#allocation2 + $0x1e8] sm:$0xff] }
 0x1eb   : > { %v8364_v62 = vld [vmem:[#allocation2 + $0x1ef] sm:$0xff]  ;;  %v2225_v0 = vadd.f32 %v2193_v16, %v2128_v31  ;;  %v2886_v1 = vadd.f32 %v8158_v36, %v2885_v46  ;;  %v2290_v15 = vmul.f32 %v8342_v6, %v7493_v43  ;;  %v2485_v28 = vmul.f32 %v7514_v9, %v8374_v53 }
 0x1ec   : > { %1839 = vst.msk [vmem:[#allocation2 + $0x208] sm:$0xff] %vm1735_vm2, %v10773_v20  ;;  %6510 = vmatmul.msk.bf16.gmra.mxu0 %vm1735_vm2, %v2796_v37  ;;  %v2486_v13 = vmul.f32 %v7514_v9, %v8364_v62  ;;  %v2746_v37 = vadd.f32 %v8109_v49, %v2710_v42  ;;  %v2420_v10 = vadd.f32 %v2388_v54, %v2323_v23  ;;  %v10893_v16 = vld [vmem:[#allocation27_spill] sm:$0xff]  ;;  %v10895_v42 = vld [vmem:[#allocation28_spill] sm:$0xff] }
 0x1ed   : > { %v1632_v21 = vpop.f32.mrf.mxu3  ;;  %v2745_v50 = vadd.f32 %v8109_v49, %v2709_v56  ;;  %v2322_v39 = vadd.f32 %v2290_v15, %v2225_v0  ;;  %v10894_v5 = vmax.f32 %v10893_v16, 0.0  ;;  %v2034_v23 = vadd.f32 %v2002_v60, %v1905_v32  ;;  %v2647_v0 = vld [vmem:[#allocation2 + $0x1f1] sm:$0xff] }
 0x1ee   : > { %v1666_v44 = vadd.f32 %v1632_v21, %v1438_v48  ;;  %v2550_v48 = vld [vmem:[#allocation2 + $0x1f0] sm:$0xff]  ;;  %v2518_v11 = vadd.f32 %v2486_v13, %v2420_v10  ;;  %v10896_v21 = vmax.f32 %v10895_v42, 0.0  ;;  %v2778_v31 = vmax.f32 %v2746_v37, 0.0 }
 0x1ef   : > { %v2956_v27 = vadd.f32 %v2886_v1, %v10894_v5  ;;  %v2419_v54 = vadd.f32 %v2387_v61, %v2322_v39  ;;  %v2583_v56 = vmul.f32 %v7519_v51, %v2550_v48  ;;  %v2777_v20 = vmax.f32 %v2745_v50, 0.0 }
 0x1f0   : > { %v8367_v24 = vadd.f32 %v7895_v18, %v1666_v44  ;;  %v2099_v15 = vmul.f32 %v2645_v14, %v7433_v33  ;;  %v2196_v13 = vmul.f32 %v8364_v62, %v7457_v52  ;;  %v2001_v37 = vmul.f32 %v8342_v6, %v7416_v4 }
 0x1f1   : > { %v2887_v59 = vpop.f32.mrf.mxu0  ;;  %v2517_v10 = vadd.f32 %v2485_v28, %v2419_v54  ;;  %v2615_v1 = vadd.f32 %v2583_v56, %v2518_v11  ;;  %v2797_v32 = vpack.c.bf16 %v2778_v31, %v2777_v20  ;;  %v2582_v50 = vmul.f32 %v7519_v51, %v2549_v41 }
 0x1f2   : > { %v10775_v18 = vmax.f32 %v8367_v24, 0.0  ;;  %v2888_v46 = vadd.f32 %v8158_v36, %v2887_v59  ;;  %v2131_v60 = vadd.f32 %v2099_v15, %v2034_v23  ;;  %v2680_v39 = vmul.f32 %v8031_v58, %v2647_v0 }
 0x1f3   : > { %v2098_v28 = vmul.f32 %v8344_v25, %v7433_v33  ;;  %v2614_v16 = vadd.f32 %v2582_v50, %v2517_v10  ;;  %v2195_v6 = vmul.f32 %v8374_v53, %v7457_v52  ;;  %v2293_v20 = vmul.f32 %v2550_v48, %v7493_v43 }
 0x1f4   : > { %1840 = vst.msk [vmem:[#allocation2 + $0x210] sm:$0xff] %vm1735_vm2, %v10775_v18  ;;  %v2957_v44 = vadd.f32 %v2888_v46, %v10896_v21  ;;  %v2646_v18 = vld [vmem:[#allocation2 + $0x1e9] sm:$0xff]  ;;  %v1904_v46 = vmul.f32 %v8316_v30, %v7413_v2  ;;  %v2228_v11 = vadd.f32 %v2196_v13, %v2131_v60  ;;  %v2712_v30 = vadd.f32 %v2680_v39, %v2615_v1 }
 0x1f5   : > { %v2679_v14 = vmul.f32 %v8031_v58, %v2646_v18  ;;  %v1907_v25 = vmul.f32 %v8364_v62, %v7413_v2  ;;  %v2004_v54 = vmul.f32 %v2550_v48, %v7416_v4  ;;  %v2292_v1 = vmul.f32 %v2549_v41, %v7493_v43 }
 0x1f6   : > { %v2985_v59 = vpack.c.bf16 %v2957_v44, %v2956_v27  ;;  %v2033_v5 = vadd.f32 %v2001_v37, %v1904_v46  ;;  %v2325_v44 = vadd.f32 %v2293_v20, %v2228_v11  ;;  %v2748_v31 = vadd.f32 %v8109_v49, %v2712_v30  ;;  %v2454_v37 = vld [vmem:[#allocation2 + $0x207] sm:$0xff] }
 0x1f7   : > { %v2711_v27 = vadd.f32 %v2679_v14, %v2614_v16  ;;  %v2389_v46 = vmul.f32 %v2646_v18, %v7510_v7  ;;  %v2036_v14 = vadd.f32 %v2004_v54, %v1907_v25  ;;  %v10899_v11 = vmax.f32 %v7656_v8, 0.0  ;;  %v2551_v54 = vld [vmem:[#allocation2 + $0x208] sm:$0xff] }
 0x1f8   : > { %v2130_v42 = vadd.f32 %v2098_v28, %v2033_v5  ;;  %v2780_v62 = vmax.f32 %v2748_v31, 0.0  ;;  %v2487_v30 = vmul.f32 %v7514_v9, %v2454_v37 }
 0x1f9   : > { %6522 = vmatmul.msk.bf16.gmra.mxu1 %vm1735_vm2, %v2985_v59  ;;  %v2890_v61 = vpop.f32.mrf.mxu0  ;;  %v2390_v59 = vmul.f32 %v2647_v0, %v7510_v7  ;;  %v2747_v10 = vadd.f32 %v8109_v49, %v2711_v27  ;;  %v1906_v27 = vmul.f32 %v8374_v53, %v7413_v2 }
 0x1fa   : > { %v2227_v23 = vadd.f32 %v2195_v6, %v2130_v42  ;;  %v2891_v56 = vadd.f32 %v8158_v36, %v2890_v61  ;;  %v10897_v61 = vld [vmem:[#allocation29_spill] sm:$0xff]  ;;  %v2003_v42 = vmul.f32 %v2549_v41, %v7416_v4  ;;  %v2197_v41 = vmul.f32 %v2454_v37, %v7457_v52  ;;  %v2457_v37 = vld [vmem:[#allocation2 + $0x22f] sm:$0xff] }
 0x1fb   : > { %v2455_v21 = vld [vmem:[#allocation2 + $0x20f] sm:$0xff]  ;;  %v2422_v60 = vadd.f32 %v2390_v59, %v2325_v44  ;;  %v10898_v39 = vmax.f32 %v10897_v61, 0.0  ;;  %v2779_v6 = vmax.f32 %v2747_v10, 0.0  ;;  %v2100_v59 = vmul.f32 %v2646_v18, %v7433_v33 }
 0x1fc   : > { %6511 = vmatmul.msk.bf16.gmra.mxu0 %vm1735_vm2, %v2797_v32  ;;  %v2488_v15 = vmul.f32 %v7514_v9, %v2455_v21  ;;  %v2324_v50 = vadd.f32 %v2292_v1, %v2227_v23  ;;  %v2552_v48 = vld [vmem:[#allocation2 + $0x210] sm:$0xff]  ;;  %v2101_v23 = vmul.f32 %v2647_v0, %v7433_v33  ;;  %v2198_v25 = vmul.f32 %v2455_v21, %v7457_v52 }
 0x1fd   : > { %v2958_v28 = vadd.f32 %v2891_v56, %v10898_v39  ;;  %v2585_v31 = vmul.f32 %v7519_v51, %v2552_v48  ;;  %v2648_v8 = vld [vmem:[#allocation2 + $0x209] sm:$0xff]  ;;  %v2649_v56 = vld [vmem:[#allocation2 + $0x211] sm:$0xff]  ;;  %v2035_v4 = vadd.f32 %v2003_v42, %v1906_v27  ;;  %v2584_v1 = vmul.f32 %v7519_v51, %v2551_v54 }
 0x1fe   : > { %v2520_v5 = vadd.f32 %v2488_v15, %v2422_v60  ;;  %v2421_v20 = vadd.f32 %v2389_v46, %v2324_v50  ;;  %v2798_v15 = vpack.c.bf16 %v2780_v62, %v2779_v6  ;;  %v2133_v2 = vadd.f32 %v2101_v23, %v2036_v14  ;;  %v2554_v42 = vld [vmem:[#allocation2 + $0x230] sm:$0xff] }
 0x1ff   : > { %v2681_v0 = vmul.f32 %v8031_v58, %v2648_v8  ;;  %v2682_v21 = vmul.f32 %v8031_v58, %v2649_v56  ;;  %v2295_v60 = vmul.f32 %v2552_v48, %v7493_v43  ;;  %v2294_v61 = vmul.f32 %v2551_v54, %v7493_v43 }
 0x200   : > { %v2617_v10 = vadd.f32 %v2585_v31, %v2520_v5  ;;  %v2230_v46 = vadd.f32 %v2198_v25, %v2133_v2  ;;  %v2391_v52 = vmul.f32 %v2648_v8, %v7510_v7  ;;  %v2456_v5 = vld [vmem:[#allocation2 + $0x227] sm:$0xff]  ;;  %v2490_v27 = vmul.f32 %v7514_v9, %v2457_v37 }
 0x201   : > { %v2892_v13 = vpop.f32.mrf.mxu0  ;;  %v10901_v23 = vmax.f32 %v7734_v29, 0.0  ;;  %v2553_v8 = vld [vmem:[#allocation2 + $0x228] sm:$0xff] }
 0x202   : > { %v2893_v32 = vadd.f32 %v8158_v36, %v2892_v13  ;;  %v2519_v13 = vadd.f32 %v2487_v30, %v2421_v20  ;;  %v2714_v18 = vadd.f32 %v2682_v21, %v2617_v10  ;;  %v2327_v14 = vadd.f32 %v2295_v60, %v2230_v46  ;;  %v2651_v10 = vld [vmem:[#allocation2 + $0x231] sm:$0xff] }
 0x204   : > { %v2959_v16 = vadd.f32 %v2893_v32, %v10899_v11  ;;  %v2132_v32 = vadd.f32 %v2100_v59, %v2035_v4  ;;  %v2616_v33 = vadd.f32 %v2584_v1, %v2519_v13  ;;  %v2392_v11 = vmul.f32 %v2649_v56, %v7510_v7 }
 0x205   : > { %v2489_v7 = vmul.f32 %v7514_v9, %v2456_v5  ;;  %v2587_v13 = vmul.f32 %v7519_v51, %v2554_v42  ;;  %v2684_v1 = vmul.f32 %v8031_v58, %v2651_v10  ;;  %v10906_v5 = vmax.f32 %v7865_v38, 0.0 }
 0x206   : > { %v2986_v44 = vpack.c.bf16 %v2959_v16, %v2958_v28  ;;  %v2229_v62 = vadd.f32 %v2197_v41, %v2132_v32  ;;  %v2713_v50 = vadd.f32 %v2681_v0, %v2616_v33  ;;  %v2750_v28 = vadd.f32 %v8109_v49, %v2714_v18  ;;  %v2650_v41 = vld [vmem:[#allocation2 + $0x229] sm:$0xff] }
 0x207   : > { %v2424_v20 = vadd.f32 %v2392_v11, %v2327_v14  ;;  %v2683_v0 = vmul.f32 %v8031_v58, %v2650_v41  ;;  %v10909_v42 = vmax.f32 %v7898_v26, 0.0 }
 0x208   : > { %v2326_v30 = vadd.f32 %v2294_v61, %v2229_v62  ;;  %v2749_v48 = vadd.f32 %v8109_v49, %v2713_v50  ;;  %v2782_v54 = vmax.f32 %v2750_v28, 0.0  ;;  %v10903_v50 = vmax.f32 %v7803_v22, 0.0 }
 0x209   : > { %6523 = vmatmul.msk.bf16.gmra.mxu1 %vm1735_vm2, %v2986_v44  ;;  %v2895_v53 = vpop.f32.mrf.mxu0  ;;  %v10900_v44 = vmax.f32 %v7701_v45, 0.0  ;;  %v2586_v45 = vmul.f32 %v7519_v51, %v2553_v8  ;;  %v10902_v51 = vmax.f32 %v7769_v35, 0.0  ;;  %v10904_v28 = vmov 0.0  }
 0x20a   : > { %v2896_v39 = vadd.f32 %v8158_v36, %v2895_v53  ;;  %v2423_v43 = vadd.f32 %v2391_v52, %v2326_v30  ;;  %v2781_v59 = vmax.f32 %v2749_v48, 0.0  ;;  %3180 = vst.msk [vmem:[#allocation3] sm:$0xff] %vm3179_vm3, %v10904_v28 }
 0x20b   : > { %3181 = vst.msk [vmem:[#allocation3 + $0x8] sm:$0xff] %vm3179_vm3, %v10904_v28 }
 0x20c   : > { %6512 = vmatmul.msk.bf16.gmra.mxu0 %vm1735_vm2, %v2798_v15  ;;  %v2960_v31 = vadd.f32 %v2896_v39, %v10900_v44  ;;  %v2522_v15 = vadd.f32 %v2490_v27, %v2424_v20  ;;  %v2799_v2 = vpack.c.bf16 %v2782_v54, %v2781_v59  ;;  %v2521_v53 = vadd.f32 %v2489_v7, %v2423_v43  ;;  %v8534_v43 = vld [vmem:[%s10907_s8] ss:$0 sm:$0xff]  ;;  %s10917_s8 = sld [smem:[#allocation41_spill]] }
 0x20d   : > { %3182 = vst.msk [vmem:[#allocation3 + $0x10] sm:$0xff] %vm3179_vm3, %v10904_v28 }
 0x20e   : > { %v2619_v29 = vadd.f32 %v2587_v13, %v2522_v15  ;;  %v2618_v9 = vadd.f32 %v2586_v45, %v2521_v53  ;;  %3184 = vst.msk [vmem:[#allocation3 + $0x20] sm:$0xff] %vm3179_vm3, %v10904_v28  ;;  %v10911_v13 = vmax.f32 %v7955_v12, 0.0 }
 0x20f   : > { %3185 = vst.msk [vmem:[#allocation3 + $0x28] sm:$0xff] %vm3179_vm3, %v10904_v28 }
 0x210   : > { %v2716_v21 = vadd.f32 %v2684_v1, %v2619_v29  ;;  %v2715_v32 = vadd.f32 %v2683_v0, %v2618_v9  ;;  %3183 = vst.msk [vmem:[#allocation3 + $0x18] sm:$0xff] %vm3179_vm3, %v10904_v28  ;;  %v10913_v9 = vmax.f32 %v8012_v3, 0.0 }
 0x211   : > { %v2897_v16 = vpop.f32.mrf.mxu0  ;;  %3186 = vst.msk [vmem:[#allocation3 + $0x30] sm:$0xff] %vm3179_vm3, %v10904_v28 }
 0x212   : > { %v2898_v6 = vadd.f32 %v8158_v36, %v2897_v16  ;;  %v2752_v60 = vadd.f32 %v8109_v49, %v2716_v21  ;;  %v2751_v61 = vadd.f32 %v8109_v49, %v2715_v32  ;;  %3187 = vst.msk [vmem:[#allocation3 + $0x38] sm:$0xff] %vm3179_vm3, %v10904_v28  ;;  %v10905_v16 = vmax.f32 %v7842_v63, 0.0  ;;  %s10918_s5 = smov %s10917_s8 }
 0x213   : > { %3188 = vst.msk [vmem:[#allocation3 + $0x40] sm:$0xff] %vm3179_vm3, %v10904_v28  ;;  %v10914_v21 = vmax.f32 %v8046_v34, 0.0 }
 0x214   : > { %v2961_v25 = vadd.f32 %v2898_v6, %v10901_v23  ;;  %v2784_v37 = vmax.f32 %v2752_v60, 0.0  ;;  %v2783_v58 = vmax.f32 %v2751_v61, 0.0  ;;  %3189 = vst.msk [vmem:[#allocation3 + $0x48] sm:$0xff] %vm3179_vm3, %v10904_v28 }
 0x215   : > { %3190 = vst.msk [vmem:[#allocation3 + $0x50] sm:$0xff] %vm3179_vm3, %v10904_v28 }
 0x216   : > { %v2987_v56 = vpack.c.bf16 %v2961_v25, %v2960_v31  ;;  %v2800_v11 = vpack.c.bf16 %v2784_v37, %v2783_v58  ;;  %3191 = vst.msk [vmem:[#allocation3 + $0x58] sm:$0xff] %vm3179_vm3, %v10904_v28  ;;  %v10910_v31 = vmax.f32 %v7927_v40, 0.0  ;;  %v8659_v37 = vld [vmem:[%s10870_s6] ss:$0 sm:$0xff]  ;;  %s6799_s6 = scalar_lea.hbm %s10713_s27, 2 }
 0x217   : > { %3192 = vst.msk [vmem:[#allocation3 + $0x60] sm:$0xff] %vm3179_vm3, %v10904_v28 }
 0x218   : > { %3193 = vst.msk [vmem:[#allocation3 + $0x68] sm:$0xff] %vm3179_vm3, %v10904_v28 }
 0x219   : > { %6524 = vmatmul.msk.bf16.gmra.mxu1 %vm1735_vm2, %v2987_v56  ;;  %v2900_v4 = vpop.f32.mrf.mxu0  ;;  %3194 = vst.msk [vmem:[#allocation3 + $0x70] sm:$0xff] %vm3179_vm3, %v10904_v28 }
 0x21a   : > { %v2901_v46 = vadd.f32 %v8158_v36, %v2900_v4  ;;  %3195 = vst.msk [vmem:[#allocation3 + $0x78] sm:$0xff] %vm3179_vm3, %v10904_v28 }
 0x21b   : > { %3196 = vst.msk [vmem:[#allocation3 + $0x80] sm:$0xff] %vm3179_vm3, %v10904_v28 }
 0x21c   : > { %6513 = vmatmul.msk.bf16.gmra.mxu0 %vm1735_vm2, %v2799_v2  ;;  %v2962_v62 = vadd.f32 %v2901_v46, %v10902_v51  ;;  %3197 = vst.msk [vmem:[#allocation3 + $0x88] sm:$0xff] %vm3179_vm3, %v10904_v28  ;;  %v10912_v2 = vmax.f32 %v7984_v17, 0.0 }
 0x21d   : > { %3198 = vst.msk [vmem:[#allocation3 + $0x90] sm:$0xff] %vm3179_vm3, %v10904_v28 }
 0x21e   : > { %3199 = vst.msk [vmem:[#allocation3 + $0x98] sm:$0xff] %vm3179_vm3, %v10904_v28 }
 0x21f   : > { %3200 = vst.msk [vmem:[#allocation3 + $0xa0] sm:$0xff] %vm3179_vm3, %v10904_v28 }
 0x220   : > { %3201 = vst.msk [vmem:[#allocation3 + $0xa8] sm:$0xff] %vm3179_vm3, %v10904_v28 }
 0x221   : > { %v2902_v33 = vpop.f32.mrf.mxu0  ;;  %3202 = vst.msk [vmem:[#allocation3 + $0xb0] sm:$0xff] %vm3179_vm3, %v10904_v28 }
 0x222   : > { %v2903_v18 = vadd.f32 %v8158_v36, %v2902_v33  ;;  %3203 = vst.msk [vmem:[#allocation3 + $0xb8] sm:$0xff] %vm3179_vm3, %v10904_v28 }
 0x223   : > { %3204 = vst.msk [vmem:[#allocation3 + $0xc0] sm:$0xff] %vm3179_vm3, %v10904_v28 }
 0x224   : > { %v2963_v14 = vadd.f32 %v2903_v18, %v10903_v50  ;;  %3205 = vst.msk [vmem:[#allocation3 + $0xc8] sm:$0xff] %vm3179_vm3, %v10904_v28 }
 0x225   : > { %3206 = vst.msk [vmem:[#allocation3 + $0xd0] sm:$0xff] %vm3179_vm3, %v10904_v28 }
 0x226   : > { %v2988_v52 = vpack.c.bf16 %v2963_v14, %v2962_v62  ;;  %3207 = vst.msk [vmem:[#allocation3 + $0xd8] sm:$0xff] %vm3179_vm3, %v10904_v28 }
 0x227   : > { %3208 = vst.msk [vmem:[#allocation3 + $0xe0] sm:$0xff] %vm3179_vm3, %v10904_v28 }
 0x228   : > { %3209 = vst.msk [vmem:[#allocation3 + $0xe8] sm:$0xff] %vm3179_vm3, %v10904_v28 }
 0x229   : > { %6525 = vmatmul.msk.bf16.gmra.mxu1 %vm1735_vm2, %v2988_v52  ;;  %v2905_v39 = vpop.f32.mrf.mxu0  ;;  %3210 = vst.msk [vmem:[#allocation3 + $0xf0] sm:$0xff] %vm3179_vm3, %v10904_v28 }
 0x22a   : > { %v2906_v35 = vadd.f32 %v8158_v36, %v2905_v39  ;;  %3211 = vst.msk [vmem:[#allocation3 + $0xf8] sm:$0xff] %vm3179_vm3, %v10904_v28 }
 0x22b   : > { %3212 = vst.msk [vmem:[#allocation3 + $0x100] sm:$0xff] %vm3179_vm3, %v10904_v28 }
 0x22c   : > { %6514 = vmatmul.msk.bf16.gmra.mxu0 %vm1735_vm2, %v2800_v11  ;;  %v2964_v30 = vadd.f32 %v2906_v35, %v10905_v16  ;;  %3213 = vst.msk [vmem:[#allocation3 + $0x108] sm:$0xff] %vm3179_vm3, %v10904_v28  ;;  %v10916_v16 = vmax.f32 %v8100_v19, 0.0 }
 0x22d   : > { %3214 = vst.msk [vmem:[#allocation3 + $0x110] sm:$0xff] %vm3179_vm3, %v10904_v28 }
 0x22e   : > { %3215 = vst.msk [vmem:[#allocation3 + $0x118] sm:$0xff] %vm3179_vm3, %v10904_v28 }
 0x22f   : > { %3216 = vst.msk [vmem:[#allocation3 + $0x120] sm:$0xff] %vm3179_vm3, %v10904_v28 }
 0x230   : > { %3217 = vst.msk [vmem:[#allocation3 + $0x128] sm:$0xff] %vm3179_vm3, %v10904_v28 }
 0x231   : > { %v2907_v22 = vpop.f32.mrf.mxu0  ;;  %3218 = vst.msk [vmem:[#allocation3 + $0x130] sm:$0xff] %vm3179_vm3, %v10904_v28 }
 0x232   : > { %v2908_v49 = vadd.f32 %v8158_v36, %v2907_v22  ;;  %3219 = vst.msk [vmem:[#allocation3 + $0x138] sm:$0xff] %vm3179_vm3, %v10904_v28  ;;  %v10915_v22 = vmax.f32 %v8074_v47, 0.0  ;;  %v6689_v47 = vld [vmem:[%s10917_s8 + $0x18] sm:$0xff]  ;;  %s10931_s8 = sld [smem:[#allocation40_spill]] }
 0x233   : > { %3220 = vst.msk [vmem:[#allocation3 + $0x140] sm:$0xff] %vm3179_vm3, %v10904_v28  ;;  %4340 = vmatpush.bf16.msra.mxu2 %v6689_v47 }
 0x234   : > { %v2965_v6 = vadd.f32 %v2908_v49, %v10906_v5  ;;  %3221 = vst.msk [vmem:[#allocation3 + $0x148] sm:$0xff] %vm3179_vm3, %v10904_v28 }
 0x235   : > { %3222 = vst.msk [vmem:[#allocation3 + $0x150] sm:$0xff] %vm3179_vm3, %v10904_v28 }
 0x236   : > { %v2989_v48 = vpack.c.bf16 %v2965_v6, %v2964_v30  ;;  %3223 = vst.msk [vmem:[#allocation3 + $0x158] sm:$0xff] %vm3179_vm3, %v10904_v28 }
 0x237   : > { %3224 = vst.msk [vmem:[#allocation3 + $0x160] sm:$0xff] %vm3179_vm3, %v10904_v28 }
 0x238   : > { %3225 = vst.msk [vmem:[#allocation3 + $0x168] sm:$0xff] %vm3179_vm3, %v10904_v28  ;;  %s10932_s2 = smov %s10931_s8 }
 0x239   : > { %6526 = vmatmul.msk.bf16.gmra.mxu1 %vm1735_vm2, %v2989_v48  ;;  %v2910_v63 = vpop.f32.mrf.mxu0  ;;  %3226 = vst.msk [vmem:[#allocation3 + $0x170] sm:$0xff] %vm3179_vm3, %v10904_v28 }
 0x23a   : > { %v2911_v38 = vadd.f32 %v8158_v36, %v2910_v63  ;;  %3227 = vst.msk [vmem:[#allocation3 + $0x178] sm:$0xff] %vm3179_vm3, %v10904_v28 }
 0x23b   : > { %3228 = vst.msk [vmem:[#allocation3 + $0x180] sm:$0xff] %vm3179_vm3, %v10904_v28 }
 0x23c   : > { %v2966_v44 = vadd.f32 %v2911_v38, %v10909_v42  ;;  %3229 = vst.msk [vmem:[#allocation3 + $0x188] sm:$0xff] %vm3179_vm3, %v10904_v28 }
 0x23d   : > { %3230 = vst.msk [vmem:[#allocation3 + $0x190] sm:$0xff] %vm3179_vm3, %v10904_v28 }
 0x23e   : > { %3231 = vst.msk [vmem:[#allocation3 + $0x198] sm:$0xff] %vm3179_vm3, %v10904_v28 }
 0x23f   : > { %3232 = vst.msk [vmem:[#allocation3 + $0x1a0] sm:$0xff] %vm3179_vm3, %v10904_v28 }
 0x240   : > { %3233 = vst.msk [vmem:[#allocation3 + $0x1a8] sm:$0xff] %vm3179_vm3, %v10904_v28 }
 0x241   : > { %v2912_v20 = vpop.f32.mrf.mxu0  ;;  %3234 = vst.msk [vmem:[#allocation3 + $0x1b0] sm:$0xff] %vm3179_vm3, %v10904_v28 }
 0x242   : > { %v2913_v27 = vadd.f32 %v8158_v36, %v2912_v20  ;;  %3235 = vst.msk [vmem:[#allocation3 + $0x1b8] sm:$0xff] %vm3179_vm3, %v10904_v28 }
 0x243   : > { %3236 = vst.msk [vmem:[#allocation3 + $0x1c0] sm:$0xff] %vm3179_vm3, %v10904_v28 }
 0x244   : > { %v2967_v23 = vadd.f32 %v2913_v27, %v10910_v31  ;;  %3237 = vst.msk [vmem:[#allocation3 + $0x1c8] sm:$0xff] %vm3179_vm3, %v10904_v28 }
 0x245   : > { %3238 = vst.msk [vmem:[#allocation3 + $0x1d0] sm:$0xff] %vm3179_vm3, %v10904_v28 }
 0x246   : > { %v3067_v25 = vpop.f32.mrf.mxu1  ;;  %v2990_v54 = vpack.c.bf16 %v2967_v23, %v2966_v44  ;;  %3239 = vst.msk [vmem:[#allocation3 + $0x1d8] sm:$0xff] %vm3179_vm3, %v10904_v28 }
 0x247   : > { %v3068_v7 = vadd.f32 %v8534_v43, %v3067_v25  ;;  %3240 = vst.msk [vmem:[#allocation3 + $0x1e0] sm:$0xff] %vm3179_vm3, %v10904_v28 }
 0x248   : > { %3241 = vst.msk [vmem:[#allocation3 + $0x1e8] sm:$0xff] %vm3179_vm3, %v10904_v28 }
 0x249   : > { %v3147_v26 = vmax.f32 %v3068_v7, 0.0  ;;  %6527 = vmatmul.msk.bf16.gmra.mxu1 %vm1735_vm2, %v2990_v54  ;;  %v2915_v40 = vpop.f32.mrf.mxu0  ;;  %3242 = vst.msk [vmem:[#allocation3 + $0x1f0] sm:$0xff] %vm3179_vm3, %v10904_v28 }
 0x24a   : > { %v2916_v56 = vadd.f32 %v8158_v36, %v2915_v40  ;;  %3243 = vst.msk [vmem:[#allocation3 + $0x1f8] sm:$0xff] %vm3179_vm3, %v10904_v28  ;;  %v10919_v40 = vld [vmem:[#allocation13_spill] sm:$0xff] }
 0x24b   : > { %3253 = vst.msk [vmem:[#allocation3 + $0x28] sm:$0xff] %vm3179_vm3, %v3147_v26 }
 0x24c   : > { %v2968_v10 = vadd.f32 %v2916_v56, %v10911_v13  ;;  %3244 = vst.msk [vmem:[#allocation3 + $0x200] sm:$0xff] %vm3179_vm3, %v10904_v28 }
 0x24d   : > { %3245 = vst.msk [vmem:[#allocation3 + $0x208] sm:$0xff] %vm3179_vm3, %v10904_v28 }
 0x24e   : > { %v3069_v8 = vpop.f32.mrf.mxu1  ;;  %3246 = vst.msk [vmem:[#allocation3 + $0x210] sm:$0xff] %vm3179_vm3, %v10904_v28 }
 0x24f   : > { %v3070_v3 = vadd.f32 %v8534_v43, %v3069_v8  ;;  %3247 = vst.msk [vmem:[#allocation3 + $0x218] sm:$0xff] %vm3179_vm3, %v10904_v28  ;;  %v10920_v8 = vmax.f32 %v10919_v40, 0.0 }
 0x250   : > { %3248 = vst.msk [vmem:[#allocation3 + $0x220] sm:$0xff] %vm3179_vm3, %v10904_v28 }
 0x251   : > { %v2917_v59 = vpop.f32.mrf.mxu0  ;;  %v3148_v51 = vmax.f32 %v3070_v3, 0.0  ;;  %3249 = vst.msk [vmem:[#allocation3 + $0x228] sm:$0xff] %vm3179_vm3, %v10904_v28 }
 0x252   : > { %v2918_v15 = vadd.f32 %v8158_v36, %v2917_v59  ;;  %3250 = vst.msk [vmem:[#allocation3 + $0x230] sm:$0xff] %vm3179_vm3, %v10904_v28  ;;  %v10921_v59 = vld [vmem:[#allocation14_spill] sm:$0xff] }
 0x253   : > { %3251 = vst.msk [vmem:[#allocation3 + $0x238] sm:$0xff] %vm3179_vm3, %v10904_v28 }
 0x254   : > { %v2969_v53 = vadd.f32 %v2918_v15, %v10912_v2  ;;  %3254 = vst.msk [vmem:[#allocation3 + $0x30] sm:$0xff] %vm3179_vm3, %v3148_v51  ;;  %v10922_v15 = vmax.f32 %v10921_v59, 0.0  ;;  %v10926_v51 = vld [vmem:[#allocation15_spill] sm:$0xff] }
 0x256   : > { %v3072_v45 = vpop.f32.mrf.mxu1  ;;  %v2991_v4 = vpack.c.bf16 %v2969_v53, %v2968_v10 }
 0x257   : > { %v3073_v33 = vadd.f32 %v8534_v43, %v3072_v45 }
 0x259   : > { %6528 = vmatmul.msk.bf16.gmra.mxu1 %vm1735_vm2, %v2991_v4  ;;  %v2920_v12 = vpop.f32.mrf.mxu0  ;;  %v3149_v50 = vmax.f32 %v3073_v33, 0.0  ;;  %v3384_v33 = vld [vmem:[#allocation3 + $0x8] sm:$0xff] }
 0x25a   : > { %v2921_v41 = vadd.f32 %v8158_v36, %v2920_v12 }
 0x25b   : > { %3255 = vst.msk [vmem:[#allocation3 + $0x48] sm:$0xff] %vm3179_vm3, %v3149_v50  ;;  %v3290_v47 = vld [vmem:[#allocation3 + $0x2f] sm:$0xff] }
 0x25c   : > { %v2970_v0 = vadd.f32 %v2921_v41, %v10913_v9 }
 0x25e   : > { %v3074_v17 = vpop.f32.mrf.mxu1 }
 0x25f   : > { %v3075_v18 = vadd.f32 %v8534_v43, %v3074_v17 }
 0x261   : > { %v2922_v29 = vpop.f32.mrf.mxu0  ;;  %v3150_v61 = vmax.f32 %v3075_v18, 0.0  ;;  %v3288_v18 = vld [vmem:[#allocation3 + $0xf] sm:$0xff] }
 0x262   : > { %v2923_v1 = vadd.f32 %v8158_v36, %v2922_v29 }
 0x263   : > { %3256 = vst.msk [vmem:[#allocation3 + $0x50] sm:$0xff] %vm3179_vm3, %v3150_v61 }
 0x264   : > { %v2971_v46 = vadd.f32 %v2923_v1, %v10914_v21  ;;  %v8697_v1 = vld [vmem:[%s10923_s10] sm:$0xff] }
 0x265   : > { %v8701_v21 = vperm.slane %v8697_v1, 0  ;;  %v8730_v40 = vperm.slane %v8697_v1, 4 }
 0x266   : > { %v3077_v32 = vpop.f32.mrf.mxu1  ;;  %v2992_v36 = vpack.c.bf16 %v2971_v46, %v2970_v0  ;;  %v8704_v46 = vperm.slane %v8697_v1, 1 }
 0x267   : > { %v3078_v60 = vadd.f32 %v8534_v43, %v3077_v32  ;;  %v10924_v32 = vld [vmem:[#allocation21_spill] sm:$0xff] }
 0x268   : > { %v3417_v61 = vmul.f32 %v8704_v46, %v3384_v33  ;;  %v8750_v33 = vperm.slane %v8697_v1, 6 }
 0x269   : > { %6529 = vmatmul.msk.bf16.gmra.mxu1 %vm1735_vm2, %v2992_v36  ;;  %v2925_v34 = vpop.f32.mrf.mxu0  ;;  %v3151_v52 = vmax.f32 %v3078_v60, 0.0  ;;  %v10925_v36 = vmax.f32 %v10924_v32, 0.0  ;;  %v3385_v60 = vld [vmem:[#allocation3 + $0x10] sm:$0xff] }
 0x26a   : > { %v2926_v58 = vadd.f32 %v8659_v37, %v2925_v34  ;;  %v3287_v34 = vld [vmem:[#allocation3 + $0x7] sm:$0xff] }
 0x26b   : > { %3257 = vst.msk [vmem:[#allocation3 + $0x68] sm:$0xff] %vm3179_vm3, %v3151_v52  ;;  %v8713_v52 = vperm.slane %v8697_v1, 2 }
 0x26c   : > { %v2972_v49 = vadd.f32 %v2926_v58, %v10915_v22 }
 0x26e   : > { %v3079_v62 = vpop.f32.mrf.mxu1 }
 0x26f   : > { %v3080_v14 = vadd.f32 %v8534_v43, %v3079_v62  ;;  %v10927_v62 = vmax.f32 %v10926_v51, 0.0 }
 0x271   : > { %v3152_v39 = vmax.f32 %v3080_v14, 0.0  ;;  %v2927_v11 = vpop.f32.mrf.mxu0  ;;  %v3320_v14 = vmul.f32 %v8701_v21, %v3287_v34  ;;  %v3291_v34 = vld [vmem:[#allocation3 + $0x47] sm:$0xff] }
 0x272   : > { %v2928_v35 = vadd.f32 %v8659_v37, %v2927_v11  ;;  %v3321_v11 = vmul.f32 %v8701_v21, %v3288_v18 }
 0x273   : > { %3258 = vst.msk [vmem:[#allocation3 + $0x70] sm:$0xff] %vm3179_vm3, %v3152_v39  ;;  %v3481_v39 = vld [vmem:[#allocation3 + $0x9] sm:$0xff] }
 0x274   : > { %v2973_v30 = vadd.f32 %v2928_v35, %v10916_v16  ;;  %v3418_v35 = vmul.f32 %v8704_v46, %v3385_v60  ;;  %v3482_v16 = vld [vmem:[#allocation3 + $0x11] sm:$0xff] }
 0x275   : > { %v3292_v60 = vld [vmem:[#allocation3 + $0x4f] sm:$0xff] }
 0x276   : > { %v3082_v5 = vpop.f32.mrf.mxu1  ;;  %v2993_v6 = vpack.c.bf16 %v2973_v30, %v2972_v49  ;;  %v3449_v30 = vadd.f32 %v3417_v61, %v3320_v14 }
 0x277   : > { %v3083_v48 = vadd.f32 %v8534_v43, %v3082_v5  ;;  %v3514_v5 = vmul.f32 %v8713_v52, %v3481_v39 }
 0x279   : > { %v3153_v63 = vmax.f32 %v3083_v48, 0.0  ;;  %6530 = vmatmul.msk.bf16.gmra.mxu1 %vm1735_vm2, %v2993_v6  ;;  %v2930_v38 = vpop.f32.mrf.mxu0  ;;  %v8719_v6 = vperm.slane %v8697_v1, 3  ;;  %v3289_v48 = vld [vmem:[#allocation3 + $0x27] sm:$0xff] }
 0x27a   : > { %v2931_v31 = vadd.f32 %v8659_v37, %v2930_v38  ;;  %v3515_v38 = vmul.f32 %v8713_v52, %v3482_v16 }
 0x27b   : > { %3259 = vst.msk [vmem:[#allocation3 + $0x88] sm:$0xff] %vm3179_vm3, %v3153_v63  ;;  %v3450_v63 = vadd.f32 %v3418_v35, %v3321_v11  ;;  %v3388_v35 = vld [vmem:[#allocation3 + $0x48] sm:$0xff] }
 0x27c   : > { %v2974_v56 = vadd.f32 %v2931_v31, %v10920_v8 }
 0x27e   : > { %v3084_v20 = vpop.f32.mrf.mxu1 }
 0x27f   : > { %v3085_v23 = vadd.f32 %v8534_v43, %v3084_v20  ;;  %v3386_v20 = vld [vmem:[#allocation3 + $0x28] sm:$0xff] }
 0x280   : > { %v3708_v32 = vmul.f32 %v8730_v40, %v3386_v20 }
 0x281   : > { %v2932_v19 = vpop.f32.mrf.mxu0  ;;  %v3154_v7 = vmax.f32 %v3085_v23, 0.0  ;;  %v3387_v23 = vld [vmem:[#allocation3 + $0x30] sm:$0xff] }
 0x282   : > { %v2933_v54 = vadd.f32 %v8659_v37, %v2932_v19  ;;  %v3546_v19 = vadd.f32 %v3514_v5, %v3449_v30  ;;  %v3903_v30 = vmul.f32 %v8750_v33, %v3291_v34  ;;  %v3389_v5 = vld [vmem:[#allocation3 + $0x50] sm:$0xff] }
 0x283   : > { %3260 = vst.msk [vmem:[#allocation3 + $0x90] sm:$0xff] %vm3179_vm3, %v3154_v7  ;;  %v3322_v7 = vmul.f32 %v8701_v21, %v3289_v48 }
 0x284   : > { %v2975_v13 = vadd.f32 %v2933_v54, %v10922_v15  ;;  %v8736_v15 = vperm.slane %v8697_v1, 5 }
 0x286   : > { %v3087_v27 = vpop.f32.mrf.mxu1  ;;  %v2994_v45 = vpack.c.bf16 %v2975_v13, %v2974_v56 }
 0x287   : > { %v3088_v26 = vadd.f32 %v8534_v43, %v3087_v27  ;;  %v3611_v27 = vmul.f32 %v8719_v6, %v3289_v48  ;;  %v3614_v48 = vmul.f32 %v8719_v6, %v3292_v60 }
 0x289   : > { %v2935_v42 = vpop.f32.mrf.mxu0  ;;  %v3155_v10 = vmax.f32 %v3088_v26, 0.0  ;;  %6531 = vmatmul.msk.bf16.gmra.mxu1 %vm1735_vm2, %v2994_v45  ;;  %v3419_v26 = vmul.f32 %v8704_v46, %v3386_v20  ;;  %v3643_v59 = vadd.f32 %v3611_v27, %v3546_v19  ;;  %v3483_v45 = vld [vmem:[#allocation3 + $0x29] sm:$0xff]  ;;  %v8768_v20 = vperm.slane %v8697_v1, 7 }
 0x28a   : > { %v2936_v0 = vadd.f32 %v8659_v37, %v2935_v42  ;;  %v3547_v42 = vadd.f32 %v3515_v38, %v3450_v63  ;;  %v3904_v63 = vmul.f32 %v8750_v33, %v3292_v60  ;;  %v3422_v1 = vmul.f32 %v8704_v46, %v3389_v5 }
 0x28b   : > { %3261 = vst.msk [vmem:[#allocation3 + $0xa8] sm:$0xff] %vm3179_vm3, %v3155_v10  ;;  %v3451_v18 = vadd.f32 %v3419_v26, %v3322_v7  ;;  %v3325_v26 = vmul.f32 %v8701_v21, %v3292_v60 }
 0x28c   : > { %v2976_v50 = vadd.f32 %v2936_v0, %v10927_v62  ;;  %v6688_v62 = vld [vmem:[%s10918_s5 + $0x10] sm:$0xff] }
 0x28d   : > { %4341 = vmatpush.bf16.msra.mxu2 %v6688_v62 }
 0x28e   : > { %v3089_v44 = vpop.f32.mrf.mxu1 }
 0x28f   : > { %v3090_v2 = vadd.f32 %v8534_v43, %v3089_v44  ;;  %v3612_v44 = vmul.f32 %v8719_v6, %v3290_v47 }
 0x291   : > { %v2937_v25 = vpop.f32.mrf.mxu0  ;;  %v3156_v4 = vmax.f32 %v3090_v2, 0.0  ;;  %v3323_v2 = vmul.f32 %v8701_v21, %v3290_v47  ;;  %v3324_v47 = vmul.f32 %v8701_v21, %v3291_v34 }
 0x292   : > { %v2938_v29 = vadd.f32 %v8659_v37, %v2937_v25 }
 0x293   : > { %3262 = vst.msk [vmem:[#allocation3 + $0xb0] sm:$0xff] %vm3179_vm3, %v3156_v4  ;;  %v3644_v4 = vadd.f32 %v3612_v44, %v3547_v42 }
 0x294   : > { %v2977_v3 = vadd.f32 %v2938_v29, %v10925_v36  ;;  %v3484_v36 = vld [vmem:[#allocation3 + $0x31] sm:$0xff] }
 0x295   : > { %v3517_v11 = vmul.f32 %v8713_v52, %v3484_v36  ;;  %v3806_v16 = vmul.f32 %v8736_v15, %v3484_v36 }
 0x296   : > { %v3092_v53 = vpop.f32.mrf.mxu1  ;;  %v2995_v58 = vpack.c.bf16 %v2977_v3, %v2976_v50  ;;  %v3709_v3 = vmul.f32 %v8730_v40, %v3387_v23  ;;  %v3740_v50 = vadd.f32 %v3708_v32, %v3643_v59 }
 0x297   : > { %v3093_v12 = vadd.f32 %v8534_v43, %v3092_v53  ;;  %v3420_v53 = vmul.f32 %v8704_v46, %v3387_v23  ;;  %v3485_v23 = vld [vmem:[#allocation3 + $0x49] sm:$0xff] }
 0x298   : > { %v3741_v61 = vadd.f32 %v3709_v3, %v3644_v4  ;;  %v3518_v4 = vmul.f32 %v8713_v52, %v3485_v23  ;;  %v3454_v3 = vadd.f32 %v3422_v1, %v3325_v26 }
 0x299   : > { %v3157_v17 = vmax.f32 %v3093_v12, 0.0  ;;  %v2940_v41 = vpop.f32.mrf.mxu0  ;;  %6532 = vmatmul.msk.bf16.gmra.mxu1 %vm1735_vm2, %v2995_v58  ;;  %v10928_v12 = vmax.f32 %v8304_v55, 0.0  ;;  %v3516_v55 = vmul.f32 %v8713_v52, %v3483_v45  ;;  %v3452_v14 = vadd.f32 %v3420_v53, %v3323_v2  ;;  %v3293_v2 = vld [vmem:[#allocation3 + $0x67] sm:$0xff] }
 0x29a   : > { %v2941_v25 = vadd.f32 %v8659_v37, %v2940_v41  ;;  %v10929_v41 = vmax.f32 %v8274_v57, 0.0  ;;  %v3805_v58 = vmul.f32 %v8736_v15, %v3483_v45  ;;  %v3838_v44 = vadd.f32 %v3806_v16, %v3741_v61  ;;  %v3486_v45 = vld [vmem:[#allocation3 + $0x51] sm:$0xff]  ;;  %v3390_v61 = vld [vmem:[#allocation3 + $0x68] sm:$0xff] }
 0x29b   : > { %3263 = vst.msk [vmem:[#allocation3 + $0xc8] sm:$0xff] %vm3179_vm3, %v3157_v17  ;;  %v3548_v38 = vadd.f32 %v3516_v55, %v3451_v18  ;;  %v3549_v27 = vadd.f32 %v3517_v11, %v3452_v14  ;;  %v4000_v53 = vmul.f32 %v8768_v20, %v3388_v35  ;;  %v3294_v18 = vld [vmem:[#allocation3 + $0x6f] sm:$0xff]  ;;  %v3712_v1 = vmul.f32 %v8730_v40, %v3390_v61 }
 0x29c   : > { %v2978_v29 = vadd.f32 %v2941_v25, %v10929_v41  ;;  %v3837_v42 = vadd.f32 %v3805_v58, %v3740_v50  ;;  %v8775_v25 = vld [vmem:[%s10923_s10 + $0x8] ss:$0 sm:$0xff]  ;;  %v3615_v58 = vmul.f32 %v8719_v6, %v3293_v2  ;;  %v3906_v16 = vmul.f32 %v8750_v33, %v3294_v18 }
 0x29e   : > { %v3094_v9 = vpop.f32.mrf.mxu1  ;;  %v3935_v59 = vadd.f32 %v3903_v30, %v3837_v42  ;;  %v3423_v42 = vmul.f32 %v8704_v46, %v3390_v61 }
 0x29f   : > { %v3095_v54 = vadd.f32 %v8534_v43, %v3094_v9 }
 0x2a0   : > { %v4032_v60 = vadd.f32 %v4000_v53, %v3935_v59 }
 0x2a1   : > { %v2942_v22 = vpop.f32.mrf.mxu0  ;;  %v3158_v13 = vmax.f32 %v3095_v54, 0.0 }
 0x2a2   : > { %v2943_v8 = vadd.f32 %v8659_v37, %v2942_v22  ;;  %v3613_v22 = vmul.f32 %v8719_v6, %v3291_v34  ;;  %v3905_v34 = vmul.f32 %v8750_v33, %v3293_v2 }
 0x2a3   : > { %3264 = vst.msk [vmem:[#allocation3 + $0xd0] sm:$0xff] %vm3179_vm3, %v3158_v13  ;;  %v3646_v13 = vadd.f32 %v3614_v48, %v3549_v27  ;;  %v3616_v48 = vmul.f32 %v8719_v6, %v3294_v18  ;;  %v3326_v27 = vmul.f32 %v8701_v21, %v3293_v2 }
 0x2a4   : > { %v2979_v17 = vadd.f32 %v2943_v8, %v10928_v12  ;;  %v3645_v7 = vadd.f32 %v3613_v22, %v3548_v38  ;;  %v3710_v8 = vmul.f32 %v8730_v40, %v3388_v35  ;;  %v3807_v12 = vmul.f32 %v8736_v15, %v3485_v23 }
 0x2a5   : > { %v4098_v22 = vmul.f32 %v8775_v25, %v3486_v45 }
 0x2a6   : > { %v3097_v49 = vpop.f32.mrf.mxu1  ;;  %v2996_v57 = vpack.c.bf16 %v2979_v17, %v2978_v29  ;;  %v3711_v29 = vmul.f32 %v8730_v40, %v3389_v5  ;;  %v3742_v36 = vadd.f32 %v3710_v8, %v3645_v7  ;;  %v3327_v8 = vmul.f32 %v8701_v21, %v3294_v18 }
 0x2a7   : > { %v3098_v10 = vadd.f32 %v8534_v43, %v3097_v49 }
 0x2a8   : > { %v3839_v14 = vadd.f32 %v3807_v12, %v3742_v36 }
 0x2a9   : > { %v8733_v56 = vpop.f32.mrf.mxu0  ;;  %v3159_v9 = vmax.f32 %v3098_v10, 0.0  ;;  %6533 = vmatmul.msk.bf16.gmra.mxu1 %vm1735_vm2, %v2996_v57  ;;  %v3936_v10 = vadd.f32 %v3904_v63, %v3838_v44  ;;  %v3519_v57 = vmul.f32 %v8713_v52, %v3486_v45  ;;  %v10933_v63 = vld [vmem:[#allocation22_spill] sm:$0xff] }
 0x2aa   : > { %v2946_v55 = vadd.f32 %v8659_v37, %v8733_v56  ;;  %v3487_v56 = vld [vmem:[#allocation3 + $0x69] sm:$0xff] }
 0x2ab   : > { %3265 = vst.msk [vmem:[#allocation3 + $0xe8] sm:$0xff] %vm3179_vm3, %v3159_v9  ;;  %v4001_v9 = vmul.f32 %v8768_v20, %v3389_v5  ;;  %v3551_v30 = vadd.f32 %v3519_v57, %v3454_v3  ;;  %v3937_v5 = vadd.f32 %v3905_v34, %v3839_v14  ;;  %v3391_v44 = vld [vmem:[#allocation3 + $0x70] sm:$0xff] }
 0x2ac   : > { %v3424_v53 = vmul.f32 %v8704_v46, %v3391_v44  ;;  %v3713_v36 = vmul.f32 %v8730_v40, %v3391_v44 }
 0x2ad   : > { %v4033_v62 = vadd.f32 %v4001_v9, %v3936_v10  ;;  %v3648_v12 = vadd.f32 %v3616_v48, %v3551_v30  ;;  %v4003_v9 = vmul.f32 %v8768_v20, %v3391_v44 }
 0x2ae   : > { %v3099_v31 = vpop.f32.mrf.mxu1 }
 0x2af   : > { %v3100_v0 = vadd.f32 %v8534_v43, %v3099_v31  ;;  %v3421_v31 = vmul.f32 %v8704_v46, %v3388_v35  ;;  %v3808_v35 = vmul.f32 %v8736_v15, %v3486_v45  ;;  %v3488_v45 = vld [vmem:[#allocation3 + $0x71] sm:$0xff]  ;;  %v3745_v14 = vadd.f32 %v3713_v36, %v3648_v12 }
 0x2b1   : > { %v3160_v51 = vmax.f32 %v3100_v0, 0.0  ;;  %v2947_v54 = vpop.f32.mrf.mxu0  ;;  %v3453_v41 = vadd.f32 %v3421_v31, %v3324_v47  ;;  %v4097_v0 = vmul.f32 %v8775_v25, %v3485_v23  ;;  %v4002_v23 = vmul.f32 %v8768_v20, %v3390_v61 }
 0x2b2   : > { %v2948_v17 = vadd.f32 %v8659_v37, %v2947_v54  ;;  %v8802_v37 = vld [vmem:[%s10931_s8] ss:$0 sm:$0xff]  ;;  %v4099_v54 = vmul.f32 %v8775_v25, %v3487_v56  ;;  %v3810_v61 = vmul.f32 %v8736_v15, %v3488_v45 }
 0x2b3   : > { %3266 = vst.msk [vmem:[#allocation3 + $0xf0] sm:$0xff] %vm3179_vm3, %v3160_v51  ;;  %v3743_v51 = vadd.f32 %v3711_v29, %v3646_v13  ;;  %v3550_v50 = vadd.f32 %v3518_v4, %v3453_v41  ;;  %v8817_v13 = vld [vmem:[#allocation3 + $0x87] sm:$0xff]  ;;  %v4034_v2 = vadd.f32 %v4002_v23, %v3937_v5  ;;  %v3520_v4 = vmul.f32 %v8713_v52, %v3487_v56  ;;  %v3393_v23 = vld [vmem:[#allocation3 + $0x90] sm:$0xff] }
 0x2b4   : > { %v3455_v41 = vadd.f32 %v3423_v42, %v3326_v27  ;;  %v3809_v29 = vmul.f32 %v8736_v15, %v3487_v56  ;;  %v3617_v34 = vmul.f32 %v8719_v6, %v8817_v13  ;;  %v3907_v57 = vmul.f32 %v8750_v33, %v8817_v13 }
 0x2b5   : > { %v3840_v47 = vadd.f32 %v3808_v35, %v3743_v51  ;;  %v3647_v31 = vadd.f32 %v3615_v58, %v3550_v50  ;;  %v4131_v3 = vadd.f32 %v4099_v54, %v4034_v2  ;;  %v3296_v51 = vld [vmem:[#allocation3 + $0x8f] sm:$0xff]  ;;  %v3842_v27 = vadd.f32 %v3810_v61, %v3745_v14 }
 0x2b6   : > { %v3102_v39 = vpop.f32.mrf.mxu1  ;;  %v3552_v50 = vadd.f32 %v3520_v4, %v3455_v41  ;;  %v3392_v35 = vld [vmem:[#allocation3 + $0x88] sm:$0xff]  ;;  %v3908_v30 = vmul.f32 %v8750_v33, %v3296_v51  ;;  %v3329_v41 = vmul.f32 %v8701_v21, %v3296_v51  ;;  %v3328_v36 = vmul.f32 %v8701_v21, %v8817_v13 }
 0x2b7   : > { %v3103_v49 = vadd.f32 %v8534_v43, %v3102_v39  ;;  %v10930_v39 = vmax.f32 %v8367_v24, 0.0  ;;  %v10934_v24 = vmax.f32 %v10933_v63, 0.0  ;;  %v3938_v59 = vadd.f32 %v3906_v16, %v3840_v47  ;;  %v3489_v16 = vld [vmem:[#allocation3 + $0x89] sm:$0xff] }
 0x2b8   : > { %v3649_v56 = vadd.f32 %v3617_v34, %v3552_v50  ;;  %v3714_v42 = vmul.f32 %v8730_v40, %v3392_v35  ;;  %v4101_v54 = vmul.f32 %v8775_v25, %v3489_v16  ;;  %v3940_v2 = vadd.f32 %v3908_v30, %v3842_v27  ;;  %v3490_v34 = vld [vmem:[#allocation3 + $0x91] sm:$0xff] }
 0x2b9   : > { %v3161_v19 = vmax.f32 %v3103_v49, 0.0  ;;  %v2981_v11 = vadd.f32 %v2948_v17, %v10930_v39  ;;  %v4129_v49 = vadd.f32 %v4097_v0, %v4032_v60  ;;  %v2980_v38 = vadd.f32 %v2946_v55, %v10934_v24  ;;  %v3298_v50 = vld [vmem:[#allocation3 + $0xaf] sm:$0xff] }
 0x2ba   : > { %v3744_v0 = vadd.f32 %v3712_v1, %v3647_v31  ;;  %v3521_v55 = vmul.f32 %v8713_v52, %v3488_v45  ;;  %v4035_v60 = vadd.f32 %v4003_v9, %v3938_v59  ;;  %v3618_v24 = vmul.f32 %v8719_v6, %v3296_v51 }
 0x2bb   : > { %3267 = vst.msk [vmem:[#allocation3 + $0x108] sm:$0xff] %vm3179_vm3, %v3161_v19  ;;  %v4130_v19 = vadd.f32 %v4098_v22, %v4033_v62  ;;  %v2997_v7 = vpack.c.bf16 %v2981_v11, %v2980_v38  ;;  %v8813_v26 = vadd.f32 %v8802_v37, %v4129_v49  ;;  %v3456_v62 = vadd.f32 %v3424_v53, %v3327_v8 }
 0x2bc   : > { %v3841_v39 = vadd.f32 %v3809_v29, %v3744_v0  ;;  %v4100_v11 = vmul.f32 %v8775_v25, %v3488_v45  ;;  %v8840_v49 = vadd.f32 %v8802_v37, %v4131_v3  ;;  %v4004_v31 = vmul.f32 %v8768_v20, %v3392_v35 }
 0x2bd   : > { %v8822_v17 = vadd.f32 %v8802_v37, %v4130_v19  ;;  %6534 = vmatmul.msk.bf16.gmra.mxu1 %vm1735_vm2, %v2997_v7  ;;  %v10791_v18 = vmax.f32 %v8813_v26, 0.0  ;;  %v3553_v19 = vadd.f32 %v3521_v55, %v3456_v62  ;;  %v3297_v7 = vld [vmem:[#allocation3 + $0xa7] sm:$0xff]  ;;  %v3746_v59 = vadd.f32 %v3714_v42, %v3649_v56 }
 0x2be   : > { %v8788_v32 = vpop.f32.mrf.mxu1  ;;  %v4132_v48 = vadd.f32 %v4100_v11, %v4035_v60  ;;  %v3939_v63 = vadd.f32 %v3907_v57, %v3841_v39  ;;  %v10789_v8 = vmax.f32 %v8840_v49, 0.0  ;;  %v3426_v29 = vmul.f32 %v8704_v46, %v3393_v23  ;;  %v3394_v11 = vld [vmem:[#allocation3 + $0xa8] sm:$0xff] }
 0x2bf   : > { %v10790_v58 = vmax.f32 %v8822_v17, 0.0  ;;  %v3105_v22 = vadd.f32 %v8534_v43, %v8788_v32  ;;  %v3650_v4 = vadd.f32 %v3618_v24, %v3553_v19  ;;  %v4005_v9 = vmul.f32 %v8768_v20, %v3393_v23 }
 0x2c0   : > { %v8857_v53 = vadd.f32 %v8802_v37, %v4132_v48  ;;  %v4036_v45 = vadd.f32 %v4004_v31, %v3939_v63  ;;  %v3909_v0 = vmul.f32 %v8750_v33, %v3297_v7  ;;  %v3425_v3 = vmul.f32 %v8704_v46, %v3392_v35  ;;  %v3491_v35 = vld [vmem:[#allocation3 + $0xa9] sm:$0xff] }
 0x2c1   : > { %v3162_v38 = vmax.f32 %v3105_v22, 0.0  ;;  %v4230_v44 = vsel %vm3179_vm3, %v10790_v58, 0.0  ;;  %v3715_v55 = vmul.f32 %v8730_v40, %v3393_v23  ;;  %v4229_v57 = vsel %vm3179_vm3, %v10791_v18, 0.0 }
 0x2c2   : > { %v4133_v60 = vadd.f32 %v4101_v54, %v4036_v45  ;;  %v4037_v62 = vadd.f32 %v4005_v9, %v3940_v2  ;;  %v4231_v14 = vadd.f32 %v4230_v44, %v4229_v57  ;;  %v10788_v61 = vmax.f32 %v8857_v53, 0.0 }
 0x2c3   : > { %3268 = vst.msk [vmem:[#allocation3 + $0x110] sm:$0xff] %vm3179_vm3, %v3162_v38  ;;  %v4232_v13 = vsel %vm3179_vm3, %v10789_v8, 0.0  ;;  %v3747_v39 = vadd.f32 %v3715_v55, %v3650_v4  ;;  %v3458_v56 = vadd.f32 %v3426_v29, %v3329_v41  ;;  %v3522_v30 = vmul.f32 %v8713_v52, %v3489_v16 }
 0x2c4   : > { %v3457_v63 = vadd.f32 %v3425_v3, %v3328_v36  ;;  %v3812_v24 = vmul.f32 %v8736_v15, %v3490_v34  ;;  %v8879_v38 = vadd.f32 %v8802_v37, %v4133_v60  ;;  %v3523_v19 = vmul.f32 %v8713_v52, %v3490_v34 }
 0x2c5   : > { %v4006_v42 = vmul.f32 %v8768_v20, %v3394_v11  ;;  %v4103_v44 = vmul.f32 %v8775_v25, %v3491_v35  ;;  %v4234_v31 = vsel %vm3179_vm3, %v10788_v61, 0.0  ;;  %v3620_v54 = vmul.f32 %v8719_v6, %v3298_v50 }
 0x2c6   : > { %v3107_v10 = vpop.f32.mrf.mxu1  ;;  %v3844_v23 = vadd.f32 %v3812_v24, %v3747_v39  ;;  %v10787_v45 = vmax.f32 %v8879_v38, 0.0  ;;  %v3331_v4 = vmul.f32 %v8701_v21, %v3298_v50  ;;  %v3330_v9 = vmul.f32 %v8701_v21, %v3297_v7 }
 0x2c7   : > { %v3108_v5 = vadd.f32 %v8534_v43, %v3107_v10  ;;  %v3811_v10 = vmul.f32 %v8736_v15, %v3489_v16  ;;  %v4233_v16 = vadd.f32 %v4232_v13, %v4231_v14 }
 0x2c8   : > { %v4236_v14 = vsel %vm3179_vm3, %v10787_v45, 0.0 }
 0x2c9   : > { %v3163_v32 = vmax.f32 %v3108_v5, 0.0  ;;  %v3843_v51 = vadd.f32 %v3811_v10, %v3746_v59  ;;  %v4102_v5 = vmul.f32 %v8775_v25, %v3490_v34  ;;  %v3555_v59 = vadd.f32 %v3523_v19, %v3458_v56  ;;  %v3299_v56 = vld [vmem:[#allocation3 + $0xc7] sm:$0xff] }
 0x2ca   : > { %v3619_v10 = vmul.f32 %v8719_v6, %v3297_v7  ;;  %v4235_v60 = vadd.f32 %v4234_v31, %v4233_v16  ;;  %v3300_v16 = vld [vmem:[#allocation3 + $0xcf] sm:$0xff] }
 0x2cb   : > { %3269 = vst.msk [vmem:[#allocation3 + $0x128] sm:$0xff] %vm3179_vm3, %v3163_v32  ;;  %v3941_v48 = vadd.f32 %v3909_v0, %v3843_v51  ;;  %v4134_v27 = vadd.f32 %v4102_v5, %v4037_v62  ;;  %v3395_v32 = vld [vmem:[#allocation3 + $0xb0] sm:$0xff]  ;;  %v3427_v0 = vmul.f32 %v8704_v46, %v3394_v11  ;;  %v3652_v3 = vadd.f32 %v3620_v54, %v3555_v59  ;;  %v3396_v54 = vld [vmem:[#allocation3 + $0xc8] sm:$0xff] }
 0x2cc   : > { %v4007_v34 = vmul.f32 %v8768_v20, %v3395_v32  ;;  %v3716_v51 = vmul.f32 %v8730_v40, %v3394_v11  ;;  %v3492_v62 = vld [vmem:[#allocation3 + $0xb1] sm:$0xff]  ;;  %v3717_v7 = vmul.f32 %v8730_v40, %v3395_v32 }
 0x2cd   : > { %v4038_v2 = vadd.f32 %v4006_v42, %v3941_v48  ;;  %v8894_v29 = vadd.f32 %v8802_v37, %v4134_v27  ;;  %v3459_v5 = vadd.f32 %v3427_v0, %v3330_v9  ;;  %v3813_v48 = vmul.f32 %v8736_v15, %v3491_v35 }
 0x2ce   : > { %v3109_v47 = vpop.f32.mrf.mxu1  ;;  %v3525_v11 = vmul.f32 %v8713_v52, %v3492_v62  ;;  %v3749_v24 = vadd.f32 %v3717_v7, %v3652_v3  ;;  %v4237_v27 = vadd.f32 %v4236_v14, %v4235_v60  ;;  %v3912_v9 = vmul.f32 %v8750_v33, %v3300_v16 }
 0x2cf   : > { %v3110_v1 = vadd.f32 %v8534_v43, %v3109_v47  ;;  %v3910_v47 = vmul.f32 %v8750_v33, %v3298_v50  ;;  %v4135_v36 = vadd.f32 %v4103_v44, %v4038_v2  ;;  %v3524_v50 = vmul.f32 %v8713_v52, %v3491_v35 }
 0x2d0   : > { %v3621_v44 = vmul.f32 %v8719_v6, %v3299_v56  ;;  %v3332_v2 = vmul.f32 %v8701_v21, %v3299_v56  ;;  %v3429_v3 = vmul.f32 %v8704_v46, %v3396_v54  ;;  %v3718_v60 = vmul.f32 %v8730_v40, %v3396_v54 }
 0x2d1   : > { %v3164_v12 = vmax.f32 %v3110_v1, 0.0  ;;  %v3554_v1 = vadd.f32 %v3522_v30, %v3457_v63  ;;  %v3942_v41 = vadd.f32 %v3910_v47, %v3844_v23  ;;  %v10786_v30 = vmax.f32 %v8894_v29, 0.0 }
 0x2d2   : > { %v8908_v63 = vadd.f32 %v8802_v37, %v4135_v36  ;;  %v4104_v47 = vmul.f32 %v8775_v25, %v3492_v62  ;;  %v3814_v23 = vmul.f32 %v8736_v15, %v3492_v62  ;;  %v4008_v14 = vmul.f32 %v8768_v20, %v3396_v54  ;;  %v3301_v54 = vld [vmem:[#allocation3 + $0xe7] sm:$0xff] }
 0x2d3   : > { %3270 = vst.msk [vmem:[#allocation3 + $0x130] sm:$0xff] %vm3179_vm3, %v3164_v12  ;;  %v3428_v12 = vmul.f32 %v8704_v46, %v3395_v32  ;;  %v3651_v57 = vadd.f32 %v3619_v10, %v3554_v1  ;;  %v4039_v39 = vadd.f32 %v4007_v34, %v3942_v41  ;;  %v3556_v32 = vadd.f32 %v3524_v50, %v3459_v5 }
 0x2d4   : > { %v3911_v1 = vmul.f32 %v8750_v33, %v3299_v56  ;;  %v4238_v59 = vsel %vm3179_vm3, %v10786_v30, 0.0  ;;  %v3622_v41 = vmul.f32 %v8719_v6, %v3300_v16 }
 0x2d5   : > { %v3460_v13 = vadd.f32 %v3428_v12, %v3331_v4  ;;  %v3748_v42 = vadd.f32 %v3716_v51, %v3651_v57  ;;  %v4136_v35 = vadd.f32 %v4104_v47, %v4039_v39  ;;  %v3846_v4 = vadd.f32 %v3814_v23, %v3749_v24  ;;  %v3397_v12 = vld [vmem:[#allocation3 + $0xd0] sm:$0xff] }
 0x2d6   : > { %v3112_v22 = vpop.f32.mrf.mxu1  ;;  %v3653_v34 = vadd.f32 %v3621_v44, %v3556_v32  ;;  %v3493_v57 = vld [vmem:[#allocation3 + $0xc9] sm:$0xff]  ;;  %v3333_v39 = vmul.f32 %v8701_v21, %v3300_v16  ;;  %v3430_v56 = vmul.f32 %v8704_v46, %v3397_v12  ;;  %v4239_v47 = vadd.f32 %v4238_v59, %v4237_v27  ;;  %v3494_v32 = vld [vmem:[#allocation3 + $0xd1] sm:$0xff] }
 0x2d7   : > { %v3113_v19 = vadd.f32 %v8534_v43, %v3112_v22  ;;  %v3557_v31 = vadd.f32 %v3525_v11, %v3460_v13  ;;  %v3845_v10 = vadd.f32 %v3813_v48, %v3748_v42  ;;  %v10778_v22 = vmax.f32 %v8908_v63, 0.0 }
 0x2d8   : > { %v8927_v62 = vadd.f32 %v8802_v37, %v4136_v35  ;;  %v3944_v48 = vadd.f32 %v3912_v9, %v3846_v4  ;;  %v4105_v11 = vmul.f32 %v8775_v25, %v3493_v57  ;;  %v3750_v42 = vadd.f32 %v3718_v60, %v3653_v34 }
 0x2d9   : > { %v3165_v0 = vmax.f32 %v3113_v19, 0.0  ;;  %v3943_v50 = vadd.f32 %v3911_v1, %v3845_v10  ;;  %v4240_v7 = vsel %vm3179_vm3, %v10778_v22, 0.0  ;;  %v3461_v19 = vadd.f32 %v3429_v3, %v3332_v2  ;;  %v3302_v1 = vld [vmem:[#allocation3 + $0xef] sm:$0xff] }
 0x2da   : > { %v3526_v23 = vmul.f32 %v8713_v52, %v3493_v57  ;;  %v3719_v35 = vmul.f32 %v8730_v40, %v3397_v12  ;;  %v4009_v16 = vmul.f32 %v8768_v20, %v3397_v12  ;;  %v8944_v10 = vadd.f32 %v4240_v7, %v4239_v47  ;;  %v6687_v2 = vld [vmem:[%s10918_s5 + $0x8] sm:$0xff] }
 0x2db   : > { %3271 = vst.msk [vmem:[#allocation3 + $0x148] sm:$0xff] %vm3179_vm3, %v3165_v0  ;;  %v4040_v44 = vadd.f32 %v4008_v14, %v3943_v50  ;;  %v3462_v27 = vadd.f32 %v3430_v56, %v3333_v39  ;;  %v3815_v59 = vmul.f32 %v8736_v15, %v3493_v57  ;;  %v3527_v4 = vmul.f32 %v8713_v52, %v3494_v32 }
 0x2dc   : > { %v4041_v9 = vadd.f32 %v4009_v16, %v3944_v48  ;;  %v3623_v3 = vmul.f32 %v8719_v6, %v3301_v54  ;;  %v3913_v34 = vmul.f32 %v8750_v33, %v3301_v54  ;;  %v3624_v60 = vmul.f32 %v8719_v6, %v3302_v1  ;;  %4342 = vmatpush.bf16.msra.mxu2 %v6687_v2 }
 0x2dd   : > { %v4137_v12 = vadd.f32 %v4105_v11, %v4040_v44  ;;  %v3558_v57 = vadd.f32 %v3526_v23, %v3461_v19  ;;  %v3816_v50 = vmul.f32 %v8736_v15, %v3494_v32  ;;  %v4106_v14 = vmul.f32 %v8775_v25, %v3494_v32 }
 0x2de   : > { %v3114_v55 = vpop.f32.mrf.mxu1  ;;  %v3559_v7 = vadd.f32 %v3527_v4, %v3462_v27  ;;  %v3847_v39 = vadd.f32 %v3815_v59, %v3750_v42  ;;  %v3334_v56 = vmul.f32 %v8701_v21, %v3301_v54  ;;  %v3335_v42 = vmul.f32 %v8701_v21, %v3302_v1  ;;  %v3303_v27 = vld [vmem:[#allocation3 + $0x107] sm:$0xff] }
 0x2df   : > { %v3115_v51 = vadd.f32 %v8534_v43, %v3114_v55  ;;  %v3654_v55 = vadd.f32 %v3622_v41, %v3557_v31  ;;  %v10777_v31 = vmax.f32 %v8927_v62, 0.0  ;;  %v8960_v47 = vadd.f32 %v8802_v37, %v4137_v12  ;;  %v6690_v59 = vld [vmem:[%s10935_s13] sm:$0xff] }
 0x2e0   : > { %v3655_v32 = vadd.f32 %v3623_v3, %v3558_v57  ;;  %v3945_v44 = vadd.f32 %v3913_v34, %v3847_v39  ;;  %v3656_v23 = vadd.f32 %v3624_v60, %v3559_v7  ;;  %v3496_v3 = vld [vmem:[#allocation3 + $0xf1] sm:$0xff]  ;;  %4370 = vmatpush.bf16.msra.mxu3 %v6690_v59 }
 0x2e1   : > { %v3166_v5 = vmax.f32 %v3115_v51, 0.0  ;;  %v3751_v41 = vadd.f32 %v3719_v35, %v3654_v55  ;;  %v3495_v55 = vld [vmem:[#allocation3 + $0xe9] sm:$0xff]  ;;  %v4242_v19 = vsel %vm3179_vm3, %v10777_v31, 0.0  ;;  %v10779_v12 = vmax.f32 %v8960_v47, 0.0 }
 0x2e2   : > { %v3528_v16 = vmul.f32 %v8713_v52, %v3495_v55  ;;  %v3304_v60 = vld [vmem:[#allocation3 + $0x10f] sm:$0xff] }
 0x2e3   : > { %3272 = vst.msk [vmem:[#allocation3 + $0x150] sm:$0xff] %vm3179_vm3, %v3166_v5  ;;  %v3399_v5 = vld [vmem:[#allocation3 + $0xf0] sm:$0xff]  ;;  %v3848_v11 = vadd.f32 %v3816_v50, %v3751_v41 }
 0x2e4   : > { %v3432_v35 = vmul.f32 %v8704_v46, %v3399_v5  ;;  %v3721_v41 = vmul.f32 %v8730_v40, %v3399_v5  ;;  %v4011_v34 = vmul.f32 %v8768_v20, %v3399_v5  ;;  %v3916_v5 = vmul.f32 %v8750_v33, %v3304_v60 }
 0x2e6   : > { %v3117_v36 = vpop.f32.mrf.mxu1  ;;  %v3753_v50 = vadd.f32 %v3721_v41, %v3656_v23  ;;  %v3464_v7 = vadd.f32 %v3432_v35, %v3335_v42  ;;  %v3497_v23 = vld [vmem:[#allocation3 + $0x109] sm:$0xff]  ;;  %v4244_v42 = vsel %vm3179_vm3, %v10779_v12, 0.0 }
 0x2e7   : > { %v3118_v13 = vadd.f32 %v8534_v43, %v3117_v36  ;;  %v3398_v36 = vld [vmem:[#allocation3 + $0xe8] sm:$0xff]  ;;  %v3819_v31 = vmul.f32 %v8736_v15, %v3497_v23 }
 0x2e8   : > { %v3720_v2 = vmul.f32 %v8730_v40, %v3398_v36  ;;  %v4010_v4 = vmul.f32 %v8768_v20, %v3398_v36 }
 0x2e9   : > { %v3167_v24 = vmax.f32 %v3118_v13, 0.0  ;;  %v3914_v13 = vmul.f32 %v8750_v33, %v3302_v1 }
 0x2ea   : > { %v4042_v57 = vadd.f32 %v4010_v4, %v3945_v44  ;;  %v3529_v44 = vmul.f32 %v8713_v52, %v3496_v3 }
 0x2eb   : > { %3273 = vst.msk [vmem:[#allocation3 + $0x168] sm:$0xff] %vm3179_vm3, %v3167_v24  ;;  %v4138_v24 = vadd.f32 %v4106_v14, %v4041_v9  ;;  %v3946_v54 = vadd.f32 %v3914_v13, %v3848_v11  ;;  %v4107_v9 = vmul.f32 %v8775_v25, %v3495_v55  ;;  %v3625_v14 = vmul.f32 %v8719_v6, %v3303_v27 }
 0x2ec   : > { %v3752_v13 = vadd.f32 %v3720_v2, %v3655_v32  ;;  %v3818_v11 = vmul.f32 %v8736_v15, %v3496_v3  ;;  %v3626_v32 = vmul.f32 %v8719_v6, %v3304_v60  ;;  %v4243_v2 = vadd.f32 %v4242_v19, %v8944_v10 }
 0x2ed   : > { %v8978_v1 = vadd.f32 %v8802_v37, %v4138_v24  ;;  %v4139_v24 = vadd.f32 %v4107_v9, %v4042_v57  ;;  %v3561_v4 = vadd.f32 %v3529_v44, %v3464_v7 }
 0x2ee   : > { %v3119_v0 = vpop.f32.mrf.mxu1  ;;  %v4245_v12 = vadd.f32 %v4244_v42, %v4243_v2 }
 0x2ef   : > { %v3120_v51 = vadd.f32 %v8534_v43, %v3119_v0  ;;  %v3431_v43 = vmul.f32 %v8704_v46, %v3398_v36  ;;  %v3817_v36 = vmul.f32 %v8736_v15, %v3495_v55  ;;  %v10780_v59 = vmax.f32 %v8978_v1, 0.0 }
 0x2f0   : > { %v4108_v55 = vmul.f32 %v8775_v25, %v3496_v3  ;;  %v8999_v3 = vadd.f32 %v8802_v37, %v4139_v24  ;;  %v3658_v19 = vadd.f32 %v3626_v32, %v3561_v4  ;;  %v3498_v24 = vld [vmem:[#allocation3 + $0x111] sm:$0xff]  ;;  %v3402_v4 = vld [vmem:[#allocation3 + $0x128] sm:$0xff] }
 0x2f1   : > { %v3168_v48 = vmax.f32 %v3120_v51, 0.0  ;;  %v3463_v0 = vadd.f32 %v3431_v43, %v3334_v56  ;;  %v3400_v56 = vld [vmem:[#allocation3 + $0x108] sm:$0xff]  ;;  %v3915_v43 = vmul.f32 %v8750_v33, %v3303_v27  ;;  %v3849_v35 = vadd.f32 %v3817_v36, %v3752_v13 }
 0x2f2   : > { %v3722_v9 = vmul.f32 %v8730_v40, %v3400_v56  ;;  %v4012_v10 = vmul.f32 %v8768_v20, %v3400_v56  ;;  %v4109_v13 = vmul.f32 %v8775_v25, %v3497_v23  ;;  %v10781_v44 = vmax.f32 %v8999_v3, 0.0 }
 0x2f3   : > { %3274 = vst.msk [vmem:[#allocation3 + $0x170] sm:$0xff] %vm3179_vm3, %v3168_v48  ;;  %v3560_v39 = vadd.f32 %v3528_v16, %v3463_v0  ;;  %v4043_v48 = vadd.f32 %v4011_v34, %v3946_v54  ;;  %v3850_v16 = vadd.f32 %v3818_v11, %v3753_v50  ;;  %v3401_v0 = vld [vmem:[#allocation3 + $0x110] sm:$0xff]  ;;  %v8996_v34 = vld [vmem:[#allocation3 + $0x127] sm:$0xff]  ;;  %v3947_v57 = vadd.f32 %v3915_v43, %v3849_v35 }
 0x2f4   : > { %v4246_v50 = vsel %vm3179_vm3, %v10780_v59, 0.0  ;;  %v3917_v7 = vmul.f32 %v8750_v33, %v8996_v34  ;;  %v3433_v11 = vmul.f32 %v8704_v46, %v3400_v56  ;;  %v3723_v43 = vmul.f32 %v8730_v40, %v3401_v0  ;;  %v3306_v35 = vld [vmem:[#allocation3 + $0x12f] sm:$0xff] }
 0x2f5   : > { %v3657_v54 = vadd.f32 %v3625_v14, %v3560_v39  ;;  %v4140_v41 = vadd.f32 %v4108_v55, %v4043_v48  ;;  %v3948_v22 = vadd.f32 %v3916_v5, %v3850_v16  ;;  %v4013_v14 = vmul.f32 %v8768_v20, %v3401_v0 }
 0x2f6   : > { %v3122_v51 = vpop.f32.mrf.mxu1  ;;  %v3336_v48 = vmul.f32 %v8701_v21, %v3303_v27  ;;  %v4044_v55 = vadd.f32 %v4012_v10, %v3947_v57  ;;  %v3337_v16 = vmul.f32 %v8701_v21, %v3304_v60  ;;  %v3755_v2 = vadd.f32 %v3723_v43, %v3658_v19  ;;  %v9022_v27 = vld [vmem:[%s10908_s28] ss:$0 sm:$0xff] }
 0x2f7   : > { %v3754_v36 = vadd.f32 %v3722_v9, %v3657_v54  ;;  %v9011_v39 = vadd.f32 %v8802_v37, %v4140_v41  ;;  %v4045_v42 = vadd.f32 %v4013_v14, %v3948_v22  ;;  %v3434_v54 = vmul.f32 %v8704_v46, %v3401_v0  ;;  %v3499_v41 = vld [vmem:[#allocation3 + $0x129] sm:$0xff] }
 0x2f8   : > { %v3123_v56 = vadd.f32 %v9022_v27, %v3122_v51  ;;  %v4110_v9 = vmul.f32 %v8775_v25, %v3498_v24  ;;  %v4141_v57 = vadd.f32 %v4109_v13, %v4044_v55  ;;  %v3820_v0 = vmul.f32 %v8736_v15, %v3498_v24 }
 0x2f9   : > { %v3851_v32 = vadd.f32 %v3819_v31, %v3754_v36  ;;  %v10785_v60 = vmax.f32 %v9011_v39, 0.0  ;;  %v3918_v10 = vmul.f32 %v8750_v33, %v3306_v35  ;;  %v4014_v14 = vmul.f32 %v8768_v20, %v3402_v4 }
 0x2fa   : > { %v3169_v19 = vmax.f32 %v3123_v56, 0.0  ;;  %v4142_v36 = vadd.f32 %v4110_v9, %v4045_v42  ;;  %v4111_v43 = vmul.f32 %v8775_v25, %v3499_v41  ;;  %v4248_v51 = vsel %vm3179_vm3, %v10781_v44, 0.0  ;;  %v3403_v9 = vld [vmem:[#allocation3 + $0x130] sm:$0xff] }
 0x2fb   : > { %v3949_v31 = vadd.f32 %v3917_v7, %v3851_v32  ;;  %v3466_v13 = vadd.f32 %v3434_v54, %v3337_v16  ;;  %v3530_v7 = vmul.f32 %v8713_v52, %v3497_v23  ;;  %v4247_v55 = vadd.f32 %v4246_v50, %v4245_v12  ;;  %v3503_v58 = vld [vmem:[#allocation3 + $0x169] sm:$0xff] }
 0x2fc   : > { %3275 = vst.msk [vmem:[#allocation3 + $0x188] sm:$0xff] %vm3179_vm3, %v3169_v19  ;;  %v3465_v32 = vadd.f32 %v3433_v11, %v3336_v48  ;;  %v9038_v56 = vadd.f32 %v8802_v37, %v4141_v57  ;;  %v3627_v44 = vmul.f32 %v8719_v6, %v8996_v34  ;;  %v3628_v16 = vmul.f32 %v8719_v6, %v3306_v35  ;;  %v3500_v19 = vld [vmem:[#allocation3 + $0x131] sm:$0xff] }
 0x2fd   : > { %v4046_v42 = vadd.f32 %v4014_v14, %v3949_v31  ;;  %v4249_v54 = vadd.f32 %v4248_v51, %v4247_v55  ;;  %v4250_v12 = vsel %vm3179_vm3, %v10785_v60, 0.0  ;;  %v9049_v50 = vadd.f32 %v8802_v37, %v4142_v36 }
 0x2fe   : > { %v3124_v5 = vpop.f32.mrf.mxu1  ;;  %v3562_v11 = vadd.f32 %v3530_v7, %v3465_v32  ;;  %v10782_v57 = vmax.f32 %v9038_v56, 0.0  ;;  %v3435_v31 = vmul.f32 %v8704_v46, %v3402_v4  ;;  %v3532_v55 = vmul.f32 %v8713_v52, %v3499_v41 }
 0x2ff   : > { %v3125_v22 = vadd.f32 %v9022_v27, %v3124_v5  ;;  %v3852_v5 = vadd.f32 %v3820_v0, %v3755_v2  ;;  %v4143_v48 = vadd.f32 %v4111_v43, %v4046_v42  ;;  %v3339_v0 = vmul.f32 %v8701_v21, %v3306_v35  ;;  %v3308_v42 = vld [vmem:[#allocation3 + $0x14f] sm:$0xff] }
 0x300   : > { %v3659_v14 = vadd.f32 %v3627_v44, %v3562_v11  ;;  %v4251_v43 = vadd.f32 %v4250_v12, %v4249_v54  ;;  %v3725_v32 = vmul.f32 %v8730_v40, %v3403_v9  ;;  %v4112_v35 = vmul.f32 %v8775_v25, %v3500_v19 }
 0x301   : > { %v3170_v59 = vmax.f32 %v3125_v22, 0.0  ;;  %v3531_v22 = vmul.f32 %v8713_v52, %v3498_v24  ;;  %v3950_v23 = vadd.f32 %v3918_v10, %v3852_v5  ;;  %v4015_v24 = vmul.f32 %v8768_v20, %v3403_v9 }
 0x302   : > { %v3436_v10 = vmul.f32 %v8704_v46, %v3403_v9  ;;  %v9060_v7 = vadd.f32 %v8802_v37, %v4143_v48  ;;  %v3724_v5 = vmul.f32 %v8730_v40, %v3402_v4  ;;  %v4252_v44 = vsel %vm3179_vm3, %v10782_v57, 0.0 }
 0x303   : > { %3276 = vst.msk [vmem:[#allocation3 + $0x190] sm:$0xff] %vm3179_vm3, %v3170_v59  ;;  %v3563_v2 = vadd.f32 %v3531_v22, %v3466_v13  ;;  %v3338_v59 = vmul.f32 %v8701_v21, %v8996_v34  ;;  %v4047_v51 = vadd.f32 %v4015_v24, %v3950_v23  ;;  %v10783_v13 = vmax.f32 %v9049_v50, 0.0  ;;  %v3307_v34 = vld [vmem:[#allocation3 + $0x147] sm:$0xff] }
 0x304   : > { %v3821_v23 = vmul.f32 %v8736_v15, %v3499_v41  ;;  %v3756_v54 = vadd.f32 %v3724_v5, %v3659_v14  ;;  %v3629_v4 = vmul.f32 %v8719_v6, %v3307_v34  ;;  %v3533_v11 = vmul.f32 %v8713_v52, %v3500_v19  ;;  %v3404_v41 = vld [vmem:[#allocation3 + $0x148] sm:$0xff] }
 0x305   : > { %v3660_v36 = vadd.f32 %v3628_v16, %v3563_v2  ;;  %v3467_v22 = vadd.f32 %v3435_v31, %v3338_v59  ;;  %v3468_v16 = vadd.f32 %v3436_v10, %v3339_v0  ;;  %v4144_v48 = vadd.f32 %v4112_v35, %v4047_v51 }
 0x306   : > { %v4254_v9 = vsel %vm3179_vm3, %v10783_v13, 0.0  ;;  %v10784_v2 = vmax.f32 %v9060_v7, 0.0  ;;  %v3630_v24 = vmul.f32 %v8719_v6, %v3308_v42  ;;  %v4253_v57 = vadd.f32 %v4252_v44, %v4251_v43  ;;  %v3405_v13 = vld [vmem:[#allocation3 + $0x150] sm:$0xff] }
 0x307   : > { %v3757_v12 = vadd.f32 %v3725_v32, %v3660_v36  ;;  %v3564_v59 = vadd.f32 %v3532_v55, %v3467_v22  ;;  %v3822_v31 = vmul.f32 %v8736_v15, %v3500_v19  ;;  %v3919_v0 = vmul.f32 %v8750_v33, %v3307_v34  ;;  %v3501_v36 = vld [vmem:[#allocation3 + $0x149] sm:$0xff] }
 0x308   : > { %v3565_v10 = vadd.f32 %v3533_v11, %v3468_v16  ;;  %v3853_v14 = vadd.f32 %v3821_v23, %v3756_v54  ;;  %v4255_v51 = vadd.f32 %v4254_v9, %v4253_v57  ;;  %v9080_v32 = vadd.f32 %v8802_v37, %v4144_v48  ;;  %v9087_v22 = vld [vmem:[#allocation3 + $0x167] sm:$0xff] }
 0x309   : > { %v3854_v5 = vadd.f32 %v3822_v31, %v3757_v12  ;;  %v3661_v35 = vadd.f32 %v3629_v4, %v3564_v59  ;;  %v4256_v43 = vsel %vm3179_vm3, %v10784_v2, 0.0  ;;  %v3340_v55 = vmul.f32 %v8701_v21, %v3307_v34  ;;  %v3127_v12 = vpop.f32.mrf.mxu1  ;;  %v3502_v59 = vld [vmem:[#allocation3 + $0x151] sm:$0xff] }
 0x30a   : > { %v3437_v19 = vmul.f32 %v8704_v46, %v3404_v41  ;;  %v3662_v44 = vadd.f32 %v3630_v24, %v3565_v10  ;;  %v3726_v16 = vmul.f32 %v8730_v40, %v3404_v41  ;;  %v3951_v57 = vadd.f32 %v3919_v0, %v3853_v14  ;;  %v3310_v10 = vld [vmem:[#allocation3 + $0x16f] sm:$0xff] }
 0x30b   : > { %v3823_v23 = vmul.f32 %v8736_v15, %v3501_v36  ;;  %v3920_v54 = vmul.f32 %v8750_v33, %v3308_v42  ;;  %v3341_v48 = vmul.f32 %v8701_v21, %v3308_v42  ;;  %v3438_v4 = vmul.f32 %v8704_v46, %v3405_v13 }
 0x30c   : > { %v3727_v9 = vmul.f32 %v8730_v40, %v3405_v13  ;;  %v3128_v34 = vadd.f32 %v9022_v27, %v3127_v12  ;;  %v3758_v11 = vadd.f32 %v3726_v16, %v3661_v35  ;;  %v4016_v24 = vmul.f32 %v8768_v20, %v3404_v41  ;;  %v3406_v16 = vld [vmem:[#allocation3 + $0x168] sm:$0xff] }
 0x30d   : > { %v4113_v31 = vmul.f32 %v8775_v25, %v3501_v36  ;;  %v3921_v0 = vmul.f32 %v8750_v33, %v9087_v22  ;;  %v3534_v42 = vmul.f32 %v8713_v52, %v3501_v36  ;;  %v3469_v30 = vadd.f32 %v3437_v19, %v3340_v55 }
 0x30e   : > { %v3759_v2 = vadd.f32 %v3727_v9, %v3662_v44  ;;  %v3171_v60 = vmax.f32 %v3128_v34, 0.0  ;;  %v4048_v45 = vadd.f32 %v4016_v24, %v3951_v57  ;;  %v3855_v61 = vadd.f32 %v3823_v23, %v3758_v11  ;;  %v3407_v9 = vld [vmem:[#allocation3 + $0x170] sm:$0xff] }
 0x30f   : > { %v3952_v12 = vadd.f32 %v3920_v54, %v3854_v5  ;;  %v3470_v35 = vadd.f32 %v3438_v4, %v3341_v48  ;;  %v3824_v41 = vmul.f32 %v8736_v15, %v3502_v59  ;;  %v3631_v8 = vmul.f32 %v8719_v6, %v9087_v22 }
 0x310   : > { %v3922_v18 = vmul.f32 %v8750_v33, %v3310_v10  ;;  %3277 = vst.msk [vmem:[#allocation3 + $0x1a8] sm:$0xff] %vm3179_vm3, %v3171_v60  ;;  %v4257_v14 = vadd.f32 %v4256_v43, %v4255_v51  ;;  %v4017_v36 = vmul.f32 %v8768_v20, %v3405_v13  ;;  %v4145_v44 = vadd.f32 %v4113_v31, %v4048_v45  ;;  %v9121_v31 = vld [vmem:[#allocation3 + $0x187] sm:$0xff] }
 0x311   : > { %v3953_v55 = vadd.f32 %v3921_v0, %v3855_v61  ;;  %v10936_v19 = vmax.f32 %v9080_v32, 0.0  ;;  %v3535_v57 = vmul.f32 %v8713_v52, %v3502_v59  ;;  %v3566_v23 = vadd.f32 %v3534_v42, %v3469_v30  ;;  %v3129_v51 = vpop.f32.mrf.mxu1 }
 0x312   : > { %v3856_v54 = vadd.f32 %v3824_v41, %v3759_v2  ;;  %v4049_v48 = vadd.f32 %v4017_v36, %v3952_v12  ;;  %v4018_v4 = vmul.f32 %v8768_v20, %v3406_v16  ;;  %v3632_v34 = vmul.f32 %v8719_v6, %v3310_v10  ;;  %v3504_v41 = vld [vmem:[#allocation3 + $0x171] sm:$0xff] }
 0x313   : > { %v4258_v5 = vsel %vm3179_vm3, %v10936_v19, 0.0  ;;  %v4115_v60 = vmul.f32 %v8775_v25, %v3503_v58  ;;  %v3567_v13 = vadd.f32 %v3535_v57, %v3470_v35  ;;  %v3663_v45 = vadd.f32 %v3631_v8, %v3566_v23 }
 0x314   : > { %v3954_v61 = vadd.f32 %v3922_v18, %v3856_v54  ;;  %v3130_v43 = vadd.f32 %v9022_v27, %v3129_v51  ;;  %v4114_v11 = vmul.f32 %v8775_v25, %v3502_v59  ;;  %v9118_v24 = vadd.f32 %v8802_v37, %v4145_v44 }
 0x315   : > { %v3728_v30 = vmul.f32 %v8730_v40, %v3406_v16  ;;  %v4050_v2 = vadd.f32 %v4018_v4, %v3953_v55  ;;  %v3343_v0 = vmul.f32 %v8701_v21, %v3310_v10  ;;  %v3825_v42 = vmul.f32 %v8736_v15, %v3503_v58 }
 0x316   : > { %v4019_v12 = vmul.f32 %v8768_v20, %v3407_v9  ;;  %v3172_v8 = vmax.f32 %v3130_v43, 0.0  ;;  %v4146_v18 = vadd.f32 %v4114_v11, %v4049_v48  ;;  %v3440_v35 = vmul.f32 %v8704_v46, %v3407_v9 }
 0x317   : > { %v3664_v59 = vadd.f32 %v3632_v34, %v3567_v13  ;;  %v4147_v36 = vadd.f32 %v4115_v60, %v4050_v2  ;;  %v3760_v44 = vadd.f32 %v3728_v30, %v3663_v45  ;;  %v3923_v55 = vmul.f32 %v8750_v33, %v9121_v31  ;;  %v3312_v60 = vld [vmem:[#allocation3 + $0x18f] sm:$0xff] }
 0x318   : > { %v4051_v19 = vadd.f32 %v4019_v12, %v3954_v61  ;;  %3278 = vst.msk [vmem:[#allocation3 + $0x1b0] sm:$0xff] %vm3179_vm3, %v3172_v8  ;;  %v4259_v57 = vadd.f32 %v4258_v5, %v4257_v14  ;;  %v3342_v10 = vmul.f32 %v8701_v21, %v9087_v22  ;;  %v3729_v23 = vmul.f32 %v8730_v40, %v3407_v9  ;;  %v3408_v5 = vld [vmem:[#allocation3 + $0x188] sm:$0xff] }
 0x319   : > { %v10792_v54 = vmax.f32 %v9118_v24, 0.0  ;;  %v3439_v48 = vmul.f32 %v8704_v46, %v3406_v16  ;;  %v3857_v4 = vadd.f32 %v3825_v42, %v3760_v44  ;;  %v4116_v34 = vmul.f32 %v8775_v25, %v3504_v41  ;;  %v9142_v22 = vld [vmem:[#allocation3 + $0x189] sm:$0xff]  ;;  %v3132_v9 = vpop.f32.mrf.mxu1 }
 0x31a   : > { %v9137_v51 = vadd.f32 %v8802_v37, %v4146_v18  ;;  %v3472_v13 = vadd.f32 %v3440_v35, %v3343_v0  ;;  %v3761_v45 = vadd.f32 %v3729_v23, %v3664_v59  ;;  %v9140_v14 = vadd.f32 %v8802_v37, %v4147_v36 }
 0x31b   : > { %v3536_v61 = vmul.f32 %v8713_v52, %v3503_v58  ;;  %v4148_v43 = vadd.f32 %v4116_v34, %v4051_v19  ;;  %v3955_v16 = vadd.f32 %v3923_v55, %v3857_v4  ;;  %v3133_v11 = vadd.f32 %v9022_v27, %v3132_v9  ;;  %v9157_v58 = vld [vmem:[%s10923_s10 + $0x8] ss:$0 sm:$0xff]  ;;  %v3409_v4 = vld [vmem:[#allocation3 + $0x190] sm:$0xff] }
 0x31c   : > { %10937 = vst [vmem:[#allocation16_spill] sm:$0xff] %v9137_v51  ;;  %v3537_v25 = vmul.f32 %v8713_v52, %v3504_v41  ;;  %v3826_v30 = vmul.f32 %v8736_v15, %v3504_v41  ;;  %v3634_v2 = vmul.f32 %v8719_v6, %v3312_v60  ;;  %v3924_v0 = vmul.f32 %v8750_v33, %v3312_v60 }
 0x31d   : > { %10938 = vst [vmem:[#allocation17_spill] sm:$0xff] %v9140_v14  ;;  %v4260_v42 = vsel %vm3179_vm3, %v10792_v54, 0.0  ;;  %v4020_v12 = vmul.f32 %v8768_v20, %v3408_v5  ;;  %v4117_v8 = vmul.f32 %v9157_v58, %v9142_v22  ;;  %v3173_v18 = vmax.f32 %v3133_v11, 0.0 }
 0x31e   : > { %v3569_v41 = vadd.f32 %v3537_v25, %v3472_v13  ;;  %v3858_v59 = vadd.f32 %v3826_v30, %v3761_v45  ;;  %v10794_v36 = vmax.f32 %v9140_v14, 0.0  ;;  %v3471_v44 = vadd.f32 %v3439_v48, %v3342_v10  ;;  %v3506_v25 = vld [vmem:[#allocation3 + $0x191] sm:$0xff] }
 0x31f   : > { %v9164_v19 = vadd.f32 %v8802_v37, %v4148_v43  ;;  %v3633_v55 = vmul.f32 %v8719_v6, %v9121_v31  ;;  %v4052_v23 = vadd.f32 %v4020_v12, %v3955_v16  ;;  %3279 = vst.msk [vmem:[#allocation3 + $0x1c8] sm:$0xff] %vm3179_vm3, %v3173_v18  ;;  %v4261_v11 = vadd.f32 %v4260_v42, %v4259_v57  ;;  %v3314_v30 = vld [vmem:[#allocation3 + $0x1af] sm:$0xff] }
 0x320   : > { %v3666_v34 = vadd.f32 %v3634_v2, %v3569_v41  ;;  %v3956_v9 = vadd.f32 %v3924_v0, %v3858_v59  ;;  %v3568_v54 = vadd.f32 %v3536_v61, %v3471_v44  ;;  %v10940_v13 = vmax.f32 %v9137_v51, 0.0  ;;  %v6686_v0 = vld [vmem:[%s10918_s5] sm:$0xff]  ;;  %s6281_s5 = scalar_lea.hbm %s10713_s27, %s7005_s9 }
 0x321   : > { %10939 = vst [vmem:[#allocation23_spill] sm:$0xff] %v9164_v19  ;;  %v4149_v35 = vadd.f32 %v4117_v8, %v4052_v23  ;;  %v4264_v37 = vsel %vm3179_vm3, %v10794_v36, 0.0  ;;  %v3731_v10 = vmul.f32 %v8730_v40, %v3409_v4  ;;  %v4021_v48 = vmul.f32 %v8768_v20, %v3409_v4  ;;  %v3134_v43 = vpop.f32.mrf.mxu1  ;;  %v3313_v41 = vld [vmem:[#allocation3 + $0x1a7] sm:$0xff]  ;;  %4343 = vmatpush.bf16.msra.mxu2 %v6686_v0  ;;  %s6285_s8 = sshll.u32 %s6281_s5, 4  ;;  %s6286_s8 = int_to_ptr.hbm [resolvable:$true] %s6285_s8 }
 0x322   : > { %v4262_v45 = vsel %vm3179_vm3, %v10940_v13, 0.0  ;;  %v10797_v16 = vmax.f32 %v9164_v19, 0.0  ;;  %v3344_v57 = vmul.f32 %v8701_v21, %v9121_v31  ;;  %v3665_v61 = vadd.f32 %v3633_v55, %v3568_v54  ;;  %v9192_v54 = vld [vmem:[%s10932_s2] ss:$0 sm:$0xff]  ;;  %s809_s2 = sand.u32 1, %s6833_s4   ;;  %s6793_s13 = sshra.s32 %s6286_s8, 4  ;;  %s6794_s13 = int_to_ptr.hbm [resolvable:$true] %s6793_s13 }
 0x323   : > { %v3135_v2 = vadd.f32 %v9022_v27, %v3134_v43  ;;  %v3345_v42 = vmul.f32 %v8701_v21, %v3312_v60  ;;  %v3442_v12 = vmul.f32 %v8704_v46, %v3409_v4  ;;  %v3763_v8 = vadd.f32 %v3731_v10, %v3666_v34  ;;  %s810_s3 = scalar_lea.vmem [#allocation5], %s809_s2  ;;  %s6273_s7 = scalar_lea.sflag [#allocation6], %s809_s2 }
 0x324   : > { %v4053_v18 = vadd.f32 %v4021_v48, %v3956_v9  ;;  %v3730_v59 = vmul.f32 %v8730_v40, %v3408_v5  ;;  %v3827_v31 = vmul.f32 %v8736_v15, %v9142_v22  ;;  %v9195_v44 = vadd.f32 %v9192_v54, %v4149_v35  ;;  %p6800_p0 = scmp.lt.s32.totalorder %s6794_s13, %s10713_s27 }
 0x325   : > { %v3174_v55 = vmax.f32 %v3135_v2, 0.0  ;;  %v3441_v60 = vmul.f32 %v8704_v46, %v3408_v5  ;;  %v3828_v23 = vmul.f32 %v8736_v15, %v3506_v25  ;;  %v4118_v4 = vmul.f32 %v9157_v58, %v3506_v25 }
 0x326   : > { %10941 = vst [vmem:[#allocation24_spill] sm:$0xff] %v9195_v44  ;;  %v3926_v34 = vmul.f32 %v8750_v33, %v3314_v30  ;;  %v4263_v9 = vadd.f32 %v4262_v45, %v4261_v11  ;;  %v4266_v13 = vsel %vm3179_vm3, %v10797_v16, 0.0  ;;  %v3762_v10 = vadd.f32 %v3730_v59, %v3665_v61  ;;  %v3411_v11 = vld [vmem:[#allocation3 + $0x1b0] sm:$0xff]  ;;  %v3410_v16 = vld [vmem:[#allocation3 + $0x1a8] sm:$0xff] }
 0x327   : > { %v3925_v48 = vmul.f32 %v8750_v33, %v3313_v41  ;;  %3280 = vst.msk [vmem:[#allocation3 + $0x1d0] sm:$0xff] %vm3179_vm3, %v3174_v55  ;;  %v3474_v35 = vadd.f32 %v3442_v12, %v3345_v42  ;;  %v3538_v5 = vmul.f32 %v8713_v52, %v9142_v22  ;;  %v3860_v43 = vadd.f32 %v3828_v23, %v3763_v8  ;;  %v3507_v61 = vld [vmem:[#allocation3 + $0x1a9] sm:$0xff]  ;;  %v3508_v23 = vld [vmem:[#allocation3 + $0x1b1] sm:$0xff] }
 0x328   : > { %v4150_v2 = vadd.f32 %v4118_v4, %v4053_v18  ;;  %v4265_v0 = vadd.f32 %v4264_v37, %v4263_v9  ;;  %v3859_v36 = vadd.f32 %v3827_v31, %v3762_v10  ;;  %v10800_v28 = vmax.f32 %v9195_v44, 0.0 }
 0x329   : > { %v3473_v45 = vadd.f32 %v3441_v60, %v3344_v57  ;;  %v3539_v19 = vmul.f32 %v8713_v52, %v3506_v25  ;;  %v3636_v59 = vmul.f32 %v8719_v6, %v3314_v30  ;;  %v3958_v14 = vadd.f32 %v3926_v34, %v3860_v43  ;;  %v3137_v55 = vpop.f32.mrf.mxu1 }
 0x32a   : > { %v4267_v42 = vadd.f32 %v4266_v13, %v4265_v0  ;;  %v3635_v12 = vmul.f32 %v8719_v6, %v3313_v41  ;;  %v3957_v22 = vadd.f32 %v3925_v48, %v3859_v36  ;;  %v3138_v8 = vadd.f32 %v9022_v27, %v3137_v55 }
 0x32b   : > { %v3570_v37 = vadd.f32 %v3538_v5, %v3473_v45  ;;  %v3571_v18 = vadd.f32 %v3539_v19, %v3474_v35  ;;  %v9214_v31 = vadd.f32 %v9192_v54, %v4150_v2  ;;  %v4023_v57 = vmul.f32 %v8768_v20, %v3411_v11  ;;  %v3315_v45 = vld [vmem:[#allocation3 + $0x1c7] sm:$0xff] }
 0x32c   : > { %v4268_v25 = vsel %vm3179_vm3, %v10800_v28, 0.0  ;;  %v4022_v60 = vmul.f32 %v8768_v20, %v3410_v16  ;;  %v4119_v4 = vmul.f32 %v9157_v58, %v3507_v61  ;;  %v3175_v34 = vmax.f32 %v3138_v8, 0.0 }
 0x32d   : > { %10942 = vst [vmem:[#allocation18_spill] sm:$0xff] %v9214_v31  ;;  %v3346_v36 = vmul.f32 %v8701_v21, %v3313_v41  ;;  %v3443_v9 = vmul.f32 %v8704_v46, %v3410_v16  ;;  %v3668_v19 = vadd.f32 %v3636_v59, %v3571_v18  ;;  %v4055_v13 = vadd.f32 %v4023_v57, %v3958_v14 }
 0x32e   : > { %v3667_v10 = vadd.f32 %v3635_v12, %v3570_v37  ;;  %v4054_v48 = vadd.f32 %v4022_v60, %v3957_v22  ;;  %v3347_v35 = vmul.f32 %v8701_v21, %v3314_v30  ;;  %v3444_v5 = vmul.f32 %v8704_v46, %v3411_v11  ;;  %3281 = vst.msk [vmem:[#allocation3 + $0x1e8] sm:$0xff] %vm3179_vm3, %v3175_v34  ;;  %v3316_v12 = vld [vmem:[#allocation3 + $0x1cf] sm:$0xff] }
 0x32f   : > { %v10799_v43 = vmax.f32 %v9214_v31, 0.0  ;;  %v3733_v2 = vmul.f32 %v8730_v40, %v3411_v11  ;;  %v4120_v0 = vmul.f32 %v9157_v58, %v3508_v23  ;;  %v9230_v41 = vadd.f32 %v4268_v25, %v4267_v42  ;;  %v3412_v25 = vld [vmem:[#allocation3 + $0x1c8] sm:$0xff] }
 0x330   : > { %v3732_v59 = vmul.f32 %v8730_v40, %v3410_v16  ;;  %v3829_v14 = vmul.f32 %v8736_v15, %v3507_v61  ;;  %v4151_v55 = vadd.f32 %v4119_v4, %v4054_v48  ;;  %v3475_v30 = vadd.f32 %v3443_v9, %v3346_v36 }
 0x331   : > { %v3540_v22 = vmul.f32 %v8713_v52, %v3507_v61  ;;  %v3765_v8 = vadd.f32 %v3733_v2, %v3668_v19  ;;  %v4152_v37 = vadd.f32 %v4120_v0, %v4055_v13  ;;  %v3139_v18 = vpop.f32.mrf.mxu1  ;;  %v3476_v60 = vadd.f32 %v3444_v5, %v3347_v35  ;;  %v3413_v19 = vld [vmem:[#allocation3 + $0x1d0] sm:$0xff] }
 0x332   : > { %v3764_v57 = vadd.f32 %v3732_v59, %v3667_v10  ;;  %v3927_v11 = vmul.f32 %v8750_v33, %v3315_v45  ;;  %v3140_v34 = vadd.f32 %v9022_v27, %v3139_v18  ;;  %v3541_v42 = vmul.f32 %v8713_v52, %v3508_v23  ;;  %v3509_v2 = vld [vmem:[#allocation3 + $0x1c9] sm:$0xff] }
 0x333   : > { %v3830_v16 = vmul.f32 %v8736_v15, %v3508_v23  ;;  %v3637_v4 = vmul.f32 %v8719_v6, %v3315_v45  ;;  %v3928_v36 = vmul.f32 %v8750_v33, %v3316_v12  ;;  %v9242_v61 = vadd.f32 %v9192_v54, %v4151_v55 }
 0x334   : > { %v3861_v9 = vadd.f32 %v3829_v14, %v3764_v57  ;;  %v3638_v13 = vmul.f32 %v8719_v6, %v3316_v12  ;;  %v3176_v10 = vmax.f32 %v3140_v34, 0.0  ;;  %v4270_v48 = vsel %vm3179_vm3, %v10799_v43, 0.0 }
 0x335   : > { %v3572_v35 = vadd.f32 %v3540_v22, %v3475_v30  ;;  %v3862_v5 = vadd.f32 %v3830_v16, %v3765_v8  ;;  %v9249_v23 = vadd.f32 %v9192_v54, %v4152_v37  ;;  %v3573_v0 = vadd.f32 %v3541_v42, %v3476_v60  ;;  %v3317_v60 = vld [vmem:[#allocation3 + $0x1e7] sm:$0xff] }
 0x336   : > { %v3348_v59 = vmul.f32 %v8701_v21, %v3315_v45  ;;  %v3445_v14 = vmul.f32 %v8704_v46, %v3412_v25  ;;  %v3959_v55 = vadd.f32 %v3927_v11, %v3861_v9  ;;  %3282 = vst.msk [vmem:[#allocation3 + $0x1f0] sm:$0xff] %vm3179_vm3, %v3176_v10  ;;  %v3349_v57 = vmul.f32 %v8701_v21, %v3316_v12  ;;  %v3510_v9 = vld [vmem:[#allocation3 + $0x1d1] sm:$0xff] }
 0x337   : > { %10943 = vst [vmem:[#allocation19_spill] sm:$0xff] %v9249_v23  ;;  %v3669_v18 = vadd.f32 %v3637_v4, %v3572_v35  ;;  %v3446_v34 = vmul.f32 %v8704_v46, %v3413_v19  ;;  %v3960_v43 = vadd.f32 %v3928_v36, %v3862_v5  ;;  %v4024_v22 = vmul.f32 %v8768_v20, %v3412_v25 }
 0x338   : > { %v3670_v8 = vadd.f32 %v3638_v13, %v3573_v0  ;;  %v4121_v37 = vmul.f32 %v9157_v58, %v3509_v2  ;;  %v3734_v11 = vmul.f32 %v8730_v40, %v3412_v25  ;;  %v3831_v42 = vmul.f32 %v8736_v15, %v3509_v2 }
 0x339   : > { %v4025_v16 = vmul.f32 %v8768_v20, %v3413_v19  ;;  %v4056_v4 = vadd.f32 %v4024_v22, %v3959_v55  ;;  %v3542_v36 = vmul.f32 %v8713_v52, %v3509_v2  ;;  %v3735_v10 = vmul.f32 %v8730_v40, %v3413_v19 }
 0x33a   : > { %v3142_v12 = vpop.f32.mrf.mxu1  ;;  %v3766_v35 = vadd.f32 %v3734_v11, %v3669_v18  ;;  %v3478_v5 = vadd.f32 %v3446_v34, %v3349_v57  ;;  %v3929_v28 = vmul.f32 %v8750_v33, %v3317_v60  ;;  %v3477_v45 = vadd.f32 %v3445_v14, %v3348_v59  ;;  %v3414_v18 = vld [vmem:[#allocation3 + $0x1e8] sm:$0xff] }
 0x33b   : > { %v3143_v13 = vadd.f32 %v9022_v27, %v3142_v12  ;;  %v4057_v0 = vadd.f32 %v4025_v16, %v3960_v43  ;;  %v3767_v25 = vadd.f32 %v3735_v10, %v3670_v8  ;;  %v4153_v30 = vadd.f32 %v4121_v37, %v4056_v4 }
 0x33c   : > { %v3543_v44 = vmul.f32 %v8713_v52, %v3510_v9  ;;  %v3863_v51 = vadd.f32 %v3831_v42, %v3766_v35  ;;  %v4122_v55 = vmul.f32 %v9157_v58, %v3510_v9  ;;  %v4271_v2 = vadd.f32 %v4270_v48, %v9230_v41 }
 0x33d   : > { %v3177_v31 = vmax.f32 %v3143_v13, 0.0  ;;  %v3318_v22 = vld [vmem:[#allocation3 + $0x1ef] sm:$0xff]  ;;  %v3574_v19 = vadd.f32 %v3542_v36, %v3477_v45  ;;  %v3832_v12 = vmul.f32 %v8736_v15, %v3510_v9  ;;  %v10944_v43 = vmax.f32 %v9242_v61, 0.0 }
 0x33e   : > { %v3511_v57 = vld [vmem:[#allocation3 + $0x1e9] sm:$0xff]  ;;  %v10945_v14 = vmax.f32 %v9249_v23, 0.0  ;;  %v3575_v8 = vadd.f32 %v3543_v44, %v3478_v5  ;;  %v4154_v37 = vadd.f32 %v4122_v55, %v4057_v0  ;;  %v3639_v11 = vmul.f32 %v8719_v6, %v3317_v60 }
 0x33f   : > { %3283 = vst.msk [vmem:[#allocation3 + $0x208] sm:$0xff] %vm3179_vm3, %v3177_v31  ;;  %v4272_v59 = vsel %vm3179_vm3, %v10944_v43, 0.0  ;;  %v3961_v41 = vadd.f32 %v3929_v28, %v3863_v51  ;;  %v3415_v48 = vld [vmem:[#allocation3 + $0x1f0] sm:$0xff]  ;;  %v3864_v45 = vadd.f32 %v3832_v12, %v3767_v25  ;;  %v3350_v42 = vmul.f32 %v8701_v21, %v3317_v60 }
 0x340   : > { %v4274_v34 = vsel %vm3179_vm3, %v10945_v14, 0.0  ;;  %v3930_v16 = vmul.f32 %v8750_v33, %v3318_v22  ;;  %v9282_v31 = vadd.f32 %v9192_v54, %v4153_v30  ;;  %v3447_v4 = vmul.f32 %v8704_v46, %v3414_v18  ;;  %v3512_v51 = vld [vmem:[#allocation3 + $0x1f1] sm:$0xff] }
 0x341   : > { %v4026_v9 = vmul.f32 %v8768_v20, %v3414_v18  ;;  %v3640_v36 = vmul.f32 %v8719_v6, %v3318_v22  ;;  %v4123_v44 = vmul.f32 %v9157_v58, %v3511_v57  ;;  %v3736_v28 = vmul.f32 %v8730_v40, %v3414_v18 }
 0x342   : > { %v3144_v10 = vpop.f32.mrf.mxu1  ;;  %v3962_v13 = vadd.f32 %v3930_v16, %v3864_v45  ;;  %v4027_v60 = vmul.f32 %v8768_v20, %v3415_v48  ;;  %v3671_v5 = vadd.f32 %v3639_v11, %v3574_v19  ;;  %v3351_v0 = vmul.f32 %v8701_v21, %v3318_v22 }
 0x343   : > { %v3145_v35 = vadd.f32 %v9022_v27, %v3144_v10  ;;  %v4058_v30 = vadd.f32 %v4026_v9, %v3961_v41  ;;  %v9293_v25 = vadd.f32 %v9192_v54, %v4154_v37  ;;  %v3448_v55 = vmul.f32 %v8704_v46, %v3415_v48  ;;  %v3900_v41 = vld [vmem:[#allocation3 + $0x227] sm:$0xff]  ;;  %v3901_v9 = vld [vmem:[#allocation3 + $0x22f] sm:$0xff] }
 0x344   : > { %v3544_v12 = vmul.f32 %v8713_v52, %v3511_v57  ;;  %v4059_v14 = vadd.f32 %v4027_v60, %v3962_v13  ;;  %v3672_v18 = vadd.f32 %v3640_v36, %v3575_v8  ;;  %v3833_v45 = vmul.f32 %v8736_v15, %v3511_v57  ;;  %v3997_v8 = vld [vmem:[#allocation3 + $0x228] sm:$0xff] }
 0x345   : > { %v3178_v43 = vmax.f32 %v3145_v35, 0.0  ;;  %v4124_v16 = vmul.f32 %v9157_v58, %v3512_v51  ;;  %v4155_v27 = vadd.f32 %v4123_v44, %v4058_v30  ;;  %v3479_v19 = vadd.f32 %v3447_v4, %v3350_v42 }
 0x346   : > { %v3608_v23 = vld [vmem:[#allocation3 + $0x207] sm:$0xff]  ;;  %v4273_v21 = vadd.f32 %v4272_v59, %v4271_v2  ;;  %v3768_v22 = vadd.f32 %v3736_v28, %v3671_v5  ;;  %v3737_v46 = vmul.f32 %v8730_v40, %v3415_v48  ;;  %v4221_v10 = vmax.f32 %v9282_v31, 0.0 }
 0x347   : > { %v3641_v11 = vmul.f32 %v8719_v6, %v3608_v23  ;;  %3284 = vst.msk [vmem:[#allocation3 + $0x210] sm:$0xff] %vm3179_vm3, %v3178_v43  ;;  %v3931_v37 = vmul.f32 %v8750_v33, %v3608_v23  ;;  %v4156_v36 = vadd.f32 %v4124_v16, %v4059_v14  ;;  %v3576_v57 = vadd.f32 %v3544_v12, %v3479_v19  ;;  %v3705_v35 = vld [vmem:[#allocation3 + $0x208] sm:$0xff] }
 0x348   : > { %v4222_v44 = vmax.f32 %v9293_v25, 0.0  ;;  %v4275_v42 = vadd.f32 %v4274_v34, %v4273_v21  ;;  %v3480_v4 = vadd.f32 %v3448_v55, %v3351_v0  ;;  %v3769_v13 = vadd.f32 %v3737_v46, %v3672_v18  ;;  %v4094_v2 = vld [vmem:[#allocation3 + $0x229] sm:$0xff] }
 0x349   : > { %v3865_v60 = vadd.f32 %v3833_v45, %v3768_v22  ;;  %v9306_v59 = vadd.f32 %v9192_v54, %v4155_v27  ;;  %v3673_v48 = vadd.f32 %v3641_v11, %v3576_v57  ;;  %v3933_v23 = vmul.f32 %v8750_v33, %v3900_v41  ;;  %v6697_v31 = vld [vmem:[%s10707_s21 + $0x8] sm:$0xff] }
 0x34a   : > { %v3934_v28 = vmul.f32 %v8750_v33, %v3901_v9  ;;  %v4030_v5 = vmul.f32 %v8768_v20, %v3997_v8  ;;  %v3545_v30 = vmul.f32 %v8713_v52, %v3512_v51  ;;  %v3834_v12 = vmul.f32 %v8736_v15, %v3512_v51 }
 0x34b   : > { %v3963_v34 = vadd.f32 %v3931_v37, %v3865_v60  ;;  %v9314_v0 = vadd.f32 %v9192_v54, %v4156_v36  ;;  %v3738_v55 = vmul.f32 %v8730_v40, %v3705_v35  ;;  %v4127_v43 = vmul.f32 %v9157_v58, %v4094_v2 }
 0x34c   : > { %v4276_v14 = vsel %vm3179_vm3, %v4221_v10, 0.0  ;;  %v4278_v18 = vsel %vm3179_vm3, %v4222_v44, 0.0  ;;  %v3577_v45 = vadd.f32 %v3545_v30, %v3480_v4  ;;  %v4028_v52 = vmul.f32 %v8768_v20, %v3705_v35  ;;  %v3998_v35 = vld [vmem:[#allocation3 + $0x230] sm:$0xff] }
 0x34d   : > { %v3866_v19 = vadd.f32 %v3834_v12, %v3769_v13  ;;  %v4223_v11 = vmax.f32 %v9306_v59, 0.0  ;;  %v3770_v41 = vadd.f32 %v3738_v55, %v3673_v48  ;;  %v4224_v57 = vmax.f32 %v9314_v0, 0.0 }
 0x34e   : > { %v3609_v51 = vld [vmem:[#allocation3 + $0x20f] sm:$0xff]  ;;  %v4060_v8 = vadd.f32 %v4028_v52, %v3963_v34  ;;  %v4277_v12 = vadd.f32 %v4276_v14, %v4275_v42 }
 0x34f   : > { %v3706_v16 = vld [vmem:[#allocation3 + $0x210] sm:$0xff]  ;;  %v3642_v21 = vmul.f32 %v8719_v6, %v3609_v51  ;;  %v3932_v37 = vmul.f32 %v8750_v33, %v3609_v51  ;;  %v4280_v33 = vsel %vm3179_vm3, %v4223_v11, 0.0  ;;  %v4282_v42 = vsel %vm3179_vm3, %v4224_v57, 0.0 }
 0x350   : > { %v3802_v27 = vld [vmem:[#allocation3 + $0x209] sm:$0xff]  ;;  %v3803_v22 = vld [vmem:[#allocation3 + $0x211] sm:$0xff]  ;;  %v3739_v9 = vmul.f32 %v8730_v40, %v3706_v16  ;;  %v4029_v2 = vmul.f32 %v8768_v20, %v3706_v16  ;;  %v4279_v16 = vadd.f32 %v4278_v18, %v4277_v12 }
 0x351   : > { %v3835_v46 = vmul.f32 %v8736_v15, %v3802_v27  ;;  %v4125_v36 = vmul.f32 %v9157_v58, %v3802_v27  ;;  %v3674_v4 = vadd.f32 %v3642_v21, %v3577_v45  ;;  %v3964_v13 = vadd.f32 %v3932_v37, %v3866_v19  ;;  %v4095_v52 = vld [vmem:[#allocation3 + $0x231] sm:$0xff] }
 0x352   : > { %v3836_v6 = vmul.f32 %v8736_v15, %v3803_v22  ;;  %v4126_v55 = vmul.f32 %v9157_v58, %v3803_v22  ;;  %v4031_v45 = vmul.f32 %v8768_v20, %v3998_v35  ;;  %v4128_v22 = vmul.f32 %v9157_v58, %v4095_v52 }
 0x353   : > { %v3867_v60 = vadd.f32 %v3835_v46, %v3770_v41  ;;  %v4157_v30 = vadd.f32 %v4125_v36, %v4060_v8  ;;  %v3771_v40 = vadd.f32 %v3739_v9, %v3674_v4  ;;  %v4061_v34 = vadd.f32 %v4029_v2, %v3964_v13 }
 0x355   : > { %v3965_v48 = vadd.f32 %v3933_v23, %v3867_v60  ;;  %v9340_v51 = vadd.f32 %v9192_v54, %v4157_v30  ;;  %v3868_v27 = vadd.f32 %v3836_v6, %v3771_v40  ;;  %v4158_v19 = vadd.f32 %v4126_v55, %v4061_v34 }
 0x356   : > { %v4281_v23 = vadd.f32 %v4280_v33, %v4279_v16 }
 0x357   : > { %v4062_v15 = vadd.f32 %v4030_v5, %v3965_v48  ;;  %v4225_v14 = vmax.f32 %v9340_v51, 0.0  ;;  %v3966_v21 = vadd.f32 %v3934_v28, %v3868_v27  ;;  %v9348_v20 = vadd.f32 %v9192_v54, %v4158_v19 }
 0x358   : > { %v4283_v37 = vadd.f32 %v4282_v42, %v4281_v23  ;;  %v6694_v42 = vld [vmem:[%s10701_s15 + $0x18] sm:$0xff]  ;;  %v6693_v23 = vld [vmem:[%s10701_s15 + $0x10] sm:$0xff] }
 0x359   : > { %v4159_v46 = vadd.f32 %v4127_v43, %v4062_v15  ;;  %v4284_v5 = vsel %vm3179_vm3, %v4225_v14, 0.0  ;;  %v4063_v18 = vadd.f32 %v4031_v45, %v3966_v21  ;;  %v4226_v9 = vmax.f32 %v9348_v20, 0.0  ;;  %v4308_v45 = vld [vmem:[%s10946_s12] sm:$0x1]  ;;  %4518 = vmatpush.bf16.msrb.mxu2 %v6694_v42  ;;  %v6692_v21 = vld [vmem:[%s10701_s15 + $0x8] sm:$0xff]  ;;  %s6283_s12 = sshll.u32 %s810_s3, 4  ;;  %s6284_s12 = int_to_ptr.vmem [resolvable:$true] %s6283_s12 }
 0x35a   : > { %v4285_v8 = vadd.f32 %v4284_v5, %v4283_v37  ;;  %v6691_v5 = vld [vmem:[%s10701_s15] sm:$0xff] }
 0x35b   : > { %v9354_v41 = vadd.f32 %v9192_v54, %v4159_v46  ;;  %v4160_v36 = vadd.f32 %v4128_v22, %v4063_v18  ;;  %v4286_v58 = vsel %vm3179_vm3, %v4226_v9, 0.0  ;;  %v4353_v22 = vld [vmem:[%s10947_s14] sm:$0x1]  ;;  %s6795_s14 = scalar_lea.hbm %s6794_s13, 1 }
 0x35c   : > { %v4287_v43 = vadd.f32 %v4286_v58, %v4285_v8  ;;  %p6796_p11 = scmp.ne.s32.totalorder %s6794_s13, %s6795_s14  ;;  %p6801_p1 = scmp.lt.s32.totalorder %s6799_s6, %s6795_s14 }
 0x35d   : > { %v4227_v28 = vmax.f32 %v9354_v41, 0.0  ;;  %v9362_v4 = vadd.f32 %v9192_v54, %v4160_v36  ;;  %4519 = vmatpush.bf16.msrb.mxu2 %v6693_v23 }
 0x35e   : > { %p6797_p12 = pnand %p6796_p11, %p7022_p5  ;;  %p6802_p2 = por %p6801_p1, %p6800_p0 }
 0x35f   : > { %v4288_v60 = vsel %vm3179_vm3, %v4227_v28, 0.0  ;;  %v4228_v13 = vmax.f32 %v9362_v4, 0.0 }
 0x360   : > { %v4289_v35 = vadd.f32 %v4288_v60, %v4287_v43  ;;  %p6798_p13 = pneg %p6797_p12 }
 0x361   : > { %v4290_v2 = vsel %vm3179_vm3, %v4228_v13, 0.0  ;;  %4520 = vmatpush.bf16.msrb.mxu2 %v6692_v21  ;;  %v10956_v21 = vmax.f32 %v8960_v47, 0.0  ;;  %v6699_v47 = vld [vmem:[%s10707_s21 + $0x18] sm:$0xff] }
 0x362   : > { %v4291_v6 = vadd.f32 %v4290_v2, %v4289_v35  ;;  %v10948_v2 = vmax.f32 %v8813_v26, 0.0  ;;  %v10952_v26 = vmax.f32 %v8879_v38, 0.0  ;;  %v10954_v38 = vmax.f32 %v8908_v63, 0.0  ;;  %p6803_p3 = pnand %p6802_p2, %p6798_p13 }
 0x363   : > { %v10958_v63 = vmax.f32 %v8999_v3, 0.0  ;;  %v10961_v3 = vmax.f32 %v9049_v50, 0.0  ;;  %v10962_v50 = vmax.f32 %v9060_v7, 0.0 }
 0x364   : > { %v4292_v30 = vrot.slane %v4291_v6, 4 }
 0x365   : > { %4521 = vmatpush.bf16.msrb.mxu2 %v6691_v5 }
 0x366   : > { %v4293_v12 = vadd.f32 %v4292_v30, %v4291_v6  ;;  %v10949_v30 = vmax.f32 %v8822_v17, 0.0 }
 0x368   : > { %v4294_v33 = vrot.slane %v4293_v12, 2 }
 0x36a   : > { %v4295_v40 = vadd.f32 %v4294_v33, %v4293_v12 }
 0x36c   : > { %v4296_v48 = vrot.slane %v4295_v40, 1 }
 0x36e   : > { %v4297_v34 = vadd.f32 %v4296_v48, %v4295_v40  ;;  %v10950_v40 = vmax.f32 %v8840_v49, 0.0  ;;  %v5883_v49 = vld [vmem:[%s10707_s21 + $0x20] sm:$0xf] }
 0x370   : > { %v4298_v54 = vmul.f32 0.00390625, %v4297_v34  ;;  %v10951_v34 = vmax.f32 %v8857_v53, 0.0  ;;  %v5905_v53 = vunpack.c.l.b16 %v5883_v49 }
 0x372   : > { %v4299_v55 = vpack.c.bf16 %v4298_v54, %v4298_v54 }
 0x374   : > { %6551 = vmatmul.msk.bf16.vlgmr.msra.gmra.mxu2 %vm3179_vm3, %v4299_v55 }
 0x3f7   : > { %v4345_v52 = vpop.f32.mrf.mxu2 }
 0x3f8   : > { %v4346_v16 = vadd.f32 %v4345_v52, %v4308_v45  ;;  %v10953_v45 = vmax.f32 %v8894_v29, 0.0  ;;  %v10955_v29 = vmax.f32 %v8927_v62, 0.0 }
 0x3fa   : > { %v4349_v27 = vmax.f32 %v4346_v16, 0.0 }
 0x3fc   : > { %v4350_v15 = vpack.c.bf16 %v4349_v27, %v4349_v27  ;;  %v5910_v27 = vpack.c.b16 %v5905_v53, %v5905_v53 }
 0x3fe   : > { %6556 = vmatmul.msk.bf16.vlgmr.msra.gmra.mxu3 %vm1735_vm2, %v4350_v15  ;;  %v5964_v15 = vsel %vm4684_vm4, %v5910_v27, 0 }
 0x3ff   : > { %v4347_v19 = vpop.f32.mrf.mxu2  ;;  %5969 = vmatpush.bf16.msra.mxu0 %v5964_v15 }
 0x403   : > { %5970 = vmatpush.bf16.msra.mxu0 %v6699_v47 }
 0x481   : > { %v4372_v46 = vpop.f32.mrf.mxu3 }
 0x482   : > { %v4373_v37 = vadd.f32 %v4372_v46, %v4353_v22  ;;  %v10957_v46 = vmax.f32 %v8978_v1, 0.0  ;;  %v10960_v1 = vmax.f32 %v9038_v56, 0.0  ;;  %v6695_v56 = vld [vmem:[%s10703_s17] sm:$0xff] }
 0x484   : > { %v4376_v18 = vsub.f32 0.0, %v4373_v37 }
 0x486   : > { %v4377_v8 = vmul.f32 1.442695, %v4376_v18  ;;  %v10959_v18 = vmax.f32 %v9011_v39, 0.0  ;;  %v4621_v39 = vld [vmem:[%s10703_s17 + $0x8] sm:$0xf] }
 0x488   : > { %6765 = vpow2.f32 %v4377_v8 }
 0x489   : > { %v4374_v36 = vpop.f32.mrf.mxu3 }
 0x48e   : > { %v6766_v58 = vpop.eup %6765 }
 0x48f   : > { %v4379_v43 = vadd.f32 1.0, %v6766_v58 }
 0x491   : > { %6767 = vrcp.f32 %v4379_v43 }
 0x497   : > { %v6768_v60 = vpop.eup %6767 }
 0x498   : > { %v9391_v35 = vperm.slane %v6768_v60, 0 }
 0x49a   : > { %v4382_v6 = vmul.f32 %v9391_v35, %v10948_v2  ;;  %v4383_v12 = vmul.f32 %v9391_v35, %v10949_v30  ;;  %v4384_v48 = vmul.f32 %v9391_v35, %v10950_v40  ;;  %v4385_v54 = vmul.f32 %v9391_v35, %v10951_v34 }
 0x49b   : > { %v4386_v17 = vmul.f32 %v9391_v35, %v10952_v26  ;;  %v4387_v52 = vmul.f32 %v9391_v35, %v10953_v45  ;;  %v4388_v19 = vmul.f32 %v9391_v35, %v10954_v38  ;;  %v4389_v42 = vmul.f32 %v9391_v35, %v10955_v29 }
 0x49c   : > { %v4414_v33 = vpack.c.bf16 %v4383_v12, %v4382_v6  ;;  %v4415_v55 = vpack.c.bf16 %v4385_v54, %v4384_v48  ;;  %v4390_v22 = vmul.f32 %v9391_v35, %v10956_v21  ;;  %v4391_v37 = vmul.f32 %v9391_v35, %v10957_v46 }
 0x49d   : > { %v4416_v16 = vpack.c.bf16 %v4387_v52, %v4386_v17  ;;  %v4417_v23 = vpack.c.bf16 %v4389_v42, %v4388_v19  ;;  %v4392_v62 = vmul.f32 %v9391_v35, %v10958_v63  ;;  %v4393_v8 = vmul.f32 %v9391_v35, %v10959_v18  ;;  %v10967_v52 = vld [vmem:[#allocation17_spill] sm:$0xff] }
 0x49e   : > { %6573 = vmatmul.msk.bf16.vlgmr.msrb.gmra.mxu2 %vm3179_vm3, %v4414_v33  ;;  %v4418_v5 = vpack.c.bf16 %v4391_v37, %v4390_v22  ;;  %v4394_v58 = vmul.f32 %v9391_v35, %v10960_v1  ;;  %v4395_v43 = vmul.f32 %v9391_v35, %v10961_v3  ;;  %v4631_v2 = vunpack.c.l.b16 %v4621_v39  ;;  %v10971_v22 = vld [vmem:[#allocation24_spill] sm:$0xff] }
 0x49f   : > { %v4419_v36 = vpack.c.bf16 %v4393_v8, %v4392_v62  ;;  %v4396_v12 = vmul.f32 %v9391_v35, %v10962_v50  ;;  %v10963_v33 = vmax.f32 %v9080_v32, 0.0  ;;  %v10964_v34 = vmax.f32 %v9118_v24, 0.0  ;;  %v9473_v32 = vld [vmem:[%s10702_s16] ss:$0 sm:$0xff]  ;;  %v10969_v24 = vld [vmem:[#allocation23_spill] sm:$0xff] }
 0x4a0   : > { %v4420_v60 = vpack.c.bf16 %v4395_v43, %v4394_v58  ;;  %v4633_v6 = vpack.c.b16 %v4631_v2, %v4631_v2  ;;  %v10970_v53 = vmax.f32 %v10969_v24, 0.0  ;;  %v10972_v46 = vmax.f32 %v10971_v22, 0.0 }
 0x4a1   : > { %v4397_v40 = vmul.f32 %v9391_v35, %v10963_v33  ;;  %v4398_v54 = vmul.f32 %v9391_v35, %v10964_v34  ;;  %v10975_v3 = vmax.f32 %v9242_v61, 0.0  ;;  %v4406_v33 = vmul.f32 %v9391_v35, %v4221_v10 }
 0x4a2   : > { %v4686_v30 = vsel %vm4684_vm4, %v4633_v6, 0  ;;  %v4401_v27 = vmul.f32 %v9391_v35, %v10970_v53  ;;  %v4402_v37 = vmul.f32 %v9391_v35, %v10972_v46  ;;  %v4408_v10 = vmul.f32 %v9391_v35, %v4223_v11 }
 0x4a3   : > { %4694 = vmatpush.bf16.msrb.mxu3 %v4686_v30  ;;  %v4421_v48 = vpack.c.bf16 %v4397_v40, %v4396_v12  ;;  %v4404_v43 = vmul.f32 %v9391_v35, %v10975_v3  ;;  %v4407_v40 = vmul.f32 %v9391_v35, %v4222_v44  ;;  %v4409_v44 = vmul.f32 %v9391_v35, %v4224_v57 }
 0x4a4   : > { %v4410_v0 = vmul.f32 %v9391_v35, %v4225_v14  ;;  %v4411_v11 = vmul.f32 %v9391_v35, %v4226_v9  ;;  %v4412_v14 = vmul.f32 %v9391_v35, %v4227_v28  ;;  %v4413_v20 = vmul.f32 %v9391_v35, %v4228_v13 }
 0x4a5   : > { %v10978_v28 = vmov 0.0  }
 0x4a6   : > { %4815 = vst.msk [vmem:[#allocation4 + $0x28] sm:$0xff] %vm4809_vm6, %v10978_v28 }
 0x4a7   : > { %4695 = vmatpush.bf16.msrb.mxu3 %v6695_v56  ;;  %4810 = vst.msk [vmem:[#allocation4] sm:$0xff] %vm4809_vm6, %v10978_v28 }
 0x4a8   : > { %4811 = vst.msk [vmem:[#allocation4 + $0x8] sm:$0xff] %vm4809_vm6, %v10978_v28 }
 0x4a9   : > { %4812 = vst.msk [vmem:[#allocation4 + $0x10] sm:$0xff] %vm4809_vm6, %v10978_v28 }
 0x4aa   : > { %4813 = vst.msk [vmem:[#allocation4 + $0x18] sm:$0xff] %vm4809_vm6, %v10978_v28 }
 0x4ab   : > { %4814 = vst.msk [vmem:[#allocation4 + $0x20] sm:$0xff] %vm4809_vm6, %v10978_v28 }
 0x4ac   : > { %4816 = vst.msk [vmem:[#allocation4 + $0x30] sm:$0xff] %vm4809_vm6, %v10978_v28 }
 0x4ad   : > { %4817 = vst.msk [vmem:[#allocation4 + $0x38] sm:$0xff] %vm4809_vm6, %v10978_v28 }
 0x4ae   : > { %6574 = vmatmul.msk.bf16.gmra.mxu2 %vm3179_vm3, %v4415_v55  ;;  %v10965_v55 = vld [vmem:[#allocation16_spill] sm:$0xff]  ;;  %4818 = vst.msk [vmem:[#allocation4 + $0x40] sm:$0xff] %vm4809_vm6, %v10978_v28 }
 0x4af   : > { %v10966_v26 = vmax.f32 %v10965_v55, 0.0  ;;  %4819 = vst.msk [vmem:[#allocation4 + $0x48] sm:$0xff] %vm4809_vm6, %v10978_v28 }
 0x4b0   : > { %4820 = vst.msk [vmem:[#allocation4 + $0x50] sm:$0xff] %vm4809_vm6, %v10978_v28 }
 0x4b1   : > { %v4399_v17 = vmul.f32 %v9391_v35, %v10966_v26  ;;  %v4426_v26 = vpack.c.bf16 %v4407_v40, %v4406_v33  ;;  %4821 = vst.msk [vmem:[#allocation4 + $0x58] sm:$0xff] %vm4809_vm6, %v10978_v28 }
 0x4b2   : > { %4822 = vst.msk [vmem:[#allocation4 + $0x60] sm:$0xff] %vm4809_vm6, %v10978_v28 }
 0x4b3   : > { %v4422_v45 = vpack.c.bf16 %v4399_v17, %v4398_v54  ;;  %4823 = vst.msk [vmem:[#allocation4 + $0x68] sm:$0xff] %vm4809_vm6, %v10978_v28 }
 0x4b4   : > { %4824 = vst.msk [vmem:[#allocation4 + $0x70] sm:$0xff] %vm4809_vm6, %v10978_v28 }
 0x4b5   : > { %4825 = vst.msk [vmem:[#allocation4 + $0x78] sm:$0xff] %vm4809_vm6, %v10978_v28 }
 0x4b6   : > { %4826 = vst.msk [vmem:[#allocation4 + $0x80] sm:$0xff] %vm4809_vm6, %v10978_v28 }
 0x4b7   : > { %4827 = vst.msk [vmem:[#allocation4 + $0x88] sm:$0xff] %vm4809_vm6, %v10978_v28 }
 0x4b8   : > { %4828 = vst.msk [vmem:[#allocation4 + $0x90] sm:$0xff] %vm4809_vm6, %v10978_v28 }
 0x4b9   : > { %4829 = vst.msk [vmem:[#allocation4 + $0x98] sm:$0xff] %vm4809_vm6, %v10978_v28 }
 0x4ba   : > { %4830 = vst.msk [vmem:[#allocation4 + $0xa0] sm:$0xff] %vm4809_vm6, %v10978_v28 }
 0x4bb   : > { %4831 = vst.msk [vmem:[#allocation4 + $0xa8] sm:$0xff] %vm4809_vm6, %v10978_v28 }
 0x4bc   : > { %4832 = vst.msk [vmem:[#allocation4 + $0xb0] sm:$0xff] %vm4809_vm6, %v10978_v28 }
 0x4bd   : > { %4833 = vst.msk [vmem:[#allocation4 + $0xb8] sm:$0xff] %vm4809_vm6, %v10978_v28 }
 0x4be   : > { %6575 = vmatmul.msk.bf16.gmra.mxu2 %vm3179_vm3, %v4416_v16  ;;  %v10968_v16 = vmax.f32 %v10967_v52, 0.0  ;;  %4834 = vst.msk [vmem:[#allocation4 + $0xc0] sm:$0xff] %vm4809_vm6, %v10978_v28 }
 0x4bf   : > { %4835 = vst.msk [vmem:[#allocation4 + $0xc8] sm:$0xff] %vm4809_vm6, %v10978_v28 }
 0x4c0   : > { %v4400_v49 = vmul.f32 %v9391_v35, %v10968_v16  ;;  %v4427_v16 = vpack.c.bf16 %v4409_v44, %v4408_v10  ;;  %4836 = vst.msk [vmem:[#allocation4 + $0xd0] sm:$0xff] %vm4809_vm6, %v10978_v28 }
 0x4c1   : > { %4837 = vst.msk [vmem:[#allocation4 + $0xd8] sm:$0xff] %vm4809_vm6, %v10978_v28 }
 0x4c2   : > { %v4423_v42 = vpack.c.bf16 %v4401_v27, %v4400_v49  ;;  %v4428_v27 = vpack.c.bf16 %v4411_v11, %v4410_v0  ;;  %4838 = vst.msk [vmem:[#allocation4 + $0xe0] sm:$0xff] %vm4809_vm6, %v10978_v28 }
 0x4c3   : > { %4839 = vst.msk [vmem:[#allocation4 + $0xe8] sm:$0xff] %vm4809_vm6, %v10978_v28 }
 0x4c4   : > { %4840 = vst.msk [vmem:[#allocation4 + $0xf0] sm:$0xff] %vm4809_vm6, %v10978_v28 }
 0x4c5   : > { %4841 = vst.msk [vmem:[#allocation4 + $0xf8] sm:$0xff] %vm4809_vm6, %v10978_v28 }
 0x4c6   : > { %4842 = vst.msk [vmem:[#allocation4 + $0x100] sm:$0xff] %vm4809_vm6, %v10978_v28 }
 0x4c7   : > { %4843 = vst.msk [vmem:[#allocation4 + $0x108] sm:$0xff] %vm4809_vm6, %v10978_v28 }
 0x4c8   : > { %4844 = vst.msk [vmem:[#allocation4 + $0x110] sm:$0xff] %vm4809_vm6, %v10978_v28 }
 0x4c9   : > { %4845 = vst.msk [vmem:[#allocation4 + $0x118] sm:$0xff] %vm4809_vm6, %v10978_v28 }
 0x4ca   : > { %4846 = vst.msk [vmem:[#allocation4 + $0x120] sm:$0xff] %vm4809_vm6, %v10978_v28 }
 0x4cb   : > { %4847 = vst.msk [vmem:[#allocation4 + $0x128] sm:$0xff] %vm4809_vm6, %v10978_v28 }
 0x4cc   : > { %4848 = vst.msk [vmem:[#allocation4 + $0x130] sm:$0xff] %vm4809_vm6, %v10978_v28 }
 0x4cd   : > { %4849 = vst.msk [vmem:[#allocation4 + $0x138] sm:$0xff] %vm4809_vm6, %v10978_v28 }
 0x4ce   : > { %6576 = vmatmul.msk.bf16.gmra.mxu2 %vm3179_vm3, %v4417_v23  ;;  %v6698_v23 = vld [vmem:[%s10707_s21 + $0x10] sm:$0xff]  ;;  %4850 = vst.msk [vmem:[#allocation4 + $0x140] sm:$0xff] %vm4809_vm6, %v10978_v28 }
 0x4cf   : > { %5971 = vmatpush.bf16.msra.mxu0 %v6698_v23  ;;  %v4429_v23 = vpack.c.bf16 %v4413_v20, %v4412_v14  ;;  %4851 = vst.msk [vmem:[#allocation4 + $0x148] sm:$0xff] %vm4809_vm6, %v10978_v28 }
 0x4d0   : > { %4852 = vst.msk [vmem:[#allocation4 + $0x150] sm:$0xff] %vm4809_vm6, %v10978_v28 }
 0x4d1   : > { %4853 = vst.msk [vmem:[#allocation4 + $0x158] sm:$0xff] %vm4809_vm6, %v10978_v28 }
 0x4d2   : > { %4854 = vst.msk [vmem:[#allocation4 + $0x160] sm:$0xff] %vm4809_vm6, %v10978_v28 }
 0x4d3   : > { %5972 = vmatpush.bf16.msra.mxu0 %v6697_v31  ;;  %4855 = vst.msk [vmem:[#allocation4 + $0x168] sm:$0xff] %vm4809_vm6, %v10978_v28 }
 0x4d4   : > { %4856 = vst.msk [vmem:[#allocation4 + $0x170] sm:$0xff] %vm4809_vm6, %v10978_v28 }
 0x4d5   : > { %4857 = vst.msk [vmem:[#allocation4 + $0x178] sm:$0xff] %vm4809_vm6, %v10978_v28 }
 0x4d6   : > { %4858 = vst.msk [vmem:[#allocation4 + $0x180] sm:$0xff] %vm4809_vm6, %v10978_v28 }
 0x4d7   : > { %4859 = vst.msk [vmem:[#allocation4 + $0x188] sm:$0xff] %vm4809_vm6, %v10978_v28 }
 0x4d8   : > { %4860 = vst.msk [vmem:[#allocation4 + $0x190] sm:$0xff] %vm4809_vm6, %v10978_v28 }
 0x4d9   : > { %4861 = vst.msk [vmem:[#allocation4 + $0x198] sm:$0xff] %vm4809_vm6, %v10978_v28 }
 0x4da   : > { %4862 = vst.msk [vmem:[#allocation4 + $0x1a0] sm:$0xff] %vm4809_vm6, %v10978_v28 }
 0x4db   : > { %4863 = vst.msk [vmem:[#allocation4 + $0x1a8] sm:$0xff] %vm4809_vm6, %v10978_v28 }
 0x4dc   : > { %4864 = vst.msk [vmem:[#allocation4 + $0x1b0] sm:$0xff] %vm4809_vm6, %v10978_v28 }
 0x4dd   : > { %4865 = vst.msk [vmem:[#allocation4 + $0x1b8] sm:$0xff] %vm4809_vm6, %v10978_v28 }
 0x4de   : > { %6577 = vmatmul.msk.bf16.gmra.mxu2 %vm3179_vm3, %v4418_v5  ;;  %v10973_v5 = vld [vmem:[#allocation18_spill] sm:$0xff]  ;;  %4866 = vst.msk [vmem:[#allocation4 + $0x1c0] sm:$0xff] %vm4809_vm6, %v10978_v28 }
 0x4df   : > { %v10974_v63 = vmax.f32 %v10973_v5, 0.0  ;;  %4867 = vst.msk [vmem:[#allocation4 + $0x1c8] sm:$0xff] %vm4809_vm6, %v10978_v28 }
 0x4e0   : > { %4868 = vst.msk [vmem:[#allocation4 + $0x1d0] sm:$0xff] %vm4809_vm6, %v10978_v28 }
 0x4e1   : > { %v4403_v62 = vmul.f32 %v9391_v35, %v10974_v63  ;;  %4869 = vst.msk [vmem:[#allocation4 + $0x1d8] sm:$0xff] %vm4809_vm6, %v10978_v28 }
 0x4e2   : > { %4870 = vst.msk [vmem:[#allocation4 + $0x1e0] sm:$0xff] %vm4809_vm6, %v10978_v28 }
 0x4e3   : > { %v4424_v1 = vpack.c.bf16 %v4403_v62, %v4402_v37  ;;  %v9664_v62 = vld [vmem:[%s10704_s18] ss:$0 sm:$0xff]  ;;  %4871 = vst.msk [vmem:[#allocation4 + $0x1e8] sm:$0xff] %vm4809_vm6, %v10978_v28 }
 0x4e4   : > { %4872 = vst.msk [vmem:[#allocation4 + $0x1f0] sm:$0xff] %vm4809_vm6, %v10978_v28 }
 0x4e5   : > { %4873 = vst.msk [vmem:[#allocation4 + $0x1f8] sm:$0xff] %vm4809_vm6, %v10978_v28 }
 0x4e6   : > { %4874 = vst.msk [vmem:[#allocation4 + $0x200] sm:$0xff] %vm4809_vm6, %v10978_v28 }
 0x4e7   : > { %4875 = vst.msk [vmem:[#allocation4 + $0x208] sm:$0xff] %vm4809_vm6, %v10978_v28 }
 0x4e8   : > { %4876 = vst.msk [vmem:[#allocation4 + $0x210] sm:$0xff] %vm4809_vm6, %v10978_v28 }
 0x4e9   : > { %4877 = vst.msk [vmem:[#allocation4 + $0x218] sm:$0xff] %vm4809_vm6, %v10978_v28 }
 0x4ea   : > { %4878 = vst.msk [vmem:[#allocation4 + $0x220] sm:$0xff] %vm4809_vm6, %v10978_v28 }
 0x4eb   : > { %4879 = vst.msk [vmem:[#allocation4 + $0x228] sm:$0xff] %vm4809_vm6, %v10978_v28 }
 0x4ec   : > { %4880 = vst.msk [vmem:[#allocation4 + $0x230] sm:$0xff] %vm4809_vm6, %v10978_v28 }
 0x4ed   : > { %4881 = vst.msk [vmem:[#allocation4 + $0x238] sm:$0xff] %vm4809_vm6, %v10978_v28 }
 0x4ee   : > { %6578 = vmatmul.msk.bf16.gmra.mxu2 %vm3179_vm3, %v4419_v36 }
 0x4fe   : > { %6579 = vmatmul.msk.bf16.gmra.mxu2 %vm3179_vm3, %v4420_v60  ;;  %v10976_v60 = vld [vmem:[#allocation19_spill] sm:$0xff] }
 0x4ff   : > { %v10977_v39 = vmax.f32 %v10976_v60, 0.0 }
 0x501   : > { %v4405_v2 = vmul.f32 %v9391_v35, %v10977_v39 }
 0x503   : > { %v4425_v12 = vpack.c.bf16 %v4405_v2, %v4404_v43 }
 0x50e   : > { %6580 = vmatmul.msk.bf16.gmra.mxu2 %vm3179_vm3, %v4421_v48 }
 0x51e   : > { %6581 = vmatmul.msk.bf16.gmra.mxu2 %vm3179_vm3, %v4422_v45 }
 0x521   : > { %v4523_v7 = vpop.f32.mrf.mxu2 }
 0x522   : > { %v9482_v38 = vadd.f32 %v9473_v32, %v4523_v7 }
 0x529   : > { %v4525_v15 = vpop.f32.mrf.mxu2 }
 0x52a   : > { %v9485_v19 = vadd.f32 %v9473_v32, %v4525_v15 }
 0x52c   : > { %v4603_v29 = vpack.c.bf16 %v9485_v19, %v9482_v38 }
 0x52e   : > { %6582 = vmatmul.msk.bf16.gmra.mxu2 %vm3179_vm3, %v4423_v42  ;;  %6593 = vmatmul.msk.bf16.vlgmr.msrb.gmra.mxu3 %vm4635_vm5, %v4603_v29 }
 0x531   : > { %v4528_v21 = vpop.f32.mrf.mxu2 }
 0x532   : > { %v9501_v8 = vadd.f32 %v9473_v32, %v4528_v21 }
 0x539   : > { %v4530_v18 = vpop.f32.mrf.mxu2 }
 0x53a   : > { %v9504_v36 = vadd.f32 %v9473_v32, %v4530_v18 }
 0x53c   : > { %v4604_v47 = vpack.c.bf16 %v9504_v36, %v9501_v8 }
 0x53e   : > { %6583 = vmatmul.msk.bf16.gmra.mxu2 %vm3179_vm3, %v4424_v1  ;;  %6594 = vmatmul.msk.bf16.gmra.mxu3 %vm4635_vm5, %v4604_v47 }
 0x541   : > { %v4533_v58 = vpop.f32.mrf.mxu2 }
 0x542   : > { %v9517_v30 = vadd.f32 %v9473_v32, %v4533_v58 }
 0x549   : > { %v4535_v6 = vpop.f32.mrf.mxu2 }
 0x54a   : > { %v9520_v56 = vadd.f32 %v9473_v32, %v4535_v6  ;;  %v6696_v6 = vld [vmem:[%s10707_s21] sm:$0xff] }
 0x54b   : > { %5973 = vmatpush.bf16.msra.mxu0 %v6696_v6  ;;  %v5112_v6 = vld [vmem:[#allocation4 + $0x11] sm:$0xff] }
 0x54c   : > { %v4605_v50 = vpack.c.bf16 %v9520_v56, %v9517_v30 }
 0x54e   : > { %6584 = vmatmul.msk.bf16.gmra.mxu2 %vm3179_vm3, %v4425_v12  ;;  %6595 = vmatmul.msk.bf16.gmra.mxu3 %vm4635_vm5, %v4605_v50 }
 0x551   : > { %v4538_v61 = vpop.f32.mrf.mxu2 }
 0x552   : > { %v9533_v34 = vadd.f32 %v9473_v32, %v4538_v61 }
 0x559   : > { %v4540_v48 = vpop.f32.mrf.mxu2 }
 0x55a   : > { %v9536_v54 = vadd.f32 %v9473_v32, %v4540_v48 }
 0x55c   : > { %v4606_v55 = vpack.c.bf16 %v9536_v54, %v9533_v34 }
 0x55e   : > { %6585 = vmatmul.msk.bf16.gmra.mxu2 %vm3179_vm3, %v4426_v26  ;;  %6596 = vmatmul.msk.bf16.gmra.mxu3 %vm4635_vm5, %v4606_v55  ;;  %v9756_v26 = vld [vmem:[%s10705_s19] sm:$0xff] }
 0x55f   : > { %v9765_v10 = vperm.slane %v9756_v26, 0  ;;  %v9768_v44 = vperm.slane %v9756_v26, 1  ;;  %v9781_v0 = vperm.slane %v9756_v26, 2 }
 0x561   : > { %v4543_v25 = vpop.f32.mrf.mxu2  ;;  %v5145_v28 = vmul.f32 %v9781_v0, %v5112_v6 }
 0x562   : > { %v9552_v45 = vadd.f32 %v9473_v32, %v4543_v25 }
 0x569   : > { %v4545_v17 = vpop.f32.mrf.mxu2 }
 0x56a   : > { %v9555_v7 = vadd.f32 %v9473_v32, %v4545_v17  ;;  %v4917_v17 = vld [vmem:[#allocation4 + $0x7] sm:$0xff] }
 0x56c   : > { %v4607_v52 = vpack.c.bf16 %v9555_v7, %v9552_v45 }
 0x56e   : > { %6586 = vmatmul.msk.bf16.gmra.mxu2 %vm3179_vm3, %v4427_v16  ;;  %6597 = vmatmul.msk.bf16.gmra.mxu3 %vm4635_vm5, %v4607_v52  ;;  %v5014_v52 = vld [vmem:[#allocation4 + $0x8] sm:$0xff]  ;;  %v4950_v16 = vmul.f32 %v9765_v10, %v4917_v17 }
 0x571   : > { %v4548_v59 = vpop.f32.mrf.mxu2 }
 0x572   : > { %v9568_v49 = vadd.f32 %v9473_v32, %v4548_v59  ;;  %v5047_v59 = vmul.f32 %v9768_v44, %v5014_v52 }
 0x579   : > { %v4550_v57 = vpop.f32.mrf.mxu2 }
 0x57a   : > { %v9571_v24 = vadd.f32 %v9473_v32, %v4550_v57  ;;  %v5111_v57 = vld [vmem:[#allocation4 + $0x9] sm:$0xff] }
 0x57c   : > { %v4608_v53 = vpack.c.bf16 %v9571_v24, %v9568_v49 }
 0x57e   : > { %6587 = vmatmul.msk.bf16.gmra.mxu2 %vm3179_vm3, %v4428_v27  ;;  %6598 = vmatmul.msk.bf16.gmra.mxu3 %vm4635_vm5, %v4608_v53 }
 0x581   : > { %v4553_v51 = vpop.f32.mrf.mxu2 }
 0x582   : > { %v9584_v15 = vadd.f32 %v9473_v32, %v4553_v51 }
 0x589   : > { %v4555_v9 = vpop.f32.mrf.mxu2 }
 0x58a   : > { %v9587_v29 = vadd.f32 %v9473_v32, %v4555_v9  ;;  %v4918_v9 = vld [vmem:[#allocation4 + $0xf] sm:$0xff] }
 0x58c   : > { %v4609_v42 = vpack.c.bf16 %v9587_v29, %v9584_v15 }
 0x58e   : > { %6588 = vmatmul.msk.bf16.gmra.mxu2 %vm3179_vm3, %v4429_v23  ;;  %6599 = vmatmul.msk.bf16.gmra.mxu3 %vm4635_vm5, %v4609_v42  ;;  %v5015_v42 = vld [vmem:[#allocation4 + $0x10] sm:$0xff]  ;;  %v5079_v23 = vadd.f32 %v5047_v59, %v4950_v16  ;;  %v9831_v59 = vperm.slane %v9756_v26, 5 }
 0x591   : > { %v4558_v41 = vpop.f32.mrf.mxu2 }
 0x592   : > { %v9604_v13 = vadd.f32 %v9473_v32, %v4558_v41  ;;  %v5144_v41 = vmul.f32 %v9781_v0, %v5111_v57 }
 0x599   : > { %v4560_v4 = vpop.f32.mrf.mxu2 }
 0x59a   : > { %v9607_v35 = vadd.f32 %v9473_v32, %v4560_v4  ;;  %v9797_v4 = vperm.slane %v9756_v26, 3 }
 0x59c   : > { %v4610_v21 = vpack.c.bf16 %v9607_v35, %v9604_v13 }
 0x59e   : > { %6600 = vmatmul.msk.bf16.gmra.mxu3 %vm4635_vm5, %v4610_v21 }
 0x5a1   : > { %v4563_v22 = vpop.f32.mrf.mxu2 }
 0x5a2   : > { %v9645_v37 = vadd.f32 %v9473_v32, %v4563_v22 }
 0x5a9   : > { %v4565_v46 = vpop.f32.mrf.mxu2 }
 0x5aa   : > { %v9648_v5 = vadd.f32 %v9473_v32, %v4565_v46 }
 0x5ac   : > { %v4611_v63 = vpack.c.bf16 %v9648_v5, %v9645_v37 }
 0x5ae   : > { %6601 = vmatmul.msk.bf16.gmra.mxu3 %vm4635_vm5, %v4611_v63 }
 0x5b1   : > { %v4568_v18 = vpop.f32.mrf.mxu2  ;;  %v4697_v47 = vpop.f32.mrf.mxu3 }
 0x5b2   : > { %v4698_v1 = vadd.f32 %v9664_v62, %v4697_v47  ;;  %v9691_v60 = vadd.f32 %v9473_v32, %v4568_v18 }
 0x5b4   : > { %v4777_v58 = vmax.f32 %v4698_v1, 0.0 }
 0x5b6   : > { %4883 = vst.msk [vmem:[#allocation4 + $0x28] sm:$0xff] %vm4809_vm6, %v4777_v58 }
 0x5b9   : > { %v4570_v3 = vpop.f32.mrf.mxu2  ;;  %v4699_v43 = vpop.f32.mrf.mxu3 }
 0x5ba   : > { %v9696_v39 = vadd.f32 %v9473_v32, %v4570_v3  ;;  %v4700_v11 = vadd.f32 %v9664_v62, %v4699_v43  ;;  %v4951_v3 = vmul.f32 %v9765_v10, %v4918_v9  ;;  %v5048_v43 = vmul.f32 %v9768_v44, %v5015_v42  ;;  %v9845_v9 = vld [vmem:[%s10705_s19 + $0x8] ss:$0 sm:$0xff] }
 0x5bc   : > { %v4612_v2 = vpack.c.bf16 %v9696_v39, %v9691_v60  ;;  %v4778_v21 = vmax.f32 %v4700_v11, 0.0 }
 0x5bd   : > { %v5208_v18 = vld [vmem:[#allocation4 + $0x27] sm:$0xff] }
 0x5be   : > { %6602 = vmatmul.msk.bf16.gmra.mxu3 %vm4635_vm5, %v4612_v2  ;;  %4884 = vst.msk [vmem:[#allocation4 + $0x30] sm:$0xff] %vm4809_vm6, %v4778_v21  ;;  %v4952_v11 = vmul.f32 %v5208_v18, %v9765_v10 }
 0x5c1   : > { %v4573_v50 = vpop.f32.mrf.mxu2  ;;  %v4702_v12 = vpop.f32.mrf.mxu3 }
 0x5c2   : > { %v9737_v40 = vadd.f32 %v9473_v32, %v4573_v50  ;;  %v4703_v53 = vadd.f32 %v9664_v62, %v4702_v12  ;;  %v5176_v50 = vadd.f32 %v5144_v41, %v5079_v23  ;;  %v5241_v12 = vmul.f32 %v9797_v4, %v5208_v18 }
 0x5c4   : > { %10979 = vst [vmem:[#allocation25_spill] sm:$0xff] %v9737_v40  ;;  %v4779_v47 = vmax.f32 %v4703_v53, 0.0  ;;  %v5273_v52 = vadd.f32 %v5241_v12, %v5176_v50 }
 0x5c5   : > { %v5209_v42 = vld [vmem:[#allocation4 + $0x2f] sm:$0xff] }
 0x5c6   : > { %4885 = vst.msk [vmem:[#allocation4 + $0x48] sm:$0xff] %vm4809_vm6, %v4779_v47  ;;  %v5306_v23 = vld [vmem:[#allocation4 + $0x30] sm:$0xff] }
 0x5c7   : > { %v5402_v21 = vld [vmem:[#allocation4 + $0x29] sm:$0xff]  ;;  %v5403_v18 = vld [vmem:[#allocation4 + $0x31] sm:$0xff] }
 0x5c8   : > { %v5435_v47 = vmul.f32 %v9831_v59, %v5402_v21 }
 0x5c9   : > { %v4575_v61 = vpop.f32.mrf.mxu2  ;;  %v4704_v33 = vpop.f32.mrf.mxu3 }
 0x5ca   : > { %v9740_v48 = vadd.f32 %v9473_v32, %v4575_v61  ;;  %v4705_v27 = vadd.f32 %v9664_v62, %v4704_v33  ;;  %v5305_v33 = vld [vmem:[#allocation4 + $0x28] sm:$0xff] }
 0x5cb   : > { %v5049_v57 = vmul.f32 %v5305_v33, %v9768_v44 }
 0x5cc   : > { %10980 = vst [vmem:[#allocation26_spill] sm:$0xff] %v9740_v48  ;;  %v4613_v55 = vpack.c.bf16 %v9740_v48, %v9737_v40  ;;  %v4780_v1 = vmax.f32 %v4705_v27, 0.0  ;;  %v9837_v27 = vperm.slane %v9756_v26, 6 }
 0x5ce   : > { %6603 = vmatmul.msk.bf16.gmra.mxu3 %vm4635_vm5, %v4613_v55  ;;  %v9823_v55 = vperm.slane %v9756_v26, 4  ;;  %4886 = vst.msk [vmem:[#allocation4 + $0x50] sm:$0xff] %vm4809_vm6, %v4780_v1  ;;  %v9850_v1 = vld [vmem:[#allocation4 + $0x47] sm:$0xff] }
 0x5cf   : > { %v5533_v50 = vmul.f32 %v9837_v27, %v9850_v1 }
 0x5d0   : > { %v5338_v53 = vmul.f32 %v9823_v55, %v5305_v33 }
 0x5d1   : > { %v4578_v31 = vpop.f32.mrf.mxu2  ;;  %v4707_v25 = vpop.f32.mrf.mxu3 }
 0x5d2   : > { %v4708_v51 = vadd.f32 %v9664_v62, %v4707_v25  ;;  %v9802_v22 = vadd.f32 %v9473_v32, %v4578_v31  ;;  %v5080_v31 = vadd.f32 %v5048_v43, %v4951_v3  ;;  %v5370_v41 = vadd.f32 %v5338_v53, %v5273_v52 }
 0x5d3   : > { %v5081_v3 = vadd.f32 %v5049_v57, %v4952_v11  ;;  %v5146_v53 = vmul.f32 %v5402_v21, %v9781_v0 }
 0x5d4   : > { %10981 = vst [vmem:[#allocation20_spill] sm:$0xff] %v9802_v22  ;;  %v4781_v2 = vmax.f32 %v4708_v51, 0.0 }
 0x5d5   : > { %v5501_v6 = vld [vmem:[#allocation4 + $0x4f] sm:$0xff] }
 0x5d6   : > { %4887 = vst.msk [vmem:[#allocation4 + $0x68] sm:$0xff] %vm4809_vm6, %v4781_v2  ;;  %v5339_v2 = vmul.f32 %v9823_v55, %v5306_v23  ;;  %v9861_v12 = vld [vmem:[#allocation4 + $0x49] sm:$0xff] }
 0x5d7   : > { %v5727_v52 = vmul.f32 %v9845_v9, %v9861_v12 }
 0x5d9   : > { %v4580_v14 = vpop.f32.mrf.mxu2  ;;  %v4709_v20 = vpop.f32.mrf.mxu3 }
 0x5da   : > { %v9805_v46 = vadd.f32 %v9473_v32, %v4580_v14  ;;  %v4710_v63 = vadd.f32 %v9664_v62, %v4709_v20  ;;  %v5177_v14 = vadd.f32 %v5145_v28, %v5080_v31  ;;  %v9840_v20 = vperm.slane %v9756_v26, 7  ;;  %v9852_v26 = vld [vmem:[#allocation4 + $0x48] sm:$0xff] }
 0x5db   : > { %v5436_v31 = vmul.f32 %v9831_v59, %v5403_v18  ;;  %v5467_v28 = vadd.f32 %v5435_v47, %v5370_v41  ;;  %v5598_v41 = vld [vmem:[#allocation4 + $0x50] sm:$0xff]  ;;  %v5178_v47 = vadd.f32 %v5146_v53, %v5081_v3 }
 0x5dc   : > { %10982 = vst [vmem:[#allocation27_spill] sm:$0xff] %v9805_v46  ;;  %v4614_v58 = vpack.c.bf16 %v9805_v46, %v9802_v22  ;;  %v4782_v61 = vmax.f32 %v4710_v63, 0.0  ;;  %v5242_v63 = vmul.f32 %v9797_v4, %v5209_v42  ;;  %v5243_v46 = vmul.f32 %v9850_v1, %v9797_v4 }
 0x5dd   : > { %v5244_v22 = vmul.f32 %v5501_v6, %v9797_v4 }
 0x5de   : > { %6604 = vmatmul.msk.bf16.gmra.mxu3 %vm4635_vm5, %v4614_v58  ;;  %4888 = vst.msk [vmem:[#allocation4 + $0x70] sm:$0xff] %vm4809_vm6, %v4782_v61  ;;  %v4953_v58 = vmul.f32 %v5209_v42, %v9765_v10  ;;  %v5050_v61 = vmul.f32 %v5306_v23, %v9768_v44  ;;  %v5274_v33 = vadd.f32 %v5242_v63, %v5177_v14 }
 0x5df   : > { %v5565_v42 = vadd.f32 %v5533_v50, %v5467_v28  ;;  %v5147_v63 = vmul.f32 %v5403_v18, %v9781_v0  ;;  %v5695_v50 = vld [vmem:[#allocation4 + $0x51] sm:$0xff]  ;;  %v9885_v18 = vld [vmem:[%s10706_s20] ss:$0 sm:$0xff] }
 0x5e0   : > { %v5082_v57 = vadd.f32 %v5050_v61, %v4953_v58 }
 0x5e1   : > { %v4583_v25 = vpop.f32.mrf.mxu2  ;;  %v4712_v17 = vpop.f32.mrf.mxu3 }
 0x5e2   : > { %v4713_v16 = vadd.f32 %v9664_v62, %v4712_v17  ;;  %v9856_v43 = vadd.f32 %v9473_v32, %v4583_v25  ;;  %v5630_v17 = vmul.f32 %v9840_v20, %v9852_v26  ;;  %v5534_v25 = vmul.f32 %v9837_v27, %v5501_v6 }
 0x5e3   : > { %v5179_v61 = vadd.f32 %v5147_v63, %v5082_v57  ;;  %v5728_v57 = vmul.f32 %v9845_v9, %v5695_v50  ;;  %v5438_v63 = vmul.f32 %v5695_v50, %v9831_v59 }
 0x5e4   : > { %v4783_v51 = vmax.f32 %v4713_v16, 0.0  ;;  %10983 = vst [vmem:[#allocation28_spill] sm:$0xff] %v9856_v43  ;;  %v5662_v58 = vadd.f32 %v5630_v17, %v5565_v42  ;;  %v5340_v17 = vmul.f32 %v9852_v26, %v9823_v55 }
 0x5e5   : > { %v9889_v3 = vld [vmem:[#allocation4 + $0x6f] sm:$0xff] }
 0x5e6   : > { %4889 = vst.msk [vmem:[#allocation4 + $0x88] sm:$0xff] %vm4809_vm6, %v4783_v51  ;;  %v5371_v51 = vadd.f32 %v5339_v2, %v5274_v33  ;;  %v5275_v33 = vadd.f32 %v5243_v46, %v5178_v47  ;;  %v5437_v46 = vmul.f32 %v9861_v12, %v9831_v59  ;;  %v5600_v47 = vld [vmem:[#allocation4 + $0x70] sm:$0xff] }
 0x5e8   : > { %v5468_v48 = vadd.f32 %v5436_v31, %v5371_v51  ;;  %v5276_v31 = vadd.f32 %v5244_v22, %v5179_v61  ;;  %v5372_v42 = vadd.f32 %v5340_v17, %v5275_v33  ;;  %v5536_v22 = vmul.f32 %v9837_v27, %v9889_v3 }
 0x5e9   : > { %v4585_v16 = vpop.f32.mrf.mxu2  ;;  %v4714_v11 = vpop.f32.mrf.mxu3  ;;  %v4955_v17 = vmul.f32 %v5501_v6, %v9765_v10  ;;  %v5148_v6 = vmul.f32 %v9861_v12, %v9781_v0 }
 0x5ea   : > { %v9872_v14 = vadd.f32 %v9473_v32, %v4585_v16  ;;  %v4715_v23 = vadd.f32 %v9664_v62, %v4714_v11  ;;  %v5566_v28 = vadd.f32 %v5534_v25, %v5468_v48  ;;  %v5631_v16 = vmul.f32 %v9840_v20, %v5598_v41  ;;  %v9896_v25 = vld [vmem:[#allocation4 + $0x67] sm:$0xff] }
 0x5eb   : > { %v5759_v11 = vadd.f32 %v5727_v52, %v5662_v58  ;;  %v5341_v48 = vmul.f32 %v5598_v41, %v9823_v55  ;;  %v5535_v61 = vmul.f32 %v9837_v27, %v9896_v25 }
 0x5ec   : > { %10984 = vst [vmem:[#allocation29_spill] sm:$0xff] %v9872_v14  ;;  %v4615_v21 = vpack.c.bf16 %v9872_v14, %v9856_v43  ;;  %v4784_v2 = vmax.f32 %v4715_v23, 0.0  ;;  %v5663_v52 = vadd.f32 %v5631_v16, %v5566_v28  ;;  %v5469_v28 = vadd.f32 %v5437_v46, %v5372_v42  ;;  %v9909_v43 = vld [vmem:[#allocation4 + $0x68] sm:$0xff] }
 0x5ed   : > { %v5373_v23 = vadd.f32 %v5341_v48, %v5276_v31  ;;  %v5633_v31 = vmul.f32 %v9840_v20, %v5600_v47  ;;  %v5051_v46 = vmul.f32 %v9852_v26, %v9768_v44  ;;  %v5632_v26 = vmul.f32 %v9840_v20, %v9909_v43 }
 0x5ee   : > { %4890 = vst.msk [vmem:[#allocation4 + $0x90] sm:$0xff] %vm4809_vm6, %v4784_v2  ;;  %6605 = vmatmul.msk.bf16.gmra.mxu3 %vm4635_vm5, %v4615_v21  ;;  %v5760_v58 = vadd.f32 %v5728_v57, %v5663_v52  ;;  %v5795_v21 = vadd.f32 %v9885_v18, %v5759_v11  ;;  %v9911_v52 = vld [vmem:[#allocation4 + $0x69] sm:$0xff]  ;;  %v5697_v11 = vld [vmem:[#allocation4 + $0x71] sm:$0xff]  ;;  %v4954_v57 = vmul.f32 %v9850_v1, %v9765_v10 }
 0x5ef   : > { %v5470_v16 = vadd.f32 %v5438_v63, %v5373_v23  ;;  %v5567_v63 = vadd.f32 %v5535_v61, %v5469_v28  ;;  %v5246_v1 = vmul.f32 %v9889_v3, %v9797_v4 }
 0x5f0   : > { %v5796_v14 = vadd.f32 %v9885_v18, %v5760_v58  ;;  %v5827_v42 = vmax.f32 %v5795_v21, 0.0  ;;  %v5083_v28 = vadd.f32 %v5051_v46, %v4954_v57 }
 0x5f1   : > { %v4588_v53 = vpop.f32.mrf.mxu2  ;;  %v4717_v51 = vpop.f32.mrf.mxu3  ;;  %v5568_v48 = vadd.f32 %v5536_v22, %v5470_v16 }
 0x5f2   : > { %v4718_v2 = vadd.f32 %v9664_v62, %v4717_v51  ;;  %v5052_v51 = vmul.f32 %v5598_v41, %v9768_v44  ;;  %v5828_v23 = vmax.f32 %v5796_v14, 0.0  ;;  %v5729_v14 = vmul.f32 %v9845_v9, %v9911_v52 }
 0x5f3   : > { %v5665_v22 = vadd.f32 %v5633_v31, %v5568_v48  ;;  %v5730_v41 = vmul.f32 %v9845_v9, %v5697_v11  ;;  %v9930_v21 = vadd.f32 %v9473_v32, %v4588_v53  ;;  %v5664_v31 = vadd.f32 %v5632_v26, %v5567_v63 }
 0x5f4   : > { %v4785_v33 = vmax.f32 %v4718_v2, 0.0  ;;  %v5084_v58 = vadd.f32 %v5052_v51, %v4955_v17  ;;  %v5149_v2 = vmul.f32 %v5695_v50, %v9781_v0  ;;  %v5859_v16 = vpack.c.bf16 %v5828_v23, %v5827_v42 }
 0x5f5   : > { %10985 = vst [vmem:[#allocation13_spill] sm:$0xff] %v9930_v21  ;;  %v5245_v50 = vmul.f32 %v9896_v25, %v9797_v4  ;;  %v5762_v17 = vadd.f32 %v5730_v41, %v5665_v22  ;;  %v5180_v42 = vadd.f32 %v5148_v6, %v5083_v28  ;;  %v5343_v53 = vmul.f32 %v5600_v47, %v9823_v55  ;;  %v9940_v40 = vld [vmem:[#allocation4 + $0x8f] sm:$0xff]  ;;  %v9948_v22 = vld [vmem:[#allocation4 + $0x87] sm:$0xff] }
 0x5f6   : > { %4891 = vst.msk [vmem:[#allocation4 + $0xa8] sm:$0xff] %vm4809_vm6, %v4785_v33  ;;  %v5181_v33 = vadd.f32 %v5149_v2, %v5084_v58  ;;  %6625 = vmatmul.msk.bf16.vlgmr.msra.gmra.mxu0 %vm4809_vm6, %v5859_v16  ;;  %v5761_v57 = vadd.f32 %v5729_v14, %v5664_v31  ;;  %v5440_v6 = vmul.f32 %v5697_v11, %v9831_v59 }
 0x5f7   : > { %v5277_v2 = vadd.f32 %v5245_v50, %v5180_v42  ;;  %v5798_v63 = vadd.f32 %v9885_v18, %v5762_v17  ;;  %v5342_v26 = vmul.f32 %v9909_v43, %v9823_v55  ;;  %v4957_v14 = vmul.f32 %v9889_v3, %v9765_v10  ;;  %v5602_v17 = vld [vmem:[#allocation4 + $0x90] sm:$0xff] }
 0x5f8   : > { %v5278_v23 = vadd.f32 %v5246_v1, %v5181_v33  ;;  %v5538_v1 = vmul.f32 %v9837_v27, %v9940_v40  ;;  %v5797_v41 = vadd.f32 %v9885_v18, %v5761_v57  ;;  %v5054_v28 = vmul.f32 %v5600_v47, %v9768_v44 }
 0x5f9   : > { %v4590_v12 = vpop.f32.mrf.mxu2  ;;  %v4719_v61 = vpop.f32.mrf.mxu3  ;;  %v5537_v31 = vmul.f32 %v9837_v27, %v9948_v22  ;;  %v5151_v57 = vmul.f32 %v5697_v11, %v9781_v0 }
 0x5fa   : > { %v9936_v48 = vadd.f32 %v9473_v32, %v4590_v12  ;;  %v4720_v51 = vadd.f32 %v9664_v62, %v4719_v61  ;;  %v5375_v16 = vadd.f32 %v5343_v53, %v5278_v23  ;;  %v5439_v12 = vmul.f32 %v9911_v52, %v9831_v59 }
 0x5fb   : > { %v5374_v23 = vadd.f32 %v5342_v26, %v5277_v2  ;;  %v5086_v3 = vadd.f32 %v5054_v28, %v4957_v14  ;;  %v4956_v2 = vmul.f32 %v9896_v25, %v9765_v10 }
 0x5fc   : > { %10986 = vst [vmem:[#allocation14_spill] sm:$0xff] %v9936_v48  ;;  %v4616_v46 = vpack.c.bf16 %v9936_v48, %v9930_v21  ;;  %v4786_v58 = vmax.f32 %v4720_v51, 0.0  ;;  %v5472_v61 = vadd.f32 %v5440_v6, %v5375_v16  ;;  %v5830_v51 = vmax.f32 %v5798_v63, 0.0  ;;  %v9967_v48 = vld [vmem:[#allocation4 + $0x88] sm:$0xff]  ;;  %v5699_v63 = vld [vmem:[#allocation4 + $0x91] sm:$0xff] }
 0x5fd   : > { %v5471_v47 = vadd.f32 %v5439_v12, %v5374_v23  ;;  %v5635_v6 = vmul.f32 %v9840_v20, %v5602_v17  ;;  %v9969_v21 = vld [vmem:[#allocation4 + $0x89] sm:$0xff]  ;;  %v5183_v11 = vadd.f32 %v5151_v57, %v5086_v3  ;;  %v5150_v12 = vmul.f32 %v9911_v52, %v9781_v0 }
 0x5fe   : > { %4892 = vst.msk [vmem:[#allocation4 + $0xb0] sm:$0xff] %vm4809_vm6, %v4786_v58  ;;  %6606 = vmatmul.msk.bf16.gmra.mxu3 %vm4635_vm5, %v4616_v46  ;;  %v5570_v53 = vadd.f32 %v5538_v1, %v5472_v61  ;;  %v5248_v46 = vmul.f32 %v9940_v40, %v9797_v4  ;;  %v5829_v58 = vmax.f32 %v5797_v41, 0.0  ;;  %v5053_v1 = vmul.f32 %v9909_v43, %v9768_v44 }
 0x5ff   : > { %v5569_v14 = vadd.f32 %v5537_v31, %v5471_v47  ;;  %v5634_v28 = vmul.f32 %v9840_v20, %v9967_v48  ;;  %v5732_v25 = vmul.f32 %v9845_v9, %v5699_v63  ;;  %v5247_v31 = vmul.f32 %v9948_v22, %v9797_v4 }
 0x600   : > { %v5860_v26 = vpack.c.bf16 %v5830_v51, %v5829_v58  ;;  %v5667_v41 = vadd.f32 %v5635_v6, %v5570_v53  ;;  %v5280_v61 = vadd.f32 %v5248_v46, %v5183_v11  ;;  %v5085_v23 = vadd.f32 %v5053_v1, %v4956_v2 }
 0x601   : > { %v4593_v33 = vpop.f32.mrf.mxu2  ;;  %v4722_v50 = vpop.f32.mrf.mxu3  ;;  %v5345_v52 = vmul.f32 %v5602_v17, %v9823_v55  ;;  %v5666_v53 = vadd.f32 %v5634_v28, %v5569_v14  ;;  %v5442_v11 = vmul.f32 %v5699_v63, %v9831_v59  ;;  %v5344_v28 = vmul.f32 %v9967_v48, %v9823_v55 }
 0x602   : > { %v4723_v42 = vadd.f32 %v9664_v62, %v4722_v50  ;;  %v5731_v50 = vmul.f32 %v9845_v9, %v9969_v21  ;;  %v9984_v43 = vadd.f32 %v9473_v32, %v4593_v33  ;;  %v5764_v3 = vadd.f32 %v5732_v25, %v5667_v41  ;;  %v10004_v41 = vld [vmem:[#allocation4 + $0xa7] sm:$0xff] }
 0x603   : > { %v5182_v33 = vadd.f32 %v5150_v12, %v5085_v23  ;;  %v4959_v12 = vmul.f32 %v9940_v40, %v9765_v10 }
 0x604   : > { %v4787_v16 = vmax.f32 %v4723_v42, 0.0  ;;  %v5763_v47 = vadd.f32 %v5731_v50, %v5666_v53  ;;  %v5800_v14 = vadd.f32 %v9885_v18, %v5764_v3  ;;  %v5441_v50 = vmul.f32 %v9969_v21, %v9831_v59 }
 0x605   : > { %v9994_v58 = vld [vmem:[#allocation4 + $0xaf] sm:$0xff]  ;;  %v5279_v1 = vadd.f32 %v5247_v31, %v5182_v33  ;;  %v5539_v53 = vmul.f32 %v9837_v27, %v10004_v41 }
 0x606   : > { %4893 = vst.msk [vmem:[#allocation4 + $0xc8] sm:$0xff] %vm4809_vm6, %v4787_v16  ;;  %6626 = vmatmul.msk.bf16.gmra.mxu0 %vm4809_vm6, %v5860_v26  ;;  %v5377_v16 = vadd.f32 %v5345_v52, %v5280_v61  ;;  %v5540_v26 = vmul.f32 %v9837_v27, %v9994_v58  ;;  %v5056_v61 = vmul.f32 %v5602_v17, %v9768_v44  ;;  %v5832_v40 = vmax.f32 %v5800_v14, 0.0 }
 0x607   : > { %v5376_v52 = vadd.f32 %v5344_v28, %v5279_v1  ;;  %v5153_v1 = vmul.f32 %v5699_v63, %v9781_v0  ;;  %v5250_v28 = vmul.f32 %v9994_v58, %v9797_v4 }
 0x608   : > { %v5474_v25 = vadd.f32 %v5442_v11, %v5377_v16  ;;  %v10018_v16 = vld [vmem:[#allocation4 + $0xa8] sm:$0xff]  ;;  %v5701_v11 = vld [vmem:[#allocation4 + $0xb1] sm:$0xff] }
 0x609   : > { %v4595_v51 = vpop.f32.mrf.mxu2  ;;  %v4724_v42 = vpop.f32.mrf.mxu3  ;;  %v5473_v33 = vadd.f32 %v5441_v50, %v5376_v52  ;;  %v5152_v52 = vmul.f32 %v9969_v21, %v9781_v0 }
 0x60a   : > { %v9991_v57 = vadd.f32 %v9473_v32, %v4595_v51  ;;  %v4725_v46 = vadd.f32 %v9664_v62, %v4724_v42  ;;  %v5799_v51 = vadd.f32 %v9885_v18, %v5763_v47  ;;  %v5604_v42 = vld [vmem:[#allocation4 + $0xb0] sm:$0xff]  ;;  %v5572_v3 = vadd.f32 %v5540_v26, %v5474_v25 }
 0x60b   : > { %v10020_v47 = vld [vmem:[#allocation4 + $0xa9] sm:$0xff]  ;;  %v5571_v26 = vadd.f32 %v5539_v53, %v5473_v33  ;;  %v5347_v21 = vmul.f32 %v5604_v42, %v9823_v55 }
 0x60c   : > { %10987 = vst [vmem:[#allocation21_spill] sm:$0xff] %v9991_v57  ;;  %v4617_v6 = vpack.c.bf16 %v9991_v57, %v9984_v43  ;;  %v4788_v2 = vmax.f32 %v4725_v46, 0.0  ;;  %v5088_v46 = vadd.f32 %v5056_v61, %v4959_v12  ;;  %v4958_v12 = vmul.f32 %v9948_v22, %v9765_v10 }
 0x60d   : > { %v5055_v61 = vmul.f32 %v9967_v48, %v9768_v44  ;;  %v5733_v63 = vmul.f32 %v9845_v9, %v10020_v47 }
 0x60e   : > { %4894 = vst.msk [vmem:[#allocation4 + $0xd0] sm:$0xff] %vm4809_vm6, %v4788_v2  ;;  %6607 = vmatmul.msk.bf16.gmra.mxu3 %vm4635_vm5, %v4617_v6  ;;  %v5637_v6 = vmul.f32 %v9840_v20, %v5604_v42  ;;  %v5831_v2 = vmax.f32 %v5799_v51, 0.0  ;;  %v5185_v25 = vadd.f32 %v5153_v1, %v5088_v46  ;;  %v5636_v51 = vmul.f32 %v9840_v20, %v10018_v16 }
 0x610   : > { %v5669_v14 = vadd.f32 %v5637_v6, %v5572_v3  ;;  %v5861_v50 = vpack.c.bf16 %v5832_v40, %v5831_v2  ;;  %v5282_v53 = vadd.f32 %v5250_v28, %v5185_v25  ;;  %v5668_v22 = vadd.f32 %v5636_v51, %v5571_v26 }
 0x611   : > { %v4598_v23 = vpop.f32.mrf.mxu2  ;;  %v4727_v31 = vpop.f32.mrf.mxu3  ;;  %v5087_v40 = vadd.f32 %v5055_v61, %v4958_v12  ;;  %v4961_v51 = vmul.f32 %v9994_v58, %v9765_v10 }
 0x612   : > { %v4728_v17 = vadd.f32 %v9664_v62, %v4727_v31  ;;  %v5734_v31 = vmul.f32 %v9845_v9, %v5701_v11  ;;  %v10041_v46 = vadd.f32 %v9473_v32, %v4598_v23  ;;  %v5765_v2 = vadd.f32 %v5733_v63, %v5668_v22 }
 0x613   : > { %v5184_v1 = vadd.f32 %v5152_v52, %v5087_v40  ;;  %v5379_v12 = vadd.f32 %v5347_v21, %v5282_v53  ;;  %v5058_v63 = vmul.f32 %v5604_v42, %v9768_v44  ;;  %v5346_v52 = vmul.f32 %v10018_v16, %v9823_v55 }
 0x614   : > { %v4789_v57 = vmax.f32 %v4728_v17, 0.0  ;;  %v5766_v3 = vadd.f32 %v5734_v31, %v5669_v14  ;;  %10988 = vst [vmem:[#allocation15_spill] sm:$0xff] %v10041_v46  ;;  %v5801_v31 = vadd.f32 %v9885_v18, %v5765_v2  ;;  %v5443_v53 = vmul.f32 %v10020_v47, %v9831_v59 }
 0x615   : > { %v10048_v28 = vld [vmem:[#allocation4 + $0xcf] sm:$0xff]  ;;  %v5090_v42 = vadd.f32 %v5058_v63, %v4961_v51 }
 0x616   : > { %4895 = vst.msk [vmem:[#allocation4 + $0xe8] sm:$0xff] %vm4809_vm6, %v4789_v57  ;;  %v5249_v57 = vmul.f32 %v10004_v41, %v9797_v4  ;;  %6627 = vmatmul.msk.bf16.gmra.mxu0 %vm4809_vm6, %v5861_v50  ;;  %v5802_v61 = vadd.f32 %v9885_v18, %v5766_v3  ;;  %v5444_v50 = vmul.f32 %v5701_v11, %v9831_v59  ;;  %v5606_v40 = vld [vmem:[#allocation4 + $0xd0] sm:$0xff]  ;;  %v5833_v21 = vmax.f32 %v5801_v31, 0.0 }
 0x617   : > { %v5542_v25 = vmul.f32 %v9837_v27, %v10048_v28 }
 0x618   : > { %v5281_v23 = vadd.f32 %v5249_v57, %v5184_v1  ;;  %v5476_v22 = vadd.f32 %v5444_v50, %v5379_v12  ;;  %v5834_v57 = vmax.f32 %v5802_v61, 0.0  ;;  %v5155_v12 = vmul.f32 %v5701_v11, %v9781_v0 }
 0x619   : > { %v4600_v17 = vpop.f32.mrf.mxu2  ;;  %v4729_v48 = vpop.f32.mrf.mxu3  ;;  %v4960_v61 = vmul.f32 %v10004_v41, %v9765_v10 }
 0x61a   : > { %v10044_v33 = vadd.f32 %v9473_v32, %v4600_v17  ;;  %v4730_v6 = vadd.f32 %v9664_v62, %v4729_v48  ;;  %v10056_v32 = vld [vmem:[#allocation4 + $0xc7] sm:$0xff]  ;;  %v5378_v17 = vadd.f32 %v5346_v52, %v5281_v23  ;;  %v5252_v23 = vmul.f32 %v10048_v28, %v9797_v4  ;;  %v5703_v52 = vld [vmem:[#allocation4 + $0xd1] sm:$0xff] }
 0x61b   : > { %v5541_v48 = vmul.f32 %v9837_v27, %v10056_v32  ;;  %v5862_v51 = vpack.c.bf16 %v5834_v57, %v5833_v21  ;;  %v5187_v31 = vadd.f32 %v5155_v12, %v5090_v42  ;;  %v5349_v42 = vmul.f32 %v5606_v40, %v9823_v55 }
 0x61c   : > { %10989 = vst [vmem:[#allocation22_spill] sm:$0xff] %v10044_v33  ;;  %v4618_v26 = vpack.c.bf16 %v10044_v33, %v10041_v46  ;;  %v4790_v14 = vmax.f32 %v4730_v6, 0.0  ;;  %v5574_v6 = vadd.f32 %v5542_v25, %v5476_v22  ;;  %v5475_v2 = vadd.f32 %v5443_v53, %v5378_v17  ;;  %v10072_v33 = vld [vmem:[#allocation4 + $0xc9] sm:$0xff] }
 0x61d   : > { %v5057_v25 = vmul.f32 %v10018_v16, %v9768_v44  ;;  %v5735_v11 = vmul.f32 %v9845_v9, %v10072_v33  ;;  %v5154_v22 = vmul.f32 %v10020_v47, %v9781_v0  ;;  %v5284_v17 = vadd.f32 %v5252_v23, %v5187_v31 }
 0x61e   : > { %4896 = vst.msk [vmem:[#allocation4 + $0xf0] sm:$0xff] %vm4809_vm6, %v4790_v14  ;;  %6608 = vmatmul.msk.bf16.gmra.mxu3 %vm4635_vm5, %v4618_v26  ;;  %v5605_v26 = vld [vmem:[#allocation4 + $0xc8] sm:$0xff]  ;;  %v5639_v14 = vmul.f32 %v9840_v20, %v5606_v40  ;;  %v5573_v50 = vadd.f32 %v5541_v48, %v5475_v2  ;;  %v5251_v16 = vmul.f32 %v10056_v32, %v9797_v4 }
 0x61f   : > { %v5638_v53 = vmul.f32 %v9840_v20, %v5605_v26  ;;  %v5446_v23 = vmul.f32 %v5703_v52, %v9831_v59 }
 0x620   : > { %v5671_v63 = vadd.f32 %v5639_v14, %v5574_v6  ;;  %v5381_v14 = vadd.f32 %v5349_v42, %v5284_v17 }
 0x621   : > { %v4732_v3 = vpop.f32.mrf.mxu3  ;;  %v5670_v41 = vadd.f32 %v5638_v53, %v5573_v50  ;;  %v5348_v53 = vmul.f32 %v5605_v26, %v9823_v55 }
 0x622   : > { %v4733_v58 = vadd.f32 %v9664_v62, %v4732_v3  ;;  %v5736_v3 = vmul.f32 %v9845_v9, %v5703_v52 }
 0x623   : > { %v5767_v21 = vadd.f32 %v5735_v11, %v5670_v41  ;;  %v5445_v11 = vmul.f32 %v10072_v33, %v9831_v59 }
 0x624   : > { %v4791_v1 = vmax.f32 %v4733_v58, 0.0  ;;  %v5089_v58 = vadd.f32 %v5057_v25, %v4960_v61  ;;  %v5768_v57 = vadd.f32 %v5736_v3, %v5671_v63  ;;  %v10096_v61 = vld [vmem:[#allocation4 + $0xe7] sm:$0xff]  ;;  %v5060_v63 = vmul.f32 %v5606_v40, %v9768_v44 }
 0x625   : > { %v5803_v31 = vadd.f32 %v9885_v18, %v5767_v21  ;;  %v5543_v41 = vmul.f32 %v9837_v27, %v10096_v61 }
 0x626   : > { %4897 = vst.msk [vmem:[#allocation4 + $0x108] sm:$0xff] %vm4809_vm6, %v4791_v1  ;;  %6628 = vmatmul.msk.bf16.gmra.mxu0 %vm4809_vm6, %v5862_v51  ;;  %v5186_v2 = vadd.f32 %v5154_v22, %v5089_v58  ;;  %v5511_v1 = vld [vmem:[#allocation4 + $0xef] sm:$0xff]  ;;  %v5804_v50 = vadd.f32 %v9885_v18, %v5768_v57  ;;  %v4963_v51 = vmul.f32 %v10048_v28, %v9765_v10 }
 0x627   : > { %v5544_v25 = vmul.f32 %v9837_v27, %v5511_v1  ;;  %v5478_v22 = vadd.f32 %v5446_v23, %v5381_v14  ;;  %v5835_v40 = vmax.f32 %v5803_v31, 0.0  ;;  %v5607_v14 = vld [vmem:[#allocation4 + $0xe8] sm:$0xff]  ;;  %v5705_v23 = vld [vmem:[#allocation4 + $0xf1] sm:$0xff] }
 0x628   : > { %v5283_v12 = vadd.f32 %v5251_v16, %v5186_v2  ;;  %v5836_v58 = vmax.f32 %v5804_v50, 0.0  ;;  %v5092_v57 = vadd.f32 %v5060_v63, %v4963_v51  ;;  %v5157_v2 = vmul.f32 %v5703_v52, %v9781_v0 }
 0x629   : > { %v4734_v48 = vpop.f32.mrf.mxu3  ;;  %v5576_v28 = vadd.f32 %v5544_v25, %v5478_v22  ;;  %v4962_v50 = vmul.f32 %v10056_v32, %v9765_v10  ;;  %v5156_v52 = vmul.f32 %v10072_v33, %v9781_v0 }
 0x62a   : > { %v4735_v6 = vadd.f32 %v9664_v62, %v4734_v48  ;;  %v5380_v17 = vadd.f32 %v5348_v53, %v5283_v12  ;;  %v5608_v48 = vld [vmem:[#allocation4 + $0xf0] sm:$0xff]  ;;  %v5059_v53 = vmul.f32 %v5605_v26, %v9768_v44  ;;  %v5863_v25 = vpack.c.bf16 %v5836_v58, %v5835_v40 }
 0x62b   : > { %v5641_v21 = vmul.f32 %v9840_v20, %v5608_v48  ;;  %v10112_v12 = vld [vmem:[#allocation4 + $0xe9] sm:$0xff]  ;;  %v5189_v31 = vadd.f32 %v5157_v2, %v5092_v57  ;;  %v5253_v26 = vmul.f32 %v10096_v61, %v9797_v4  ;;  %v5351_v33 = vmul.f32 %v5608_v48, %v9823_v55 }
 0x62c   : > { %v4792_v47 = vmax.f32 %v4735_v6, 0.0  ;;  %v5477_v6 = vadd.f32 %v5445_v11, %v5380_v17  ;;  %v5640_v11 = vmul.f32 %v9840_v20, %v5607_v14  ;;  %v5737_v22 = vmul.f32 %v9845_v9, %v10112_v12 }
 0x62d   : > { %v5673_v63 = vadd.f32 %v5641_v21, %v5576_v28 }
 0x62e   : > { %4898 = vst.msk [vmem:[#allocation4 + $0x110] sm:$0xff] %vm4809_vm6, %v4792_v47  ;;  %v5254_v47 = vmul.f32 %v5511_v1, %v9797_v4  ;;  %v5575_v51 = vadd.f32 %v5543_v41, %v5477_v6 }
 0x630   : > { %v5286_v17 = vadd.f32 %v5254_v47, %v5189_v31  ;;  %v5672_v41 = vadd.f32 %v5640_v11, %v5575_v51  ;;  %v4965_v47 = vmul.f32 %v5511_v1, %v9765_v10  ;;  %v10139_v31 = vld [vmem:[#allocation4 + $0x107] sm:$0xff]  ;;  %v5447_v1 = vmul.f32 %v10112_v12, %v9831_v59 }
 0x631   : > { %v4737_v3 = vpop.f32.mrf.mxu3 }
 0x632   : > { %v4738_v16 = vadd.f32 %v9664_v62, %v4737_v3  ;;  %v5738_v3 = vmul.f32 %v9845_v9, %v5705_v23  ;;  %v5769_v6 = vadd.f32 %v5737_v22, %v5672_v41  ;;  %v5383_v21 = vadd.f32 %v5351_v33, %v5286_v17 }
 0x634   : > { %v4793_v42 = vmax.f32 %v4738_v16, 0.0  ;;  %v5091_v16 = vadd.f32 %v5059_v53, %v4962_v50  ;;  %v5770_v58 = vadd.f32 %v5738_v3, %v5673_v63  ;;  %v5062_v50 = vmul.f32 %v5608_v48, %v9768_v44 }
 0x635   : > { %v10129_v40 = vld [vmem:[#allocation4 + $0x10f] sm:$0xff]  ;;  %v5350_v63 = vmul.f32 %v5607_v14, %v9823_v55 }
 0x636   : > { %4899 = vst.msk [vmem:[#allocation4 + $0x128] sm:$0xff] %vm4809_vm6, %v4793_v42  ;;  %6629 = vmatmul.msk.bf16.gmra.mxu0 %vm4809_vm6, %v5863_v25  ;;  %v5188_v57 = vadd.f32 %v5156_v52, %v5091_v16  ;;  %v5806_v53 = vadd.f32 %v9885_v18, %v5770_v58  ;;  %v5448_v25 = vmul.f32 %v5705_v23, %v9831_v59  ;;  %v5610_v3 = vld [vmem:[#allocation4 + $0x110] sm:$0xff] }
 0x637   : > { %v5546_v51 = vmul.f32 %v9837_v27, %v10129_v40  ;;  %v5805_v52 = vadd.f32 %v9885_v18, %v5769_v6  ;;  %v5094_v17 = vadd.f32 %v5062_v50, %v4965_v47  ;;  %v5159_v58 = vmul.f32 %v5705_v23, %v9781_v0  ;;  %v5707_v47 = vld [vmem:[#allocation4 + $0x111] sm:$0xff] }
 0x638   : > { %v5285_v2 = vadd.f32 %v5253_v26, %v5188_v57  ;;  %v5480_v11 = vadd.f32 %v5448_v25, %v5383_v21  ;;  %v5545_v26 = vmul.f32 %v9837_v27, %v10139_v31  ;;  %v5609_v21 = vld [vmem:[#allocation4 + $0x108] sm:$0xff]  ;;  %v5061_v50 = vmul.f32 %v5607_v14, %v9768_v44 }
 0x639   : > { %v4739_v32 = vpop.f32.mrf.mxu3  ;;  %v5837_v33 = vmax.f32 %v5805_v52, 0.0  ;;  %v5255_v14 = vmul.f32 %v10139_v31, %v9797_v4 }
 0x63a   : > { %v4740_v28 = vadd.f32 %v9664_v62, %v4739_v32  ;;  %v5382_v22 = vadd.f32 %v5350_v63, %v5285_v2  ;;  %v5838_v32 = vmax.f32 %v5806_v53, 0.0  ;;  %v5578_v41 = vadd.f32 %v5546_v51, %v5480_v11  ;;  %v10151_v2 = vld [vmem:[#allocation4 + $0x109] sm:$0xff] }
 0x63b   : > { %v5191_v53 = vadd.f32 %v5159_v58, %v5094_v17  ;;  %v5158_v63 = vmul.f32 %v10112_v12, %v9781_v0  ;;  %v5739_v11 = vmul.f32 %v9845_v9, %v10151_v2  ;;  %v5353_v17 = vmul.f32 %v5610_v3, %v9823_v55  ;;  %v10170_v12 = vld [vmem:[%s10704_s18] ss:$0 sm:$0xff] }
 0x63c   : > { %v4794_v42 = vmax.f32 %v4740_v28, 0.0  ;;  %v5256_v28 = vmul.f32 %v10129_v40, %v9797_v4  ;;  %v5479_v6 = vadd.f32 %v5447_v1, %v5382_v22  ;;  %v5864_v25 = vpack.c.bf16 %v5838_v32, %v5837_v33 }
 0x63d   : > { %v5642_v1 = vmul.f32 %v9840_v20, %v5609_v21 }
 0x63e   : > { %4900 = vst.msk [vmem:[#allocation4 + $0x130] sm:$0xff] %vm4809_vm6, %v4794_v42  ;;  %v5643_v42 = vmul.f32 %v9840_v20, %v5610_v3  ;;  %v5577_v23 = vadd.f32 %v5545_v26, %v5479_v6  ;;  %v5288_v52 = vadd.f32 %v5256_v28, %v5191_v53  ;;  %v10180_v53 = vld [vmem:[#allocation4 + $0x127] sm:$0xff] }
 0x640   : > { %v5675_v51 = vadd.f32 %v5643_v42, %v5578_v41  ;;  %v5674_v32 = vadd.f32 %v5642_v1, %v5577_v23  ;;  %v5385_v28 = vadd.f32 %v5353_v17, %v5288_v52  ;;  %v5450_v42 = vmul.f32 %v5707_v47, %v9831_v59 }
 0x641   : > { %v4742_v48 = vpop.f32.mrf.mxu3  ;;  %v5064_v23 = vmul.f32 %v5610_v3, %v9768_v44 }
 0x642   : > { %v4743_v16 = vadd.f32 %v9664_v62, %v4742_v48  ;;  %v4964_v62 = vmul.f32 %v10096_v61, %v9765_v10  ;;  %v5740_v48 = vmul.f32 %v9845_v9, %v5707_v47  ;;  %v5771_v33 = vadd.f32 %v5739_v11, %v5674_v32 }
 0x643   : > { %v5482_v52 = vadd.f32 %v5450_v42, %v5385_v28  ;;  %v5161_v42 = vmul.f32 %v5707_v47, %v9781_v0 }
 0x644   : > { %v4795_v57 = vmax.f32 %v4743_v16, 0.0  ;;  %v5093_v22 = vadd.f32 %v5061_v50, %v4964_v62  ;;  %v5772_v16 = vadd.f32 %v5740_v48, %v5675_v51  ;;  %v5352_v51 = vmul.f32 %v5609_v21, %v9823_v55 }
 0x645   : > { %v10173_v41 = vld [vmem:[#allocation4 + $0x12f] sm:$0xff]  ;;  %v5807_v1 = vadd.f32 %v9885_v18, %v5771_v33 }
 0x646   : > { %4901 = vst.msk [vmem:[#allocation4 + $0x148] sm:$0xff] %vm4809_vm6, %v4795_v57  ;;  %6630 = vmatmul.msk.bf16.gmra.mxu0 %vm4809_vm6, %v5864_v25  ;;  %v5190_v58 = vadd.f32 %v5158_v63, %v5093_v22  ;;  %v5548_v62 = vmul.f32 %v9837_v27, %v10173_v41  ;;  %v5808_v50 = vadd.f32 %v9885_v18, %v5772_v16  ;;  %v5612_v11 = vld [vmem:[#allocation4 + $0x130] sm:$0xff] }
 0x647   : > { %v4967_v25 = vmul.f32 %v10129_v40, %v9765_v10  ;;  %v5449_v63 = vmul.f32 %v10151_v2, %v9831_v59  ;;  %v5547_v22 = vmul.f32 %v9837_v27, %v10180_v53  ;;  %v5645_v16 = vmul.f32 %v9840_v20, %v5612_v11  ;;  %v10193_v28 = vld [vmem:[#allocation4 + $0x129] sm:$0xff]  ;;  %v5709_v33 = vld [vmem:[#allocation4 + $0x131] sm:$0xff] }
 0x648   : > { %v5287_v6 = vadd.f32 %v5255_v14, %v5190_v58  ;;  %v5580_v14 = vadd.f32 %v5548_v62, %v5482_v52  ;;  %v5840_v17 = vmax.f32 %v5808_v50, 0.0  ;;  %v4966_v50 = vmul.f32 %v10139_v31, %v9765_v10 }
 0x649   : > { %v4744_v61 = vpop.f32.mrf.mxu3  ;;  %v5096_v32 = vadd.f32 %v5064_v23, %v4967_v25  ;;  %v5063_v25 = vmul.f32 %v5609_v21, %v9768_v44  ;;  %v5742_v47 = vmul.f32 %v9845_v9, %v5709_v33  ;;  %v5257_v21 = vmul.f32 %v10180_v53, %v9797_v4 }
 0x64a   : > { %v4745_v26 = vadd.f32 %v10170_v12, %v4744_v61  ;;  %v5384_v61 = vadd.f32 %v5352_v51, %v5287_v6  ;;  %v5258_v6 = vmul.f32 %v10173_v41, %v9797_v4  ;;  %v5677_v62 = vadd.f32 %v5645_v16, %v5580_v14 }
 0x64c   : > { %v4796_v57 = vmax.f32 %v4745_v26, 0.0  ;;  %v5481_v3 = vadd.f32 %v5449_v63, %v5384_v61  ;;  %v5839_v26 = vmax.f32 %v5807_v1, 0.0  ;;  %v5193_v63 = vadd.f32 %v5161_v42, %v5096_v32 }
 0x64d   : > { %v5741_v1 = vmul.f32 %v9845_v9, %v10193_v28  ;;  %v5774_v14 = vadd.f32 %v5742_v47, %v5677_v62  ;;  %v5355_v32 = vmul.f32 %v5612_v11, %v9823_v55 }
 0x64e   : > { %4902 = vst.msk [vmem:[#allocation4 + $0x150] sm:$0xff] %vm4809_vm6, %v4796_v57  ;;  %v5611_v57 = vld [vmem:[#allocation4 + $0x128] sm:$0xff]  ;;  %v5579_v51 = vadd.f32 %v5547_v22, %v5481_v3  ;;  %v5865_v23 = vpack.c.bf16 %v5840_v17, %v5839_v26  ;;  %v5290_v61 = vadd.f32 %v5258_v6, %v5193_v63 }
 0x64f   : > { %v5644_v52 = vmul.f32 %v9840_v20, %v5611_v57  ;;  %v5354_v63 = vmul.f32 %v5611_v57, %v9823_v55 }
 0x650   : > { %v5387_v42 = vadd.f32 %v5355_v32, %v5290_v61 }
 0x651   : > { %v4747_v48 = vpop.f32.mrf.mxu3  ;;  %v5676_v22 = vadd.f32 %v5644_v52, %v5579_v51  ;;  %v5452_v51 = vmul.f32 %v5709_v33, %v9831_v59  ;;  %v5451_v52 = vmul.f32 %v10193_v28, %v9831_v59 }
 0x652   : > { %v4748_v40 = vadd.f32 %v10170_v12, %v4747_v48  ;;  %v5160_v48 = vmul.f32 %v10151_v2, %v9781_v0  ;;  %v5810_v2 = vadd.f32 %v9885_v18, %v5774_v14 }
 0x653   : > { %v5773_v3 = vadd.f32 %v5741_v1, %v5676_v22  ;;  %v10224_v1 = vld [vmem:[#allocation4 + $0x147] sm:$0xff]  ;;  %v5484_v47 = vadd.f32 %v5452_v51, %v5387_v42  ;;  %v4968_v51 = vmul.f32 %v10180_v53, %v9765_v10 }
 0x654   : > { %v4797_v58 = vmax.f32 %v4748_v40, 0.0  ;;  %v5095_v40 = vadd.f32 %v5063_v25, %v4966_v50  ;;  %v4969_v50 = vmul.f32 %v10173_v41, %v9765_v10  ;;  %v5066_v25 = vmul.f32 %v5612_v11, %v9768_v44  ;;  %v10232_v42 = vld [vmem:[#allocation4 + $0x148] sm:$0xff] }
 0x655   : > { %v5517_v26 = vld [vmem:[#allocation4 + $0x14f] sm:$0xff]  ;;  %v5549_v41 = vmul.f32 %v9837_v27, %v10224_v1 }
 0x656   : > { %4903 = vst.msk [vmem:[#allocation4 + $0x168] sm:$0xff] %vm4809_vm6, %v4797_v58  ;;  %6631 = vmatmul.msk.bf16.gmra.mxu0 %vm4809_vm6, %v5865_v23  ;;  %v5192_v16 = vadd.f32 %v5160_v48, %v5095_v40  ;;  %v5550_v62 = vmul.f32 %v9837_v27, %v5517_v26  ;;  %v5809_v23 = vadd.f32 %v9885_v18, %v5773_v3  ;;  %v5842_v48 = vmax.f32 %v5810_v2, 0.0  ;;  %v5614_v14 = vld [vmem:[#allocation4 + $0x150] sm:$0xff] }
 0x657   : > { %v5098_v40 = vadd.f32 %v5066_v25, %v4969_v50  ;;  %v5647_v3 = vmul.f32 %v9840_v20, %v5614_v14  ;;  %v10234_v2 = vld [vmem:[#allocation4 + $0x149] sm:$0xff] }
 0x658   : > { %v5289_v6 = vadd.f32 %v5257_v21, %v5192_v16  ;;  %v5582_v11 = vadd.f32 %v5550_v62, %v5484_v47  ;;  %v5841_v21 = vmax.f32 %v5809_v23, 0.0  ;;  %v5163_v16 = vmul.f32 %v5709_v33, %v9781_v0 }
 0x659   : > { %v4749_v31 = vpop.f32.mrf.mxu3  ;;  %v5065_v62 = vmul.f32 %v5611_v57, %v9768_v44  ;;  %v5162_v33 = vmul.f32 %v10193_v28, %v9781_v0  ;;  %v5743_v47 = vmul.f32 %v9845_v9, %v10234_v2 }
 0x65a   : > { %v4750_v17 = vadd.f32 %v10170_v12, %v4749_v31  ;;  %v5386_v22 = vadd.f32 %v5354_v63, %v5289_v6  ;;  %v5711_v6 = vld [vmem:[#allocation4 + $0x151] sm:$0xff]  ;;  %v5866_v50 = vpack.c.bf16 %v5842_v48, %v5841_v21  ;;  %v5679_v23 = vadd.f32 %v5647_v3, %v5582_v11  ;;  %v6160_v3 = vld [vmem:[%s10709_s23 + $0x8] sm:$0xf] }
 0x65b   : > { %v5195_v63 = vadd.f32 %v5163_v16, %v5098_v40  ;;  %v5097_v57 = vadd.f32 %v5065_v62, %v4968_v51  ;;  %v5259_v48 = vmul.f32 %v10224_v1, %v9797_v4  ;;  %v5357_v11 = vmul.f32 %v5614_v14, %v9823_v55 }
 0x65c   : > { %v4798_v58 = vmax.f32 %v4750_v17, 0.0  ;;  %v5483_v17 = vadd.f32 %v5451_v52, %v5386_v22  ;;  %v5646_v52 = vmul.f32 %v9840_v20, %v10232_v42  ;;  %v5068_v51 = vmul.f32 %v5614_v14, %v9768_v44 }
 0x65d   : > { %v5194_v40 = vadd.f32 %v5162_v33, %v5097_v57  ;;  %v5356_v33 = vmul.f32 %v10232_v42, %v9823_v55 }
 0x65e   : > { %4904 = vst.msk [vmem:[#allocation4 + $0x170] sm:$0xff] %vm4809_vm6, %v4798_v58  ;;  %v5260_v58 = vmul.f32 %v5517_v26, %v9797_v4  ;;  %v5581_v25 = vadd.f32 %v5549_v41, %v5483_v17 }
 0x65f   : > { %v5291_v16 = vadd.f32 %v5259_v48, %v5194_v40 }
 0x660   : > { %v5292_v53 = vadd.f32 %v5260_v58, %v5195_v63  ;;  %v4971_v58 = vmul.f32 %v5517_v26, %v9765_v10  ;;  %v5453_v26 = vmul.f32 %v10234_v2, %v9831_v59 }
 0x661   : > { %v4752_v61 = vpop.f32.mrf.mxu3 }
 0x662   : > { %v4753_v31 = vadd.f32 %v10170_v12, %v4752_v61  ;;  %v5744_v61 = vmul.f32 %v9845_v9, %v5711_v6  ;;  %v5389_v9 = vadd.f32 %v5357_v11, %v5292_v53  ;;  %v5388_v53 = vadd.f32 %v5356_v33, %v5291_v16 }
 0x663   : > { %v5100_v48 = vadd.f32 %v5068_v51, %v4971_v58 }
 0x664   : > { %v4799_v32 = vmax.f32 %v4753_v31, 0.0  ;;  %v5678_v31 = vadd.f32 %v5646_v52, %v5581_v25  ;;  %v5776_v41 = vadd.f32 %v5744_v61, %v5679_v23  ;;  %v5454_v25 = vmul.f32 %v5711_v6, %v9831_v59  ;;  %v10262_v23 = vld [vmem:[#allocation4 + $0x167] sm:$0xff] }
 0x665   : > { %v10252_v21 = vld [vmem:[#allocation4 + $0x16f] sm:$0xff]  ;;  %v5485_v40 = vadd.f32 %v5453_v26, %v5388_v53  ;;  %v10291_v26 = vld [vmem:[%s10708_s22] ss:$0 sm:$0xff] }
 0x666   : > { %4905 = vst.msk [vmem:[#allocation4 + $0x188] sm:$0xff] %vm4809_vm6, %v4799_v32  ;;  %6632 = vmatmul.msk.bf16.gmra.mxu0 %vm4809_vm6, %v5866_v50  ;;  %v5775_v17 = vadd.f32 %v5743_v47, %v5678_v31  ;;  %v5812_v62 = vadd.f32 %v9885_v18, %v5776_v41  ;;  %v6167_v50 = vunpack.c.l.b16 %v6160_v3  ;;  %v5552_v63 = vmul.f32 %v9837_v27, %v10252_v21  ;;  %v5616_v57 = vld [vmem:[#allocation4 + $0x170] sm:$0xff] }
 0x667   : > { %v5486_v47 = vadd.f32 %v5454_v25, %v5389_v9  ;;  %v10276_v9 = vld [vmem:[#allocation4 + $0x168] sm:$0xff]  ;;  %v5649_v3 = vmul.f32 %v9840_v20, %v5616_v57  ;;  %v5262_v58 = vmul.f32 %v10252_v21, %v9797_v4  ;;  %v5067_v25 = vmul.f32 %v10232_v42, %v9768_v44 }
 0x668   : > { %v5811_v14 = vadd.f32 %v9885_v18, %v5775_v17  ;;  %v6169_v52 = vpack.c.b16 %v6167_v50, %v6167_v50  ;;  %v5844_v31 = vmax.f32 %v5812_v62, 0.0  ;;  %v10279_v16 = vld [vmem:[#allocation4 + $0x169] sm:$0xff]  ;;  %v5713_v62 = vld [vmem:[#allocation4 + $0x171] sm:$0xff]  ;;  %v4970_v50 = vmul.f32 %v10224_v1, %v9765_v10  ;;  %v10298_v1 = vld [vmem:[%s10705_s19 + $0x8] ss:$0 sm:$0xff] }
 0x669   : > { %v4754_v22 = vpop.f32.mrf.mxu3  ;;  %v5584_v11 = vadd.f32 %v5552_v63, %v5486_v47  ;;  %v5745_v42 = vmul.f32 %v10298_v1, %v10279_v16  ;;  %v5164_v47 = vmul.f32 %v10234_v2, %v9781_v0 }
 0x66a   : > { %v4755_v28 = vadd.f32 %v10170_v12, %v4754_v22  ;;  %v5551_v22 = vmul.f32 %v9837_v27, %v10262_v23  ;;  %v5843_v18 = vmax.f32 %v5811_v14, 0.0 }
 0x66b   : > { %v5681_v63 = vadd.f32 %v5649_v3, %v5584_v11 }
 0x66c   : > { %v4800_v32 = vmax.f32 %v4755_v28, 0.0  ;;  %v6175_v28 = vsel %vm4684_vm4, %v6169_v52, 0  ;;  %v5583_v51 = vadd.f32 %v5551_v22, %v5485_v40  ;;  %v5648_v52 = vmul.f32 %v9840_v20, %v10276_v9 }
 0x66d   : > { %6183 = vmatpush.bf16.msrb.mxu1 %v6175_v28  ;;  %v5359_v40 = vmul.f32 %v5616_v57, %v9823_v55 }
 0x66e   : > { %4906 = vst.msk [vmem:[#allocation4 + $0x190] sm:$0xff] %vm4809_vm6, %v4800_v32  ;;  %v5165_v32 = vmul.f32 %v5711_v6, %v9781_v0  ;;  %v5867_v6 = vpack.c.bf16 %v5844_v31, %v5843_v18  ;;  %v5680_v22 = vadd.f32 %v5648_v52, %v5583_v51  ;;  %v5099_v31 = vadd.f32 %v5067_v25, %v4970_v50 }
 0x66f   : > { %v4973_v50 = vmul.f32 %v10252_v21, %v9765_v10  ;;  %v5070_v25 = vmul.f32 %v5616_v57, %v9768_v44 }
 0x670   : > { %v5197_v33 = vadd.f32 %v5165_v32, %v5100_v48  ;;  %v5777_v18 = vadd.f32 %v5745_v42, %v5680_v22  ;;  %v5196_v2 = vadd.f32 %v5164_v47, %v5099_v31  ;;  %v5358_v47 = vmul.f32 %v10276_v9, %v9823_v55 }
 0x671   : > { %v4757_v61 = vpop.f32.mrf.mxu3 }
 0x672   : > { %v4758_v41 = vadd.f32 %v10170_v12, %v4757_v61  ;;  %v5746_v61 = vmul.f32 %v10298_v1, %v5713_v62  ;;  %v5294_v53 = vadd.f32 %v5262_v58, %v5197_v33  ;;  %v5456_v33 = vmul.f32 %v5713_v62, %v9831_v59 }
 0x673   : > { %v5975_v14 = vpop.f32.mrf.mxu0 }
 0x674   : > { %v4801_v17 = vmax.f32 %v4758_v41, 0.0  ;;  %v5261_v41 = vmul.f32 %v10262_v23, %v9797_v4  ;;  %v5778_v28 = vadd.f32 %v5746_v61, %v5681_v63  ;;  %v5976_v32 = vadd.f32 %v10291_v26, %v5975_v14  ;;  %v10324_v14 = vld [vmem:[#allocation4 + $0x187] sm:$0xff] }
 0x675   : > { %v5391_v58 = vadd.f32 %v5359_v40, %v5294_v53  ;;  %v5455_v61 = vmul.f32 %v10279_v16, %v9831_v59 }
 0x676   : > { %4907 = vst.msk [vmem:[#allocation4 + $0x1a8] sm:$0xff] %vm4809_vm6, %v4801_v17  ;;  %6633 = vmatmul.msk.bf16.gmra.mxu0 %vm4809_vm6, %v5867_v6  ;;  %v10311_v17 = vld [vmem:[#allocation4 + $0x18f] sm:$0xff]  ;;  %v5293_v51 = vadd.f32 %v5261_v41, %v5196_v2  ;;  %v10319_v6 = vld [vmem:[%s10706_s20] ss:$0 sm:$0xff]  ;;  %v6055_v21 = vadd.f32 %v5976_v32, %v9482_v38  ;;  %v5553_v41 = vmul.f32 %v9837_v27, %v10324_v14 }
 0x677   : > { %v5814_v63 = vadd.f32 %v10319_v6, %v5778_v28  ;;  %v5554_v52 = vmul.f32 %v9837_v27, %v10311_v17  ;;  %v5813_v57 = vadd.f32 %v10319_v6, %v5777_v18  ;;  %v5488_v22 = vadd.f32 %v5456_v33, %v5391_v58  ;;  %v5618_v28 = vld [vmem:[#allocation4 + $0x190] sm:$0xff]  ;;  %v10342_v33 = vld [vmem:[#allocation4 + $0x188] sm:$0xff] }
 0x678   : > { %v5390_v31 = vadd.f32 %v5358_v47, %v5293_v51  ;;  %v6087_v2 = vsel %vm4635_vm5, %v6055_v21, 0.0  ;;  %v5651_v47 = vmul.f32 %v9840_v20, %v5618_v28  ;;  %v4972_v21 = vmul.f32 %v10262_v23, %v9765_v10 }
 0x679   : > { %v4759_v48 = vpop.f32.mrf.mxu3  ;;  %v5846_v40 = vmax.f32 %v5814_v63, 0.0  ;;  %v5586_v18 = vadd.f32 %v5554_v52, %v5488_v22  ;;  %v5715_v52 = vld [vmem:[#allocation4 + $0x191] sm:$0xff] }
 0x67a   : > { %v4760_v11 = vadd.f32 %v10170_v12, %v4759_v48  ;;  %v5487_v46 = vadd.f32 %v5455_v61, %v5390_v31 }
 0x67b   : > { %v5977_v42 = vpop.f32.mrf.mxu0  ;;  %v5683_v61 = vadd.f32 %v5651_v47, %v5586_v18 }
 0x67c   : > { %v4802_v3 = vmax.f32 %v4760_v11, 0.0  ;;  %v5978_v53 = vadd.f32 %v10291_v26, %v5977_v42  ;;  %v5102_v11 = vadd.f32 %v5070_v25, %v4973_v50  ;;  %v5167_v42 = vmul.f32 %v5713_v62, %v9781_v0  ;;  %v10345_v50 = vld [vmem:[#allocation4 + $0x189] sm:$0xff] }
 0x67d   : > { %v5585_v63 = vadd.f32 %v5553_v41, %v5487_v46  ;;  %v5069_v62 = vmul.f32 %v10276_v9, %v9768_v44  ;;  %v5747_v31 = vmul.f32 %v10298_v1, %v10345_v50  ;;  %v5166_v46 = vmul.f32 %v10279_v16, %v9781_v0 }
 0x67e   : > { %4908 = vst.msk [vmem:[#allocation4 + $0x1b0] sm:$0xff] %vm4809_vm6, %v4802_v3  ;;  %v6056_v38 = vadd.f32 %v5978_v53, %v9485_v19  ;;  %v5845_v3 = vmax.f32 %v5813_v57, 0.0  ;;  %v5264_v19 = vmul.f32 %v10311_v17, %v9797_v4  ;;  %v5199_v53 = vadd.f32 %v5167_v42, %v5102_v11 }
 0x67f   : > { %v5748_v41 = vmul.f32 %v10298_v1, %v5715_v52  ;;  %v5263_v11 = vmul.f32 %v10324_v14, %v9797_v4  ;;  %v5361_v16 = vmul.f32 %v5618_v28, %v9823_v55 }
 0x680   : > { %v6088_v58 = vsel %vm4635_vm5, %v6056_v38, 0.0  ;;  %v5868_v57 = vpack.c.bf16 %v5846_v40, %v5845_v3  ;;  %v5296_v9 = vadd.f32 %v5264_v19, %v5199_v53  ;;  %v5458_v53 = vmul.f32 %v5715_v52, %v9831_v59 }
 0x681   : > { %v4762_v48 = vpop.f32.mrf.mxu3  ;;  %v6089_v25 = vadd.f32 %v6088_v58, %v6087_v2  ;;  %v5780_v2 = vadd.f32 %v5748_v41, %v5683_v61 }
 0x682   : > { %v4763_v32 = vadd.f32 %v10170_v12, %v4762_v48  ;;  %v5650_v48 = vmul.f32 %v9840_v20, %v10342_v33 }
 0x683   : > { %v5980_v22 = vpop.f32.mrf.mxu0  ;;  %v5816_v61 = vadd.f32 %v10319_v6, %v5780_v2 }
 0x684   : > { %v4803_v51 = vmax.f32 %v4763_v32, 0.0  ;;  %v5981_v23 = vadd.f32 %v10291_v26, %v5980_v22  ;;  %v5682_v38 = vadd.f32 %v5650_v48, %v5585_v63  ;;  %v5101_v32 = vadd.f32 %v5069_v62, %v4972_v21  ;;  %v10377_v22 = vld [vmem:[#allocation4 + $0x1a7] sm:$0xff] }
 0x685   : > { %v5393_v63 = vadd.f32 %v5361_v16, %v5296_v9 }
 0x686   : > { %4909 = vst.msk [vmem:[#allocation4 + $0x1c8] sm:$0xff] %vm4809_vm6, %v4803_v51  ;;  %v6057_v18 = vadd.f32 %v5981_v23, %v9501_v8  ;;  %6634 = vmatmul.msk.bf16.gmra.mxu0 %vm4809_vm6, %v5868_v57  ;;  %v5779_v42 = vadd.f32 %v5747_v31, %v5682_v38  ;;  %v5198_v58 = vadd.f32 %v5166_v46, %v5101_v32  ;;  %v10368_v51 = vld [vmem:[#allocation4 + $0x1af] sm:$0xff] }
 0x687   : > { %v4975_v8 = vmul.f32 %v10311_v17, %v9765_v10  ;;  %v5072_v57 = vmul.f32 %v5618_v28, %v9768_v44  ;;  %v5556_v48 = vmul.f32 %v9837_v27, %v10368_v51  ;;  %v5360_v46 = vmul.f32 %v10342_v33, %v9823_v55 }
 0x688   : > { %v6090_v47 = vsel %vm4635_vm5, %v6057_v18, 0.0  ;;  %v5295_v62 = vadd.f32 %v5263_v11, %v5198_v58  ;;  %v5457_v17 = vmul.f32 %v10345_v50, %v9831_v59  ;;  %v5490_v23 = vadd.f32 %v5458_v53, %v5393_v63  ;;  %v10393_v63 = vld [vmem:[#allocation4 + $0x1a8] sm:$0xff] }
 0x689   : > { %v4764_v40 = vpop.f32.mrf.mxu3  ;;  %v6091_v21 = vadd.f32 %v6090_v47, %v6089_v25  ;;  %v5815_v25 = vadd.f32 %v10319_v6, %v5779_v42  ;;  %v5555_v38 = vmul.f32 %v9837_v27, %v10377_v22  ;;  %v5104_v32 = vadd.f32 %v5072_v57, %v4975_v8  ;;  %v10396_v53 = vld [vmem:[#allocation4 + $0x1a9] sm:$0xff] }
 0x68a   : > { %v4765_v3 = vadd.f32 %v10170_v12, %v4764_v40  ;;  %v5392_v9 = vadd.f32 %v5360_v46, %v5295_v62  ;;  %v5620_v40 = vld [vmem:[#allocation4 + $0x1b0] sm:$0xff]  ;;  %v5848_v18 = vmax.f32 %v5816_v61, 0.0  ;;  %v5169_v58 = vmul.f32 %v5715_v52, %v9781_v0 }
 0x68b   : > { %v5982_v31 = vpop.f32.mrf.mxu0  ;;  %v5847_v16 = vmax.f32 %v5815_v25, 0.0  ;;  %v5653_v62 = vmul.f32 %v9840_v20, %v5620_v40  ;;  %v5717_v61 = vld [vmem:[#allocation4 + $0x1b1] sm:$0xff]  ;;  %v5071_v52 = vmul.f32 %v10342_v33, %v9768_v44 }
 0x68c   : > { %v4804_v19 = vmax.f32 %v4765_v3, 0.0  ;;  %v5983_v28 = vadd.f32 %v10291_v26, %v5982_v31  ;;  %v5588_v3 = vadd.f32 %v5556_v48, %v5490_v23  ;;  %v5489_v42 = vadd.f32 %v5457_v17, %v5392_v9 }
 0x68d   : > { %v4974_v48 = vmul.f32 %v10324_v14, %v9765_v10  ;;  %v5869_v31 = vpack.c.bf16 %v5848_v18, %v5847_v16  ;;  %v5201_v46 = vadd.f32 %v5169_v58, %v5104_v32  ;;  %v5168_v23 = vmul.f32 %v10345_v50, %v9781_v0 }
 0x68e   : > { %4910 = vst.msk [vmem:[#allocation4 + $0x1d0] sm:$0xff] %vm4809_vm6, %v4804_v19  ;;  %v6058_v11 = vadd.f32 %v5983_v28, %v9504_v36  ;;  %v5266_v36 = vmul.f32 %v10368_v51, %v9797_v4  ;;  %v5587_v57 = vadd.f32 %v5555_v38, %v5489_v42  ;;  %v5685_v25 = vadd.f32 %v5653_v62, %v5588_v3 }
 0x68f   : > { %v5652_v28 = vmul.f32 %v9840_v20, %v10393_v63  ;;  %v5265_v32 = vmul.f32 %v10377_v22, %v9797_v4  ;;  %v5363_v50 = vmul.f32 %v5620_v40, %v9823_v55 }
 0x690   : > { %v6092_v47 = vsel %vm4635_vm5, %v6058_v11, 0.0  ;;  %v5298_v33 = vadd.f32 %v5266_v36, %v5201_v46  ;;  %v5103_v11 = vadd.f32 %v5071_v52, %v4974_v48  ;;  %v5074_v48 = vmul.f32 %v5620_v40, %v9768_v44 }
 0x691   : > { %v4767_v41 = vpop.f32.mrf.mxu3  ;;  %v6093_v8 = vadd.f32 %v6092_v47, %v6091_v21  ;;  %v5749_v21 = vmul.f32 %v10298_v1, %v10396_v53  ;;  %v5684_v9 = vadd.f32 %v5652_v28, %v5587_v57  ;;  %v5362_v28 = vmul.f32 %v10393_v63, %v9823_v55 }
 0x692   : > { %v4768_v2 = vadd.f32 %v10170_v12, %v4767_v41  ;;  %v5750_v41 = vmul.f32 %v10298_v1, %v5717_v61  ;;  %v5200_v42 = vadd.f32 %v5168_v23, %v5103_v11  ;;  %v5395_v62 = vadd.f32 %v5363_v50, %v5298_v33 }
 0x693   : > { %v5985_v17 = vpop.f32.mrf.mxu0  ;;  %v5781_v16 = vadd.f32 %v5749_v21, %v5684_v9  ;;  %v5171_v50 = vmul.f32 %v5717_v61, %v9781_v0 }
 0x694   : > { %v4805_v19 = vmax.f32 %v4768_v2, 0.0  ;;  %v5986_v14 = vadd.f32 %v10291_v26, %v5985_v17  ;;  %v5782_v2 = vadd.f32 %v5750_v41, %v5685_v25  ;;  %v5297_v57 = vadd.f32 %v5265_v32, %v5200_v42  ;;  %v10428_v25 = vld [vmem:[#allocation4 + $0x1c7] sm:$0xff] }
 0x695   : > { %v10419_v58 = vld [vmem:[#allocation4 + $0x1cf] sm:$0xff]  ;;  %v5557_v41 = vmul.f32 %v9837_v27, %v10428_v25 }
 0x696   : > { %4911 = vst.msk [vmem:[#allocation4 + $0x1e8] sm:$0xff] %vm4809_vm6, %v4805_v19  ;;  %v6059_v18 = vadd.f32 %v5986_v14, %v9517_v30  ;;  %6635 = vmatmul.msk.bf16.gmra.mxu0 %vm4809_vm6, %v5869_v31  ;;  %v4977_v30 = vmul.f32 %v10368_v51, %v9765_v10  ;;  %v5818_v52 = vadd.f32 %v10319_v6, %v5782_v2  ;;  %v5622_v33 = vld [vmem:[#allocation4 + $0x1d0] sm:$0xff] }
 0x697   : > { %v5460_v31 = vmul.f32 %v5717_v61, %v9831_v59  ;;  %v5558_v46 = vmul.f32 %v9837_v27, %v10419_v58  ;;  %v5459_v51 = vmul.f32 %v10396_v53, %v9831_v59  ;;  %v5394_v14 = vadd.f32 %v5362_v28, %v5297_v57 }
 0x698   : > { %v6094_v47 = vsel %vm4635_vm5, %v6059_v18, 0.0  ;;  %v5106_v9 = vadd.f32 %v5074_v48, %v4977_v30  ;;  %v5850_v11 = vmax.f32 %v5818_v52, 0.0  ;;  %v10449_v30 = vld [vmem:[#allocation4 + $0x1c9] sm:$0xff]  ;;  %v5719_v48 = vld [vmem:[#allocation4 + $0x1d1] sm:$0xff]  ;;  %v4976_v52 = vmul.f32 %v10377_v22, %v9765_v10 }
 0x699   : > { %v4769_v38 = vpop.f32.mrf.mxu3  ;;  %v6095_v36 = vadd.f32 %v6094_v47, %v6093_v8  ;;  %v5817_v8 = vadd.f32 %v10319_v6, %v5781_v16  ;;  %v5492_v21 = vadd.f32 %v5460_v31, %v5395_v62  ;;  %v10444_v47 = vld [vmem:[#allocation4 + $0x1c8] sm:$0xff]  ;;  %v5268_v62 = vmul.f32 %v10419_v58, %v9797_v4 }
 0x69a   : > { %v4770_v3 = vadd.f32 %v10170_v12, %v4769_v38  ;;  %v5073_v61 = vmul.f32 %v10393_v63, %v9768_v44  ;;  %v5654_v28 = vmul.f32 %v9840_v20, %v10444_v47  ;;  %v5751_v22 = vmul.f32 %v10298_v1, %v10449_v30 }
 0x69b   : > { %v5987_v17 = vpop.f32.mrf.mxu0  ;;  %v5590_v18 = vadd.f32 %v5558_v46, %v5492_v21  ;;  %v5849_v2 = vmax.f32 %v5817_v8, 0.0 }
 0x69c   : > { %v4806_v19 = vmax.f32 %v4770_v3, 0.0  ;;  %v5988_v40 = vadd.f32 %v10291_v26, %v5987_v17  ;;  %v5491_v3 = vadd.f32 %v5459_v51, %v5394_v14  ;;  %v5203_v17 = vadd.f32 %v5171_v50, %v5106_v9 }
 0x69d   : > { %v5870_v31 = vpack.c.bf16 %v5850_v11, %v5849_v2  ;;  %v5105_v14 = vadd.f32 %v5073_v61, %v4976_v52  ;;  %v5365_v11 = vmul.f32 %v5622_v33, %v9823_v55 }
 0x69e   : > { %4912 = vst.msk [vmem:[#allocation4 + $0x1f0] sm:$0xff] %vm4809_vm6, %v4806_v19  ;;  %v6060_v38 = vadd.f32 %v5988_v40, %v9520_v56  ;;  %v5655_v19 = vmul.f32 %v9840_v20, %v5622_v33  ;;  %v5589_v56 = vadd.f32 %v5557_v41, %v5491_v3  ;;  %v5752_v40 = vmul.f32 %v10298_v1, %v5719_v48 }
 0x69f   : > { %v5300_v63 = vadd.f32 %v5268_v62, %v5203_v17  ;;  %v5267_v41 = vmul.f32 %v10428_v25, %v9797_v4  ;;  %v5076_v62 = vmul.f32 %v5622_v33, %v9768_v44 }
 0x6a0   : > { %v6096_v16 = vsel %vm4635_vm5, %v6060_v38, 0.0  ;;  %v5687_v46 = vadd.f32 %v5655_v19, %v5590_v18  ;;  %v5686_v21 = vadd.f32 %v5654_v28, %v5589_v56 }
 0x6a1   : > { %v4772_v23 = vpop.f32.mrf.mxu3  ;;  %v6097_v57 = vadd.f32 %v6096_v16, %v6095_v36  ;;  %v5170_v36 = vmul.f32 %v10396_v53, %v9781_v0  ;;  %v5397_v16 = vadd.f32 %v5365_v11, %v5300_v63 }
 0x6a2   : > { %v4773_v32 = vadd.f32 %v10170_v12, %v4772_v23  ;;  %v5784_v38 = vadd.f32 %v5752_v40, %v5687_v46  ;;  %v5783_v3 = vadd.f32 %v5751_v22, %v5686_v21  ;;  %v10485_v46 = vld [vmem:[#allocation4 + $0x1e7] sm:$0xff] }
 0x6a3   : > { %v5990_v8 = vpop.f32.mrf.mxu0  ;;  %v5559_v40 = vmul.f32 %v9837_v27, %v10485_v46 }
 0x6a4   : > { %v4807_v42 = vmax.f32 %v4773_v32, 0.0  ;;  %v5991_v51 = vadd.f32 %v10291_v26, %v5990_v8  ;;  %v5202_v32 = vadd.f32 %v5170_v36, %v5105_v14  ;;  %v5820_v56 = vadd.f32 %v10319_v6, %v5784_v38 }
 0x6a5   : > { %v10470_v18 = vld [vmem:[#allocation4 + $0x1ef] sm:$0xff]  ;;  %v5819_v33 = vadd.f32 %v10319_v6, %v5783_v3  ;;  %v5075_v3 = vmul.f32 %v10444_v47, %v9768_v44 }
 0x6a6   : > { %4913 = vst.msk [vmem:[#allocation4 + $0x208] sm:$0xff] %vm4809_vm6, %v4807_v42  ;;  %v6061_v9 = vadd.f32 %v5991_v51, %v9533_v34  ;;  %6636 = vmatmul.msk.bf16.gmra.mxu0 %vm4809_vm6, %v5870_v31  ;;  %v5299_v19 = vadd.f32 %v5267_v41, %v5202_v32  ;;  %v4979_v34 = vmul.f32 %v10419_v58, %v9765_v10  ;;  %v5624_v28 = vld [vmem:[#allocation4 + $0x1f0] sm:$0xff]  ;;  %v5852_v22 = vmax.f32 %v5820_v56, 0.0 }
 0x6a7   : > { %v5560_v52 = vmul.f32 %v9837_v27, %v10470_v18  ;;  %v5364_v31 = vmul.f32 %v10444_v47, %v9823_v55  ;;  %v5851_v41 = vmax.f32 %v5819_v33, 0.0  ;;  %v5657_v38 = vmul.f32 %v9840_v20, %v5624_v28  ;;  %v5720_v32 = vld [vmem:[#allocation4 + $0x1e9] sm:$0xff] }
 0x6a8   : > { %v6098_v2 = vsel %vm4635_vm5, %v6061_v9, 0.0  ;;  %v5108_v36 = vadd.f32 %v5076_v62, %v4979_v34  ;;  %v5623_v9 = vld [vmem:[#allocation4 + $0x1e8] sm:$0xff]  ;;  %v5172_v56 = vmul.f32 %v10449_v30, %v9781_v0  ;;  %v5269_v47 = vmul.f32 %v10485_v46, %v9797_v4 }
 0x6a9   : > { %v4774_v23 = vpop.f32.mrf.mxu3  ;;  %v6099_v42 = vadd.f32 %v6098_v2, %v6097_v57  ;;  %v5461_v57 = vmul.f32 %v10449_v30, %v9831_v59  ;;  %v5396_v8 = vadd.f32 %v5364_v31, %v5299_v19  ;;  %v4978_v2 = vmul.f32 %v10428_v25, %v9765_v10 }
 0x6aa   : > { %v4775_v53 = vadd.f32 %v10170_v12, %v4774_v23  ;;  %v5462_v12 = vmul.f32 %v5719_v48, %v9831_v59  ;;  %v5173_v23 = vmul.f32 %v5719_v48, %v9781_v0  ;;  %v5656_v62 = vmul.f32 %v9840_v20, %v5623_v9 }
 0x6ab   : > { %v5992_v61 = vpop.f32.mrf.mxu0  ;;  %v5493_v21 = vadd.f32 %v5461_v57, %v5396_v8  ;;  %v5367_v33 = vmul.f32 %v5624_v28, %v9823_v55 }
 0x6ac   : > { %v4808_v50 = vmax.f32 %v4775_v53, 0.0  ;;  %v5993_v58 = vadd.f32 %v10291_v26, %v5992_v61  ;;  %v5494_v17 = vadd.f32 %v5462_v12, %v5397_v16  ;;  %v5270_v53 = vmul.f32 %v10470_v18, %v9797_v4 }
 0x6ad   : > { %v5591_v48 = vadd.f32 %v5559_v40, %v5493_v21  ;;  %v5205_v19 = vadd.f32 %v5173_v23, %v5108_v36  ;;  %v5753_v12 = vmul.f32 %v10298_v1, %v5720_v32  ;;  %v5107_v61 = vadd.f32 %v5075_v3, %v4978_v2  ;;  %v5528_v2 = vld [vmem:[#allocation4 + $0x207] sm:$0xff] }
 0x6ae   : > { %4914 = vst.msk [vmem:[#allocation4 + $0x210] sm:$0xff] %vm4809_vm6, %v4808_v50  ;;  %v6062_v51 = vadd.f32 %v5993_v58, %v9536_v54  ;;  %v5592_v63 = vadd.f32 %v5560_v52, %v5494_v17  ;;  %v5721_v54 = vld [vmem:[#allocation4 + $0x1f1] sm:$0xff]  ;;  %v5871_v50 = vpack.c.bf16 %v5852_v22, %v5851_v41  ;;  %v5078_v21 = vmul.f32 %v5624_v28, %v9768_v44 }
 0x6af   : > { %v5754_v52 = vmul.f32 %v10298_v1, %v5721_v54  ;;  %v5302_v25 = vadd.f32 %v5270_v53, %v5205_v19  ;;  %v5688_v57 = vadd.f32 %v5656_v62, %v5591_v48  ;;  %v5204_v30 = vadd.f32 %v5172_v56, %v5107_v61 }
 0x6b0   : > { %v6100_v14 = vsel %vm4635_vm5, %v6062_v51, 0.0  ;;  %v5689_v16 = vadd.f32 %v5657_v38, %v5592_v63  ;;  %v4981_v63 = vmul.f32 %v10470_v18, %v9765_v10  ;;  %v5464_v23 = vmul.f32 %v5721_v54, %v9831_v59 }
 0x6b1   : > { %v6101_v11 = vadd.f32 %v6100_v14, %v6099_v42  ;;  %v5785_v36 = vadd.f32 %v5753_v12, %v5688_v57  ;;  %v5399_v51 = vadd.f32 %v5367_v33, %v5302_v25  ;;  %v5301_v40 = vadd.f32 %v5269_v47, %v5204_v30  ;;  %v5625_v47 = vld [vmem:[#allocation4 + $0x208] sm:$0xff] }
 0x6b2   : > { %v5786_v58 = vadd.f32 %v5754_v52, %v5689_v16  ;;  %v5366_v38 = vmul.f32 %v5623_v9, %v9823_v55  ;;  %v5463_v53 = vmul.f32 %v5720_v32, %v9831_v59  ;;  %v5110_v28 = vadd.f32 %v5078_v21, %v4981_v63 }
 0x6b3   : > { %v5995_v34 = vpop.f32.mrf.mxu0  ;;  %v5821_v3 = vadd.f32 %v10319_v6, %v5785_v36  ;;  %v5077_v12 = vmul.f32 %v5623_v9, %v9768_v44  ;;  %v5175_v52 = vmul.f32 %v5721_v54, %v9781_v0  ;;  %v5174_v30 = vmul.f32 %v5720_v32, %v9781_v0 }
 0x6b4   : > { %v5996_v42 = vadd.f32 %v10291_v26, %v5995_v34  ;;  %v5398_v18 = vadd.f32 %v5366_v38, %v5301_v40  ;;  %v5561_v34 = vmul.f32 %v9837_v27, %v5528_v2  ;;  %v5658_v9 = vmul.f32 %v9840_v20, %v5625_v47 }
 0x6b5   : > { %v5529_v17 = vld [vmem:[#allocation4 + $0x20f] sm:$0xff]  ;;  %v5853_v61 = vmax.f32 %v5821_v3, 0.0 }
 0x6b6   : > { %v6063_v31 = vadd.f32 %v5996_v42, %v9552_v45  ;;  %6637 = vmatmul.msk.bf16.gmra.mxu0 %vm4809_vm6, %v5871_v50  ;;  %v5822_v45 = vadd.f32 %v10319_v6, %v5786_v58  ;;  %v5562_v14 = vmul.f32 %v9837_v27, %v5529_v17  ;;  %v5496_v50 = vadd.f32 %v5464_v23, %v5399_v51  ;;  %v5626_v48 = vld [vmem:[#allocation4 + $0x210] sm:$0xff] }
 0x6b7   : > { %v5495_v56 = vadd.f32 %v5463_v53, %v5398_v18  ;;  %v4980_v42 = vmul.f32 %v10485_v46, %v9765_v10  ;;  %v5722_v58 = vld [vmem:[#allocation4 + $0x209] sm:$0xff]  ;;  %v5723_v33 = vld [vmem:[#allocation4 + $0x211] sm:$0xff]  ;;  %v5207_v46 = vadd.f32 %v5175_v52, %v5110_v28  ;;  %v5271_v51 = vmul.f32 %v5528_v2, %v9797_v4 }
 0x6b8   : > { %v6102_v8 = vsel %vm4635_vm5, %v6063_v31, 0.0  ;;  %v5854_v19 = vmax.f32 %v5822_v45, 0.0  ;;  %v5594_v62 = vadd.f32 %v5562_v14, %v5496_v50  ;;  %v5659_v31 = vmul.f32 %v9840_v20, %v5626_v48 }
 0x6b9   : > { %v6103_v22 = vadd.f32 %v6102_v8, %v6101_v11  ;;  %v5593_v36 = vadd.f32 %v5561_v34, %v5495_v56  ;;  %v5109_v54 = vadd.f32 %v5077_v12, %v4980_v42  ;;  %v5755_v63 = vmul.f32 %v10298_v1, %v5722_v58  ;;  %v5628_v56 = vld [vmem:[#allocation4 + $0x230] sm:$0xff] }
 0x6ba   : > { %v5872_v8 = vpack.c.bf16 %v5854_v19, %v5853_v61  ;;  %v5691_v10 = vadd.f32 %v5659_v31, %v5594_v62  ;;  %v5369_v23 = vmul.f32 %v5626_v48, %v9823_v55  ;;  %v5368_v2 = vmul.f32 %v5625_v47, %v9823_v55 }
 0x6bb   : > { %v5997_v41 = vpop.f32.mrf.mxu0  ;;  %v5206_v21 = vadd.f32 %v5174_v30, %v5109_v54  ;;  %v5690_v32 = vadd.f32 %v5658_v9, %v5593_v36  ;;  %v5465_v50 = vmul.f32 %v5722_v58, %v9831_v59  ;;  %v5661_v31 = vmul.f32 %v9840_v20, %v5628_v56  ;;  %v5724_v36 = vld [vmem:[#allocation4 + $0x229] sm:$0xff] }
 0x6bc   : > { %v5998_v11 = vadd.f32 %v10291_v26, %v5997_v41  ;;  %v5757_v9 = vmul.f32 %v10298_v1, %v5724_v36 }
 0x6bd   : > { %v5303_v14 = vadd.f32 %v5271_v51, %v5206_v21 }
 0x6be   : > { %v6064_v16 = vadd.f32 %v5998_v11, %v9555_v7  ;;  %v5272_v7 = vmul.f32 %v5529_v17, %v9797_v4  ;;  %v5756_v17 = vmul.f32 %v10298_v1, %v5723_v33  ;;  %v5787_v4 = vadd.f32 %v5755_v63, %v5690_v32  ;;  %v5531_v11 = vld [vmem:[#allocation4 + $0x22f] sm:$0xff] }
 0x6bf   : > { %v5400_v28 = vadd.f32 %v5368_v2, %v5303_v14  ;;  %v5564_v62 = vmul.f32 %v9837_v27, %v5531_v11 }
 0x6c0   : > { %v6104_v25 = vsel %vm4635_vm5, %v6064_v16, 0.0  ;;  %v5788_v45 = vadd.f32 %v5756_v17, %v5691_v10  ;;  %v5530_v16 = vld [vmem:[#allocation4 + $0x227] sm:$0xff]  ;;  %v5823_v19 = vadd.f32 %v10319_v6, %v5787_v4 }
 0x6c1   : > { %v6105_v57 = vadd.f32 %v6104_v25, %v6103_v22  ;;  %v5304_v22 = vadd.f32 %v5272_v7, %v5207_v46  ;;  %v5497_v12 = vadd.f32 %v5465_v50, %v5400_v28  ;;  %v5563_v52 = vmul.f32 %v9837_v27, %v5530_v16  ;;  %v5627_v25 = vld [vmem:[#allocation4 + $0x228] sm:$0xff] }
 0x6c2   : > { %v5824_v3 = vadd.f32 %v10319_v6, %v5788_v45  ;;  %v5855_v61 = vmax.f32 %v5823_v19, 0.0  ;;  %v5660_v30 = vmul.f32 %v9840_v20, %v5627_v25 }
 0x6c3   : > { %v6000_v44 = vpop.f32.mrf.mxu0  ;;  %v5401_v38 = vadd.f32 %v5369_v23, %v5304_v22 }
 0x6c4   : > { %v6001_v40 = vadd.f32 %v10291_v26, %v6000_v44  ;;  %v5856_v42 = vmax.f32 %v5824_v3, 0.0 }
 0x6c6   : > { %v6065_v0 = vadd.f32 %v6001_v40, %v9568_v49  ;;  %6638 = vmatmul.msk.bf16.gmra.mxu0 %vm4809_vm6, %v5872_v8  ;;  %v5466_v49 = vmul.f32 %v5723_v33, %v9831_v59  ;;  %v5873_v58 = vpack.c.bf16 %v5856_v42, %v5855_v61  ;;  %v5595_v33 = vadd.f32 %v5563_v52, %v5497_v12 }
 0x6c8   : > { %v6106_v41 = vsel %vm4635_vm5, %v6065_v0, 0.0  ;;  %v5498_v34 = vadd.f32 %v5466_v49, %v5401_v38  ;;  %v5692_v44 = vadd.f32 %v5660_v30, %v5595_v33 }
 0x6c9   : > { %v6107_v53 = vadd.f32 %v6106_v41, %v6105_v57  ;;  %v5725_v57 = vld [vmem:[#allocation4 + $0x231] sm:$0xff] }
 0x6ca   : > { %v5596_v47 = vadd.f32 %v5564_v62, %v5498_v34  ;;  %v5758_v27 = vmul.f32 %v10298_v1, %v5725_v57  ;;  %v5789_v63 = vadd.f32 %v5757_v9, %v5692_v44  ;;  %v6705_v44 = vld [vmem:[%s10711_s25 + $0x20] sm:$0xff] }
 0x6cb   : > { %v6002_v18 = vpop.f32.mrf.mxu0 }
 0x6cc   : > { %v6003_v48 = vadd.f32 %v10291_v26, %v6002_v18  ;;  %v5693_v10 = vadd.f32 %v5661_v31, %v5596_v47  ;;  %v5825_v0 = vadd.f32 %v10319_v6, %v5789_v63  ;;  %v10991_v63 = vld [vmem:[#allocation26_spill] sm:$0xff] }
 0x6ce   : > { %v6066_v55 = vadd.f32 %v6003_v48, %v9571_v24  ;;  %v5790_v51 = vadd.f32 %v5758_v27, %v5693_v10  ;;  %v5857_v23 = vmax.f32 %v5825_v0, 0.0 }
 0x6d0   : > { %v6108_v59 = vsel %vm4635_vm5, %v6066_v55, 0.0  ;;  %v5826_v22 = vadd.f32 %v10319_v6, %v5790_v51  ;;  %v6708_v6 = vld [vmem:[%s10711_s25 + $0x38] sm:$0xff] }
 0x6d1   : > { %v6109_v7 = vadd.f32 %v6108_v59, %v6107_v53  ;;  %6257 = vmatpush.bf16.msra.mxu2 %v6708_v6  ;;  %v10995_v6 = vld [vmem:[#allocation29_spill] sm:$0xff] }
 0x6d2   : > { %v5858_v32 = vmax.f32 %v5826_v22, 0.0  ;;  %v10992_v22 = vld [vmem:[#allocation20_spill] sm:$0xff] }
 0x6d3   : > { %v6005_v8 = vpop.f32.mrf.mxu0 }
 0x6d4   : > { %v6006_v24 = vadd.f32 %v10291_v26, %v6005_v8  ;;  %v5874_v41 = vpack.c.bf16 %v5858_v32, %v5857_v23  ;;  %v10993_v32 = vld [vmem:[#allocation27_spill] sm:$0xff] }
 0x6d6   : > { %v6067_v46 = vadd.f32 %v6006_v24, %v9584_v15  ;;  %6639 = vmatmul.msk.bf16.gmra.mxu0 %vm4809_vm6, %v5873_v58  ;;  %v6706_v24 = vld [vmem:[%s10711_s25 + $0x28] sm:$0xff] }
 0x6d8   : > { %v6110_v54 = vsel %vm4635_vm5, %v6067_v46, 0.0 }
 0x6d9   : > { %v6111_v40 = vadd.f32 %v6110_v54, %v6109_v7 }
 0x6db   : > { %v6007_v20 = vpop.f32.mrf.mxu0 }
 0x6dc   : > { %v6008_v17 = vadd.f32 %v10291_v26, %v6007_v20 }
 0x6de   : > { %v6068_v21 = vadd.f32 %v6008_v17, %v9587_v29  ;;  %v6700_v29 = vld [vmem:[%s10709_s23] sm:$0xff] }
 0x6df   : > { %6184 = vmatpush.bf16.msrb.mxu1 %v6700_v29 }
 0x6e0   : > { %v6112_v15 = vsel %vm4635_vm5, %v6068_v21, 0.0 }
 0x6e1   : > { %v6113_v45 = vadd.f32 %v6112_v15, %v6111_v40 }
 0x6e3   : > { %v6010_v1 = vpop.f32.mrf.mxu0 }
 0x6e4   : > { %v6011_v14 = vadd.f32 %v10291_v26, %v6010_v1 }
 0x6e6   : > { %v6069_v4 = vadd.f32 %v6011_v14, %v9604_v13  ;;  %6640 = vmatmul.msk.bf16.gmra.mxu0 %vm4809_vm6, %v5874_v41  ;;  %v10994_v41 = vld [vmem:[#allocation28_spill] sm:$0xff] }
 0x6e8   : > { %v6114_v38 = vsel %vm4635_vm5, %v6069_v4, 0.0 }
 0x6e9   : > { %v6115_v53 = vadd.f32 %v6114_v38, %v6113_v45 }
 0x6eb   : > { %v6012_v2 = vpop.f32.mrf.mxu0 }
 0x6ec   : > { %v6013_v11 = vadd.f32 %v10291_v26, %v6012_v2 }
 0x6ee   : > { %v6070_v13 = vadd.f32 %v6013_v11, %v9607_v35 }
 0x6f0   : > { %v6116_v3 = vsel %vm4635_vm5, %v6070_v13, 0.0 }
 0x6f1   : > { %v6117_v50 = vadd.f32 %v6116_v3, %v6115_v53 }
 0x6f3   : > { %v6015_v49 = vpop.f32.mrf.mxu0 }
 0x6f4   : > { %v6016_v18 = vadd.f32 %v10291_v26, %v6015_v49 }
 0x6f6   : > { %v6071_v28 = vadd.f32 %v6016_v18, %v9645_v37  ;;  %v6707_v37 = vld [vmem:[%s10711_s25 + $0x30] sm:$0xff] }
 0x6f7   : > { %6258 = vmatpush.bf16.msra.mxu2 %v6707_v37 }
 0x6f8   : > { %v6118_v16 = vsel %vm4635_vm5, %v6071_v28, 0.0 }
 0x6f9   : > { %v6119_v48 = vadd.f32 %v6118_v16, %v6117_v50  ;;  %v10996_v50 = vld [vmem:[#allocation13_spill] sm:$0xff] }
 0x6fb   : > { %v6017_v19 = vpop.f32.mrf.mxu0  ;;  %6259 = vmatpush.bf16.msra.mxu2 %v6706_v24  ;;  %v6701_v24 = vld [vmem:[%s10711_s25] sm:$0xff] }
 0x6fc   : > { %v6018_v34 = vadd.f32 %v10291_v26, %v6017_v19 }
 0x6fe   : > { %v6072_v62 = vadd.f32 %v6018_v34, %v9648_v5 }
 0x6ff   : > { %6260 = vmatpush.bf16.msra.mxu2 %v6705_v44 }
 0x700   : > { %v6120_v56 = vsel %vm4635_vm5, %v6072_v62, 0.0 }
 0x701   : > { %v6121_v55 = vadd.f32 %v6120_v56, %v6119_v48  ;;  %v10997_v48 = vld [vmem:[#allocation14_spill] sm:$0xff] }
 0x703   : > { %v6020_v35 = vpop.f32.mrf.mxu0 }
 0x704   : > { %v6021_v42 = vadd.f32 %v10291_v26, %v6020_v35 }
 0x706   : > { %v6073_v12 = vadd.f32 %v6021_v42, %v9691_v60  ;;  %v10990_v60 = vld [vmem:[#allocation25_spill] sm:$0xff] }
 0x708   : > { %v6122_v52 = vsel %vm4635_vm5, %v6073_v12, 0.0 }
 0x709   : > { %v6123_v25 = vadd.f32 %v6122_v52, %v6121_v55  ;;  %v6704_v55 = vld [vmem:[%s10711_s25 + $0x18] sm:$0xff] }
 0x70a   : > { %6261 = vmatpush.bf16.msra.mxu2 %v6704_v55 }
 0x70b   : > { %v6022_v59 = vpop.f32.mrf.mxu0 }
 0x70c   : > { %v6023_v61 = vadd.f32 %v10291_v26, %v6022_v59  ;;  %v10998_v59 = vld [vmem:[#allocation21_spill] sm:$0xff] }
 0x70e   : > { %v6074_v5 = vadd.f32 %v6023_v61, %v9696_v39 }
 0x710   : > { %v6124_v47 = vsel %vm4635_vm5, %v6074_v5, 0.0 }
 0x711   : > { %v6125_v31 = vadd.f32 %v6124_v47, %v6123_v25  ;;  %v6703_v25 = vld [vmem:[%s10711_s25 + $0x10] sm:$0xff] }
 0x712   : > { %6262 = vmatpush.bf16.msra.mxu2 %v6703_v25 }
 0x713   : > { %v6025_v7 = vpop.f32.mrf.mxu0 }
 0x714   : > { %v6026_v57 = vadd.f32 %v10291_v26, %v6025_v7 }
 0x716   : > { %v6075_v58 = vadd.f32 %v6026_v57, %v10990_v60 }
 0x718   : > { %v6126_v33 = vsel %vm4635_vm5, %v6075_v58, 0.0 }
 0x719   : > { %v6127_v30 = vadd.f32 %v6126_v33, %v6125_v31  ;;  %v10999_v31 = vld [vmem:[#allocation15_spill] sm:$0xff] }
 0x71b   : > { %v6027_v8 = vpop.f32.mrf.mxu0 }
 0x71c   : > { %v6028_v54 = vadd.f32 %v10291_v26, %v6027_v8 }
 0x71e   : > { %v6076_v20 = vadd.f32 %v6028_v54, %v10991_v63 }
 0x720   : > { %v6128_v15 = vsel %vm4635_vm5, %v6076_v20, 0.0 }
 0x721   : > { %v6129_v53 = vadd.f32 %v6128_v15, %v6127_v30 }
 0x723   : > { %v6030_v36 = vpop.f32.mrf.mxu0 }
 0x724   : > { %v6031_v40 = vadd.f32 %v10291_v26, %v6030_v36 }
 0x726   : > { %v6077_v21 = vadd.f32 %v6031_v40, %v10992_v22  ;;  %v6161_v22 = vld [vmem:[%s10710_s24] sm:$0x1] }
 0x728   : > { %v6130_v14 = vsel %vm4635_vm5, %v6077_v21, 0.0 }
 0x729   : > { %v6131_v13 = vadd.f32 %v6130_v14, %v6129_v53 }
 0x72b   : > { %v6032_v10 = vpop.f32.mrf.mxu0 }
 0x72c   : > { %v6033_v17 = vadd.f32 %v10291_v26, %v6032_v10  ;;  %v11000_v10 = vld [vmem:[#allocation22_spill] sm:$0xff] }
 0x72e   : > { %v6078_v45 = vadd.f32 %v6033_v17, %v10993_v32 }
 0x730   : > { %v6132_v29 = vsel %vm4635_vm5, %v6078_v45, 0.0 }
 0x731   : > { %v6133_v28 = vadd.f32 %v6132_v29, %v6131_v13 }
 0x733   : > { %v6035_v39 = vpop.f32.mrf.mxu0 }
 0x734   : > { %v6036_v0 = vadd.f32 %v10291_v26, %v6035_v39 }
 0x736   : > { %v6079_v4 = vadd.f32 %v6036_v0, %v10994_v41 }
 0x738   : > { %v6134_v3 = vsel %vm4635_vm5, %v6079_v4, 0.0 }
 0x739   : > { %v6135_v62 = vadd.f32 %v6134_v3, %v6133_v28 }
 0x73b   : > { %v6037_v27 = vpop.f32.mrf.mxu0 }
 0x73c   : > { %v6038_v23 = vadd.f32 %v10291_v26, %v6037_v27 }
 0x73e   : > { %v6080_v2 = vadd.f32 %v6038_v23, %v10995_v6  ;;  %v6208_v23 = vld [vmem:[%s10712_s26] sm:$0x1] }
 0x740   : > { %v6136_v16 = vsel %vm4635_vm5, %v6080_v2, 0.0 }
 0x741   : > { %v6137_v52 = vadd.f32 %v6136_v16, %v6135_v62 }
 0x743   : > { %v6040_v46 = vpop.f32.mrf.mxu0 }
 0x744   : > { %v6041_v38 = vadd.f32 %v10291_v26, %v6040_v46 }
 0x746   : > { %v6081_v49 = vadd.f32 %v6041_v38, %v10996_v50 }
 0x748   : > { %v6138_v35 = vsel %vm4635_vm5, %v6081_v49, 0.0 }
 0x749   : > { %v6139_v5 = vadd.f32 %v6138_v35, %v6137_v52 }
 0x74b   : > { %v6042_v9 = vpop.f32.mrf.mxu0 }
 0x74c   : > { %v6043_v11 = vadd.f32 %v10291_v26, %v6042_v9 }
 0x74e   : > { %v6082_v19 = vadd.f32 %v6043_v11, %v10997_v48 }
 0x750   : > { %v6140_v37 = vsel %vm4635_vm5, %v6082_v19, 0.0 }
 0x751   : > { %v6141_v57 = vadd.f32 %v6140_v37, %v6139_v5 }
 0x753   : > { %v6045_v51 = vpop.f32.mrf.mxu0 }
 0x754   : > { %v6046_v18 = vadd.f32 %v10291_v26, %v6045_v51 }
 0x756   : > { %v6083_v42 = vadd.f32 %v6046_v18, %v9984_v43  ;;  %v6702_v43 = vld [vmem:[%s10711_s25 + $0x8] sm:$0xff] }
 0x757   : > { %6263 = vmatpush.bf16.msra.mxu2 %v6702_v43 }
 0x758   : > { %v6142_v47 = vsel %vm4635_vm5, %v6083_v42, 0.0 }
 0x759   : > { %v6143_v58 = vadd.f32 %v6142_v47, %v6141_v57 }
 0x75b   : > { %v6047_v1 = vpop.f32.mrf.mxu0  ;;  %6264 = vmatpush.bf16.msra.mxu2 %v6701_v24 }
 0x75c   : > { %v6048_v34 = vadd.f32 %v10291_v26, %v6047_v1 }
 0x75e   : > { %v6084_v61 = vadd.f32 %v6048_v34, %v10998_v59 }
 0x760   : > { %v6144_v60 = vsel %vm4635_vm5, %v6084_v61, 0.0 }
 0x761   : > { %v6145_v36 = vadd.f32 %v6144_v60, %v6143_v58 }
 0x763   : > { %v6050_v56 = vpop.f32.mrf.mxu0 }
 0x764   : > { %v6051_v12 = vadd.f32 %v10291_v26, %v6050_v56 }
 0x766   : > { %v6085_v7 = vadd.f32 %v6051_v12, %v10999_v31 }
 0x768   : > { %v6146_v30 = vsel %vm4635_vm5, %v6085_v7, 0.0 }
 0x769   : > { %v6147_v27 = vadd.f32 %v6146_v30, %v6145_v36 }
 0x76b   : > { %v6052_v33 = vpop.f32.mrf.mxu0 }
 0x76c   : > { %v6053_v8 = vadd.f32 %v10291_v26, %v6052_v33 }
 0x76e   : > { %v6086_v39 = vadd.f32 %v6053_v8, %v11000_v10 }
 0x770   : > { %v6148_v46 = vsel %vm4635_vm5, %v6086_v39, 0.0 }
 0x771   : > { %v6149_v44 = vadd.f32 %v6148_v46, %v6147_v27 }
 0x773   : > { %v6150_v9 = vrot.slane %v6149_v44, 4 }
 0x775   : > { %v6151_v54 = vadd.f32 %v6150_v9, %v6149_v44 }
 0x777   : > { %v6152_v51 = vrot.slane %v6151_v54, 2 }
 0x779   : > { %v6153_v40 = vadd.f32 %v6152_v51, %v6151_v54 }
 0x77b   : > { %v6154_v26 = vrot.slane %v6153_v40, 1 }
 0x77d   : > { %v6155_v63 = vadd.f32 %v6154_v26, %v6153_v40 }
 0x77f   : > { %v6156_v20 = vmul.f32 0.00390625, %v6155_v63 }
 0x781   : > { %v6157_v17 = vpack.c.bf16 %v6156_v20, %v6156_v20 }
 0x783   : > { %6645 = vmatmul.msk.bf16.vlgmr.msrb.gmra.mxu1 %vm4635_vm5, %v6157_v17 }
 0x800   : > { %v6186_v21 = vpop.f32.mrf.mxu1 }
 0x801   : > { %v6187_v0 = vadd.f32 %v6186_v21, %v6161_v22 }
 0x803   : > { %v6190_v15 = vmax.f32 %v6187_v0, 0.0 }
 0x805   : > { %v6191_v32 = vpack.c.bf16 %v6190_v15, %v6190_v15 }
 0x807   : > { %6265 = vmatmul.bf16.vlgmr.msra.gmra.mxu2 %v6191_v32 }
 0x808   : > { %v6188_v45 = vpop.f32.mrf.mxu1 }
 0x88a   : > { %v6266_v1 = vpop.f32.mrf.mxu2 }
 0x88b   : > { %v6267_v14 = vadd.f32 %v6266_v1, %v6208_v23 }
 0x88d   : > { %6271 = vst.msk [vmem:[%s810_s3] sm:$0x1] %vm6270_vm7, %v6267_v14 }
 0x88e   : > { %6806 = shalt.err (!%p6803_p3)
}
 0x88f   : > { %6713 = dma.vmem_to_hbm [thread:$0]  (%p7022_p5), %s6284_s12, 16, %s6286_s8, %s6273_s7  }
 0x892   : > { %v6268_v41 = vpop.f32.mrf.mxu2 }
 0x893 PF: > { %s11001_s2 = sld [smem:[#allocation8_spill]]  ;;  %p6719_p4 = scmp.ge.s32.totalorder %s6841_s30, 2 }
 0x895   : > { %p6716_p7 = pnand %p6719_p4, %p7026_p6 }
 0x897   : > { %p6717_p8 = pneg %p6716_p7 }
 0x899   : > { %s6297_s3 = sand.u32 1, %s11001_s2  }
 0x89a   : > { %s6298_s9 = scalar_lea.sflag [#allocation6], %s6297_s3 }
 0x89b   : > { %6824 = dma.done.wait (%p6717_p8), %s6298_s9, 16  }
 0x89c   : > { %6826 = vsyncadd (%p6717_p8), %s6298_s9, 4294967280  ;;  %s11003_s30 = sld [smem:[#allocation10_spill]]  ;;  %s11006_s7 = smov %s6833_s4 }
 0x89d   : > { %s11004_s13 = sld [smem:[#allocation9_spill]] }
 0x89e   : > { %s11005_s8 = sld [smem:[#allocation11_spill]] }
 0x8a2   : > { %p37_p9 = scmp.ge.s32.totalorder %s11003_s30, 4  }
 0x8a3   : > { %s11007_s4 = smov %s11004_s13 }
 0x8a4   :  { %39 = sbr.rel (!%p37_p9) target bundleno = 19 (0x13), region = 173 }
 0x8a9   :  { %6303 = vsyncpa [#allocation6], 1 }
 0x8aa   :  { %6305 = vsyncpa [#allocation6 + $0x1], 1 }

</bundles_post_ra>
